<compile_context>
chip_gen: v7x
topology: tpu7x:2x2x1
jax: 0.10.0
libtpu: 0.0.40
codegen_flags: <defaults>
</compile_context>

<pallas_src>
import functools

import jax
import jax.numpy as jnp
from jax.experimental import pallas as pl
from jax.experimental.pallas import tpu as pltpu

_C1, _C2 = 32, 64  # conv1 / conv2 output channels (as in the PyTorch module)


# --------------------------------------------------------------------------- kernel

def _fused_kernel(
    x_ref, tab_ref,
    w1_ref, s1_ref, b1_ref,
    w2_ref, s2_ref, b2_ref,
    wt_ref, st_ref, bt_ref,
    wci_ref, wct_ref, bc1_ref,
    wa1_ref, ba1_ref, wa2_ref, ba2_ref,
    wo_ref, bo_ref,
    o_ref,
    xpad_sc, col1_sc, hmax1_sc, y1pad_sc, col2_sc, hmax2_sc,
    *, B, H, W):
    """Entire MultimodalCancerModel forward for the whole batch in one kernel."""
    C1, C2 = _C1, _C2
    H2, W2 = H // 2, W // 2      # spatial after first MaxPool2d(2)
    H4, W4 = H // 4, W // 4      # spatial after second MaxPool2d(2)

    # ---- stage 0: zero-pad the input inside VMEM (no XLA pad op) -------------------
    xpad_sc[...] = jnp.zeros_like(xpad_sc)
    xpad_sc[:, pl.ds(1, H), pl.ds(1, W), :] = x_ref[...]                  # (B,H,W,1)

    # ---- stage 1: conv1 (1->32, 3x3, pad=1) as a single im2col matmul ---------------
    # col1[(b,h,w), tap] = xpad[b, h+dy, w+dx],  tap = dy*3 + dx
    for tap in range(9):
        dy, dx = divmod(tap, 3)
        p = xpad_sc[:, pl.ds(dy, H), pl.ds(dx, W), :]                     # (B,H,W,1)
        col1_sc[:, tap:tap + 1] = p.reshape(B * H * W, 1)
    y1 = jnp.dot(col1_sc[...], w1_ref[...], preferred_element_type=jnp.float32)
    y1 = jnp.maximum(y1 * s1_ref[...] + b1_ref[...], 0.0)                 # BN + ReLU, (B*H*W, C1)

    # ---- stage 2: fused 2x2 MaxPool #1 ----------------------------------------------
    # rows of y1 are ordered (b, h, w); pool h via whole-vreg slices, w via stride-2 loads
    r1 = y1.reshape(B * H2, 2 * W, C1)
    hmax1 = jnp.maximum(r1[:, :W, :], r1[:, W:, :])                       # (B*H2, W, C1)
    hmax1_sc[...] = hmax1.reshape(B * H2 * W, C1)
    pooled1 = jnp.maximum(hmax1_sc[pl.ds(0, B * H2 * W2, stride=2), :],
                          hmax1_sc[pl.ds(1, B * H2 * W2, stride=2), :])   # (B*H2*W2, C1), (b,h2,w2)

    # ---- stage 3: re-pad the pooled activation for conv2 (still in VMEM) ------------
    y1pad_sc[...] = jnp.zeros_like(y1pad_sc)
    y1pad_sc[:, pl.ds(1, H2), pl.ds(1, W2), :] = pooled1.reshape(B, H2, W2, C1)

    # ---- stage 4: conv2 (32->64, 3x3, pad=1) as one K=288 bf16 matmul ----------------
    for tap in range(9):
        dy, dx = divmod(tap, 3)
        p = y1pad_sc[:, pl.ds(dy, H2), pl.ds(dx, W2), :]                  # (B,H2,W2,C1)
        col2_sc[:, tap * C1:(tap + 1) * C1] = (
            p.reshape(B * H2 * W2, C1).astype(jnp.bfloat16))
    y2 = jnp.dot(col2_sc[...], w2_ref[...], preferred_element_type=jnp.float32)
    y2 = jnp.maximum(y2 * s2_ref[...] + b2_ref[...], 0.0)                 # BN + ReLU, (B*H2*W2, C2)

    # ---- stage 5: fused 2x2 MaxPool #2 ----------------------------------------------
    r2 = y2.reshape(B * H4, 2 * W2, C2)
    hmax2 = jnp.maximum(r2[:, :W2, :], r2[:, W2:, :])                     # (B*H4, W2, C2)
    hmax2_sc[...] = hmax2.reshape(B * H4 * W2, C2)
    pooled2 = jnp.maximum(hmax2_sc[pl.ds(0, B * H4 * W4, stride=2), :],
                          hmax2_sc[pl.ds(1, B * H4 * W4, stride=2), :])   # (B*H4*W4, C2), (b,h2,w2)

    # ---- stage 6: AdaptiveAvgPool2d(1) -> (B, 64) image features ---------------------
    S = H4 * W4
    img = jnp.concatenate(
        [jnp.mean(pooled2[b * S:(b + 1) * S, :], axis=0, keepdims=True) for b in range(B)],
        axis=0)                                                           # (B, C2)

    # ---- stage 7: tabular net (Linear + folded BN1d + ReLU) --------------------------
    t = jnp.dot(tab_ref[...], wt_ref[...], preferred_element_type=jnp.float32)
    t = jnp.maximum(t * st_ref[...] + bt_ref[...], 0.0)                   # (B, 64)

    # ---- stage 8: classifier — concat folded into split Linear(128,128) weights ------
    h = (jnp.dot(img, wci_ref[...], preferred_element_type=jnp.float32)
         + jnp.dot(t, wct_ref[...], preferred_element_type=jnp.float32)
         + bc1_ref[...])                                                  # (B, 128)

    # AttentionBlock(128): sigmoid(Linear(64->128)(relu(Linear(128->64)(h)))) * h
    a1 = jnp.maximum(
        jnp.dot(h, wa1_ref[...], preferred_element_type=jnp.float32) + ba1_ref[...], 0.0)
    attn = jax.nn.sigmoid(
        jnp.dot(a1, wa2_ref[...], preferred_element_type=jnp.float32) + ba2_ref[...])
    hh = jnp.maximum(h * attn, 0.0)        # ReLU after attention; Dropout(0.3) == identity (eval)

    # Linear(128,1) as multiply + lane reduction (avoids an N=1 MXU pass) + Sigmoid
    logit = jnp.sum(hh * wo_ref[...], axis=1, keepdims=True) + bo_ref[...]
    o_ref[...] = jax.nn.sigmoid(logit)                                    # (B, 1)


# --------------------------------------------------------------------------- wrapper

def multimodal_cancer_model(params, image_nchw, tabular):
    """image_nchw: (B, 1, H, W) f32, tabular: (B, TAB) f32. Returns (B, 1) probabilities."""
    B, Cin, H, W = image_nchw.shape
    assert Cin == 1, "model expects a single input channel"
    assert H % 4 == 0 and W % 4 == 0, "two 2x2 max-pools require H, W divisible by 4"

    x = image_nchw.reshape(B, H, W, 1).astype(jnp.float32)  # NCHW with C=1 -> NHWC (pure view)
    tab = tabular.astype(jnp.float32)
    H2, W2, H4 = H // 2, W // 2, H // 4
    p = params

    args = (x, tab,
            p["w1"], p["s1"], p["b1"],
            p["w2"], p["s2"], p["b2"],
            p["w_tab"], p["s_tab"], p["b_tab"],
            p["w_c_img"], p["w_c_tab"], p["b_c1"],
            p["w_a1"], p["b_a1"], p["w_a2"], p["b_a2"],
            p["w_out"], p["b_out"])

    def full_spec(a):
        return pl.BlockSpec(a.shape, lambda i, nd=a.ndim: (0,) * nd)

    kernel = functools.partial(_fused_kernel, B=B, H=H, W=W)

    return pl.pallas_call(
        kernel,
        out_shape=jax.ShapeDtypeStruct((B, 1), jnp.float32),
        grid=(1,),
        in_specs=[full_spec(a) for a in args],
        out_specs=pl.BlockSpec((B, 1), lambda i: (0, 0)),
        scratch_shapes=[
            pltpu.VMEM((B, H + 2, W + 2, 1), jnp.float32),       # zero-padded input
            pltpu.VMEM((B * H * W, 9), jnp.float32),             # conv1 im2col
            pltpu.VMEM((B * H2 * W, _C1), jnp.float32),          # conv1 h-maxed rows
            pltpu.VMEM((B, H2 + 2, W2 + 2, _C1), jnp.float32),   # padded pooled1 for conv2
            pltpu.VMEM((B * H2 * W2, 9 * _C1), jnp.bfloat16),    # conv2 im2col (K=288, bf16)
            pltpu.VMEM((B * H4 * W2, _C2), jnp.float32),         # conv2 h-maxed rows
        ],
        compiler_params=pltpu.CompilerParams(dimension_semantics=("arbitrary",)),
    )(*args)


# --------------------------------------------------------------------------- params

def _bn_fold(gamma, beta, mean, var, lin_bias, eps=1e-5):
    # BN(y + b) = y * s + ((b - mean) * s + beta),  s = gamma / sqrt(var + eps)
    s = gamma / jnp.sqrt(var + eps)
    return s, (lin_bias - mean) * s + beta


def _bn_stats(n, seed):
    i = jnp.arange(n, dtype=jnp.float32)
    gamma = 1.0 + 0.05 * jnp.sin(i + seed)
    beta = 0.02 * jnp.cos(i + seed)
    mean = 0.01 * jnp.sin(0.5 * i + seed)
    var = 1.0 + 0.1 * jnp.cos(0.3 * i + seed) ** 2
    return gamma, beta, mean, var


def init_params(key, tabular_size):
    ks = jax.random.split(key, 8)

    def lin(k, fan_in, fan_out):
        kw, kb = jax.random.split(k)
        w = jax.random.normal(kw, (fan_in, fan_out), jnp.float32) / jnp.sqrt(float(fan_in))
        b = 0.01 * jax.random.normal(kb, (fan_out,), jnp.float32)
        return w, b

    p = {}
    # Conv2d(1, 32, 3, padding=1) + BatchNorm2d(32): im2col weight (9, 32), BN folded.
    w, b = lin(ks[0], 9, _C1)
    s, bb = _bn_fold(*_bn_stats(_C1, 1.0), b)
    p["w1"] = w
    p["s1"], p["b1"] = s.reshape(1, _C1), bb.reshape(1, _C1)
    # Conv2d(32, 64, 3, padding=1) + BatchNorm2d(64): im2col weight (288, 64) bf16, row = tap*32 + cin.
    w, b = lin(ks[1], 9 * _C1, _C2)
    s, bb = _bn_fold(*_bn_stats(_C2, 2.0), b)
    p["w2"] = w.astype(jnp.bfloat16)
    p["s2"], p["b2"] = s.reshape(1, _C2), bb.reshape(1, _C2)
    # tabular_net: Linear(tabular_size, 64) + BatchNorm1d(64)
    w, b = lin(ks[2], tabular_size, 64)
    s, bb = _bn_fold(*_bn_stats(64, 3.0), b)
    p["w_tab"] = w
    p["s_tab"], p["b_tab"] = s.reshape(1, 64), bb.reshape(1, 64)
    # classifier Linear(128, 128) — split so torch.cat([img(64), tab(64)]) folds into two matmuls
    w, b = lin(ks[3], 128, 128)
    p["w_c_img"], p["w_c_tab"] = w[:64], w[64:]
    p["b_c1"] = b.reshape(1, 128)
    # AttentionBlock(128): Linear(128, 64), Linear(64, 128)
    w, b = lin(ks[4], 128, 64)
    p["w_a1"], p["b_a1"] = w, b.reshape(1, 64)
    w, b = lin(ks[5], 64, 128)
    p["w_a2"], p["b_a2"] = w, b.reshape(1, 128)
    # classifier Linear(128, 1) — stored as a row for multiply + lane-reduce
    w, b = lin(ks[6], 128, 1)
    p["w_out"] = w.reshape(1, 128)
    p["b_out"] = b.reshape(1, 1)
    return p


# --------------------------------------------------------------------------- main

if __name__ == "__main__":
    B, H, W = 2, 16, 16
    TAB = 8

    key = jax.random.PRNGKey(0)
    k_img, k_tab, k_par = jax.random.split(key, 3)

    image = jax.random.normal(k_img, (B, 1, H, W), jnp.float32)   # NCHW like PyTorch
    tabular = jax.random.normal(k_tab, (B, TAB), jnp.float32)
    params = init_params(k_par, TAB)

    out = jax.jit(multimodal_cancer_model)(params, image, tabular)
    out = jax.block_until_ready(out)

    assert out.shape == (B, 1), out.shape
    assert bool(jnp.all(jnp.isfinite(out))), "non-finite output"
    assert bool(jnp.all((out > 0.0) & (out < 1.0))), "sigmoid output out of range"
    print("KERNEL_OK")
</pallas_src>

<mosaic_0001>
module attributes {stable_mosaic.version = 11 : i64} {
  func.func @_fused_kernel(%arg0: i32, %arg1: memref<2x16x16x1xf32, #tpu.memory_space<vmem>>, %arg2: memref<2x8xf32, #tpu.memory_space<vmem>>, %arg3: memref<9x32xf32, #tpu.memory_space<vmem>>, %arg4: memref<1x32xf32, #tpu.memory_space<vmem>>, %arg5: memref<1x32xf32, #tpu.memory_space<vmem>>, %arg6: memref<288x64xbf16, #tpu.memory_space<vmem>>, %arg7: memref<1x64xf32, #tpu.memory_space<vmem>>, %arg8: memref<1x64xf32, #tpu.memory_space<vmem>>, %arg9: memref<8x64xf32, #tpu.memory_space<vmem>>, %arg10: memref<1x64xf32, #tpu.memory_space<vmem>>, %arg11: memref<1x64xf32, #tpu.memory_space<vmem>>, %arg12: memref<64x128xf32, #tpu.memory_space<vmem>>, %arg13: memref<64x128xf32, #tpu.memory_space<vmem>>, %arg14: memref<1x128xf32, #tpu.memory_space<vmem>>, %arg15: memref<128x64xf32, #tpu.memory_space<vmem>>, %arg16: memref<1x64xf32, #tpu.memory_space<vmem>>, %arg17: memref<64x128xf32, #tpu.memory_space<vmem>>, %arg18: memref<1x128xf32, #tpu.memory_space<vmem>>, %arg19: memref<1x128xf32, #tpu.memory_space<vmem>>, %arg20: memref<1x1xf32, #tpu.memory_space<vmem>>, %arg21: memref<2x1xf32, #tpu.memory_space<vmem>>, %arg22: memref<2x18x18x1xf32, #tpu.memory_space<vmem>>, %arg23: memref<512x9xf32, #tpu.memory_space<vmem>>, %arg24: memref<256x32xf32, #tpu.memory_space<vmem>>, %arg25: memref<2x10x10x32xf32, #tpu.memory_space<vmem>>, %arg26: memref<128x288xbf16, #tpu.memory_space<vmem>>, %arg27: memref<64x64xf32, #tpu.memory_space<vmem>>) attributes {dimension_semantics = [#tpu.dimension_semantics<arbitrary>], iteration_bounds = array<i64: 1>, scalar_prefetch = 0 : i64, scratch_operands = 6 : i64, tpu.core_type = #tpu.core_type<tc>, window_params = [{pipeline_mode = #tpu.pipeline_mode<synchronous>, transform_indices = @transform_0, window_bounds = array<i64: 2, 16, 16, 1>}, {pipeline_mode = #tpu.pipeline_mode<synchronous>, transform_indices = @transform_1, window_bounds = array<i64: 2, 8>}, {pipeline_mode = #tpu.pipeline_mode<synchronous>, transform_indices = @transform_2, window_bounds = array<i64: 9, 32>}, {pipeline_mode = #tpu.pipeline_mode<synchronous>, transform_indices = @transform_3, window_bounds = array<i64: 1, 32>}, {pipeline_mode = #tpu.pipeline_mode<synchronous>, transform_indices = @transform_4, window_bounds = array<i64: 1, 32>}, {pipeline_mode = #tpu.pipeline_mode<synchronous>, transform_indices = @transform_5, window_bounds = array<i64: 288, 64>}, {pipeline_mode = #tpu.pipeline_mode<synchronous>, transform_indices = @transform_6, window_bounds = array<i64: 1, 64>}, {pipeline_mode = #tpu.pipeline_mode<synchronous>, transform_indices = @transform_7, window_bounds = array<i64: 1, 64>}, {pipeline_mode = #tpu.pipeline_mode<synchronous>, transform_indices = @transform_8, window_bounds = array<i64: 8, 64>}, {pipeline_mode = #tpu.pipeline_mode<synchronous>, transform_indices = @transform_9, window_bounds = array<i64: 1, 64>}, {pipeline_mode = #tpu.pipeline_mode<synchronous>, transform_indices = @transform_10, window_bounds = array<i64: 1, 64>}, {pipeline_mode = #tpu.pipeline_mode<synchronous>, transform_indices = @transform_11, window_bounds = array<i64: 64, 128>}, {pipeline_mode = #tpu.pipeline_mode<synchronous>, transform_indices = @transform_12, window_bounds = array<i64: 64, 128>}, {pipeline_mode = #tpu.pipeline_mode<synchronous>, transform_indices = @transform_13, window_bounds = array<i64: 1, 128>}, {pipeline_mode = #tpu.pipeline_mode<synchronous>, transform_indices = @transform_14, window_bounds = array<i64: 128, 64>}, {pipeline_mode = #tpu.pipeline_mode<synchronous>, transform_indices = @transform_15, window_bounds = array<i64: 1, 64>}, {pipeline_mode = #tpu.pipeline_mode<synchronous>, transform_indices = @transform_16, window_bounds = array<i64: 64, 128>}, {pipeline_mode = #tpu.pipeline_mode<synchronous>, transform_indices = @transform_17, window_bounds = array<i64: 1, 128>}, {pipeline_mode = #tpu.pipeline_mode<synchronous>, transform_indices = @transform_18, window_bounds = array<i64: 1, 128>}, {pipeline_mode = #tpu.pipeline_mode<synchronous>, transform_indices = @transform_19, window_bounds = array<i64: 1, 1>}, {pipeline_mode = #tpu.pipeline_mode<synchronous>, transform_indices = @transform_20, window_bounds = array<i64: 2, 1>}]} {
    %cst = arith.constant 0.000000e+00 : f32
    %0 = vector.broadcast %cst : f32 to vector<2x18x18x1xf32>
    %c0 = arith.constant 0 : index
    %c0_0 = arith.constant 0 : index
    %c0_1 = arith.constant 0 : index
    %c0_2 = arith.constant 0 : index
    %1 = vector.load %arg22[%c0, %c0_0, %c0_1, %c0_2] : memref<2x18x18x1xf32, #tpu.memory_space<vmem>>, vector<2x18x18x1xf32>
    tpu.vector_store %arg22[%c0, %c0_0, %c0_1, %c0_2], %0 {strides = array<i32>} : memref<2x18x18x1xf32, #tpu.memory_space<vmem>>, vector<2x18x18x1xf32>,
    %c0_3 = arith.constant 0 : index
    %c0_4 = arith.constant 0 : index
    %c0_5 = arith.constant 0 : index
    %c0_6 = arith.constant 0 : index
    %2 = vector.load %arg1[%c0_3, %c0_4, %c0_5, %c0_6] : memref<2x16x16x1xf32, #tpu.memory_space<vmem>>, vector<2x16x16x1xf32>
    %c0_7 = arith.constant 0 : index
    %c1 = arith.constant 1 : index
    %c1_8 = arith.constant 1 : index
    %c0_9 = arith.constant 0 : index
    %3 = vector.load %arg22[%c0_7, %c1, %c1_8, %c0_9] : memref<2x18x18x1xf32, #tpu.memory_space<vmem>>, vector<2x16x16x1xf32>
    tpu.vector_store %arg22[%c0_7, %c1, %c1_8, %c0_9], %2 {strides = array<i32>} : memref<2x18x18x1xf32, #tpu.memory_space<vmem>>, vector<2x16x16x1xf32>,
    %c0_10 = arith.constant 0 : index
    %c0_11 = arith.constant 0 : index
    %c0_12 = arith.constant 0 : index
    %c0_13 = arith.constant 0 : index
    %4 = vector.load %arg22[%c0_10, %c0_11, %c0_12, %c0_13] : memref<2x18x18x1xf32, #tpu.memory_space<vmem>>, vector<2x16x16x1xf32>
    %5 = vector.shape_cast %4 : vector<2x16x16x1xf32> to vector<512x1xf32>
    %c0_14 = arith.constant 0 : index
    %c0_15 = arith.constant 0 : index
    %6 = vector.load %arg23[%c0_14, %c0_15] : memref<512x9xf32, #tpu.memory_space<vmem>>, vector<512x1xf32>
    tpu.vector_store %arg23[%c0_14, %c0_15], %5 {strides = array<i32>} : memref<512x9xf32, #tpu.memory_space<vmem>>, vector<512x1xf32>,
    %c0_16 = arith.constant 0 : index
    %c0_17 = arith.constant 0 : index
    %c1_18 = arith.constant 1 : index
    %c0_19 = arith.constant 0 : index
    %7 = vector.load %arg22[%c0_16, %c0_17, %c1_18, %c0_19] : memref<2x18x18x1xf32, #tpu.memory_space<vmem>>, vector<2x16x16x1xf32>
    %8 = vector.shape_cast %7 : vector<2x16x16x1xf32> to vector<512x1xf32>
    %c0_20 = arith.constant 0 : index
    %c1_21 = arith.constant 1 : index
    %9 = vector.load %arg23[%c0_20, %c1_21] : memref<512x9xf32, #tpu.memory_space<vmem>>, vector<512x1xf32>
    tpu.vector_store %arg23[%c0_20, %c1_21], %8 {strides = array<i32>} : memref<512x9xf32, #tpu.memory_space<vmem>>, vector<512x1xf32>,
    %c0_22 = arith.constant 0 : index
    %c0_23 = arith.constant 0 : index
    %c2 = arith.constant 2 : index
    %c0_24 = arith.constant 0 : index
    %10 = vector.load %arg22[%c0_22, %c0_23, %c2, %c0_24] : memref<2x18x18x1xf32, #tpu.memory_space<vmem>>, vector<2x16x16x1xf32>
    %11 = vector.shape_cast %10 : vector<2x16x16x1xf32> to vector<512x1xf32>
    %c0_25 = arith.constant 0 : index
    %c2_26 = arith.constant 2 : index
    %12 = vector.load %arg23[%c0_25, %c2_26] : memref<512x9xf32, #tpu.memory_space<vmem>>, vector<512x1xf32>
    tpu.vector_store %arg23[%c0_25, %c2_26], %11 {strides = array<i32>} : memref<512x9xf32, #tpu.memory_space<vmem>>, vector<512x1xf32>,
    %c0_27 = arith.constant 0 : index
    %c1_28 = arith.constant 1 : index
    %c0_29 = arith.constant 0 : index
    %c0_30 = arith.constant 0 : index
    %13 = vector.load %arg22[%c0_27, %c1_28, %c0_29, %c0_30] : memref<2x18x18x1xf32, #tpu.memory_space<vmem>>, vector<2x16x16x1xf32>
    %14 = vector.shape_cast %13 : vector<2x16x16x1xf32> to vector<512x1xf32>
    %c0_31 = arith.constant 0 : index
    %c3 = arith.constant 3 : index
    %15 = vector.load %arg23[%c0_31, %c3] : memref<512x9xf32, #tpu.memory_space<vmem>>, vector<512x1xf32>
    tpu.vector_store %arg23[%c0_31, %c3], %14 {strides = array<i32>} : memref<512x9xf32, #tpu.memory_space<vmem>>, vector<512x1xf32>,
    %c0_32 = arith.constant 0 : index
    %c1_33 = arith.constant 1 : index
    %c1_34 = arith.constant 1 : index
    %c0_35 = arith.constant 0 : index
    %16 = vector.load %arg22[%c0_32, %c1_33, %c1_34, %c0_35] : memref<2x18x18x1xf32, #tpu.memory_space<vmem>>, vector<2x16x16x1xf32>
    %17 = vector.shape_cast %16 : vector<2x16x16x1xf32> to vector<512x1xf32>
    %c0_36 = arith.constant 0 : index
    %c4 = arith.constant 4 : index
    %18 = vector.load %arg23[%c0_36, %c4] : memref<512x9xf32, #tpu.memory_space<vmem>>, vector<512x1xf32>
    tpu.vector_store %arg23[%c0_36, %c4], %17 {strides = array<i32>} : memref<512x9xf32, #tpu.memory_space<vmem>>, vector<512x1xf32>,
    %c0_37 = arith.constant 0 : index
    %c1_38 = arith.constant 1 : index
    %c2_39 = arith.constant 2 : index
    %c0_40 = arith.constant 0 : index
    %19 = vector.load %arg22[%c0_37, %c1_38, %c2_39, %c0_40] : memref<2x18x18x1xf32, #tpu.memory_space<vmem>>, vector<2x16x16x1xf32>
    %20 = vector.shape_cast %19 : vector<2x16x16x1xf32> to vector<512x1xf32>
    %c0_41 = arith.constant 0 : index
    %c5 = arith.constant 5 : index
    %21 = vector.load %arg23[%c0_41, %c5] : memref<512x9xf32, #tpu.memory_space<vmem>>, vector<512x1xf32>
    tpu.vector_store %arg23[%c0_41, %c5], %20 {strides = array<i32>} : memref<512x9xf32, #tpu.memory_space<vmem>>, vector<512x1xf32>,
    %c0_42 = arith.constant 0 : index
    %c2_43 = arith.constant 2 : index
    %c0_44 = arith.constant 0 : index
    %c0_45 = arith.constant 0 : index
    %22 = vector.load %arg22[%c0_42, %c2_43, %c0_44, %c0_45] : memref<2x18x18x1xf32, #tpu.memory_space<vmem>>, vector<2x16x16x1xf32>
    %23 = vector.shape_cast %22 : vector<2x16x16x1xf32> to vector<512x1xf32>
    %c0_46 = arith.constant 0 : index
    %c6 = arith.constant 6 : index
    %24 = vector.load %arg23[%c0_46, %c6] : memref<512x9xf32, #tpu.memory_space<vmem>>, vector<512x1xf32>
    tpu.vector_store %arg23[%c0_46, %c6], %23 {strides = array<i32>} : memref<512x9xf32, #tpu.memory_space<vmem>>, vector<512x1xf32>,
    %c0_47 = arith.constant 0 : index
    %c2_48 = arith.constant 2 : index
    %c1_49 = arith.constant 1 : index
    %c0_50 = arith.constant 0 : index
    %25 = vector.load %arg22[%c0_47, %c2_48, %c1_49, %c0_50] : memref<2x18x18x1xf32, #tpu.memory_space<vmem>>, vector<2x16x16x1xf32>
    %26 = vector.shape_cast %25 : vector<2x16x16x1xf32> to vector<512x1xf32>
    %c0_51 = arith.constant 0 : index
    %c7 = arith.constant 7 : index
    %27 = vector.load %arg23[%c0_51, %c7] : memref<512x9xf32, #tpu.memory_space<vmem>>, vector<512x1xf32>
    tpu.vector_store %arg23[%c0_51, %c7], %26 {strides = array<i32>} : memref<512x9xf32, #tpu.memory_space<vmem>>, vector<512x1xf32>,
    %c0_52 = arith.constant 0 : index
    %c2_53 = arith.constant 2 : index
    %c2_54 = arith.constant 2 : index
    %c0_55 = arith.constant 0 : index
    %28 = vector.load %arg22[%c0_52, %c2_53, %c2_54, %c0_55] : memref<2x18x18x1xf32, #tpu.memory_space<vmem>>, vector<2x16x16x1xf32>
    %29 = vector.shape_cast %28 : vector<2x16x16x1xf32> to vector<512x1xf32>
    %c0_56 = arith.constant 0 : index
    %c8 = arith.constant 8 : index
    %30 = vector.load %arg23[%c0_56, %c8] : memref<512x9xf32, #tpu.memory_space<vmem>>, vector<512x1xf32>
    tpu.vector_store %arg23[%c0_56, %c8], %29 {strides = array<i32>} : memref<512x9xf32, #tpu.memory_space<vmem>>, vector<512x1xf32>,
    %c0_57 = arith.constant 0 : index
    %c0_58 = arith.constant 0 : index
    %31 = vector.load %arg23[%c0_57, %c0_58] : memref<512x9xf32, #tpu.memory_space<vmem>>, vector<512x9xf32>
    %c0_59 = arith.constant 0 : index
    %c0_60 = arith.constant 0 : index
    %32 = vector.load %arg3[%c0_59, %c0_60] : memref<9x32xf32, #tpu.memory_space<vmem>>, vector<9x32xf32>
    %cst_61 = arith.constant dense<0.000000e+00> : vector<512x32xf32>
    %33 = tpu.matmul %31, %32, %cst_61 {dimension_numbers = #tpu.dot_dimension_numbers<[1], [0], [0], [1], [0, 0, 1, 1], [], []>} : vector<512x9xf32>, vector<9x32xf32>, vector<512x32xf32> -> vector<512x32xf32>
    %c0_62 = arith.constant 0 : index
    %c0_63 = arith.constant 0 : index
    %34 = vector.load %arg4[%c0_62, %c0_63] : memref<1x32xf32, #tpu.memory_space<vmem>>, vector<1x32xf32>
    %35 = vector.broadcast %34 : vector<1x32xf32> to vector<512x32xf32>
    %36 = arith.mulf %33, %35 : vector<512x32xf32>
    %c0_64 = arith.constant 0 : index
    %c0_65 = arith.constant 0 : index
    %37 = vector.load %arg5[%c0_64, %c0_65] : memref<1x32xf32, #tpu.memory_space<vmem>>, vector<1x32xf32>
    %38 = vector.broadcast %37 : vector<1x32xf32> to vector<512x32xf32>
    %39 = arith.addf %36, %38 : vector<512x32xf32>
    %cst_66 = arith.constant 0.000000e+00 : f32
    %40 = vector.broadcast %cst_66 : f32 to vector<512x32xf32>
    %41 = arith.maximumf %39, %40 : vector<512x32xf32>
    %42 = vector.shape_cast %41 : vector<512x32xf32> to vector<16x32x32xf32>
    %43 = vector.extract_strided_slice %42 {offsets = [0, 0, 0], sizes = [16, 16, 32], strides = [1, 1, 1]} : vector<16x32x32xf32> to vector<16x16x32xf32>
    %44 = vector.extract_strided_slice %42 {offsets = [0, 16, 0], sizes = [16, 16, 32], strides = [1, 1, 1]} : vector<16x32x32xf32> to vector<16x16x32xf32>
    %45 = arith.maximumf %43, %44 : vector<16x16x32xf32>
    %46 = vector.shape_cast %45 : vector<16x16x32xf32> to vector<256x32xf32>
    %c0_67 = arith.constant 0 : index
    %c0_68 = arith.constant 0 : index
    %47 = vector.load %arg24[%c0_67, %c0_68] : memref<256x32xf32, #tpu.memory_space<vmem>>, vector<256x32xf32>
    tpu.vector_store %arg24[%c0_67, %c0_68], %46 {strides = array<i32>} : memref<256x32xf32, #tpu.memory_space<vmem>>, vector<256x32xf32>,
    %c0_69 = arith.constant 0 : index
    %c0_70 = arith.constant 0 : index
    %48 = tpu.strided_load %arg24[%c0_69, %c0_70] {strides = array<i32: 2, 1>} : memref<256x32xf32, #tpu.memory_space<vmem>>, vector<128x32xf32>
    %c1_71 = arith.constant 1 : index
    %c0_72 = arith.constant 0 : index
    %49 = tpu.strided_load %arg24[%c1_71, %c0_72] {strides = array<i32: 2, 1>} : memref<256x32xf32, #tpu.memory_space<vmem>>, vector<128x32xf32>
    %50 = arith.maximumf %48, %49 : vector<128x32xf32>
    %cst_73 = arith.constant 0.000000e+00 : f32
    %51 = vector.broadcast %cst_73 : f32 to vector<2x10x10x32xf32>
    %c0_74 = arith.constant 0 : index
    %c0_75 = arith.constant 0 : index
    %c0_76 = arith.constant 0 : index
    %c0_77 = arith.constant 0 : index
    %52 = vector.load %arg25[%c0_74, %c0_75, %c0_76, %c0_77] : memref<2x10x10x32xf32, #tpu.memory_space<vmem>>, vector<2x10x10x32xf32>
    tpu.vector_store %arg25[%c0_74, %c0_75, %c0_76, %c0_77], %51 {strides = array<i32>} : memref<2x10x10x32xf32, #tpu.memory_space<vmem>>, vector<2x10x10x32xf32>,
    %53 = vector.shape_cast %50 : vector<128x32xf32> to vector<2x8x8x32xf32>
    %c0_78 = arith.constant 0 : index
    %c1_79 = arith.constant 1 : index
    %c1_80 = arith.constant 1 : index
    %c0_81 = arith.constant 0 : index
    %54 = vector.load %arg25[%c0_78, %c1_79, %c1_80, %c0_81] : memref<2x10x10x32xf32, #tpu.memory_space<vmem>>, vector<2x8x8x32xf32>
    tpu.vector_store %arg25[%c0_78, %c1_79, %c1_80, %c0_81], %53 {strides = array<i32>} : memref<2x10x10x32xf32, #tpu.memory_space<vmem>>, vector<2x8x8x32xf32>,
    %c0_82 = arith.constant 0 : index
    %c0_83 = arith.constant 0 : index
    %c0_84 = arith.constant 0 : index
    %c0_85 = arith.constant 0 : index
    %55 = vector.load %arg25[%c0_82, %c0_83, %c0_84, %c0_85] : memref<2x10x10x32xf32, #tpu.memory_space<vmem>>, vector<2x8x8x32xf32>
    %56 = vector.shape_cast %55 : vector<2x8x8x32xf32> to vector<128x32xf32>
    %57 = arith.truncf %56 : vector<128x32xf32> to vector<128x32xbf16>
    %c0_86 = arith.constant 0 : index
    %c0_87 = arith.constant 0 : index
    %58 = vector.load %arg26[%c0_86, %c0_87] : memref<128x288xbf16, #tpu.memory_space<vmem>>, vector<128x32xbf16>
    tpu.vector_store %arg26[%c0_86, %c0_87], %57 {strides = array<i32>} : memref<128x288xbf16, #tpu.memory_space<vmem>>, vector<128x32xbf16>,
    %c0_88 = arith.constant 0 : index
    %c0_89 = arith.constant 0 : index
    %c1_90 = arith.constant 1 : index
    %c0_91 = arith.constant 0 : index
    %59 = vector.load %arg25[%c0_88, %c0_89, %c1_90, %c0_91] : memref<2x10x10x32xf32, #tpu.memory_space<vmem>>, vector<2x8x8x32xf32>
    %60 = vector.shape_cast %59 : vector<2x8x8x32xf32> to vector<128x32xf32>
    %61 = arith.truncf %60 : vector<128x32xf32> to vector<128x32xbf16>
    %c0_92 = arith.constant 0 : index
    %c32 = arith.constant 32 : index
    %62 = vector.load %arg26[%c0_92, %c32] : memref<128x288xbf16, #tpu.memory_space<vmem>>, vector<128x32xbf16>
    tpu.vector_store %arg26[%c0_92, %c32], %61 {strides = array<i32>} : memref<128x288xbf16, #tpu.memory_space<vmem>>, vector<128x32xbf16>,
    %c0_93 = arith.constant 0 : index
    %c0_94 = arith.constant 0 : index
    %c2_95 = arith.constant 2 : index
    %c0_96 = arith.constant 0 : index
    %63 = vector.load %arg25[%c0_93, %c0_94, %c2_95, %c0_96] : memref<2x10x10x32xf32, #tpu.memory_space<vmem>>, vector<2x8x8x32xf32>
    %64 = vector.shape_cast %63 : vector<2x8x8x32xf32> to vector<128x32xf32>
    %65 = arith.truncf %64 : vector<128x32xf32> to vector<128x32xbf16>
    %c0_97 = arith.constant 0 : index
    %c64 = arith.constant 64 : index
    %66 = vector.load %arg26[%c0_97, %c64] : memref<128x288xbf16, #tpu.memory_space<vmem>>, vector<128x32xbf16>
    tpu.vector_store %arg26[%c0_97, %c64], %65 {strides = array<i32>} : memref<128x288xbf16, #tpu.memory_space<vmem>>, vector<128x32xbf16>,
    %c0_98 = arith.constant 0 : index
    %c1_99 = arith.constant 1 : index
    %c0_100 = arith.constant 0 : index
    %c0_101 = arith.constant 0 : index
    %67 = vector.load %arg25[%c0_98, %c1_99, %c0_100, %c0_101] : memref<2x10x10x32xf32, #tpu.memory_space<vmem>>, vector<2x8x8x32xf32>
    %68 = vector.shape_cast %67 : vector<2x8x8x32xf32> to vector<128x32xf32>
    %69 = arith.truncf %68 : vector<128x32xf32> to vector<128x32xbf16>
    %c0_102 = arith.constant 0 : index
    %c96 = arith.constant 96 : index
    %70 = vector.load %arg26[%c0_102, %c96] : memref<128x288xbf16, #tpu.memory_space<vmem>>, vector<128x32xbf16>
    tpu.vector_store %arg26[%c0_102, %c96], %69 {strides = array<i32>} : memref<128x288xbf16, #tpu.memory_space<vmem>>, vector<128x32xbf16>,
    %c0_103 = arith.constant 0 : index
    %c1_104 = arith.constant 1 : index
    %c1_105 = arith.constant 1 : index
    %c0_106 = arith.constant 0 : index
    %71 = vector.load %arg25[%c0_103, %c1_104, %c1_105, %c0_106] : memref<2x10x10x32xf32, #tpu.memory_space<vmem>>, vector<2x8x8x32xf32>
    %72 = vector.shape_cast %71 : vector<2x8x8x32xf32> to vector<128x32xf32>
    %73 = arith.truncf %72 : vector<128x32xf32> to vector<128x32xbf16>
    %c0_107 = arith.constant 0 : index
    %c128 = arith.constant 128 : index
    %74 = vector.load %arg26[%c0_107, %c128] : memref<128x288xbf16, #tpu.memory_space<vmem>>, vector<128x32xbf16>
    tpu.vector_store %arg26[%c0_107, %c128], %73 {strides = array<i32>} : memref<128x288xbf16, #tpu.memory_space<vmem>>, vector<128x32xbf16>,
    %c0_108 = arith.constant 0 : index
    %c1_109 = arith.constant 1 : index
    %c2_110 = arith.constant 2 : index
    %c0_111 = arith.constant 0 : index
    %75 = vector.load %arg25[%c0_108, %c1_109, %c2_110, %c0_111] : memref<2x10x10x32xf32, #tpu.memory_space<vmem>>, vector<2x8x8x32xf32>
    %76 = vector.shape_cast %75 : vector<2x8x8x32xf32> to vector<128x32xf32>
    %77 = arith.truncf %76 : vector<128x32xf32> to vector<128x32xbf16>
    %c0_112 = arith.constant 0 : index
    %c160 = arith.constant 160 : index
    %78 = vector.load %arg26[%c0_112, %c160] : memref<128x288xbf16, #tpu.memory_space<vmem>>, vector<128x32xbf16>
    tpu.vector_store %arg26[%c0_112, %c160], %77 {strides = array<i32>} : memref<128x288xbf16, #tpu.memory_space<vmem>>, vector<128x32xbf16>,
    %c0_113 = arith.constant 0 : index
    %c2_114 = arith.constant 2 : index
    %c0_115 = arith.constant 0 : index
    %c0_116 = arith.constant 0 : index
    %79 = vector.load %arg25[%c0_113, %c2_114, %c0_115, %c0_116] : memref<2x10x10x32xf32, #tpu.memory_space<vmem>>, vector<2x8x8x32xf32>
    %80 = vector.shape_cast %79 : vector<2x8x8x32xf32> to vector<128x32xf32>
    %81 = arith.truncf %80 : vector<128x32xf32> to vector<128x32xbf16>
    %c0_117 = arith.constant 0 : index
    %c192 = arith.constant 192 : index
    %82 = vector.load %arg26[%c0_117, %c192] : memref<128x288xbf16, #tpu.memory_space<vmem>>, vector<128x32xbf16>
    tpu.vector_store %arg26[%c0_117, %c192], %81 {strides = array<i32>} : memref<128x288xbf16, #tpu.memory_space<vmem>>, vector<128x32xbf16>,
    %c0_118 = arith.constant 0 : index
    %c2_119 = arith.constant 2 : index
    %c1_120 = arith.constant 1 : index
    %c0_121 = arith.constant 0 : index
    %83 = vector.load %arg25[%c0_118, %c2_119, %c1_120, %c0_121] : memref<2x10x10x32xf32, #tpu.memory_space<vmem>>, vector<2x8x8x32xf32>
    %84 = vector.shape_cast %83 : vector<2x8x8x32xf32> to vector<128x32xf32>
    %85 = arith.truncf %84 : vector<128x32xf32> to vector<128x32xbf16>
    %c0_122 = arith.constant 0 : index
    %c224 = arith.constant 224 : index
    %86 = vector.load %arg26[%c0_122, %c224] : memref<128x288xbf16, #tpu.memory_space<vmem>>, vector<128x32xbf16>
    tpu.vector_store %arg26[%c0_122, %c224], %85 {strides = array<i32>} : memref<128x288xbf16, #tpu.memory_space<vmem>>, vector<128x32xbf16>,
    %c0_123 = arith.constant 0 : index
    %c2_124 = arith.constant 2 : index
    %c2_125 = arith.constant 2 : index
    %c0_126 = arith.constant 0 : index
    %87 = vector.load %arg25[%c0_123, %c2_124, %c2_125, %c0_126] : memref<2x10x10x32xf32, #tpu.memory_space<vmem>>, vector<2x8x8x32xf32>
    %88 = vector.shape_cast %87 : vector<2x8x8x32xf32> to vector<128x32xf32>
    %89 = arith.truncf %88 : vector<128x32xf32> to vector<128x32xbf16>
    %c0_127 = arith.constant 0 : index
    %c256 = arith.constant 256 : index
    %90 = vector.load %arg26[%c0_127, %c256] : memref<128x288xbf16, #tpu.memory_space<vmem>>, vector<128x32xbf16>
    tpu.vector_store %arg26[%c0_127, %c256], %89 {strides = array<i32>} : memref<128x288xbf16, #tpu.memory_space<vmem>>, vector<128x32xbf16>,
    %c0_128 = arith.constant 0 : index
    %c0_129 = arith.constant 0 : index
    %91 = vector.load %arg26[%c0_128, %c0_129] : memref<128x288xbf16, #tpu.memory_space<vmem>>, vector<128x288xbf16>
    %c0_130 = arith.constant 0 : index
    %c0_131 = arith.constant 0 : index
    %92 = vector.load %arg6[%c0_130, %c0_131] : memref<288x64xbf16, #tpu.memory_space<vmem>>, vector<288x64xbf16>
    %cst_132 = arith.constant dense<0.000000e+00> : vector<128x64xf32>
    %93 = tpu.matmul %91, %92, %cst_132 {dimension_numbers = #tpu.dot_dimension_numbers<[1], [0], [0], [1], [0, 0, 1, 1], [], []>} : vector<128x288xbf16>, vector<288x64xbf16>, vector<128x64xf32> -> vector<128x64xf32>
    %c0_133 = arith.constant 0 : index
    %c0_134 = arith.constant 0 : index
    %94 = vector.load %arg7[%c0_133, %c0_134] : memref<1x64xf32, #tpu.memory_space<vmem>>, vector<1x64xf32>
    %95 = vector.broadcast %94 : vector<1x64xf32> to vector<128x64xf32>
    %96 = arith.mulf %93, %95 : vector<128x64xf32>
    %c0_135 = arith.constant 0 : index
    %c0_136 = arith.constant 0 : index
    %97 = vector.load %arg8[%c0_135, %c0_136] : memref<1x64xf32, #tpu.memory_space<vmem>>, vector<1x64xf32>
    %98 = vector.broadcast %97 : vector<1x64xf32> to vector<128x64xf32>
    %99 = arith.addf %96, %98 : vector<128x64xf32>
    %cst_137 = arith.constant 0.000000e+00 : f32
    %100 = vector.broadcast %cst_137 : f32 to vector<128x64xf32>
    %101 = arith.maximumf %99, %100 : vector<128x64xf32>
    %102 = vector.shape_cast %101 : vector<128x64xf32> to vector<8x16x64xf32>
    %103 = vector.extract_strided_slice %102 {offsets = [0, 0, 0], sizes = [8, 8, 64], strides = [1, 1, 1]} : vector<8x16x64xf32> to vector<8x8x64xf32>
    %104 = vector.extract_strided_slice %102 {offsets = [0, 8, 0], sizes = [8, 8, 64], strides = [1, 1, 1]} : vector<8x16x64xf32> to vector<8x8x64xf32>
    %105 = arith.maximumf %103, %104 : vector<8x8x64xf32>
    %106 = vector.shape_cast %105 : vector<8x8x64xf32> to vector<64x64xf32>
    %c0_138 = arith.constant 0 : index
    %c0_139 = arith.constant 0 : index
    %107 = vector.load %arg27[%c0_138, %c0_139] : memref<64x64xf32, #tpu.memory_space<vmem>>, vector<64x64xf32>
    tpu.vector_store %arg27[%c0_138, %c0_139], %106 {strides = array<i32>} : memref<64x64xf32, #tpu.memory_space<vmem>>, vector<64x64xf32>,
    %c0_140 = arith.constant 0 : index
    %c0_141 = arith.constant 0 : index
    %108 = tpu.strided_load %arg27[%c0_140, %c0_141] {strides = array<i32: 2, 1>} : memref<64x64xf32, #tpu.memory_space<vmem>>, vector<32x64xf32>
    %c1_142 = arith.constant 1 : index
    %c0_143 = arith.constant 0 : index
    %109 = tpu.strided_load %arg27[%c1_142, %c0_143] {strides = array<i32: 2, 1>} : memref<64x64xf32, #tpu.memory_space<vmem>>, vector<32x64xf32>
    %110 = arith.maximumf %108, %109 : vector<32x64xf32>
    %111 = vector.extract_strided_slice %110 {offsets = [0, 0], sizes = [16, 64], strides = [1, 1]} : vector<32x64xf32> to vector<16x64xf32>
    %cst_144 = arith.constant dense<0.000000e+00> : vector<64xf32>
    %112 = vector.multi_reduction <add>, %111, %cst_144 [0] : vector<16x64xf32> to vector<64xf32>
    %113 = vector.shape_cast %112 : vector<64xf32> to vector<1x64xf32>
    %cst_145 = arith.constant 1.600000e+01 : f32
    %114 = vector.broadcast %cst_145 : f32 to vector<1x64xf32>
    %115 = arith.divf %113, %114 : vector<1x64xf32>
    %116 = vector.extract_strided_slice %110 {offsets = [16, 0], sizes = [16, 64], strides = [1, 1]} : vector<32x64xf32> to vector<16x64xf32>
    %cst_146 = arith.constant dense<0.000000e+00> : vector<64xf32>
    %117 = vector.multi_reduction <add>, %116, %cst_146 [0] : vector<16x64xf32> to vector<64xf32>
    %118 = vector.shape_cast %117 : vector<64xf32> to vector<1x64xf32>
    %cst_147 = arith.constant 1.600000e+01 : f32
    %119 = vector.broadcast %cst_147 : f32 to vector<1x64xf32>
    %120 = arith.divf %118, %119 : vector<1x64xf32>
    %121 = tpu.concatenate %115, %120 in 0 : vector<1x64xf32>, vector<1x64xf32> -> vector<2x64xf32>
    %c0_148 = arith.constant 0 : index
    %c0_149 = arith.constant 0 : index
    %122 = vector.load %arg2[%c0_148, %c0_149] : memref<2x8xf32, #tpu.memory_space<vmem>>, vector<2x8xf32>
    %c0_150 = arith.constant 0 : index
    %c0_151 = arith.constant 0 : index
    %123 = vector.load %arg9[%c0_150, %c0_151] : memref<8x64xf32, #tpu.memory_space<vmem>>, vector<8x64xf32>
    %cst_152 = arith.constant dense<0.000000e+00> : vector<2x64xf32>
    %124 = tpu.matmul %122, %123, %cst_152 {dimension_numbers = #tpu.dot_dimension_numbers<[1], [0], [0], [1], [0, 0, 1, 1], [], []>} : vector<2x8xf32>, vector<8x64xf32>, vector<2x64xf32> -> vector<2x64xf32>
    %c0_153 = arith.constant 0 : index
    %c0_154 = arith.constant 0 : index
    %125 = vector.load %arg10[%c0_153, %c0_154] : memref<1x64xf32, #tpu.memory_space<vmem>>, vector<1x64xf32>
    %126 = vector.broadcast %125 : vector<1x64xf32> to vector<2x64xf32>
    %127 = arith.mulf %124, %126 : vector<2x64xf32>
    %c0_155 = arith.constant 0 : index
    %c0_156 = arith.constant 0 : index
    %128 = vector.load %arg11[%c0_155, %c0_156] : memref<1x64xf32, #tpu.memory_space<vmem>>, vector<1x64xf32>
    %129 = vector.broadcast %128 : vector<1x64xf32> to vector<2x64xf32>
    %130 = arith.addf %127, %129 : vector<2x64xf32>
    %cst_157 = arith.constant 0.000000e+00 : f32
    %131 = vector.broadcast %cst_157 : f32 to vector<2x64xf32>
    %132 = arith.maximumf %130, %131 : vector<2x64xf32>
    %c0_158 = arith.constant 0 : index
    %c0_159 = arith.constant 0 : index
    %133 = vector.load %arg12[%c0_158, %c0_159] : memref<64x128xf32, #tpu.memory_space<vmem>>, vector<64x128xf32>
    %cst_160 = arith.constant dense<0.000000e+00> : vector<2x128xf32>
    %134 = tpu.matmul %121, %133, %cst_160 {dimension_numbers = #tpu.dot_dimension_numbers<[1], [0], [0], [1], [0, 0, 1, 1], [], []>} : vector<2x64xf32>, vector<64x128xf32>, vector<2x128xf32> -> vector<2x128xf32>
    %c0_161 = arith.constant 0 : index
    %c0_162 = arith.constant 0 : index
    %135 = vector.load %arg13[%c0_161, %c0_162] : memref<64x128xf32, #tpu.memory_space<vmem>>, vector<64x128xf32>
    %cst_163 = arith.constant dense<0.000000e+00> : vector<2x128xf32>
    %136 = tpu.matmul %132, %135, %cst_163 {dimension_numbers = #tpu.dot_dimension_numbers<[1], [0], [0], [1], [0, 0, 1, 1], [], []>} : vector<2x64xf32>, vector<64x128xf32>, vector<2x128xf32> -> vector<2x128xf32>
    %137 = arith.addf %134, %136 : vector<2x128xf32>
    %c0_164 = arith.constant 0 : index
    %c0_165 = arith.constant 0 : index
    %138 = vector.load %arg14[%c0_164, %c0_165] : memref<1x128xf32, #tpu.memory_space<vmem>>, vector<1x128xf32>
    %139 = vector.broadcast %138 : vector<1x128xf32> to vector<2x128xf32>
    %140 = arith.addf %137, %139 : vector<2x128xf32>
    %c0_166 = arith.constant 0 : index
    %c0_167 = arith.constant 0 : index
    %141 = vector.load %arg15[%c0_166, %c0_167] : memref<128x64xf32, #tpu.memory_space<vmem>>, vector<128x64xf32>
    %cst_168 = arith.constant dense<0.000000e+00> : vector<2x64xf32>
    %142 = tpu.matmul %140, %141, %cst_168 {dimension_numbers = #tpu.dot_dimension_numbers<[1], [0], [0], [1], [0, 0, 1, 1], [], []>} : vector<2x128xf32>, vector<128x64xf32>, vector<2x64xf32> -> vector<2x64xf32>
    %c0_169 = arith.constant 0 : index
    %c0_170 = arith.constant 0 : index
    %143 = vector.load %arg16[%c0_169, %c0_170] : memref<1x64xf32, #tpu.memory_space<vmem>>, vector<1x64xf32>
    %144 = vector.broadcast %143 : vector<1x64xf32> to vector<2x64xf32>
    %145 = arith.addf %142, %144 : vector<2x64xf32>
    %cst_171 = arith.constant 0.000000e+00 : f32
    %146 = vector.broadcast %cst_171 : f32 to vector<2x64xf32>
    %147 = arith.maximumf %145, %146 : vector<2x64xf32>
    %c0_172 = arith.constant 0 : index
    %c0_173 = arith.constant 0 : index
    %148 = vector.load %arg17[%c0_172, %c0_173] : memref<64x128xf32, #tpu.memory_space<vmem>>, vector<64x128xf32>
    %cst_174 = arith.constant dense<0.000000e+00> : vector<2x128xf32>
    %149 = tpu.matmul %147, %148, %cst_174 {dimension_numbers = #tpu.dot_dimension_numbers<[1], [0], [0], [1], [0, 0, 1, 1], [], []>} : vector<2x64xf32>, vector<64x128xf32>, vector<2x128xf32> -> vector<2x128xf32>
    %c0_175 = arith.constant 0 : index
    %c0_176 = arith.constant 0 : index
    %150 = vector.load %arg18[%c0_175, %c0_176] : memref<1x128xf32, #tpu.memory_space<vmem>>, vector<1x128xf32>
    %151 = vector.broadcast %150 : vector<1x128xf32> to vector<2x128xf32>
    %152 = arith.addf %149, %151 : vector<2x128xf32>
    %153 = arith.negf %152 : vector<2x128xf32>
    %154 = math.exp %153 : vector<2x128xf32>
    %cst_177 = arith.constant 1.000000e+00 : f32
    %155 = vector.broadcast %cst_177 : f32 to vector<2x128xf32>
    %156 = arith.addf %155, %154 : vector<2x128xf32>
    %157 = arith.divf %155, %156 : vector<2x128xf32>
    %158 = arith.mulf %140, %157 : vector<2x128xf32>
    %cst_178 = arith.constant 0.000000e+00 : f32
    %159 = vector.broadcast %cst_178 : f32 to vector<2x128xf32>
    %160 = arith.maximumf %158, %159 : vector<2x128xf32>
    %c0_179 = arith.constant 0 : index
    %c0_180 = arith.constant 0 : index
    %161 = vector.load %arg19[%c0_179, %c0_180] : memref<1x128xf32, #tpu.memory_space<vmem>>, vector<1x128xf32>
    %162 = vector.broadcast %161 : vector<1x128xf32> to vector<2x128xf32>
    %163 = arith.mulf %160, %162 : vector<2x128xf32>
    %cst_181 = arith.constant dense<0.000000e+00> : vector<2xf32>
    %164 = vector.multi_reduction <add>, %163, %cst_181 [1] : vector<2x128xf32> to vector<2xf32>
    %165 = vector.shape_cast %164 : vector<2xf32> to vector<2x1xf32>
    %c0_182 = arith.constant 0 : index
    %c0_183 = arith.constant 0 : index
    %166 = vector.load %arg20[%c0_182, %c0_183] : memref<1x1xf32, #tpu.memory_space<vmem>>, vector<1x1xf32>
    %167 = vector.broadcast %166 : vector<1x1xf32> to vector<2x1xf32>
    %168 = arith.addf %165, %167 : vector<2x1xf32>
    %169 = arith.negf %168 : vector<2x1xf32>
    %170 = math.exp %169 : vector<2x1xf32>
    %cst_184 = arith.constant 1.000000e+00 : f32
    %171 = vector.broadcast %cst_184 : f32 to vector<2x1xf32>
    %172 = arith.addf %171, %170 : vector<2x1xf32>
    %173 = arith.divf %171, %172 : vector<2x1xf32>
    %c0_185 = arith.constant 0 : index
    %c0_186 = arith.constant 0 : index
    %174 = vector.load %arg21[%c0_185, %c0_186] : memref<2x1xf32, #tpu.memory_space<vmem>>, vector<2x1xf32>
    tpu.vector_store %arg21[%c0_185, %c0_186], %173 {strides = array<i32>} : memref<2x1xf32, #tpu.memory_space<vmem>>, vector<2x1xf32>,
    return
  }
  func.func @transform_0(%arg0: i32) -> (i32, i32, i32, i32) {
    %c0_i32 = arith.constant 0 : i32
    %c0_i32_0 = arith.constant 0 : i32
    %c0_i32_1 = arith.constant 0 : i32
    %c0_i32_2 = arith.constant 0 : i32
    %c0_i32_3 = arith.constant 0 : i32
    return %c0_i32, %c0_i32_0, %c0_i32_1, %c0_i32_2 : i32, i32, i32, i32
  }
  func.func @transform_1(%arg0: i32) -> (i32, i32) {
    %c0_i32 = arith.constant 0 : i32
    %c0_i32_0 = arith.constant 0 : i32
    %c0_i32_1 = arith.constant 0 : i32
    return %c0_i32, %c0_i32_0 : i32, i32
  }
  func.func @transform_2(%arg0: i32) -> (i32, i32) {
    %c0_i32 = arith.constant 0 : i32
    %c0_i32_0 = arith.constant 0 : i32
    %c0_i32_1 = arith.constant 0 : i32
    return %c0_i32, %c0_i32_0 : i32, i32
  }
  func.func @transform_3(%arg0: i32) -> (i32, i32) {
    %c0_i32 = arith.constant 0 : i32
    %c0_i32_0 = arith.constant 0 : i32
    %c0_i32_1 = arith.constant 0 : i32
    return %c0_i32, %c0_i32_0 : i32, i32
  }
  func.func @transform_4(%arg0: i32) -> (i32, i32) {
    %c0_i32 = arith.constant 0 : i32
    %c0_i32_0 = arith.constant 0 : i32
    %c0_i32_1 = arith.constant 0 : i32
    return %c0_i32, %c0_i32_0 : i32, i32
  }
  func.func @transform_5(%arg0: i32) -> (i32, i32) {
    %c0_i32 = arith.constant 0 : i32
    %c0_i32_0 = arith.constant 0 : i32
    %c0_i32_1 = arith.constant 0 : i32
    return %c0_i32, %c0_i32_0 : i32, i32
  }
  func.func @transform_6(%arg0: i32) -> (i32, i32) {
    %c0_i32 = arith.constant 0 : i32
    %c0_i32_0 = arith.constant 0 : i32
    %c0_i32_1 = arith.constant 0 : i32
    return %c0_i32, %c0_i32_0 : i32, i32
  }
  func.func @transform_7(%arg0: i32) -> (i32, i32) {
    %c0_i32 = arith.constant 0 : i32
    %c0_i32_0 = arith.constant 0 : i32
    %c0_i32_1 = arith.constant 0 : i32
    return %c0_i32, %c0_i32_0 : i32, i32
  }
  func.func @transform_8(%arg0: i32) -> (i32, i32) {
    %c0_i32 = arith.constant 0 : i32
    %c0_i32_0 = arith.constant 0 : i32
    %c0_i32_1 = arith.constant 0 : i32
    return %c0_i32, %c0_i32_0 : i32, i32
  }
  func.func @transform_9(%arg0: i32) -> (i32, i32) {
    %c0_i32 = arith.constant 0 : i32
    %c0_i32_0 = arith.constant 0 : i32
    %c0_i32_1 = arith.constant 0 : i32
    return %c0_i32, %c0_i32_0 : i32, i32
  }
  func.func @transform_10(%arg0: i32) -> (i32, i32) {
    %c0_i32 = arith.constant 0 : i32
    %c0_i32_0 = arith.constant 0 : i32
    %c0_i32_1 = arith.constant 0 : i32
    return %c0_i32, %c0_i32_0 : i32, i32
  }
  func.func @transform_11(%arg0: i32) -> (i32, i32) {
    %c0_i32 = arith.constant 0 : i32
    %c0_i32_0 = arith.constant 0 : i32
    %c0_i32_1 = arith.constant 0 : i32
    return %c0_i32, %c0_i32_0 : i32, i32
  }
  func.func @transform_12(%arg0: i32) -> (i32, i32) {
    %c0_i32 = arith.constant 0 : i32
    %c0_i32_0 = arith.constant 0 : i32
    %c0_i32_1 = arith.constant 0 : i32
    return %c0_i32, %c0_i32_0 : i32, i32
  }
  func.func @transform_13(%arg0: i32) -> (i32, i32) {
    %c0_i32 = arith.constant 0 : i32
    %c0_i32_0 = arith.constant 0 : i32
    %c0_i32_1 = arith.constant 0 : i32
    return %c0_i32, %c0_i32_0 : i32, i32
  }
  func.func @transform_14(%arg0: i32) -> (i32, i32) {
    %c0_i32 = arith.constant 0 : i32
    %c0_i32_0 = arith.constant 0 : i32
    %c0_i32_1 = arith.constant 0 : i32
    return %c0_i32, %c0_i32_0 : i32, i32
  }
  func.func @transform_15(%arg0: i32) -> (i32, i32) {
    %c0_i32 = arith.constant 0 : i32
    %c0_i32_0 = arith.constant 0 : i32
    %c0_i32_1 = arith.constant 0 : i32
    return %c0_i32, %c0_i32_0 : i32, i32
  }
  func.func @transform_16(%arg0: i32) -> (i32, i32) {
    %c0_i32 = arith.constant 0 : i32
    %c0_i32_0 = arith.constant 0 : i32
    %c0_i32_1 = arith.constant 0 : i32
    return %c0_i32, %c0_i32_0 : i32, i32
  }
  func.func @transform_17(%arg0: i32) -> (i32, i32) {
    %c0_i32 = arith.constant 0 : i32
    %c0_i32_0 = arith.constant 0 : i32
    %c0_i32_1 = arith.constant 0 : i32
    return %c0_i32, %c0_i32_0 : i32, i32
  }
  func.func @transform_18(%arg0: i32) -> (i32, i32) {
    %c0_i32 = arith.constant 0 : i32
    %c0_i32_0 = arith.constant 0 : i32
    %c0_i32_1 = arith.constant 0 : i32
    return %c0_i32, %c0_i32_0 : i32, i32
  }
  func.func @transform_19(%arg0: i32) -> (i32, i32) {
    %c0_i32 = arith.constant 0 : i32
    %c0_i32_0 = arith.constant 0 : i32
    %c0_i32_1 = arith.constant 0 : i32
    return %c0_i32, %c0_i32_0 : i32, i32
  }
  func.func @transform_20(%arg0: i32) -> (i32, i32) {
    %c0_i32 = arith.constant 0 : i32
    %c0_i32_0 = arith.constant 0 : i32
    %c0_i32_1 = arith.constant 0 : i32
    return %c0_i32, %c0_i32_0 : i32, i32
  }
}

</mosaic_0001>

<bundles_post_ra>
// kernel: multimodal_cancer_model.1
= control target key start
LH: loop header
LB: loop body
LE: loop exit
PB: predicated region body
PF: predicated region fallthrough
CT: control target
= control target key end

     0   :  { %vm68_vm0 = vcmask 7168   ;;  %vm71_vm1 = vcmask 1024   ;;  %v6677_v0 = vmov 0.0   ;;  %s6678_s26 = smov 2   ;;  %s6679_s27 = smov 1   ;;  %vm3775_vm2 = vcmask 1040384   ;;  %s9607_s0 = inlined_call_operand.vmem [shape: f32[2,16,16,1], index: 0, kind: input, shape index: {}]   ;;  %s9608_s2 = inlined_call_operand.vmem [shape: f32[9,32], index: 2, kind: input, shape index: {}]   ;;  %s9609_s3 = inlined_call_operand.vmem [shape: f32[1,32], index: 3, kind: input, shape index: {}]   ;;  %s9610_s4 = inlined_call_operand.vmem [shape: f32[1,32], index: 4, kind: input, shape index: {}]   ;;  %s9611_s5 = inlined_call_operand.vmem [shape: bf16[288,64], index: 5, kind: input, shape index: {}]   ;;  %s9612_s12 = inlined_call_operand.vmem [shape: f32[64,128], index: 12, kind: input, shape index: {}]   ;;  %s9613_s8 = inlined_call_operand.vmem [shape: f32[8,64], index: 8, kind: input, shape index: {}]   ;;  %s9614_s1 = inlined_call_operand.vmem [shape: f32[2,8], index: 1, kind: input, shape index: {}]   ;;  %s9615_s11 = inlined_call_operand.vmem [shape: f32[64,128], index: 11, kind: input, shape index: {}]   ;;  %s9616_s6 = inlined_call_operand.vmem [shape: f32[1,64], index: 6, kind: input, shape index: {}]   ;;  %s9617_s7 = inlined_call_operand.vmem [shape: f32[1,64], index: 7, kind: input, shape index: {}]   ;;  %s9618_s9 = inlined_call_operand.vmem [shape: f32[1,64], index: 9, kind: input, shape index: {}]   ;;  %s9619_s10 = inlined_call_operand.vmem [shape: f32[1,64], index: 10, kind: input, shape index: {}]   ;;  %s9620_s14 = inlined_call_operand.vmem [shape: f32[128,64], index: 14, kind: input, shape index: {}]   ;;  %s9621_s16 = inlined_call_operand.vmem [shape: f32[64,128], index: 16, kind: input, shape index: {}]   ;;  %s9622_s13 = inlined_call_operand.vmem [shape: f32[1,128], index: 13, kind: input, shape index: {}]   ;;  %s9623_s15 = inlined_call_operand.vmem [shape: f32[1,64], index: 15, kind: input, shape index: {}]   ;;  %s9624_s19 = inlined_call_operand.<no memory space> [shape: f32[1,1], index: 19, kind: input, shape index: {}]   ;;  %s9625_s17 = inlined_call_operand.vmem [shape: f32[1,128], index: 17, kind: input, shape index: {}]   ;;  %s9626_s18 = inlined_call_operand.vmem [shape: f32[1,128], index: 18, kind: input, shape index: {}]   ;;  %s9627_s20 = inlined_call_operand.vmem [shape: f32[2,1], index: 20, kind: output, shape index: {}]  }
   0x1   :  { %9633 = sst [smem:[#allocation9_spill]] %s9607_s0  ;;  %69 = vst.msk [vmem:[#allocation2] sm:$0xff] %vm68_vm0, %v6677_v0  ;;  %70 = vst.msk [vmem:[#allocation2 + $0x8] sm:$0xff] %vm68_vm0, %v6677_v0  ;;  %s6680_s28 = smov 3   ;;  %vm6685_vm3 = vmmov 1   ;;  %vm755_vm5 = vcmask 15368  }
   0x2   :  { %9634 = sst [smem:[#allocation10_spill]] %s9608_s2  ;;  %73 = vst.msk [vmem:[#allocation2 + $0x18] sm:$0xff] %vm68_vm0, %v6677_v0  ;;  %74 = vst.msk [vmem:[#allocation2 + $0x20] sm:$0xff] %vm68_vm0, %v6677_v0  ;;  %s9638_s23 = sld [smem:[#allocation9_spill]]  ;;  %vm1140_vm6 = vcmask 23568   ;;  %vm1525_vm7 = vcmask 31768  }
   0x3   :  { %9635 = sst [smem:[#allocation11_spill]] %s9609_s3  ;;  %76 = vst.msk [vmem:[#allocation2 + $0x30] sm:$0xff] %vm68_vm0, %v6677_v0  ;;  %77 = vst.msk [vmem:[#allocation2 + $0x38] sm:$0xff] %vm68_vm0, %v6677_v0  ;;  %s6682_s0 = smov 5   ;;  %vm1910_vm8 = vcmask 39968   ;;  %vm2295_vm9 = vcmask 48168  }
   0x4   :  { %9636 = sst [smem:[#allocation12_spill]] %s9610_s4  ;;  %79 = vst.msk [vmem:[#allocation2 + $0x48] sm:$0xff] %vm68_vm0, %v6677_v0  ;;  %80 = vst.msk [vmem:[#allocation2 + $0x50] sm:$0xff] %vm68_vm0, %v6677_v0  ;;  %s6683_s22 = smov 6   ;;  %vm2681_vm10 = vcmask 56368   ;;  %vm3066_vm11 = vcmask 64568  }
   0x5   :  { %9637 = sst [smem:[#allocation13_spill]] %s9611_s5  ;;  %82 = vst.msk [vmem:[#allocation2 + $0x60] sm:$0xff] %vm68_vm0, %v6677_v0  ;;  %83 = vst.msk [vmem:[#allocation2 + $0x68] sm:$0xff] %vm68_vm0, %v6677_v0  ;;  %s6681_s5 = smov 4   ;;  %vm3451_vm12 = vcmask 72768   ;;  %vm3582_vm13 = vcmask 72704  }
   0x6   :  { %85 = vst.msk [vmem:[#allocation2 + $0x78] sm:$0xff] %vm68_vm0, %v6677_v0  ;;  %86 = vst.msk [vmem:[#allocation2 + $0x80] sm:$0xff] %vm68_vm0, %v6677_v0  ;;  %s6684_s24 = smov 7   ;;  %s9639_s4 = sld [smem:[#allocation10_spill]]  ;;  %vm4402_vm14 = vcmask 261120   ;;  %vm4515_vm15 = vcmask 254976  }
   0x7   :  { %88 = vst.msk [vmem:[#allocation2 + $0x90] sm:$0xff] %vm68_vm0, %v6677_v0  ;;  %89 = vst.msk [vmem:[#allocation2 + $0x98] sm:$0xff] %vm68_vm0, %v6677_v0  ;;  %s6686_s21 = smov 8   ;;  %s9640_s2 = sld [smem:[#allocation11_spill]] }
   0x8   :  { %91 = vst.msk [vmem:[#allocation2 + $0xa8] sm:$0xff] %vm68_vm0, %v6677_v0  ;;  %92 = vst.msk [vmem:[#allocation2 + $0xb0] sm:$0xff] %vm68_vm0, %v6677_v0  ;;  %v178_v1 = vld [vmem:[%s9638_s23] sm:$0xff]  ;;  %v179_v2 = vld [vmem:[%s9638_s23 + $0x8] sm:$0xff]  ;;  %s9641_s30 = sld [smem:[#allocation12_spill]]  ;;  %s9642_s29 = sld [smem:[#allocation13_spill]] }
   0x9   :  { %94 = vst.msk [vmem:[#allocation2 + $0xc0] sm:$0xff] %vm68_vm0, %v6677_v0  ;;  %95 = vst.msk [vmem:[#allocation2 + $0xc8] sm:$0xff] %vm68_vm0, %v6677_v0  ;;  %v180_v3 = vld [vmem:[%s9638_s23 + $0x10] sm:$0xff]  ;;  %v181_v4 = vld [vmem:[%s9638_s23 + $0x18] sm:$0xff] }
   0xa   :  { %97 = vst.msk [vmem:[#allocation2 + $0xd8] sm:$0xff] %vm68_vm0, %v6677_v0  ;;  %98 = vst.msk [vmem:[#allocation2 + $0xe0] sm:$0xff] %vm68_vm0, %v6677_v0  ;;  %v182_v5 = vld [vmem:[%s9638_s23 + $0x20] sm:$0xff]  ;;  %v183_v6 = vld [vmem:[%s9638_s23 + $0x28] sm:$0xff] }
   0xb   :  { %100 = vst.msk [vmem:[#allocation2 + $0xf0] sm:$0xff] %vm68_vm0, %v6677_v0  ;;  %101 = vst.msk [vmem:[#allocation2 + $0xf8] sm:$0xff] %vm68_vm0, %v6677_v0  ;;  %v184_v7 = vld [vmem:[%s9638_s23 + $0x30] sm:$0xff]  ;;  %v185_v8 = vld [vmem:[%s9638_s23 + $0x38] sm:$0xff] }
   0xc   :  { %103 = vst.msk [vmem:[#allocation2 + $0x108] sm:$0xff] %vm68_vm0, %v6677_v0  ;;  %104 = vst.msk [vmem:[#allocation2 + $0x110] sm:$0xff] %vm68_vm0, %v6677_v0  ;;  %v186_v9 = vld [vmem:[%s9638_s23 + $0x40] sm:$0xff]  ;;  %v187_v10 = vld [vmem:[%s9638_s23 + $0x48] sm:$0xff] }
   0xd   :  { %106 = vst.msk [vmem:[#allocation2 + $0x120] sm:$0xff] %vm68_vm0, %v6677_v0  ;;  %107 = vst.msk [vmem:[#allocation2 + $0x128] sm:$0xff] %vm68_vm0, %v6677_v0  ;;  %v820_v11 = vld [vmem:[#allocation2 + $0x2] sm:$0xff]  ;;  %v188_v30 = vld [vmem:[%s9638_s23 + $0x50] sm:$0xff] }
   0xe   :  { %109 = vst.msk [vmem:[#allocation2 + $0x138] sm:$0xff] %vm68_vm0, %v6677_v0  ;;  %110 = vst.msk [vmem:[#allocation2 + $0x140] sm:$0xff] %vm68_vm0, %v6677_v0  ;;  %v435_v12 = vld [vmem:[#allocation2 + $0x1] sm:$0xff]  ;;  %948 = vrot.lane.b32.xlu1 %v820_v11, %s6678_s26  ;;  %v189_v33 = vld [vmem:[%s9638_s23 + $0x58] sm:$0xff] }
   0xf   :  { %112 = vst.msk [vmem:[#allocation2 + $0x150] sm:$0xff] %vm68_vm0, %v6677_v0  ;;  %113 = vst.msk [vmem:[#allocation2 + $0x158] sm:$0xff] %vm68_vm0, %v6677_v0  ;;  %563 = vrot.lane.b32.xlu0 %v435_v12, %s6679_s27  ;;  %v307_v23 = vld [vmem:[#allocation2] sm:$0xff]  ;;  %v308_v24 = vld [vmem:[#allocation2 + $0x8] sm:$0xff] }
  0x10   :  { %115 = vst.msk [vmem:[#allocation2 + $0x168] sm:$0xff] %vm68_vm0, %v6677_v0  ;;  %116 = vst.msk [vmem:[#allocation2 + $0x170] sm:$0xff] %vm68_vm0, %v6677_v0  ;;  %v3580_v36 = vld [vmem:[%s9639_s4] sm:$0xff]  ;;  %v3581_v37 = vld [vmem:[%s9639_s4 + $0x8] sm:$0x1]  ;;  %s6689_s4 = smov 96  }
  0x11   :  { %118 = vst.msk [vmem:[#allocation2 + $0x180] sm:$0xff] %vm68_vm0, %v6677_v0  ;;  %119 = vst.msk [vmem:[#allocation2 + $0x188] sm:$0xff] %vm68_vm0, %v6677_v0  ;;  %v6557_v40 = vpack.c.bf16 %v3581_v37, %v3580_v36  ;;  %v190_v42 = vld [vmem:[%s9638_s23 + $0x60] sm:$0xff]  ;;  %v191_v44 = vld [vmem:[%s9638_s23 + $0x68] sm:$0xff] }
  0x12   :  { %121 = vst.msk [vmem:[#allocation2 + $0x198] sm:$0xff] %vm68_vm0, %v6677_v0  ;;  %122 = vst.msk [vmem:[#allocation2 + $0x1a0] sm:$0xff] %vm68_vm0, %v6677_v0  ;;  %v192_v50 = vld [vmem:[%s9638_s23 + $0x70] sm:$0xff]  ;;  %v193_v52 = vld [vmem:[%s9638_s23 + $0x78] sm:$0xff] }
  0x13   :  { %124 = vst.msk [vmem:[#allocation2 + $0x1b0] sm:$0xff] %vm68_vm0, %v6677_v0  ;;  %125 = vst.msk [vmem:[#allocation2 + $0x1b8] sm:$0xff] %vm68_vm0, %v6677_v0  ;;  %v194_v58 = vld [vmem:[%s9638_s23 + $0x80] sm:$0xff] }
  0x14   :  { %127 = vst.msk [vmem:[#allocation2 + $0x1c8] sm:$0xff] %vm68_vm0, %v6677_v0  ;;  %128 = vst.msk [vmem:[#allocation2 + $0x1d0] sm:$0xff] %vm68_vm0, %v6677_v0 }
  0x15   :  { %130 = vst.msk [vmem:[#allocation2 + $0x1e0] sm:$0xff] %vm68_vm0, %v6677_v0  ;;  %131 = vst.msk [vmem:[#allocation2 + $0x1e8] sm:$0xff] %vm68_vm0, %v6677_v0 }
  0x16   :  { %133 = vst.msk [vmem:[#allocation2 + $0x1f8] sm:$0xff] %vm68_vm0, %v6677_v0  ;;  %134 = vst.msk [vmem:[#allocation2 + $0x200] sm:$0xff] %vm68_vm0, %v6677_v0 }
  0x17   :  { %136 = vst.msk [vmem:[#allocation2 + $0x210] sm:$0xff] %vm68_vm0, %v6677_v0  ;;  %137 = vst.msk [vmem:[#allocation2 + $0x218] sm:$0xff] %vm68_vm0, %v6677_v0 }
  0x18   :  { %139 = vst.msk [vmem:[#allocation2 + $0x228] sm:$0xff] %vm68_vm0, %v6677_v0  ;;  %140 = vst.msk [vmem:[#allocation2 + $0x230] sm:$0xff] %vm68_vm0, %v6677_v0 }
  0x19   :  { %142 = vst.msk [vmem:[#allocation2 + $0x240] sm:$0xff] %vm68_vm0, %v6677_v0  ;;  %143 = vst.msk [vmem:[#allocation2 + $0x248] sm:$0xff] %vm68_vm0, %v6677_v0 }
  0x1a   :  { %145 = vst.msk [vmem:[#allocation2 + $0x258] sm:$0xff] %vm68_vm0, %v6677_v0  ;;  %146 = vst.msk [vmem:[#allocation2 + $0x260] sm:$0xff] %vm68_vm0, %v6677_v0 }
  0x1b   :  { %148 = vst.msk [vmem:[#allocation2 + $0x270] sm:$0xff] %vm68_vm0, %v6677_v0  ;;  %149 = vst.msk [vmem:[#allocation2 + $0x278] sm:$0xff] %vm68_vm0, %v6677_v0 }
  0x1c   :  { %151 = vst.msk [vmem:[#allocation2 + $0x288] sm:$0xff] %vm68_vm0, %v6677_v0  ;;  %152 = vst.msk [vmem:[#allocation2 + $0x290] sm:$0xff] %vm68_vm0, %v6677_v0 }
  0x1d   :  { %154 = vst.msk [vmem:[#allocation2 + $0x2a0] sm:$0xff] %vm68_vm0, %v6677_v0  ;;  %155 = vst.msk [vmem:[#allocation2 + $0x2a8] sm:$0xff] %vm68_vm0, %v6677_v0 }
  0x1e   :  { %157 = vst.msk [vmem:[#allocation2 + $0x2b8] sm:$0xff] %vm68_vm0, %v6677_v0  ;;  %158 = vst.msk [vmem:[#allocation2 + $0x2c0] sm:$0xff] %vm68_vm0, %v6677_v0 }
  0x1f   :  { %160 = vst.msk [vmem:[#allocation2 + $0x2d0] sm:$0xff] %vm68_vm0, %v6677_v0  ;;  %161 = vst.msk [vmem:[#allocation2 + $0x2d8] sm:$0xff] %vm68_vm0, %v6677_v0 }
  0x20   :  { %163 = vst.msk [vmem:[#allocation2 + $0x2e8] sm:$0xff] %vm68_vm0, %v6677_v0  ;;  %164 = vst.msk [vmem:[#allocation2 + $0x2f0] sm:$0xff] %vm68_vm0, %v6677_v0 }
  0x21   :  { %166 = vst.msk [vmem:[#allocation2 + $0x300] sm:$0xff] %vm68_vm0, %v6677_v0  ;;  %167 = vst.msk [vmem:[#allocation2 + $0x308] sm:$0xff] %vm68_vm0, %v6677_v0 }
  0x22   :  { %169 = vst.msk [vmem:[#allocation2 + $0x318] sm:$0xff] %vm68_vm0, %v6677_v0  ;;  %170 = vst.msk [vmem:[#allocation2 + $0x320] sm:$0xff] %vm68_vm0, %v6677_v0 }
  0x23   :  { %172 = vst.msk [vmem:[#allocation2 + $0x330] sm:$0xff] %vm68_vm0, %v6677_v0  ;;  %173 = vst.msk [vmem:[#allocation2 + $0x338] sm:$0xff] %vm68_vm0, %v6677_v0 }
  0x24   :  { %175 = vst.msk [vmem:[#allocation2 + $0x348] sm:$0xff] %vm68_vm0, %v6677_v0  ;;  %176 = vst.msk [vmem:[#allocation2 + $0x350] sm:$0xff] %vm68_vm0, %v6677_v0 }
  0x25   :  { %72 = vst.msk [vmem:[#allocation2 + $0x10] sm:$0x3] %vm71_vm1, %v6677_v0  ;;  %75 = vst.msk [vmem:[#allocation2 + $0x28] sm:$0x3] %vm71_vm1, %v6677_v0 }
  0x26   :  { %78 = vst.msk [vmem:[#allocation2 + $0x40] sm:$0x3] %vm71_vm1, %v6677_v0  ;;  %81 = vst.msk [vmem:[#allocation2 + $0x58] sm:$0x3] %vm71_vm1, %v6677_v0 }
  0x27   :  { %84 = vst.msk [vmem:[#allocation2 + $0x70] sm:$0x3] %vm71_vm1, %v6677_v0  ;;  %87 = vst.msk [vmem:[#allocation2 + $0x88] sm:$0x3] %vm71_vm1, %v6677_v0 }
  0x28   :  { %90 = vst.msk [vmem:[#allocation2 + $0xa0] sm:$0x3] %vm71_vm1, %v6677_v0  ;;  %93 = vst.msk [vmem:[#allocation2 + $0xb8] sm:$0x3] %vm71_vm1, %v6677_v0 }
  0x29   :  { %96 = vst.msk [vmem:[#allocation2 + $0xd0] sm:$0x3] %vm71_vm1, %v6677_v0  ;;  %99 = vst.msk [vmem:[#allocation2 + $0xe8] sm:$0x3] %vm71_vm1, %v6677_v0 }
  0x2a   :  { %102 = vst.msk [vmem:[#allocation2 + $0x100] sm:$0x3] %vm71_vm1, %v6677_v0  ;;  %105 = vst.msk [vmem:[#allocation2 + $0x118] sm:$0x3] %vm71_vm1, %v6677_v0 }
  0x2b   :  { %108 = vst.msk [vmem:[#allocation2 + $0x130] sm:$0x3] %vm71_vm1, %v6677_v0  ;;  %111 = vst.msk [vmem:[#allocation2 + $0x148] sm:$0x3] %vm71_vm1, %v6677_v0 }
  0x2c   :  { %114 = vst.msk [vmem:[#allocation2 + $0x160] sm:$0x3] %vm71_vm1, %v6677_v0  ;;  %117 = vst.msk [vmem:[#allocation2 + $0x178] sm:$0x3] %vm71_vm1, %v6677_v0  ;;  %v821_v15 = vld [vmem:[#allocation2 + $0xa] sm:$0xff] }
  0x2d   :  { %120 = vst.msk [vmem:[#allocation2 + $0x190] sm:$0x3] %vm71_vm1, %v6677_v0  ;;  %123 = vst.msk [vmem:[#allocation2 + $0x1a8] sm:$0x3] %vm71_vm1, %v6677_v0  ;;  %v436_v16 = vld [vmem:[#allocation2 + $0x9] sm:$0xff]  ;;  %950 = vrot.lane.b32.xlu1 %v821_v15, %s6678_s26 }
  0x2e   :  { %126 = vst.msk [vmem:[#allocation2 + $0x1c0] sm:$0x3] %vm71_vm1, %v6677_v0  ;;  %129 = vst.msk [vmem:[#allocation2 + $0x1d8] sm:$0x3] %vm71_vm1, %v6677_v0  ;;  %565 = vrot.lane.b32.xlu0 %v436_v16, %s6679_s27 }
  0x2f   :  { %132 = vst.msk [vmem:[#allocation2 + $0x1f0] sm:$0x3] %vm71_vm1, %v6677_v0  ;;  %135 = vst.msk [vmem:[#allocation2 + $0x208] sm:$0x3] %vm71_vm1, %v6677_v0 }
  0x30   :  { %138 = vst.msk [vmem:[#allocation2 + $0x220] sm:$0x3] %vm71_vm1, %v6677_v0  ;;  %141 = vst.msk [vmem:[#allocation2 + $0x238] sm:$0x3] %vm71_vm1, %v6677_v0 }
  0x31   :  { %144 = vst.msk [vmem:[#allocation2 + $0x250] sm:$0x3] %vm71_vm1, %v6677_v0  ;;  %147 = vst.msk [vmem:[#allocation2 + $0x268] sm:$0x3] %vm71_vm1, %v6677_v0 }
  0x32   :  { %150 = vst.msk [vmem:[#allocation2 + $0x280] sm:$0x3] %vm71_vm1, %v6677_v0  ;;  %153 = vst.msk [vmem:[#allocation2 + $0x298] sm:$0x3] %vm71_vm1, %v6677_v0 }
  0x33   :  { %156 = vst.msk [vmem:[#allocation2 + $0x2b0] sm:$0x3] %vm71_vm1, %v6677_v0  ;;  %159 = vst.msk [vmem:[#allocation2 + $0x2c8] sm:$0x3] %vm71_vm1, %v6677_v0 }
  0x34   :  { %162 = vst.msk [vmem:[#allocation2 + $0x2e0] sm:$0x3] %vm71_vm1, %v6677_v0  ;;  %165 = vst.msk [vmem:[#allocation2 + $0x2f8] sm:$0x3] %vm71_vm1, %v6677_v0 }
  0x35   :  { %168 = vst.msk [vmem:[#allocation2 + $0x310] sm:$0x3] %vm71_vm1, %v6677_v0  ;;  %171 = vst.msk [vmem:[#allocation2 + $0x328] sm:$0x3] %vm71_vm1, %v6677_v0 }
  0x36   :  { %174 = vst.msk [vmem:[#allocation2 + $0x340] sm:$0x3] %vm71_vm1, %v6677_v0  ;;  %177 = vst.msk [vmem:[#allocation2 + $0x358] sm:$0x3] %vm71_vm1, %v6677_v0 }
  0x37   :  { %243 = vst.msk [vmem:[#allocation2 + $0x19] sm:$0xff] %vm68_vm0, %v178_v1  ;;  %244 = vst.msk [vmem:[#allocation2 + $0x21] sm:$0xff] %vm68_vm0, %v179_v2  ;;  %v195_v1 = vld [vmem:[%s9638_s23 + $0x88] sm:$0xff] }
  0x38   :  { %245 = vst.msk [vmem:[#allocation2 + $0x31] sm:$0xff] %vm68_vm0, %v180_v3  ;;  %246 = vst.msk [vmem:[#allocation2 + $0x39] sm:$0xff] %vm68_vm0, %v181_v4 }
  0x39   :  { %247 = vst.msk [vmem:[#allocation2 + $0x49] sm:$0xff] %vm68_vm0, %v182_v5  ;;  %248 = vst.msk [vmem:[#allocation2 + $0x51] sm:$0xff] %vm68_vm0, %v183_v6 }
  0x3a   :  { %249 = vst.msk [vmem:[#allocation2 + $0x61] sm:$0xff] %vm68_vm0, %v184_v7  ;;  %250 = vst.msk [vmem:[#allocation2 + $0x69] sm:$0xff] %vm68_vm0, %v185_v8 }
  0x3b   :  { %251 = vst.msk [vmem:[#allocation2 + $0x79] sm:$0xff] %vm68_vm0, %v186_v9  ;;  %252 = vst.msk [vmem:[#allocation2 + $0x81] sm:$0xff] %vm68_vm0, %v187_v10 }
  0x3c   :  { %371 = vst.msk [vmem:[#allocation3] sm:$0xff] %vm68_vm0, %v307_v23  ;;  %372 = vst.msk [vmem:[#allocation3 + $0x8] sm:$0xff] %vm68_vm0, %v308_v24 }
  0x3d   :  { %253 = vst.msk [vmem:[#allocation2 + $0x91] sm:$0xff] %vm68_vm0, %v188_v30  ;;  %254 = vst.msk [vmem:[#allocation2 + $0x99] sm:$0xff] %vm68_vm0, %v189_v33 }
  0x3e   :  { %v1206_v13 = vld [vmem:[#allocation2 + $0x20] sm:$0xff]  ;;  %v1205_v14 = vld [vmem:[#allocation2 + $0x18] sm:$0xff]  ;;  %vm6558_vm4 = vmpackc.low %vm3775_vm2, %vm6685_vm3  ;;  %255 = vst.msk [vmem:[#allocation2 + $0xa9] sm:$0xff] %vm68_vm0, %v190_v42  ;;  %vm4725_vm3 = vcmask 785920  }
  0x3f   :  { %373 = vst.msk [vmem:[#allocation3 + $0x10] sm:$0xff] %vm68_vm0, %v1205_v14  ;;  %374 = vst.msk [vmem:[#allocation3 + $0x18] sm:$0xff] %vm68_vm0, %v1206_v13  ;;  %v2361_v17 = vld [vmem:[#allocation2 + $0x30] sm:$0xff]  ;;  %v2362_v18 = vld [vmem:[#allocation2 + $0x38] sm:$0xff]  ;;  %1335 = vrot.lane.b32.xlu1 %v1206_v13, %s6680_s28  ;;  %1333 = vrot.lane.b32.xlu0 %v1205_v14, %s6680_s28 }
  0x40   :  { %375 = vst.msk [vmem:[#allocation3 + $0x20] sm:$0xff] %vm68_vm0, %v2361_v17  ;;  %376 = vst.msk [vmem:[#allocation3 + $0x28] sm:$0xff] %vm68_vm0, %v2362_v18  ;;  %v7061_v19 = vld [vmem:[#allocation2 + $0x48] sm:$0xff]  ;;  %v7063_v20 = vld [vmem:[#allocation2 + $0x50] sm:$0xff]  ;;  %6559 = vmatprep.subr.msk.bf16.mxu0 %vm6558_vm4, %v6557_v40 }
  0x41   :  { %377 = vst.msk [vmem:[#allocation3 + $0x30] sm:$0xff] %vm68_vm0, %v7061_v19  ;;  %378 = vst.msk [vmem:[#allocation3 + $0x38] sm:$0xff] %vm68_vm0, %v7063_v20  ;;  %v7069_v21 = vld [vmem:[#allocation2 + $0x60] sm:$0xff]  ;;  %v7071_v22 = vld [vmem:[#allocation2 + $0x68] sm:$0xff]  ;;  %6562 = vmatpush3.bf16.msk.msra.mxu0 %vm6558_vm4, %v6557_v40  ;;  %vm4790_vm4 = vcmask 1048320  }
  0x42   :  { %379 = vst.msk [vmem:[#allocation3 + $0x40] sm:$0xff] %vm68_vm0, %v7069_v21  ;;  %380 = vst.msk [vmem:[#allocation3 + $0x48] sm:$0xff] %vm68_vm0, %v7071_v22  ;;  %v1590_v25 = vld [vmem:[#allocation2 + $0x19] sm:$0xff]  ;;  %v1591_v28 = vld [vmem:[#allocation2 + $0x21] sm:$0xff] }
  0x43   :  { %v7081_v26 = vld [vmem:[#allocation2 + $0x78] sm:$0xff]  ;;  %v7083_v27 = vld [vmem:[#allocation2 + $0x80] sm:$0xff]  ;;  %1718 = vrot.lane.b32.xlu0 %v1590_v25, %s6681_s5  ;;  %567 = vrot.lane.b32.xlu1 %v1590_v25, %s6679_s27  ;;  %256 = vst.msk [vmem:[#allocation2 + $0xb1] sm:$0xff] %vm68_vm0, %v191_v44  ;;  %v2748_v45 = vld [vmem:[#allocation2 + $0x49] sm:$0xff] }
  0x44   :  { %381 = vst.msk [vmem:[#allocation3 + $0x50] sm:$0xff] %vm68_vm0, %v7081_v26  ;;  %382 = vst.msk [vmem:[#allocation3 + $0x58] sm:$0xff] %vm68_vm0, %v7083_v27  ;;  %v1975_v29 = vld [vmem:[#allocation2 + $0x1a] sm:$0xff]  ;;  %v1976_v31 = vld [vmem:[#allocation2 + $0x22] sm:$0xff] }
  0x45   :  { %v7099_v32 = vld [vmem:[#allocation2 + $0x90] sm:$0xff]  ;;  %v7111_v35 = vld [vmem:[#allocation2 + $0x98] sm:$0xff]  ;;  %v7138_v43 = vld [vmem:[#allocation2 + $0xa8] sm:$0xff]  ;;  %257 = vst.msk [vmem:[#allocation2 + $0xc1] sm:$0xff] %vm68_vm0, %v192_v50 }
  0x46   :  { %383 = vst.msk [vmem:[#allocation3 + $0x60] sm:$0xff] %vm68_vm0, %v7099_v32  ;;  %v2746_v34 = vld [vmem:[#allocation2 + $0x31] sm:$0xff]  ;;  %384 = vst.msk [vmem:[#allocation3 + $0x68] sm:$0xff] %vm68_vm0, %v7111_v35  ;;  %v2747_v38 = vld [vmem:[#allocation2 + $0x39] sm:$0xff] }
  0x47   :  { %1720 = vrot.lane.b32.xlu0 %v1591_v28, %s6681_s5  ;;  %2103 = vrot.lane.b32.xlu1 %v1975_v29, %s6682_s0  ;;  %v3131_v39 = vld [vmem:[#allocation2 + $0x32] sm:$0xff]  ;;  %v3132_v41 = vld [vmem:[#allocation2 + $0x3a] sm:$0xff]  ;;  %385 = vst.msk [vmem:[#allocation3 + $0x70] sm:$0xff] %vm68_vm0, %v7138_v43  ;;  %v3133_v48 = vld [vmem:[#allocation2 + $0x4a] sm:$0xff] }
  0x48   :  { %v2749_v47 = vld [vmem:[#allocation2 + $0x51] sm:$0xff]  ;;  %258 = vst.msk [vmem:[#allocation2 + $0xc9] sm:$0xff] %vm68_vm0, %v193_v52  ;;  %v2750_v53 = vld [vmem:[#allocation2 + $0x61] sm:$0xff]  ;;  %v2751_v55 = vld [vmem:[#allocation2 + $0x69] sm:$0xff] }
  0x49   :  { %v3134_v49 = vld [vmem:[#allocation2 + $0x52] sm:$0xff]  ;;  %v3135_v56 = vld [vmem:[#allocation2 + $0x62] sm:$0xff]  ;;  %v3136_v57 = vld [vmem:[#allocation2 + $0x6a] sm:$0xff]  ;;  %259 = vst.msk [vmem:[#allocation2 + $0xd9] sm:$0xff] %vm68_vm0, %v194_v58 }
  0x4a   :  { %v7152_v46 = vld [vmem:[#allocation2 + $0xb0] sm:$0xff]  ;;  %260 = vst.msk [vmem:[#allocation2 + $0xe1] sm:$0xff] %vm68_vm0, %v195_v1  ;;  %v2752_v4 = vld [vmem:[#allocation2 + $0x79] sm:$0xff]  ;;  %v2753_v10 = vld [vmem:[#allocation2 + $0x81] sm:$0xff] }
  0x4b   :  { %569 = vrot.lane.b32.xlu0 %v1591_v28, %s6679_s27  ;;  %952 = vrot.lane.b32.xlu1 %v1975_v29, %s6678_s26  ;;  %386 = vst.msk [vmem:[#allocation3 + $0x78] sm:$0xff] %vm68_vm0, %v7152_v46  ;;  %v3137_v11 = vld [vmem:[#allocation2 + $0x7a] sm:$0xff]  ;;  %v3138_v16 = vld [vmem:[#allocation2 + $0x82] sm:$0xff]  ;;  %v2754_v28 = vld [vmem:[#allocation2 + $0x91] sm:$0xff] }
  0x4c   :  { %v7174_v51 = vld [vmem:[#allocation2 + $0xc0] sm:$0xff]  ;;  %v197_v25 = vld [vmem:[%s9638_s23 + $0x98] sm:$0xff]  ;;  %v2756_v58 = vld [vmem:[#allocation2 + $0xa9] sm:$0xff]  ;;  %4514 = vst.msk [vmem:[#allocation5] sm:$0xff] %vm4402_vm14, %v6677_v0 }
  0x4d   :  { %387 = vst.msk [vmem:[#allocation3 + $0x80] sm:$0xff] %vm68_vm0, %v7174_v51  ;;  %262 = vst.msk [vmem:[#allocation2 + $0xf9] sm:$0xff] %vm68_vm0, %v197_v25  ;;  %v2755_v36 = vld [vmem:[#allocation2 + $0x99] sm:$0xff] }
  0x4e   :  { %v3139_v37 = vld [vmem:[#allocation2 + $0x92] sm:$0xff]  ;;  %4517 = vst.msk [vmem:[#allocation5 + $0x10] sm:$0xff] %vm4402_vm14, %v6677_v0  ;;  %4519 = vst.msk [vmem:[#allocation5 + $0x20] sm:$0xff] %vm4402_vm14, %v6677_v0 }
  0x4f   :  { %2105 = vrot.lane.b32.xlu0 %v1976_v31, %s6682_s0  ;;  %2489 = vrot.lane.b32.xlu1 %v2361_v17, %s6683_s22  ;;  %v7188_v54 = vld [vmem:[#allocation2 + $0xc8] sm:$0xff]  ;;  %4521 = vst.msk [vmem:[#allocation5 + $0x30] sm:$0xff] %vm4402_vm14, %v6677_v0  ;;  %4523 = vst.msk [vmem:[#allocation5 + $0x40] sm:$0xff] %vm4402_vm14, %v6677_v0 }
  0x50   :  { %388 = vst.msk [vmem:[#allocation3 + $0x88] sm:$0xff] %vm68_vm0, %v7188_v54  ;;  %v7213_v63 = vld [vmem:[#allocation2 + $0xd8] sm:$0xff] }
  0x51   :  { %389 = vst.msk [vmem:[#allocation3 + $0x90] sm:$0xff] %vm68_vm0, %v7213_v63  ;;  %v7232_v7 = vld [vmem:[#allocation2 + $0xe0] sm:$0xff] }
  0x52   :  { %390 = vst.msk [vmem:[#allocation3 + $0x98] sm:$0xff] %vm68_vm0, %v7232_v7 }
  0x53   :  { %954 = vrot.lane.b32.xlu0 %v1976_v31, %s6678_s26  ;;  %1337 = vrot.lane.b32.xlu1 %v2361_v17, %s6680_s28  ;;  %4525 = vst.msk [vmem:[#allocation5 + $0x50] sm:$0xff] %vm4402_vm14, %v6677_v0  ;;  %4527 = vst.msk [vmem:[#allocation5 + $0x60] sm:$0xff] %vm4402_vm14, %v6677_v0 }
  0x54   :  { %4529 = vst.msk [vmem:[#allocation5 + $0x70] sm:$0xff] %vm4402_vm14, %v6677_v0  ;;  %4531 = vst.msk [vmem:[#allocation5 + $0x80] sm:$0xff] %vm4402_vm14, %v6677_v0 }
  0x55   :  { %4533 = vst.msk [vmem:[#allocation5 + $0x90] sm:$0xff] %vm4402_vm14, %v6677_v0  ;;  %4535 = vst.msk [vmem:[#allocation5 + $0xa0] sm:$0xff] %vm4402_vm14, %v6677_v0 }
  0x56   :  { %4537 = vst.msk [vmem:[#allocation5 + $0xb0] sm:$0xff] %vm4402_vm14, %v6677_v0  ;;  %4539 = vst.msk [vmem:[#allocation5 + $0xc0] sm:$0xff] %vm4402_vm14, %v6677_v0 }
  0x57   :  { %2491 = vrot.lane.b32.xlu0 %v2362_v18, %s6683_s22  ;;  %2874 = vrot.lane.b32.xlu1 %v2746_v34, %s6684_s24  ;;  %4541 = vst.msk [vmem:[#allocation5 + $0xd0] sm:$0xff] %vm4402_vm14, %v6677_v0  ;;  %4543 = vst.msk [vmem:[#allocation5 + $0xe0] sm:$0xff] %vm4402_vm14, %v6677_v0 }
  0x58   :  { %4545 = vst.msk [vmem:[#allocation5 + $0xf0] sm:$0xff] %vm4402_vm14, %v6677_v0  ;;  %4547 = vst.msk [vmem:[#allocation5 + $0x100] sm:$0xff] %vm4402_vm14, %v6677_v0 }
  0x59   :  { %4549 = vst.msk [vmem:[#allocation5 + $0x110] sm:$0xff] %vm4402_vm14, %v6677_v0  ;;  %4551 = vst.msk [vmem:[#allocation5 + $0x120] sm:$0xff] %vm4402_vm14, %v6677_v0 }
  0x5a   :  { %4553 = vst.msk [vmem:[#allocation5 + $0x130] sm:$0xff] %vm4402_vm14, %v6677_v0 }
  0x5b   :  { %1339 = vrot.lane.b32.xlu0 %v2362_v18, %s6680_s28  ;;  %1722 = vrot.lane.b32.xlu1 %v2746_v34, %s6681_s5  ;;  %4516 = vst.msk [vmem:[#allocation5 + $0x8] sm:$0x3] %vm4515_vm15, %v6677_v0  ;;  %4518 = vst.msk [vmem:[#allocation5 + $0x18] sm:$0x3] %vm4515_vm15, %v6677_v0 }
  0x5c   :  { %4520 = vst.msk [vmem:[#allocation5 + $0x28] sm:$0x3] %vm4515_vm15, %v6677_v0  ;;  %4522 = vst.msk [vmem:[#allocation5 + $0x38] sm:$0x3] %vm4515_vm15, %v6677_v0 }
  0x5d   :  { %4524 = vst.msk [vmem:[#allocation5 + $0x48] sm:$0x3] %vm4515_vm15, %v6677_v0  ;;  %4526 = vst.msk [vmem:[#allocation5 + $0x58] sm:$0x3] %vm4515_vm15, %v6677_v0 }
  0x5e   :  { %4528 = vst.msk [vmem:[#allocation5 + $0x68] sm:$0x3] %vm4515_vm15, %v6677_v0  ;;  %4530 = vst.msk [vmem:[#allocation5 + $0x78] sm:$0x3] %vm4515_vm15, %v6677_v0 }
  0x5f   :  { %2876 = vrot.lane.b32.xlu0 %v2747_v38, %s6684_s24  ;;  %3259 = vrot.lane.b32.xlu1 %v3131_v39, %s6686_s21  ;;  %4532 = vst.msk [vmem:[#allocation5 + $0x88] sm:$0x3] %vm4515_vm15, %v6677_v0  ;;  %4534 = vst.msk [vmem:[#allocation5 + $0x98] sm:$0x3] %vm4515_vm15, %v6677_v0 }
  0x60   :  { %4536 = vst.msk [vmem:[#allocation5 + $0xa8] sm:$0x3] %vm4515_vm15, %v6677_v0  ;;  %4538 = vst.msk [vmem:[#allocation5 + $0xb8] sm:$0x3] %vm4515_vm15, %v6677_v0 }
  0x61   :  { %4540 = vst.msk [vmem:[#allocation5 + $0xc8] sm:$0x3] %vm4515_vm15, %v6677_v0  ;;  %4542 = vst.msk [vmem:[#allocation5 + $0xd8] sm:$0x3] %vm4515_vm15, %v6677_v0 }
  0x62   :  { %4544 = vst.msk [vmem:[#allocation5 + $0xe8] sm:$0x3] %vm4515_vm15, %v6677_v0  ;;  %4546 = vst.msk [vmem:[#allocation5 + $0xf8] sm:$0x3] %vm4515_vm15, %v6677_v0 }
  0x63   :  { %571 = vrot.lane.b32.xlu0 %v2746_v34, %s6679_s27  ;;  %1724 = vrot.lane.b32.xlu1 %v2747_v38, %s6681_s5  ;;  %4548 = vst.msk [vmem:[#allocation5 + $0x108] sm:$0x3] %vm4515_vm15, %v6677_v0  ;;  %4550 = vst.msk [vmem:[#allocation5 + $0x118] sm:$0x3] %vm4515_vm15, %v6677_v0 }
  0x64   :  { %4552 = vst.msk [vmem:[#allocation5 + $0x128] sm:$0x3] %vm4515_vm15, %v6677_v0  ;;  %4554 = vst.msk [vmem:[#allocation5 + $0x138] sm:$0x3] %vm4515_vm15, %v6677_v0 }
  0x67   :  { %2107 = vrot.lane.b32.xlu0 %v3131_v39, %s6682_s0  ;;  %3261 = vrot.lane.b32.xlu1 %v3132_v41, %s6686_s21 }
  0x6b   :  { %573 = vrot.lane.b32.xlu0 %v2747_v38, %s6679_s27  ;;  %956 = vrot.lane.b32.xlu1 %v3131_v39, %s6678_s26 }
  0x6f   :  { %2109 = vrot.lane.b32.xlu0 %v3132_v41, %s6682_s0  ;;  %2493 = vrot.lane.b32.xlu1 %v7061_v19, %s6683_s22 }
  0x73   :  { %958 = vrot.lane.b32.xlu0 %v3132_v41, %s6678_s26  ;;  %1341 = vrot.lane.b32.xlu1 %v7061_v19, %s6680_s28  ;;  %v196_v19 = vld [vmem:[%s9638_s23 + $0x90] sm:$0xff] }
  0x74   :  { %261 = vst.msk [vmem:[#allocation2 + $0xf1] sm:$0xff] %vm68_vm0, %v196_v19 }
  0x77   :  { %2495 = vrot.lane.b32.xlu0 %v7063_v20, %s6683_s22  ;;  %2878 = vrot.lane.b32.xlu1 %v2748_v45, %s6684_s24 }
  0x7b   :  { %1343 = vrot.lane.b32.xlu0 %v7063_v20, %s6680_s28  ;;  %1726 = vrot.lane.b32.xlu1 %v2748_v45, %s6681_s5  ;;  %v7266_v24 = vld [vmem:[#allocation2 + $0xf0] sm:$0xff]  ;;  %v7284_v31 = vld [vmem:[#allocation2 + $0xf8] sm:$0xff] }
  0x7c   :  { %391 = vst.msk [vmem:[#allocation3 + $0xa0] sm:$0xff] %vm68_vm0, %v7266_v24  ;;  %392 = vst.msk [vmem:[#allocation3 + $0xa8] sm:$0xff] %vm68_vm0, %v7284_v31 }
  0x7f   :  { %2880 = vrot.lane.b32.xlu0 %v2749_v47, %s6684_s24  ;;  %3263 = vrot.lane.b32.xlu1 %v3133_v48, %s6686_s21 }
  0x80   :  { %v949_v59 = vpop.permute.xlu1 %948 }
  0x81   :  { %v564_v60 = vpop.permute.xlu0 %563 }
  0x82   :  { %756 = vst.msk [vmem:[#allocation3] sm:$0xff] %vm755_vm5, %v564_v60 }
  0x83   :  { %575 = vrot.lane.b32.xlu0 %v2748_v45, %s6679_s27  ;;  %1728 = vrot.lane.b32.xlu1 %v2749_v47, %s6681_s5  ;;  %1141 = vst.msk [vmem:[#allocation3] sm:$0xff] %vm1140_vm6, %v949_v59 }
  0x87   :  { %2111 = vrot.lane.b32.xlu0 %v3133_v48, %s6682_s0  ;;  %3265 = vrot.lane.b32.xlu1 %v3134_v49, %s6686_s21 }
  0x8b   :  { %577 = vrot.lane.b32.xlu0 %v2749_v47, %s6679_s27  ;;  %960 = vrot.lane.b32.xlu1 %v3133_v48, %s6678_s26  ;;  %v198_v47 = vld [vmem:[%s9638_s23 + $0xa0] sm:$0xff] }
  0x8c   :  { %263 = vst.msk [vmem:[#allocation2 + $0x109] sm:$0xff] %vm68_vm0, %v198_v47 }
  0x8f   :  { %2113 = vrot.lane.b32.xlu0 %v3134_v49, %s6682_s0  ;;  %2497 = vrot.lane.b32.xlu1 %v7069_v21, %s6683_s22 }
  0x93   :  { %962 = vrot.lane.b32.xlu0 %v3134_v49, %s6678_s26  ;;  %1345 = vrot.lane.b32.xlu1 %v7069_v21, %s6680_s28 }
  0x97   :  { %2499 = vrot.lane.b32.xlu0 %v7071_v22, %s6683_s22  ;;  %2882 = vrot.lane.b32.xlu1 %v2750_v53, %s6684_s24 }
  0x9b   :  { %1347 = vrot.lane.b32.xlu0 %v7071_v22, %s6680_s28  ;;  %1730 = vrot.lane.b32.xlu1 %v2750_v53, %s6681_s5 }
  0x9f   :  { %2884 = vrot.lane.b32.xlu0 %v2751_v55, %s6684_s24  ;;  %3267 = vrot.lane.b32.xlu1 %v3135_v56, %s6686_s21  ;;  %v951_v61 = vpop.permute.xlu1 %950 }
  0xa0   :  { %v566_v62 = vpop.permute.xlu0 %565 }
  0xa1   :  { %757 = vst.msk [vmem:[#allocation3 + $0x8] sm:$0xff] %vm755_vm5, %v566_v62 }
  0xa2   :  { %1142 = vst.msk [vmem:[#allocation3 + $0x8] sm:$0xff] %vm1140_vm6, %v951_v61 }
  0xa3   :  { %579 = vrot.lane.b32.xlu0 %v2750_v53, %s6679_s27  ;;  %1732 = vrot.lane.b32.xlu1 %v2751_v55, %s6681_s5  ;;  %v7320_v53 = vld [vmem:[#allocation2 + $0x108] sm:$0xff] }
  0xa4   :  { %393 = vst.msk [vmem:[#allocation3 + $0xb0] sm:$0xff] %vm68_vm0, %v7320_v53 }
  0xa7   :  { %2115 = vrot.lane.b32.xlu0 %v3135_v56, %s6682_s0  ;;  %3269 = vrot.lane.b32.xlu1 %v3136_v57, %s6686_s21 }
  0xab   :  { %581 = vrot.lane.b32.xlu0 %v2751_v55, %s6679_s27  ;;  %964 = vrot.lane.b32.xlu1 %v3135_v56, %s6678_s26  ;;  %v199_v55 = vld [vmem:[%s9638_s23 + $0xa8] sm:$0xff] }
  0xac   :  { %264 = vst.msk [vmem:[#allocation2 + $0x111] sm:$0xff] %vm68_vm0, %v199_v55 }
  0xaf   :  { %2117 = vrot.lane.b32.xlu0 %v3136_v57, %s6682_s0  ;;  %2501 = vrot.lane.b32.xlu1 %v7081_v26, %s6683_s22 }
  0xb1   :  { %v1336_v2 = vpop.permute.xlu1 %1335  ;;  %v1334_v3 = vpop.permute.xlu0 %1333 }
  0xb2   :  { %1527 = vst.msk [vmem:[#allocation3 + $0x8] sm:$0xff] %vm1525_vm7, %v1336_v2  ;;  %1526 = vst.msk [vmem:[#allocation3] sm:$0xff] %vm1525_vm7, %v1334_v3  ;;  %v2757_v2 = vld [vmem:[#allocation2 + $0xb1] sm:$0xff] }
  0xb3   :  { %966 = vrot.lane.b32.xlu0 %v3136_v57, %s6678_s26  ;;  %1349 = vrot.lane.b32.xlu1 %v7081_v26, %s6680_s28  ;;  %v7338_v61 = vld [vmem:[#allocation2 + $0x110] sm:$0xff] }
  0xb4   :  { %394 = vst.msk [vmem:[#allocation3 + $0xb8] sm:$0xff] %vm68_vm0, %v7338_v61  ;;  %v3141_v3 = vld [vmem:[#allocation2 + $0xaa] sm:$0xff] }
  0xb5   :  { %v1719_v5 = vpop.permute.xlu0 %1718  ;;  %v568_v6 = vpop.permute.xlu1 %567 }
  0xb6   :  { %1911 = vst.msk [vmem:[#allocation3] sm:$0xff] %vm1910_vm8, %v1719_v5 }
  0xb7   :  { %758 = vst.msk [vmem:[#allocation3 + $0x10] sm:$0xff] %vm755_vm5, %v568_v6  ;;  %2503 = vrot.lane.b32.xlu0 %v7083_v27, %s6683_s22  ;;  %2886 = vrot.lane.b32.xlu1 %v2752_v4, %s6684_s24 }
  0xb9   :  { %v1721_v8 = vpop.permute.xlu0 %1720  ;;  %v2104_v9 = vpop.permute.xlu1 %2103 }
  0xba   :  { %1912 = vst.msk [vmem:[#allocation3 + $0x8] sm:$0xff] %vm1910_vm8, %v1721_v8 }
  0xbb   :  { %2296 = vst.msk [vmem:[#allocation3] sm:$0xff] %vm2295_vm9, %v2104_v9  ;;  %1351 = vrot.lane.b32.xlu0 %v7083_v27, %s6680_s28  ;;  %1734 = vrot.lane.b32.xlu1 %v2752_v4, %s6681_s5 }
  0xbd   :  { %v570_v12 = vpop.permute.xlu0 %569  ;;  %v953_v13 = vpop.permute.xlu1 %952 }
  0xbe   :  { %759 = vst.msk [vmem:[#allocation3 + $0x18] sm:$0xff] %vm755_vm5, %v570_v12  ;;  %v200_v12 = vld [vmem:[%s9638_s23 + $0xb0] sm:$0xff] }
  0xbf   :  { %1143 = vst.msk [vmem:[#allocation3 + $0x10] sm:$0xff] %vm1140_vm6, %v953_v13  ;;  %2888 = vrot.lane.b32.xlu0 %v2753_v10, %s6684_s24  ;;  %3271 = vrot.lane.b32.xlu1 %v3137_v11, %s6686_s21 }
  0xc0   :  { %265 = vst.msk [vmem:[#allocation2 + $0x121] sm:$0xff] %vm68_vm0, %v200_v12 }
  0xc1   :  { %v2106_v14 = vpop.permute.xlu0 %2105  ;;  %v2490_v15 = vpop.permute.xlu1 %2489 }
  0xc2   :  { %2297 = vst.msk [vmem:[#allocation3 + $0x8] sm:$0xff] %vm2295_vm9, %v2106_v14 }
  0xc3   :  { %2682 = vst.msk [vmem:[#allocation3] sm:$0xff] %vm2681_vm10, %v2490_v15  ;;  %583 = vrot.lane.b32.xlu0 %v2752_v4, %s6679_s27  ;;  %1736 = vrot.lane.b32.xlu1 %v2753_v10, %s6681_s5 }
  0xc5   :  { %v955_v17 = vpop.permute.xlu0 %954  ;;  %v1338_v18 = vpop.permute.xlu1 %1337 }
  0xc6   :  { %1144 = vst.msk [vmem:[#allocation3 + $0x18] sm:$0xff] %vm1140_vm6, %v955_v17 }
  0xc7   :  { %1528 = vst.msk [vmem:[#allocation3 + $0x10] sm:$0xff] %vm1525_vm7, %v1338_v18  ;;  %2119 = vrot.lane.b32.xlu0 %v3137_v11, %s6682_s0  ;;  %3273 = vrot.lane.b32.xlu1 %v3138_v16, %s6686_s21  ;;  %v7374_v17 = vld [vmem:[#allocation2 + $0x120] sm:$0xff]  ;;  %v201_v18 = vld [vmem:[%s9638_s23 + $0xb8] sm:$0xff] }
  0xc8   :  { %266 = vst.msk [vmem:[#allocation2 + $0x129] sm:$0xff] %vm68_vm0, %v201_v18  ;;  %395 = vst.msk [vmem:[#allocation3 + $0xc0] sm:$0xff] %vm68_vm0, %v7374_v17 }
  0xc9   :  { %v2492_v20 = vpop.permute.xlu0 %2491  ;;  %v2875_v21 = vpop.permute.xlu1 %2874 }
  0xca   :  { %2683 = vst.msk [vmem:[#allocation3 + $0x8] sm:$0xff] %vm2681_vm10, %v2492_v20 }
  0xcb   :  { %3067 = vst.msk [vmem:[#allocation3] sm:$0xff] %vm3066_vm11, %v2875_v21  ;;  %585 = vrot.lane.b32.xlu0 %v2753_v10, %s6679_s27  ;;  %968 = vrot.lane.b32.xlu1 %v3137_v11, %s6678_s26  ;;  %v2758_v21 = vld [vmem:[#allocation2 + $0xc1] sm:$0xff] }
  0xcd   :  { %v1340_v22 = vpop.permute.xlu0 %1339  ;;  %v1723_v23 = vpop.permute.xlu1 %1722 }
  0xce   :  { %1529 = vst.msk [vmem:[#allocation3 + $0x18] sm:$0xff] %vm1525_vm7, %v1340_v22 }
  0xcf   :  { %1913 = vst.msk [vmem:[#allocation3 + $0x10] sm:$0xff] %vm1910_vm8, %v1723_v23  ;;  %2121 = vrot.lane.b32.xlu0 %v3138_v16, %s6682_s0  ;;  %2505 = vrot.lane.b32.xlu1 %v7099_v32, %s6683_s22  ;;  %v7392_v25 = vld [vmem:[#allocation2 + $0x128] sm:$0xff] }
  0xd0   :  { %396 = vst.msk [vmem:[#allocation3 + $0xc8] sm:$0xff] %vm68_vm0, %v7392_v25 }
  0xd1   :  { %v2877_v26 = vpop.permute.xlu0 %2876  ;;  %v3260_v27 = vpop.permute.xlu1 %3259 }
  0xd2   :  { %3068 = vst.msk [vmem:[#allocation3 + $0x8] sm:$0xff] %vm3066_vm11, %v2877_v26 }
  0xd3   :  { %3452 = vst.msk [vmem:[#allocation3] sm:$0xff] %vm3451_vm12, %v3260_v27  ;;  %970 = vrot.lane.b32.xlu0 %v3138_v16, %s6678_s26  ;;  %1353 = vrot.lane.b32.xlu1 %v7099_v32, %s6680_s28 }
  0xd5   :  { %v572_v29 = vpop.permute.xlu0 %571  ;;  %v1725_v30 = vpop.permute.xlu1 %1724 }
  0xd6   :  { %760 = vst.msk [vmem:[#allocation3 + $0x20] sm:$0xff] %vm755_vm5, %v572_v29  ;;  %v3143_v29 = vld [vmem:[#allocation2 + $0xc2] sm:$0xff] }
  0xd7   :  { %1914 = vst.msk [vmem:[#allocation3 + $0x18] sm:$0xff] %vm1910_vm8, %v1725_v30  ;;  %2507 = vrot.lane.b32.xlu0 %v7111_v35, %s6683_s22  ;;  %2890 = vrot.lane.b32.xlu1 %v2754_v28, %s6684_s24 }
  0xd9   :  { %v2108_v33 = vpop.permute.xlu0 %2107  ;;  %v3262_v32 = vpop.permute.xlu1 %3261 }
  0xda   :  { %v3516_v34 = vld [vmem:[#allocation3] sm:$0xff]  ;;  %2298 = vst.msk [vmem:[#allocation3 + $0x10] sm:$0xff] %vm2295_vm9, %v2108_v33 }
  0xdb   :  { %3453 = vst.msk [vmem:[#allocation3 + $0x8] sm:$0xff] %vm3451_vm12, %v3262_v32  ;;  %6344 = vmatprep.mubr.msk.f32.mxu0 %vm3582_vm13, %v3516_v34  ;;  %1355 = vrot.lane.b32.xlu0 %v7111_v35, %s6680_s28  ;;  %v3140_v35 = vld [vmem:[#allocation2 + $0x9a] sm:$0xff] }
  0xdc   :  { %1738 = vrot.lane.b32.xlu1 %v2754_v28, %s6681_s5 }
  0xdd   :  { %v574_v38 = vpop.permute.xlu0 %573  ;;  %v957_v39 = vpop.permute.xlu1 %956 }
  0xde   :  { %761 = vst.msk [vmem:[#allocation3 + $0x28] sm:$0xff] %vm755_vm5, %v574_v38 }
  0xdf   :  { %1145 = vst.msk [vmem:[#allocation3 + $0x20] sm:$0xff] %vm1140_vm6, %v957_v39  ;;  %2892 = vrot.lane.b32.xlu0 %v2755_v36, %s6684_s24  ;;  %v202_v39 = vld [vmem:[%s9638_s23 + $0xc0] sm:$0xff] }
  0xe0   :  { %3275 = vrot.lane.b32.xlu1 %v3139_v37, %s6686_s21  ;;  %267 = vst.msk [vmem:[#allocation2 + $0x139] sm:$0xff] %vm68_vm0, %v202_v39 }
  0xe1   :  { %v2110_v40 = vpop.permute.xlu0 %2109  ;;  %v2494_v41 = vpop.permute.xlu1 %2493 }
  0xe2   :  { %v3517_v42 = vld [vmem:[#allocation3 + $0x8] sm:$0xff]  ;;  %2299 = vst.msk [vmem:[#allocation3 + $0x18] sm:$0xff] %vm2295_vm9, %v2110_v40 }
  0xe3   :  { %2684 = vst.msk [vmem:[#allocation3 + $0x10] sm:$0xff] %vm2681_vm10, %v2494_v41  ;;  %6345 = vmatmul.mubr.msk.f32.vlgmr.msra.gmra.mrb[0].mxu0 %vm3582_vm13, %v3517_v42  ;;  %587 = vrot.lane.b32.xlu0 %v2754_v28, %s6679_s27  ;;  %v2759_v28 = vld [vmem:[#allocation2 + $0xc9] sm:$0xff] }
  0xe4   :  { %1740 = vrot.lane.b32.xlu1 %v2755_v36, %s6681_s5 }
  0xe5   :  { %v959_v44 = vpop.permute.xlu0 %958  ;;  %v1342_v45 = vpop.permute.xlu1 %1341 }
  0xe6   :  { %1146 = vst.msk [vmem:[#allocation3 + $0x28] sm:$0xff] %vm1140_vm6, %v959_v44 }
  0xe7   :  { %1530 = vst.msk [vmem:[#allocation3 + $0x20] sm:$0xff] %vm1525_vm7, %v1342_v45  ;;  %2123 = vrot.lane.b32.xlu0 %v3139_v37, %s6682_s0  ;;  %v7428_v44 = vld [vmem:[#allocation2 + $0x138] sm:$0xff]  ;;  %v203_v45 = vld [vmem:[%s9638_s23 + $0xc8] sm:$0xff] }
  0xe8   :  { %3277 = vrot.lane.b32.xlu1 %v3140_v35, %s6686_s21  ;;  %397 = vst.msk [vmem:[#allocation3 + $0xd0] sm:$0xff] %vm68_vm0, %v7428_v44  ;;  %268 = vst.msk [vmem:[#allocation2 + $0x141] sm:$0xff] %vm68_vm0, %v203_v45 }
  0xe9   :  { %v2496_v48 = vpop.permute.xlu0 %2495  ;;  %v2879_v49 = vpop.permute.xlu1 %2878 }
  0xea   :  { %2685 = vst.msk [vmem:[#allocation3 + $0x18] sm:$0xff] %vm2681_vm10, %v2496_v48 }
  0xeb   :  { %3069 = vst.msk [vmem:[#allocation3 + $0x10] sm:$0xff] %vm3066_vm11, %v2879_v49  ;;  %589 = vrot.lane.b32.xlu0 %v2755_v36, %s6679_s27  ;;  %v2760_v49 = vld [vmem:[#allocation2 + $0xd9] sm:$0xff] }
  0xec   :  { %972 = vrot.lane.b32.xlu1 %v3139_v37, %s6678_s26 }
  0xed   :  { %v1344_v50 = vpop.permute.xlu0 %1343  ;;  %v1727_v52 = vpop.permute.xlu1 %1726 }
  0xee   :  { %1531 = vst.msk [vmem:[#allocation3 + $0x28] sm:$0xff] %vm1525_vm7, %v1344_v50 }
  0xef   :  { %1915 = vst.msk [vmem:[#allocation3 + $0x20] sm:$0xff] %vm1910_vm8, %v1727_v52  ;;  %2125 = vrot.lane.b32.xlu0 %v3140_v35, %s6682_s0  ;;  %v7449_v55 = vld [vmem:[#allocation2 + $0x140] sm:$0xff] }
  0xf0   :  { %2509 = vrot.lane.b32.xlu1 %v7138_v43, %s6683_s22  ;;  %398 = vst.msk [vmem:[#allocation3 + $0xd8] sm:$0xff] %vm68_vm0, %v7449_v55 }
  0xf1   :  { %v2881_v56 = vpop.permute.xlu0 %2880  ;;  %v3264_v57 = vpop.permute.xlu1 %3263 }
  0xf2   :  { %3070 = vst.msk [vmem:[#allocation3 + $0x18] sm:$0xff] %vm3066_vm11, %v2881_v56 }
  0xf3   :  { %3454 = vst.msk [vmem:[#allocation3 + $0x10] sm:$0xff] %vm3451_vm12, %v3264_v57  ;;  %974 = vrot.lane.b32.xlu0 %v3140_v35, %s6678_s26 }
  0xf4   :  { %1357 = vrot.lane.b32.xlu1 %v7138_v43, %s6680_s28 }
  0xf5   :  { %v576_v59 = vpop.permute.xlu0 %575  ;;  %v1729_v60 = vpop.permute.xlu1 %1728 }
  0xf6   :  { %762 = vst.msk [vmem:[#allocation3 + $0x30] sm:$0xff] %vm755_vm5, %v576_v59  ;;  %v3145_v59 = vld [vmem:[#allocation2 + $0xda] sm:$0xff] }
  0xf7   :  { %1916 = vst.msk [vmem:[#allocation3 + $0x28] sm:$0xff] %vm1910_vm8, %v1729_v60  ;;  %2511 = vrot.lane.b32.xlu0 %v7152_v46, %s6683_s22 }
  0xf8   :  { %2894 = vrot.lane.b32.xlu1 %v2756_v58, %s6684_s24 }
  0xf9   :  { %v2112_v62 = vpop.permute.xlu0 %2111  ;;  %v3266_v1 = vpop.permute.xlu1 %3265 }
  0xfa   :  { %v3518_v43 = vld [vmem:[#allocation3 + $0x10] sm:$0xff]  ;;  %2300 = vst.msk [vmem:[#allocation3 + $0x20] sm:$0xff] %vm2295_vm9, %v2112_v62 }
  0xfb   :  { %3455 = vst.msk [vmem:[#allocation3 + $0x18] sm:$0xff] %vm3451_vm12, %v3266_v1  ;;  %6347 = vmatprep.mubr.msk.f32.mxu0 %vm3582_vm13, %v3518_v43  ;;  %1359 = vrot.lane.b32.xlu0 %v7152_v46, %s6680_s28  ;;  %v3142_v46 = vld [vmem:[#allocation2 + $0xb2] sm:$0xff] }
  0xfc   :  { %1742 = vrot.lane.b32.xlu1 %v2756_v58, %s6681_s5 }
  0xfd   :  { %v578_v4 = vpop.permute.xlu0 %577  ;;  %v961_v5 = vpop.permute.xlu1 %960 }
  0xfe   :  { %763 = vst.msk [vmem:[#allocation3 + $0x38] sm:$0xff] %vm755_vm5, %v578_v4 }
  0xff   :  { %1147 = vst.msk [vmem:[#allocation3 + $0x30] sm:$0xff] %vm1140_vm6, %v961_v5  ;;  %2896 = vrot.lane.b32.xlu0 %v2757_v2, %s6684_s24  ;;  %v204_v5 = vld [vmem:[%s9638_s23 + $0xd0] sm:$0xff] }
 0x100   :  { %3279 = vrot.lane.b32.xlu1 %v3141_v3, %s6686_s21  ;;  %269 = vst.msk [vmem:[#allocation2 + $0x151] sm:$0xff] %vm68_vm0, %v204_v5 }
 0x101   :  { %v2114_v6 = vpop.permute.xlu0 %2113  ;;  %v2498_v8 = vpop.permute.xlu1 %2497 }
 0x102   :  { %v3519_v9 = vld [vmem:[#allocation3 + $0x18] sm:$0xff]  ;;  %2301 = vst.msk [vmem:[#allocation3 + $0x28] sm:$0xff] %vm2295_vm9, %v2114_v6 }
 0x103   :  { %2686 = vst.msk [vmem:[#allocation3 + $0x20] sm:$0xff] %vm2681_vm10, %v2498_v8  ;;  %6348 = vmatmul.mubr.msk.f32.gmra.mrb[2].mxu0 %vm3582_vm13, %v3519_v9  ;;  %591 = vrot.lane.b32.xlu0 %v2756_v58, %s6679_s27  ;;  %v2761_v58 = vld [vmem:[#allocation2 + $0xe1] sm:$0xff] }
 0x104   :  { %1744 = vrot.lane.b32.xlu1 %v2757_v2, %s6681_s5 }
 0x105   :  { %v963_v10 = vpop.permute.xlu0 %962  ;;  %v1346_v11 = vpop.permute.xlu1 %1345 }
 0x106   :  { %1148 = vst.msk [vmem:[#allocation3 + $0x38] sm:$0xff] %vm1140_vm6, %v963_v10 }
 0x107   :  { %1532 = vst.msk [vmem:[#allocation3 + $0x30] sm:$0xff] %vm1525_vm7, %v1346_v11  ;;  %2127 = vrot.lane.b32.xlu0 %v3141_v3, %s6682_s0  ;;  %v7485_v10 = vld [vmem:[#allocation2 + $0x150] sm:$0xff]  ;;  %v205_v11 = vld [vmem:[%s9638_s23 + $0xd8] sm:$0xff] }
 0x108   :  { %3281 = vrot.lane.b32.xlu1 %v3142_v46, %s6686_s21  ;;  %270 = vst.msk [vmem:[#allocation2 + $0x159] sm:$0xff] %vm68_vm0, %v205_v11  ;;  %399 = vst.msk [vmem:[#allocation3 + $0xe0] sm:$0xff] %vm68_vm0, %v7485_v10 }
 0x109   :  { %v2500_v13 = vpop.permute.xlu0 %2499  ;;  %v2883_v14 = vpop.permute.xlu1 %2882 }
 0x10a   :  { %2687 = vst.msk [vmem:[#allocation3 + $0x28] sm:$0xff] %vm2681_vm10, %v2500_v13 }
 0x10b   :  { %3071 = vst.msk [vmem:[#allocation3 + $0x20] sm:$0xff] %vm3066_vm11, %v2883_v14  ;;  %593 = vrot.lane.b32.xlu0 %v2757_v2, %s6679_s27  ;;  %v2762_v14 = vld [vmem:[#allocation2 + $0xf1] sm:$0xff] }
 0x10c   :  { %976 = vrot.lane.b32.xlu1 %v3141_v3, %s6678_s26 }
 0x10d   :  { %v1348_v15 = vpop.permute.xlu0 %1347  ;;  %v1731_v16 = vpop.permute.xlu1 %1730 }
 0x10e   :  { %1533 = vst.msk [vmem:[#allocation3 + $0x38] sm:$0xff] %vm1525_vm7, %v1348_v15 }
 0x10f   :  { %1917 = vst.msk [vmem:[#allocation3 + $0x30] sm:$0xff] %vm1910_vm8, %v1731_v16  ;;  %2129 = vrot.lane.b32.xlu0 %v3142_v46, %s6682_s0  ;;  %v7503_v18 = vld [vmem:[#allocation2 + $0x158] sm:$0xff] }
 0x110   :  { %2513 = vrot.lane.b32.xlu1 %v7174_v51, %s6683_s22  ;;  %400 = vst.msk [vmem:[#allocation3 + $0xe8] sm:$0xff] %vm68_vm0, %v7503_v18 }
 0x111   :  { %v2885_v19 = vpop.permute.xlu0 %2884  ;;  %v3268_v20 = vpop.permute.xlu1 %3267 }
 0x112   :  { %3072 = vst.msk [vmem:[#allocation3 + $0x28] sm:$0xff] %vm3066_vm11, %v2885_v19 }
 0x113   :  { %3456 = vst.msk [vmem:[#allocation3 + $0x20] sm:$0xff] %vm3451_vm12, %v3268_v20  ;;  %978 = vrot.lane.b32.xlu0 %v3142_v46, %s6678_s26 }
 0x114   :  { %1361 = vrot.lane.b32.xlu1 %v7174_v51, %s6680_s28 }
 0x115   :  { %v580_v22 = vpop.permute.xlu0 %579  ;;  %v1733_v23 = vpop.permute.xlu1 %1732 }
 0x116   :  { %764 = vst.msk [vmem:[#allocation3 + $0x40] sm:$0xff] %vm755_vm5, %v580_v22  ;;  %v7515_v22 = vld [vmem:[#allocation2 + $0xf2] sm:$0xff] }
 0x117   :  { %1918 = vst.msk [vmem:[#allocation3 + $0x38] sm:$0xff] %vm1910_vm8, %v1733_v23  ;;  %2515 = vrot.lane.b32.xlu0 %v7188_v54, %s6683_s22 }
 0x118   :  { %2898 = vrot.lane.b32.xlu1 %v2758_v21, %s6684_s24 }
 0x119   :  { %v2116_v26 = vpop.permute.xlu0 %2115  ;;  %v3270_v27 = vpop.permute.xlu1 %3269 }
 0x11a   :  { %v3520_v51 = vld [vmem:[#allocation3 + $0x20] sm:$0xff]  ;;  %2302 = vst.msk [vmem:[#allocation3 + $0x30] sm:$0xff] %vm2295_vm9, %v2116_v26 }
 0x11b   :  { %3457 = vst.msk [vmem:[#allocation3 + $0x28] sm:$0xff] %vm3451_vm12, %v3270_v27  ;;  %6350 = vmatprep.mubr.msk.f32.mxu0 %vm3582_vm13, %v3520_v51  ;;  %1363 = vrot.lane.b32.xlu0 %v7188_v54, %s6680_s28  ;;  %v3144_v54 = vld [vmem:[#allocation2 + $0xca] sm:$0xff] }
 0x11c   :  { %1746 = vrot.lane.b32.xlu1 %v2758_v21, %s6681_s5 }
 0x11d   :  { %v582_v30 = vpop.permute.xlu0 %581  ;;  %v965_v33 = vpop.permute.xlu1 %964 }
 0x11e   :  { %765 = vst.msk [vmem:[#allocation3 + $0x48] sm:$0xff] %vm755_vm5, %v582_v30 }
 0x11f   :  { %1149 = vst.msk [vmem:[#allocation3 + $0x40] sm:$0xff] %vm1140_vm6, %v965_v33  ;;  %2900 = vrot.lane.b32.xlu0 %v2759_v28, %s6684_s24  ;;  %v206_v33 = vld [vmem:[%s9638_s23 + $0xe0] sm:$0xff] }
 0x120   :  { %3283 = vrot.lane.b32.xlu1 %v3143_v29, %s6686_s21  ;;  %271 = vst.msk [vmem:[#allocation2 + $0x169] sm:$0xff] %vm68_vm0, %v206_v33  ;;  %v2768_v33 = vld [vmem:[#allocation2 + $0x139] sm:$0xff] }
 0x121   :  { %v2118_v32 = vpop.permute.xlu0 %2117  ;;  %v2502_v34 = vpop.permute.xlu1 %2501 }
 0x122   :  { %v3521_v36 = vld [vmem:[#allocation3 + $0x28] sm:$0xff]  ;;  %2303 = vst.msk [vmem:[#allocation3 + $0x38] sm:$0xff] %vm2295_vm9, %v2118_v32 }
 0x123   :  { %2688 = vst.msk [vmem:[#allocation3 + $0x30] sm:$0xff] %vm2681_vm10, %v2502_v34  ;;  %6351 = vmatmul.mubr.msk.f32.gmra.mrb[4].mxu0 %vm3582_vm13, %v3521_v36  ;;  %595 = vrot.lane.b32.xlu0 %v2758_v21, %s6679_s27  ;;  %v7513_v21 = vld [vmem:[#allocation2 + $0xf9] sm:$0xff] }
 0x124   :  { %1748 = vrot.lane.b32.xlu1 %v2759_v28, %s6681_s5 }
 0x125   :  { %v967_v37 = vpop.permute.xlu0 %966  ;;  %v1350_v38 = vpop.permute.xlu1 %1349 }
 0x126   :  { %1150 = vst.msk [vmem:[#allocation3 + $0x48] sm:$0xff] %vm1140_vm6, %v967_v37 }
 0x127   :  { %1534 = vst.msk [vmem:[#allocation3 + $0x40] sm:$0xff] %vm1525_vm7, %v1350_v38  ;;  %2131 = vrot.lane.b32.xlu0 %v3143_v29, %s6682_s0  ;;  %v7629_v37 = vld [vmem:[#allocation2 + $0x168] sm:$0xff] }
 0x128   :  { %3285 = vrot.lane.b32.xlu1 %v3144_v54, %s6686_s21  ;;  %v207_v38 = vld [vmem:[%s9638_s23 + $0xe8] sm:$0xff]  ;;  %401 = vst.msk [vmem:[#allocation3 + $0xf0] sm:$0xff] %vm68_vm0, %v7629_v37 }
 0x129   :  { %v2504_v40 = vpop.permute.xlu0 %2503  ;;  %v2887_v41 = vpop.permute.xlu1 %2886  ;;  %272 = vst.msk [vmem:[#allocation2 + $0x171] sm:$0xff] %vm68_vm0, %v207_v38 }
 0x12a   :  { %2689 = vst.msk [vmem:[#allocation3 + $0x38] sm:$0xff] %vm2681_vm10, %v2504_v40 }
 0x12b   :  { %3073 = vst.msk [vmem:[#allocation3 + $0x30] sm:$0xff] %vm3066_vm11, %v2887_v41  ;;  %597 = vrot.lane.b32.xlu0 %v2759_v28, %s6679_s27  ;;  %v3148_v28 = vld [vmem:[#allocation2 + $0xfa] sm:$0xff]  ;;  %v2764_v41 = vld [vmem:[#allocation2 + $0x109] sm:$0xff] }
 0x12c   :  { %980 = vrot.lane.b32.xlu1 %v3143_v29, %s6678_s26 }
 0x12d   :  { %v1352_v42 = vpop.permute.xlu0 %1351  ;;  %v1735_v35 = vpop.permute.xlu1 %1734 }
 0x12e   :  { %1535 = vst.msk [vmem:[#allocation3 + $0x48] sm:$0xff] %vm1525_vm7, %v1352_v42 }
 0x12f   :  { %1919 = vst.msk [vmem:[#allocation3 + $0x40] sm:$0xff] %vm1910_vm8, %v1735_v35  ;;  %2133 = vrot.lane.b32.xlu0 %v3144_v54, %s6682_s0 }
 0x130   :  { %2517 = vrot.lane.b32.xlu1 %v7213_v63, %s6683_s22  ;;  %v7647_v45 = vld [vmem:[#allocation2 + $0x170] sm:$0xff] }
 0x131   :  { %v2889_v47 = vpop.permute.xlu0 %2888  ;;  %v3272_v48 = vpop.permute.xlu1 %3271  ;;  %402 = vst.msk [vmem:[#allocation3 + $0xf8] sm:$0xff] %vm68_vm0, %v7647_v45 }
 0x132   :  { %3074 = vst.msk [vmem:[#allocation3 + $0x38] sm:$0xff] %vm3066_vm11, %v2889_v47 }
 0x133   :  { %3458 = vst.msk [vmem:[#allocation3 + $0x30] sm:$0xff] %vm3451_vm12, %v3272_v48  ;;  %982 = vrot.lane.b32.xlu0 %v3144_v54, %s6678_s26 }
 0x134   :  { %1365 = vrot.lane.b32.xlu1 %v7213_v63, %s6680_s28 }
 0x135   :  { %v584_v50 = vpop.permute.xlu0 %583  ;;  %v1737_v52 = vpop.permute.xlu1 %1736 }
 0x136   :  { %766 = vst.msk [vmem:[#allocation3 + $0x50] sm:$0xff] %vm755_vm5, %v584_v50  ;;  %v3149_v50 = vld [vmem:[#allocation2 + $0x10a] sm:$0xff] }
 0x137   :  { %1920 = vst.msk [vmem:[#allocation3 + $0x48] sm:$0xff] %vm1910_vm8, %v1737_v52  ;;  %2519 = vrot.lane.b32.xlu0 %v7232_v7, %s6683_s22 }
 0x138   :  { %2902 = vrot.lane.b32.xlu1 %v2760_v49, %s6684_s24 }
 0x139   :  { %v2120_v56 = vpop.permute.xlu0 %2119  ;;  %v3274_v57 = vpop.permute.xlu1 %3273 }
 0x13a   :  { %v3522_v63 = vld [vmem:[#allocation3 + $0x30] sm:$0xff]  ;;  %2304 = vst.msk [vmem:[#allocation3 + $0x40] sm:$0xff] %vm2295_vm9, %v2120_v56 }
 0x13b   :  { %3459 = vst.msk [vmem:[#allocation3 + $0x38] sm:$0xff] %vm3451_vm12, %v3274_v57  ;;  %6353 = vmatprep.mubr.msk.f32.mxu0 %vm3582_vm13, %v3522_v63  ;;  %1367 = vrot.lane.b32.xlu0 %v7232_v7, %s6680_s28  ;;  %v3146_v7 = vld [vmem:[#allocation2 + $0xe2] sm:$0xff] }
 0x13c   :  { %1750 = vrot.lane.b32.xlu1 %v2760_v49, %s6681_s5 }
 0x13d   :  { %v586_v60 = vpop.permute.xlu0 %585  ;;  %v969_v62 = vpop.permute.xlu1 %968 }
 0x13e   :  { %767 = vst.msk [vmem:[#allocation3 + $0x58] sm:$0xff] %vm755_vm5, %v586_v60 }
 0x13f   :  { %1151 = vst.msk [vmem:[#allocation3 + $0x50] sm:$0xff] %vm1140_vm6, %v969_v62  ;;  %2904 = vrot.lane.b32.xlu0 %v2761_v58, %s6684_s24  ;;  %v208_v62 = vld [vmem:[%s9638_s23 + $0xf0] sm:$0xff] }
 0x140   :  { %3287 = vrot.lane.b32.xlu1 %v3145_v59, %s6686_s21  ;;  %273 = vst.msk [vmem:[#allocation2 + $0x181] sm:$0xff] %vm68_vm0, %v208_v62  ;;  %v213_v62 = vld [vmem:[%s9638_s23 + $0x118] sm:$0xff] }
 0x141   :  { %v2122_v1 = vpop.permute.xlu0 %2121  ;;  %v2506_v43 = vpop.permute.xlu1 %2505  ;;  %278 = vst.msk [vmem:[#allocation2 + $0x1e9] sm:$0xff] %vm68_vm0, %v213_v62 }
 0x142   :  { %v3523_v2 = vld [vmem:[#allocation3 + $0x38] sm:$0xff]  ;;  %2305 = vst.msk [vmem:[#allocation3 + $0x48] sm:$0xff] %vm2295_vm9, %v2122_v1 }
 0x143   :  { %2690 = vst.msk [vmem:[#allocation3 + $0x40] sm:$0xff] %vm2681_vm10, %v2506_v43  ;;  %6354 = vmatmul.mubr.msk.f32.gmra.mrb[6].mxu0 %vm3582_vm13, %v3523_v2  ;;  %599 = vrot.lane.b32.xlu0 %v2760_v49, %s6679_s27  ;;  %v2765_v49 = vld [vmem:[#allocation2 + $0x111] sm:$0xff] }
 0x144   :  { %1752 = vrot.lane.b32.xlu1 %v2761_v58, %s6681_s5 }
 0x145   :  { %v971_v3 = vpop.permute.xlu0 %970  ;;  %v1354_v4 = vpop.permute.xlu1 %1353 }
 0x146   :  { %1152 = vst.msk [vmem:[#allocation3 + $0x58] sm:$0xff] %vm1140_vm6, %v971_v3  ;;  %v209_v3 = vld [vmem:[%s9638_s23 + $0xf8] sm:$0xff] }
 0x147   :  { %1536 = vst.msk [vmem:[#allocation3 + $0x50] sm:$0xff] %vm1525_vm7, %v1354_v4  ;;  %2135 = vrot.lane.b32.xlu0 %v3145_v59, %s6682_s0 }
 0x148   :  { %3289 = vrot.lane.b32.xlu1 %v3146_v7, %s6686_s21  ;;  %274 = vst.msk [vmem:[#allocation2 + $0x189] sm:$0xff] %vm68_vm0, %v209_v3 }
 0x149   :  { %v2508_v6 = vpop.permute.xlu0 %2507  ;;  %v2891_v8 = vpop.permute.xlu1 %2890 }
 0x14a   :  { %2691 = vst.msk [vmem:[#allocation3 + $0x48] sm:$0xff] %vm2681_vm10, %v2508_v6  ;;  %v2766_v6 = vld [vmem:[#allocation2 + $0x121] sm:$0xff] }
 0x14b   :  { %3075 = vst.msk [vmem:[#allocation3 + $0x40] sm:$0xff] %vm3066_vm11, %v2891_v8  ;;  %601 = vrot.lane.b32.xlu0 %v2761_v58, %s6679_s27 }
 0x14c   :  { %984 = vrot.lane.b32.xlu1 %v3145_v59, %s6678_s26 }
 0x14d   :  { %v1356_v9 = vpop.permute.xlu0 %1355 }
 0x14e   :  { %v1739_v46 = vpop.permute.xlu1 %1738  ;;  %1537 = vst.msk [vmem:[#allocation3 + $0x58] sm:$0xff] %vm1525_vm7, %v1356_v9 }
 0x14f   :  { %1921 = vst.msk [vmem:[#allocation3 + $0x50] sm:$0xff] %vm1910_vm8, %v1739_v46  ;;  %2137 = vrot.lane.b32.xlu0 %v3146_v7, %s6682_s0 }
 0x150   :  { %2521 = vrot.lane.b32.xlu1 %v7266_v24, %s6683_s22 }
 0x151   :  { %v2893_v12 = vpop.permute.xlu0 %2892 }
 0x152   :  { %v3276_v13 = vpop.permute.xlu1 %3275  ;;  %3076 = vst.msk [vmem:[#allocation3 + $0x48] sm:$0xff] %vm3066_vm11, %v2893_v12 }
 0x153   :  { %3460 = vst.msk [vmem:[#allocation3 + $0x40] sm:$0xff] %vm3451_vm12, %v3276_v13  ;;  %986 = vrot.lane.b32.xlu0 %v3146_v7, %s6678_s26  ;;  %v3151_v13 = vld [vmem:[#allocation2 + $0x122] sm:$0xff] }
 0x154   :  { %1369 = vrot.lane.b32.xlu1 %v7266_v24, %s6680_s28 }
 0x155   :  { %v588_v15 = vpop.permute.xlu0 %587 }
 0x156   :  { %v1741_v16 = vpop.permute.xlu1 %1740  ;;  %768 = vst.msk [vmem:[#allocation3 + $0x60] sm:$0xff] %vm755_vm5, %v588_v15 }
 0x157   :  { %1922 = vst.msk [vmem:[#allocation3 + $0x58] sm:$0xff] %vm1910_vm8, %v1741_v16  ;;  %2523 = vrot.lane.b32.xlu0 %v7284_v31, %s6683_s22 }
 0x158   :  { %2906 = vrot.lane.b32.xlu1 %v2762_v14, %s6684_s24 }
 0x159   :  { %v2124_v19 = vpop.permute.xlu0 %2123 }
 0x15a   :  { %v3278_v20 = vpop.permute.xlu1 %3277  ;;  %v3524_v24 = vld [vmem:[#allocation3 + $0x40] sm:$0xff]  ;;  %2306 = vst.msk [vmem:[#allocation3 + $0x50] sm:$0xff] %vm2295_vm9, %v2124_v19 }
 0x15b   :  { %3461 = vst.msk [vmem:[#allocation3 + $0x48] sm:$0xff] %vm3451_vm12, %v3278_v20  ;;  %6356 = vmatprep.mubr.msk.f32.mxu0 %vm3582_vm13, %v3524_v24  ;;  %1371 = vrot.lane.b32.xlu0 %v7284_v31, %s6680_s28 }
 0x15c   :  { %1754 = vrot.lane.b32.xlu1 %v2762_v14, %s6681_s5 }
 0x15d   :  { %v590_v23 = vpop.permute.xlu0 %589 }
 0x15e   :  { %v973_v26 = vpop.permute.xlu1 %972  ;;  %769 = vst.msk [vmem:[#allocation3 + $0x68] sm:$0xff] %vm755_vm5, %v590_v23 }
 0x15f   :  { %1153 = vst.msk [vmem:[#allocation3 + $0x60] sm:$0xff] %vm1140_vm6, %v973_v26  ;;  %2908 = vrot.lane.b32.xlu0 %v7513_v21, %s6684_s24  ;;  %v210_v26 = vld [vmem:[%s9638_s23 + $0x100] sm:$0xff] }
 0x160   :  { %3291 = vrot.lane.b32.xlu1 %v7515_v22, %s6686_s21  ;;  %275 = vst.msk [vmem:[#allocation2 + $0x1c9] sm:$0xff] %vm68_vm0, %v210_v26 }
 0x161   :  { %v2126_v31 = vpop.permute.xlu0 %2125 }
 0x162   :  { %v2510_v27 = vpop.permute.xlu1 %2509  ;;  %v3525_v51 = vld [vmem:[#allocation3 + $0x48] sm:$0xff]  ;;  %2307 = vst.msk [vmem:[#allocation3 + $0x58] sm:$0xff] %vm2295_vm9, %v2126_v31 }
 0x163   :  { %2692 = vst.msk [vmem:[#allocation3 + $0x50] sm:$0xff] %vm2681_vm10, %v2510_v27  ;;  %6357 = vmatmul.mubr.msk.f32.gmra.mrb[8].mxu0 %vm3582_vm13, %v3525_v51  ;;  %603 = vrot.lane.b32.xlu0 %v2762_v14, %s6679_s27 }
 0x164   :  { %1756 = vrot.lane.b32.xlu1 %v7513_v21, %s6681_s5 }
 0x165   :  { %v975_v29 = vpop.permute.xlu0 %974 }
 0x166   :  { %v1358_v30 = vpop.permute.xlu1 %1357  ;;  %1154 = vst.msk [vmem:[#allocation3 + $0x68] sm:$0xff] %vm1140_vm6, %v975_v29 }
 0x167   :  { %1538 = vst.msk [vmem:[#allocation3 + $0x60] sm:$0xff] %vm1525_vm7, %v1358_v30  ;;  %2139 = vrot.lane.b32.xlu0 %v7515_v22, %s6682_s0  ;;  %v7734_v29 = vld [vmem:[#allocation2 + $0x1c8] sm:$0xff] }
 0x168   :  { %3293 = vrot.lane.b32.xlu1 %v3148_v28, %s6686_s21  ;;  %v211_v30 = vld [vmem:[%s9638_s23 + $0x108] sm:$0xff]  ;;  %405 = vst.msk [vmem:[#allocation3 + $0x110] sm:$0xff] %vm68_vm0, %v7734_v29 }
 0x169   :  { %v2512_v32 = vpop.permute.xlu0 %2511  ;;  %276 = vst.msk [vmem:[#allocation2 + $0x1d1] sm:$0xff] %vm68_vm0, %v211_v30 }
 0x16a   :  { %v2895_v34 = vpop.permute.xlu1 %2894  ;;  %2693 = vst.msk [vmem:[#allocation3 + $0x58] sm:$0xff] %vm2681_vm10, %v2512_v32 }
 0x16b   :  { %3077 = vst.msk [vmem:[#allocation3 + $0x50] sm:$0xff] %vm3066_vm11, %v2895_v34  ;;  %605 = vrot.lane.b32.xlu0 %v7513_v21, %s6679_s27 }
 0x16c   :  { %988 = vrot.lane.b32.xlu1 %v7515_v22, %s6678_s26 }
 0x16d   :  { %v1360_v36 = vpop.permute.xlu0 %1359 }
 0x16e   :  { %v1743_v54 = vpop.permute.xlu1 %1742  ;;  %1539 = vst.msk [vmem:[#allocation3 + $0x68] sm:$0xff] %vm1525_vm7, %v1360_v36 }
 0x16f   :  { %1923 = vst.msk [vmem:[#allocation3 + $0x60] sm:$0xff] %vm1910_vm8, %v1743_v54  ;;  %2141 = vrot.lane.b32.xlu0 %v3148_v28, %s6682_s0 }
 0x170   :  { %2525 = vrot.lane.b32.xlu1 %v7320_v53, %s6683_s22 }
 0x171   :  { %v2897_v39 = vpop.permute.xlu0 %2896 }
 0x172   :  { %v3280_v40 = vpop.permute.xlu1 %3279  ;;  %3078 = vst.msk [vmem:[#allocation3 + $0x58] sm:$0xff] %vm3066_vm11, %v2897_v39 }
 0x173   :  { %3462 = vst.msk [vmem:[#allocation3 + $0x50] sm:$0xff] %vm3451_vm12, %v3280_v40  ;;  %990 = vrot.lane.b32.xlu0 %v3148_v28, %s6678_s26  ;;  %v7755_v40 = vld [vmem:[#allocation2 + $0x1d0] sm:$0xff] }
 0x174   :  { %1373 = vrot.lane.b32.xlu1 %v7320_v53, %s6680_s28  ;;  %406 = vst.msk [vmem:[#allocation3 + $0x118] sm:$0xff] %vm68_vm0, %v7755_v40 }
 0x175   :  { %v592_v42 = vpop.permute.xlu0 %591 }
 0x176   :  { %v1745_v35 = vpop.permute.xlu1 %1744  ;;  %770 = vst.msk [vmem:[#allocation3 + $0x70] sm:$0xff] %vm755_vm5, %v592_v42  ;;  %v3153_v42 = vld [vmem:[#allocation2 + $0x13a] sm:$0xff] }
 0x177   :  { %1924 = vst.msk [vmem:[#allocation3 + $0x68] sm:$0xff] %vm1910_vm8, %v1745_v35  ;;  %2527 = vrot.lane.b32.xlu0 %v7338_v61, %s6683_s22 }
 0x178   :  { %2910 = vrot.lane.b32.xlu1 %v2764_v41, %s6684_s24 }
 0x179   :  { %v2128_v47 = vpop.permute.xlu0 %2127 }
 0x17a   :  { %v3282_v48 = vpop.permute.xlu1 %3281  ;;  %v3526_v53 = vld [vmem:[#allocation3 + $0x50] sm:$0xff]  ;;  %2308 = vst.msk [vmem:[#allocation3 + $0x60] sm:$0xff] %vm2295_vm9, %v2128_v47 }
 0x17b   :  { %3463 = vst.msk [vmem:[#allocation3 + $0x58] sm:$0xff] %vm3451_vm12, %v3282_v48  ;;  %6359 = vmatprep.mubr.msk.f32.mxu0 %vm3582_vm13, %v3526_v53  ;;  %1375 = vrot.lane.b32.xlu0 %v7338_v61, %s6680_s28  ;;  %v3150_v61 = vld [vmem:[#allocation2 + $0x112] sm:$0xff] }
 0x17c   :  { %1758 = vrot.lane.b32.xlu1 %v2764_v41, %s6681_s5 }
 0x17d   :  { %v594_v52 = vpop.permute.xlu0 %593 }
 0x17e   :  { %v977_v56 = vpop.permute.xlu1 %976  ;;  %771 = vst.msk [vmem:[#allocation3 + $0x78] sm:$0xff] %vm755_vm5, %v594_v52 }
 0x17f   :  { %1155 = vst.msk [vmem:[#allocation3 + $0x70] sm:$0xff] %vm1140_vm6, %v977_v56  ;;  %2912 = vrot.lane.b32.xlu0 %v2765_v49, %s6684_s24  ;;  %v212_v56 = vld [vmem:[%s9638_s23 + $0x110] sm:$0xff] }
 0x180   :  { %3295 = vrot.lane.b32.xlu1 %v3149_v50, %s6686_s21  ;;  %277 = vst.msk [vmem:[#allocation2 + $0x1e1] sm:$0xff] %vm68_vm0, %v212_v56 }
 0x181   :  { %v2130_v57 = vpop.permute.xlu0 %2129 }
 0x182   :  { %v2514_v63 = vpop.permute.xlu1 %2513  ;;  %v3527_v58 = vld [vmem:[#allocation3 + $0x58] sm:$0xff]  ;;  %2309 = vst.msk [vmem:[#allocation3 + $0x68] sm:$0xff] %vm2295_vm9, %v2130_v57 }
 0x183   :  { %2694 = vst.msk [vmem:[#allocation3 + $0x60] sm:$0xff] %vm2681_vm10, %v2514_v63  ;;  %6360 = vmatmul.mubr.msk.f32.gmra.mrb[10].mxu0 %vm3582_vm13, %v3527_v58  ;;  %607 = vrot.lane.b32.xlu0 %v2764_v41, %s6679_s27  ;;  %v2769_v41 = vld [vmem:[#allocation2 + $0x141] sm:$0xff] }
 0x184   :  { %1760 = vrot.lane.b32.xlu1 %v2765_v49, %s6681_s5 }
 0x185   :  { %v979_v59 = vpop.permute.xlu0 %978 }
 0x186   :  { %v1362_v60 = vpop.permute.xlu1 %1361  ;;  %1156 = vst.msk [vmem:[#allocation3 + $0x78] sm:$0xff] %vm1140_vm6, %v979_v59  ;;  %v7784_v59 = vld [vmem:[%s9640_s2] ss:$0 sm:$0xff] }
 0x187   :  { %1540 = vst.msk [vmem:[#allocation3 + $0x70] sm:$0xff] %vm1525_vm7, %v1362_v60  ;;  %2143 = vrot.lane.b32.xlu0 %v3149_v50, %s6682_s0  ;;  %v7788_v60 = vld [vmem:[#allocation2 + $0x1e0] sm:$0xff] }
 0x188   :  { %3297 = vrot.lane.b32.xlu1 %v3150_v61, %s6686_s21  ;;  %407 = vst.msk [vmem:[#allocation3 + $0x120] sm:$0xff] %vm68_vm0, %v7788_v60 }
 0x189   :  { %v2516_v1 = vpop.permute.xlu0 %2515 }
 0x18a   :  { %v2899_v43 = vpop.permute.xlu1 %2898  ;;  %2695 = vst.msk [vmem:[#allocation3 + $0x68] sm:$0xff] %vm2681_vm10, %v2516_v1 }
 0x18b   :  { %3079 = vst.msk [vmem:[#allocation3 + $0x60] sm:$0xff] %vm3066_vm11, %v2899_v43  ;;  %609 = vrot.lane.b32.xlu0 %v2765_v49, %s6679_s27 }
 0x18c   :  { %992 = vrot.lane.b32.xlu1 %v3149_v50, %s6678_s26  ;;  %v3154_v50 = vld [vmem:[#allocation2 + $0x142] sm:$0xff] }
 0x18d   :  { %v1364_v2 = vpop.permute.xlu0 %1363 }
 0x18e   :  { %v1747_v7 = vpop.permute.xlu1 %1746  ;;  %1541 = vst.msk [vmem:[#allocation3 + $0x78] sm:$0xff] %vm1525_vm7, %v1364_v2 }
 0x18f   :  { %1925 = vst.msk [vmem:[#allocation3 + $0x70] sm:$0xff] %vm1910_vm8, %v1747_v7  ;;  %2145 = vrot.lane.b32.xlu0 %v3150_v61, %s6682_s0  ;;  %v7803_v7 = vld [vmem:[%s9641_s30] ss:$0 sm:$0xff] }
 0x190   :  { %2529 = vrot.lane.b32.xlu1 %v7374_v17, %s6683_s22 }
 0x191   :  { %v2901_v4 = vpop.permute.xlu0 %2900 }
 0x192   :  { %v3284_v5 = vpop.permute.xlu1 %3283  ;;  %3080 = vst.msk [vmem:[#allocation3 + $0x68] sm:$0xff] %vm3066_vm11, %v2901_v4 }
 0x193   :  { %3464 = vst.msk [vmem:[#allocation3 + $0x60] sm:$0xff] %vm3451_vm12, %v3284_v5  ;;  %994 = vrot.lane.b32.xlu0 %v3150_v61, %s6678_s26 }
 0x194   :  { %1377 = vrot.lane.b32.xlu1 %v7374_v17, %s6680_s28  ;;  %v2767_v17 = vld [vmem:[#allocation2 + $0x129] sm:$0xff] }
 0x195   :  { %v596_v8 = vpop.permute.xlu0 %595 }
 0x196   :  { %v1749_v9 = vpop.permute.xlu1 %1748  ;;  %772 = vst.msk [vmem:[#allocation3 + $0x80] sm:$0xff] %vm755_vm5, %v596_v8 }
 0x197   :  { %1926 = vst.msk [vmem:[#allocation3 + $0x78] sm:$0xff] %vm1910_vm8, %v1749_v9  ;;  %2531 = vrot.lane.b32.xlu0 %v7392_v25, %s6683_s22 }
 0x198   :  { %2914 = vrot.lane.b32.xlu1 %v2766_v6, %s6684_s24 }
 0x199   :  { %v2132_v46 = vpop.permute.xlu0 %2131 }
 0x19a   :  { %v3286_v11 = vpop.permute.xlu1 %3285  ;;  %v3528_v12 = vld [vmem:[#allocation3 + $0x60] sm:$0xff]  ;;  %2310 = vst.msk [vmem:[#allocation3 + $0x70] sm:$0xff] %vm2295_vm9, %v2132_v46 }
 0x19b   :  { %3465 = vst.msk [vmem:[#allocation3 + $0x68] sm:$0xff] %vm3451_vm12, %v3286_v11  ;;  %6362 = vmatprep.mubr.msk.f32.mxu0 %vm3582_vm13, %v3528_v12  ;;  %1379 = vrot.lane.b32.xlu0 %v7392_v25, %s6680_s28  ;;  %v3152_v25 = vld [vmem:[#allocation2 + $0x12a] sm:$0xff] }
 0x19c   :  { %1762 = vrot.lane.b32.xlu1 %v2766_v6, %s6681_s5 }
 0x19d   :  { %v598_v14 = vpop.permute.xlu0 %597 }
 0x19e   :  { %v981_v15 = vpop.permute.xlu1 %980  ;;  %773 = vst.msk [vmem:[#allocation3 + $0x88] sm:$0xff] %vm755_vm5, %v598_v14 }
 0x19f   :  { %1157 = vst.msk [vmem:[#allocation3 + $0x80] sm:$0xff] %vm1140_vm6, %v981_v15  ;;  %2916 = vrot.lane.b32.xlu0 %v2767_v17, %s6684_s24 }
 0x1a0   :  { %3299 = vrot.lane.b32.xlu1 %v3151_v13, %s6686_s21 }
 0x1a1   :  { %v2134_v16 = vpop.permute.xlu0 %2133 }
 0x1a2   :  { %v2518_v19 = vpop.permute.xlu1 %2517  ;;  %v3529_v20 = vld [vmem:[#allocation3 + $0x68] sm:$0xff]  ;;  %2311 = vst.msk [vmem:[#allocation3 + $0x78] sm:$0xff] %vm2295_vm9, %v2134_v16 }
 0x1a3   :  { %2696 = vst.msk [vmem:[#allocation3 + $0x70] sm:$0xff] %vm2681_vm10, %v2518_v19  ;;  %6363 = vmatmul.mubr.msk.f32.gmra.mrb[12].mxu0 %vm3582_vm13, %v3529_v20  ;;  %611 = vrot.lane.b32.xlu0 %v2766_v6, %s6679_s27  ;;  %v2770_v6 = vld [vmem:[#allocation2 + $0x151] sm:$0xff] }
 0x1a4   :  { %1764 = vrot.lane.b32.xlu1 %v2767_v17, %s6681_s5 }
 0x1a5   :  { %v983_v24 = vpop.permute.xlu0 %982 }
 0x1a6   :  { %v1366_v21 = vpop.permute.xlu1 %1365  ;;  %1158 = vst.msk [vmem:[#allocation3 + $0x88] sm:$0xff] %vm1140_vm6, %v983_v24 }
 0x1a7   :  { %1542 = vst.msk [vmem:[#allocation3 + $0x80] sm:$0xff] %vm1525_vm7, %v1366_v21  ;;  %2147 = vrot.lane.b32.xlu0 %v3151_v13, %s6682_s0 }
 0x1a8   :  { %3301 = vrot.lane.b32.xlu1 %v3152_v25, %s6686_s21 }
 0x1a9   :  { %v2520_v22 = vpop.permute.xlu0 %2519 }
 0x1aa   :  { %v2903_v23 = vpop.permute.xlu1 %2902  ;;  %2697 = vst.msk [vmem:[#allocation3 + $0x78] sm:$0xff] %vm2681_vm10, %v2520_v22 }
 0x1ab   :  { %3081 = vst.msk [vmem:[#allocation3 + $0x70] sm:$0xff] %vm3066_vm11, %v2903_v23  ;;  %613 = vrot.lane.b32.xlu0 %v2767_v17, %s6679_s27  ;;  %v2771_v23 = vld [vmem:[#allocation2 + $0x159] sm:$0xff] }
 0x1ac   :  { %996 = vrot.lane.b32.xlu1 %v3151_v13, %s6678_s26 }
 0x1ad   :  { %v1368_v31 = vpop.permute.xlu0 %1367 }
 0x1ae   :  { %v1751_v27 = vpop.permute.xlu1 %1750  ;;  %1543 = vst.msk [vmem:[#allocation3 + $0x88] sm:$0xff] %vm1525_vm7, %v1368_v31 }
 0x1af   :  { %1927 = vst.msk [vmem:[#allocation3 + $0x80] sm:$0xff] %vm1910_vm8, %v1751_v27  ;;  %2149 = vrot.lane.b32.xlu0 %v3152_v25, %s6682_s0  ;;  %v3155_v27 = vld [vmem:[#allocation2 + $0x152] sm:$0xff] }
 0x1b0   :  { %2533 = vrot.lane.b32.xlu1 %v7428_v44, %s6683_s22 }
 0x1b1   :  { %v2905_v51 = vpop.permute.xlu0 %2904 }
 0x1b2   :  { %v3288_v28 = vpop.permute.xlu1 %3287  ;;  %3082 = vst.msk [vmem:[#allocation3 + $0x78] sm:$0xff] %vm3066_vm11, %v2905_v51 }
 0x1b3   :  { %3466 = vst.msk [vmem:[#allocation3 + $0x70] sm:$0xff] %vm3451_vm12, %v3288_v28  ;;  %998 = vrot.lane.b32.xlu0 %v3152_v25, %s6678_s26 }
 0x1b4   :  { %1381 = vrot.lane.b32.xlu1 %v7428_v44, %s6680_s28 }
 0x1b5   :  { %v600_v32 = vpop.permute.xlu0 %599 }
 0x1b6   :  { %v6346_v34 = vpop.f32.mrb[0].mxu0  ;;  %774 = vst.msk [vmem:[#allocation3 + $0x90] sm:$0xff] %vm755_vm5, %v600_v32  ;;  %v1753_v36 = vpop.permute.xlu1 %1752  ;;  %v3156_v32 = vld [vmem:[#allocation2 + $0x15a] sm:$0xff] }
 0x1b7   :  { %v7743_v54 = vpop.f32.mrb[1].mxu0  ;;  %1928 = vst.msk [vmem:[#allocation3 + $0x88] sm:$0xff] %vm1910_vm8, %v1753_v36  ;;  %2535 = vrot.lane.b32.xlu0 %v7449_v55, %s6683_s22  ;;  %v4172_v43 = vmul.f32 %v6346_v34, %v7784_v59 }
 0x1b8   :  { %2918 = vrot.lane.b32.xlu1 %v2768_v33, %s6684_s24  ;;  %v4171_v3 = vmul.f32 %v7784_v59, %v7743_v54 }
 0x1b9   :  { %v2136_v44 = vpop.permute.xlu0 %2135  ;;  %v4243_v8 = vadd.f32 %v7803_v7, %v4172_v43 }
 0x1ba   :  { %v3530_v38 = vld [vmem:[#allocation3 + $0x70] sm:$0xff]  ;;  %2312 = vst.msk [vmem:[#allocation3 + $0x80] sm:$0xff] %vm2295_vm9, %v2136_v44  ;;  %v3290_v39 = vpop.permute.xlu1 %3289  ;;  %v4242_v12 = vadd.f32 %v7803_v7, %v4171_v3 }
 0x1bb   :  { %6365 = vmatprep.mubr.msk.f32.mxu0 %vm3582_vm13, %v3530_v38  ;;  %3467 = vst.msk [vmem:[#allocation3 + $0x78] sm:$0xff] %vm3451_vm12, %v3290_v39  ;;  %1383 = vrot.lane.b32.xlu0 %v7449_v55, %s6680_s28  ;;  %v4307_v16 = vmax.f32 %v4243_v8, 0.0  ;;  %v214_v38 = vld [vmem:[%s9638_s23 + $0x120] sm:$0xff] }
 0x1bc   :  { %1766 = vrot.lane.b32.xlu1 %v2768_v33, %s6681_s5  ;;  %v4306_v24 = vmax.f32 %v4242_v12, 0.0  ;;  %279 = vst.msk [vmem:[#allocation2 + $0x1f9] sm:$0xff] %vm68_vm0, %v214_v38  ;;  %v216_v12 = vld [vmem:[%s9638_s23 + $0x130] sm:$0xff] }
 0x1bd   :  { %v602_v35 = vpop.permute.xlu0 %601  ;;  %281 = vst.msk [vmem:[#allocation2 + $0x211] sm:$0xff] %vm68_vm0, %v216_v12 }
 0x1be   :  { %775 = vst.msk [vmem:[#allocation3 + $0x98] sm:$0xff] %vm755_vm5, %v602_v35  ;;  %v985_v47 = vpop.permute.xlu1 %984 }
 0x1bf   :  { %1159 = vst.msk [vmem:[#allocation3 + $0x90] sm:$0xff] %vm1140_vm6, %v985_v47  ;;  %2920 = vrot.lane.b32.xlu0 %v2769_v41, %s6684_s24  ;;  %v4572_v47 = vld [vmem:[#allocation5] sm:$0xff] }
 0x1c0   :  { %3303 = vrot.lane.b32.xlu1 %v3153_v42, %s6686_s21 }
 0x1c1   :  { %v2138_v55 = vpop.permute.xlu0 %2137 }
 0x1c2   :  { %2313 = vst.msk [vmem:[#allocation3 + $0x88] sm:$0xff] %vm2295_vm9, %v2138_v55  ;;  %v2522_v48 = vpop.permute.xlu1 %2521  ;;  %v3531_v53 = vld [vmem:[#allocation3 + $0x78] sm:$0xff] }
 0x1c3   :  { %2698 = vst.msk [vmem:[#allocation3 + $0x80] sm:$0xff] %vm2681_vm10, %v2522_v48  ;;  %6366 = vmatmul.mubr.msk.f32.gmra.mrb[14].mxu0 %vm3582_vm13, %v3531_v53  ;;  %615 = vrot.lane.b32.xlu0 %v2768_v33, %s6679_s27  ;;  %v7859_v55 = vld [vmem:[#allocation2 + $0x1f8] sm:$0xff]  ;;  %v215_v48 = vld [vmem:[%s9638_s23 + $0x128] sm:$0xff] }
 0x1c4   :  { %1768 = vrot.lane.b32.xlu1 %v2769_v41, %s6681_s5  ;;  %280 = vst.msk [vmem:[#allocation2 + $0x201] sm:$0xff] %vm68_vm0, %v215_v48  ;;  %409 = vst.msk [vmem:[#allocation3 + $0x130] sm:$0xff] %vm68_vm0, %v7859_v55 }
 0x1c5   :  { %v987_v49 = vpop.permute.xlu0 %986 }
 0x1c6   :  { %1160 = vst.msk [vmem:[#allocation3 + $0x98] sm:$0xff] %vm1140_vm6, %v987_v49  ;;  %v1370_v52 = vpop.permute.xlu1 %1369 }
 0x1c7   :  { %1544 = vst.msk [vmem:[#allocation3 + $0x90] sm:$0xff] %vm1525_vm7, %v1370_v52  ;;  %2151 = vrot.lane.b32.xlu0 %v3153_v42, %s6682_s0 }
 0x1c8   :  { %3305 = vrot.lane.b32.xlu1 %v3154_v50, %s6686_s21 }
 0x1c9   :  { %v2524_v57 = vpop.permute.xlu0 %2523 }
 0x1ca   :  { %2699 = vst.msk [vmem:[#allocation3 + $0x88] sm:$0xff] %vm2681_vm10, %v2524_v57  ;;  %v2907_v63 = vpop.permute.xlu1 %2906 }
 0x1cb   :  { %3083 = vst.msk [vmem:[#allocation3 + $0x80] sm:$0xff] %vm3066_vm11, %v2907_v63  ;;  %617 = vrot.lane.b32.xlu0 %v2769_v41, %s6679_s27  ;;  %v2772_v63 = vld [vmem:[#allocation2 + $0x169] sm:$0xff]  ;;  %v7882_v62 = vld [vmem:[#allocation2 + $0x200] sm:$0xff] }
 0x1cc   :  { %1000 = vrot.lane.b32.xlu1 %v3153_v42, %s6678_s26  ;;  %410 = vst.msk [vmem:[#allocation3 + $0x138] sm:$0xff] %vm68_vm0, %v7882_v62 }
 0x1cd   :  { %v1372_v58 = vpop.permute.xlu0 %1371 }
 0x1ce   :  { %1545 = vst.msk [vmem:[#allocation3 + $0x98] sm:$0xff] %vm1525_vm7, %v1372_v58  ;;  %v1755_v61 = vpop.permute.xlu1 %1754 }
 0x1cf   :  { %1929 = vst.msk [vmem:[#allocation3 + $0x90] sm:$0xff] %vm1910_vm8, %v1755_v61  ;;  %2153 = vrot.lane.b32.xlu0 %v3154_v50, %s6682_s0 }
 0x1d0   :  { %2537 = vrot.lane.b32.xlu1 %v7485_v10, %s6683_s22 }
 0x1d1   :  { %v2909_v1 = vpop.permute.xlu0 %2908 }
 0x1d2   :  { %3084 = vst.msk [vmem:[#allocation3 + $0x88] sm:$0xff] %vm3066_vm11, %v2909_v1  ;;  %v3292_v2 = vpop.permute.xlu1 %3291 }
 0x1d3   :  { %3468 = vst.msk [vmem:[#allocation3 + $0x80] sm:$0xff] %vm3451_vm12, %v3292_v2  ;;  %1002 = vrot.lane.b32.xlu0 %v3154_v50, %s6678_s26  ;;  %v2773_v2 = vld [vmem:[#allocation2 + $0x171] sm:$0xff] }
 0x1d4   :  { %1385 = vrot.lane.b32.xlu1 %v7485_v10, %s6680_s28  ;;  %v7819_v10 = vld [vmem:[#allocation2 + $0x1e8] sm:$0xff] }
 0x1d5   :  { %v604_v4 = vpop.permute.xlu0 %603  ;;  %408 = vst.msk [vmem:[#allocation3 + $0x128] sm:$0xff] %vm68_vm0, %v7819_v10 }
 0x1d6   :  { %v6349_v5 = vpop.f32.mrb[2].mxu0  ;;  %776 = vst.msk [vmem:[#allocation3 + $0xa0] sm:$0xff] %vm755_vm5, %v604_v4  ;;  %v1757_v9 = vpop.permute.xlu1 %1756  ;;  %v3157_v4 = vld [vmem:[#allocation2 + $0x16a] sm:$0xff] }
 0x1d7   :  { %v4174_v46 = vmul.f32 %v6349_v5, %v7784_v59  ;;  %v3855_v11 = vpop.f32.mrb[3].mxu0  ;;  %1930 = vst.msk [vmem:[#allocation3 + $0x98] sm:$0xff] %vm1910_vm8, %v1757_v9  ;;  %2539 = vrot.lane.b32.xlu0 %v7503_v18, %s6683_s22 }
 0x1d8   :  { %v4173_v17 = vmul.f32 %v7784_v59, %v3855_v11  ;;  %2922 = vrot.lane.b32.xlu1 %v2770_v6, %s6684_s24 }
 0x1d9   :  { %v4245_v13 = vadd.f32 %v7803_v7, %v4174_v46  ;;  %v2140_v15 = vpop.permute.xlu0 %2139  ;;  %v3158_v46 = vld [vmem:[#allocation2 + $0x172] sm:$0xff] }
 0x1da   :  { %v4244_v14 = vadd.f32 %v7803_v7, %v4173_v17  ;;  %2314 = vst.msk [vmem:[#allocation3 + $0x90] sm:$0xff] %vm2295_vm9, %v2140_v15  ;;  %v3294_v20 = vpop.permute.xlu1 %3293  ;;  %v3532_v25 = vld [vmem:[#allocation3 + $0x80] sm:$0xff] }
 0x1db   :  { %v4309_v19 = vmax.f32 %v4245_v13, 0.0  ;;  %3469 = vst.msk [vmem:[#allocation3 + $0x88] sm:$0xff] %vm3451_vm12, %v3294_v20  ;;  %1387 = vrot.lane.b32.xlu0 %v7503_v18, %s6680_s28  ;;  %6368 = vmatprep.mubr.msk.f32.mxu0 %vm3582_vm13, %v3532_v25  ;;  %v2389_v15 = vld [vmem:[#allocation2 + $0x180] sm:$0xff]  ;;  %v217_v20 = vld [vmem:[%s9638_s23 + $0x138] sm:$0xff] }
 0x1dc   :  { %v4308_v21 = vmax.f32 %v4244_v14, 0.0  ;;  %1770 = vrot.lane.b32.xlu1 %v2770_v6, %s6681_s5  ;;  %282 = vst.msk [vmem:[#allocation2 + $0x219] sm:$0xff] %vm68_vm0, %v217_v20  ;;  %v219_v20 = vld [vmem:[%s9638_s23 + $0x148] sm:$0xff] }
 0x1dd   :  { %v4371_v22 = vmax.f32 %v4307_v16, %v4309_v19  ;;  %v606_v31 = vpop.permute.xlu0 %605  ;;  %v7917_v19 = vld [vmem:[#allocation2 + $0x210] sm:$0xff]  ;;  %284 = vst.msk [vmem:[#allocation2 + $0x231] sm:$0xff] %vm68_vm0, %v219_v20 }
 0x1de   :  { %v4370_v26 = vmax.f32 %v4306_v24, %v4308_v21  ;;  %777 = vst.msk [vmem:[#allocation3 + $0xa8] sm:$0xff] %vm755_vm5, %v606_v31  ;;  %v989_v51 = vpop.permute.xlu1 %988 }
 0x1df   :  { %4404 = vst.msk [vmem:[#allocation4 + $0x8] sm:$0xff] %vm4402_vm14, %v4371_v22  ;;  %2924 = vrot.lane.b32.xlu0 %v2771_v23, %s6684_s24 }
 0x1e0   :  { %4403 = vst.msk [vmem:[#allocation4] sm:$0xff] %vm4402_vm14, %v4370_v26  ;;  %3307 = vrot.lane.b32.xlu1 %v3155_v27, %s6686_s21  ;;  %v339_v26 = vld [vmem:[#allocation2 + $0x1b0] sm:$0xff] }
 0x1e1   :  { %1161 = vst.msk [vmem:[#allocation3 + $0xa0] sm:$0xff] %vm1140_vm6, %v989_v51  ;;  %v2142_v18 = vpop.permute.xlu0 %2141  ;;  %v2774_v51 = vld [vmem:[#allocation2 + $0x181] sm:$0xff] }
 0x1e2   :  { %2315 = vst.msk [vmem:[#allocation3 + $0x98] sm:$0xff] %vm2295_vm9, %v2142_v18  ;;  %v2526_v28 = vpop.permute.xlu1 %2525  ;;  %v3533_v30 = vld [vmem:[#allocation3 + $0x88] sm:$0xff] }
 0x1e3   :  { %2700 = vst.msk [vmem:[#allocation3 + $0x90] sm:$0xff] %vm2681_vm10, %v2526_v28  ;;  %6369 = vmatmul.mubr.msk.f32.gmra.mrb[16].mxu0 %vm3582_vm13, %v3533_v30  ;;  %619 = vrot.lane.b32.xlu0 %v2770_v6, %s6679_s27 }
 0x1e4   :  { %1772 = vrot.lane.b32.xlu1 %v2771_v23, %s6681_s5  ;;  %411 = vst.msk [vmem:[#allocation3 + $0x140] sm:$0xff] %vm68_vm0, %v7917_v19  ;;  %403 = vst.msk [vmem:[#allocation3 + $0x100] sm:$0xff] %vm68_vm0, %v339_v26 }
 0x1e5   :  { %v991_v33 = vpop.permute.xlu0 %990 }
 0x1e6   :  { %1162 = vst.msk [vmem:[#allocation3 + $0xa8] sm:$0xff] %vm1140_vm6, %v991_v33  ;;  %v1374_v54 = vpop.permute.xlu1 %1373 }
 0x1e7   :  { %v4435_v34 = vld [vmem:[#allocation4] ss:$2 sm:$0xff]  ;;  %v4467_v36 = vld [vmem:[#allocation4 + $0x1] ss:$2 sm:$0xff]  ;;  %1546 = vst.msk [vmem:[#allocation3 + $0xa0] sm:$0xff] %vm1525_vm7, %v1374_v54  ;;  %2155 = vrot.lane.b32.xlu0 %v3155_v27, %s6682_s0 }
 0x1e8   :  { %v4498_v44 = vmax.f32 %v4435_v34, %v4467_v36  ;;  %3309 = vrot.lane.b32.xlu1 %v3156_v32, %s6686_s21  ;;  %v7940_v36 = vld [vmem:[#allocation2 + $0x218] sm:$0xff] }
 0x1e9   :  { %v2528_v39 = vpop.permute.xlu0 %2527  ;;  %412 = vst.msk [vmem:[#allocation3 + $0x148] sm:$0xff] %vm68_vm0, %v7940_v36 }
 0x1ea   :  { %4556 = vst.msk [vmem:[#allocation5 + $0x11] sm:$0xff] %vm4402_vm14, %v4498_v44  ;;  %v2911_v41 = vpop.permute.xlu1 %2910 }
 0x1eb   :  { %2701 = vst.msk [vmem:[#allocation3 + $0x98] sm:$0xff] %vm2681_vm10, %v2528_v39  ;;  %621 = vrot.lane.b32.xlu0 %v2771_v23, %s6679_s27  ;;  %v2390_v23 = vld [vmem:[#allocation2 + $0x188] sm:$0xff] }
 0x1ec   :  { %3085 = vst.msk [vmem:[#allocation3 + $0x90] sm:$0xff] %vm3066_vm11, %v2911_v41  ;;  %1004 = vrot.lane.b32.xlu1 %v3155_v27, %s6678_s26 }
 0x1ed   :  { %v1376_v42 = vpop.permute.xlu0 %1375 }
 0x1ee   :  { %1547 = vst.msk [vmem:[#allocation3 + $0xa8] sm:$0xff] %vm1525_vm7, %v1376_v42  ;;  %v1759_v35 = vpop.permute.xlu1 %1758 }
 0x1ef   :  { %1931 = vst.msk [vmem:[#allocation3 + $0xa0] sm:$0xff] %vm1910_vm8, %v1759_v35  ;;  %2157 = vrot.lane.b32.xlu0 %v3156_v32, %s6682_s0 }
 0x1f0   :  { %2541 = vrot.lane.b32.xlu1 %v7629_v37, %s6683_s22 }
 0x1f1   :  { %v7869_v53 = vld [vmem:[#allocation5 + $0x10] sm:$0xff]  ;;  %v2913_v49 = vpop.permute.xlu0 %2912 }
 0x1f2   :  { %v4588_v50 = vpack.c.bf16 %v7869_v53, %v4572_v47  ;;  %3086 = vst.msk [vmem:[#allocation3 + $0x98] sm:$0xff] %vm3066_vm11, %v2913_v49  ;;  %v3296_v52 = vpop.permute.xlu1 %3295 }
 0x1f3   :  { %3470 = vst.msk [vmem:[#allocation3 + $0x90] sm:$0xff] %vm3451_vm12, %v3296_v52  ;;  %1006 = vrot.lane.b32.xlu0 %v3156_v32, %s6678_s26 }
 0x1f4   :  { %4596 = vst.msk [vmem:[#allocation6] sm:$0xff] %vm4402_vm14, %v4588_v50  ;;  %1389 = vrot.lane.b32.xlu1 %v7629_v37, %s6680_s28  ;;  %v2775_v50 = vld [vmem:[#allocation2 + $0x189] sm:$0xff] }
 0x1f5   :  { %v608_v56 = vpop.permute.xlu0 %607 }
 0x1f6   :  { %v6352_v57 = vpop.f32.mrb[4].mxu0  ;;  %778 = vst.msk [vmem:[#allocation3 + $0xb0] sm:$0xff] %vm755_vm5, %v608_v56  ;;  %v1761_v58 = vpop.permute.xlu1 %1760 }
 0x1f7   :  { %v3865_v61 = vpop.f32.mrb[5].mxu0  ;;  %1932 = vst.msk [vmem:[#allocation3 + $0xa8] sm:$0xff] %vm1910_vm8, %v1761_v58  ;;  %2543 = vrot.lane.b32.xlu0 %v7647_v45, %s6683_s22  ;;  %v4176_v24 = vmul.f32 %v6352_v57, %v7784_v59  ;;  %v3159_v57 = vld [vmem:[#allocation2 + $0x182] sm:$0xff] }
 0x1f8   :  { %2926 = vrot.lane.b32.xlu1 %v2772_v63, %s6684_s24  ;;  %v4175_v22 = vmul.f32 %v7784_v59, %v3865_v61  ;;  %v467_v61 = vld [vmem:[#allocation2 + $0x1b1] sm:$0xff] }
 0x1f9   :  { %v2144_v37 = vpop.permute.xlu0 %2143  ;;  %v4247_v18 = vadd.f32 %v7803_v7, %v4176_v24 }
 0x1fa   :  { %2316 = vst.msk [vmem:[#allocation3 + $0xa0] sm:$0xff] %vm2295_vm9, %v2144_v37  ;;  %v3298_v1 = vpop.permute.xlu1 %3297  ;;  %v3534_v43 = vld [vmem:[#allocation3 + $0x90] sm:$0xff]  ;;  %v4246_v32 = vadd.f32 %v7803_v7, %v4175_v22 }
 0x1fb   :  { %3471 = vst.msk [vmem:[#allocation3 + $0x98] sm:$0xff] %vm3451_vm12, %v3298_v1  ;;  %1391 = vrot.lane.b32.xlu0 %v7647_v45, %s6680_s28  ;;  %6371 = vmatprep.mubr.msk.f32.mxu0 %vm3582_vm13, %v3534_v43  ;;  %v4311_v39 = vmax.f32 %v4247_v18, 0.0 }
 0x1fc   :  { %1774 = vrot.lane.b32.xlu1 %v2772_v63, %s6681_s5  ;;  %v4310_v47 = vmax.f32 %v4246_v32, 0.0 }
 0x1fd   :  { %v610_v3 = vpop.permute.xlu0 %609 }
 0x1fe   :  { %779 = vst.msk [vmem:[#allocation3 + $0xb8] sm:$0xff] %vm755_vm5, %v610_v3  ;;  %v993_v5 = vpop.permute.xlu1 %992  ;;  %v3160_v3 = vld [vmem:[#allocation2 + $0x18a] sm:$0xff] }
 0x1ff   :  { %1163 = vst.msk [vmem:[#allocation3 + $0xb0] sm:$0xff] %vm1140_vm6, %v993_v5  ;;  %2928 = vrot.lane.b32.xlu0 %v2773_v2, %s6684_s24 }
 0x200   :  { %3311 = vrot.lane.b32.xlu1 %v3157_v4, %s6686_s21 }
 0x201   :  { %v2146_v6 = vpop.permute.xlu0 %2145 }
 0x202   :  { %2317 = vst.msk [vmem:[#allocation3 + $0xa8] sm:$0xff] %vm2295_vm9, %v2146_v6  ;;  %v2530_v45 = vpop.permute.xlu1 %2529  ;;  %v3535_v8 = vld [vmem:[#allocation3 + $0x98] sm:$0xff] }
 0x203   :  { %2702 = vst.msk [vmem:[#allocation3 + $0xa0] sm:$0xff] %vm2681_vm10, %v2530_v45  ;;  %6372 = vmatmul.mubr.msk.f32.gmra.mrb[18].mxu0 %vm3582_vm13, %v3535_v8  ;;  %623 = vrot.lane.b32.xlu0 %v2772_v63, %s6679_s27  ;;  %v340_v63 = vld [vmem:[#allocation2 + $0x1b8] sm:$0xff]  ;;  %v218_v8 = vld [vmem:[%s9638_s23 + $0x140] sm:$0xff] }
 0x204   :  { %1776 = vrot.lane.b32.xlu1 %v2773_v2, %s6681_s5  ;;  %404 = vst.msk [vmem:[#allocation3 + $0x108] sm:$0xff] %vm68_vm0, %v340_v63  ;;  %283 = vst.msk [vmem:[#allocation2 + $0x229] sm:$0xff] %vm68_vm0, %v218_v8 }
 0x205   :  { %v995_v9 = vpop.permute.xlu0 %994 }
 0x206   :  { %1164 = vst.msk [vmem:[#allocation3 + $0xb8] sm:$0xff] %vm1140_vm6, %v995_v9  ;;  %v1378_v11 = vpop.permute.xlu1 %1377  ;;  %v468_v9 = vld [vmem:[#allocation2 + $0x1b9] sm:$0xff] }
 0x207   :  { %1548 = vst.msk [vmem:[#allocation3 + $0xb0] sm:$0xff] %vm1525_vm7, %v1378_v11  ;;  %2159 = vrot.lane.b32.xlu0 %v3157_v4, %s6682_s0  ;;  %v852_v11 = vld [vmem:[#allocation2 + $0x1b2] sm:$0xff] }
 0x208   :  { %3313 = vrot.lane.b32.xlu1 %v3158_v46, %s6686_s21 }
 0x209   :  { %v2532_v17 = vpop.permute.xlu0 %2531 }
 0x20a   :  { %2703 = vst.msk [vmem:[#allocation3 + $0xa8] sm:$0xff] %vm2681_vm10, %v2532_v17  ;;  %v2915_v13 = vpop.permute.xlu1 %2914 }
 0x20b   :  { %3087 = vst.msk [vmem:[#allocation3 + $0xa0] sm:$0xff] %vm3066_vm11, %v2915_v13  ;;  %625 = vrot.lane.b32.xlu0 %v2773_v2, %s6679_s27  ;;  %v2391_v13 = vld [vmem:[#allocation2 + $0x198] sm:$0xff]  ;;  %v8006_v32 = vld [vmem:[#allocation2 + $0x230] sm:$0xff] }
 0x20c   :  { %1008 = vrot.lane.b32.xlu1 %v3157_v4, %s6678_s26  ;;  %414 = vst.msk [vmem:[#allocation3 + $0x158] sm:$0xff] %vm68_vm0, %v8006_v32 }
 0x20d   :  { %v1380_v14 = vpop.permute.xlu0 %1379 }
 0x20e   :  { %1549 = vst.msk [vmem:[#allocation3 + $0xb8] sm:$0xff] %vm1525_vm7, %v1380_v14  ;;  %v1763_v16 = vpop.permute.xlu1 %1762 }
 0x20f   :  { %1933 = vst.msk [vmem:[#allocation3 + $0xb0] sm:$0xff] %vm1910_vm8, %v1763_v16  ;;  %2161 = vrot.lane.b32.xlu0 %v3158_v46, %s6682_s0  ;;  %v7980_v16 = vld [vmem:[#allocation2 + $0x228] sm:$0xff] }
 0x210   :  { %2545 = vrot.lane.b32.xlu1 %v2389_v15, %s6683_s22  ;;  %413 = vst.msk [vmem:[#allocation3 + $0x150] sm:$0xff] %vm68_vm0, %v7980_v16 }
 0x211   :  { %v2917_v25 = vpop.permute.xlu0 %2916 }
 0x212   :  { %3088 = vst.msk [vmem:[#allocation3 + $0xa8] sm:$0xff] %vm3066_vm11, %v2917_v25  ;;  %v3300_v21 = vpop.permute.xlu1 %3299  ;;  %v4605_v25 = vld [vmem:[#allocation5 + $0x11] sm:$0xff] }
 0x213   :  { %3472 = vst.msk [vmem:[#allocation3 + $0xa0] sm:$0xff] %vm3451_vm12, %v3300_v21  ;;  %1010 = vrot.lane.b32.xlu0 %v3158_v46, %s6678_s26 }
 0x214   :  { %1393 = vrot.lane.b32.xlu1 %v2389_v15, %s6680_s28  ;;  %v853_v15 = vld [vmem:[#allocation2 + $0x1ba] sm:$0xff] }
 0x215   :  { %v612_v31 = vpop.permute.xlu0 %611 }
 0x216   :  { %v6355_v27 = vpop.f32.mrb[6].mxu0  ;;  %780 = vst.msk [vmem:[#allocation3 + $0xc0] sm:$0xff] %vm755_vm5, %v612_v31  ;;  %v1765_v28 = vpop.permute.xlu1 %1764 }
 0x217   :  { %v4178_v30 = vmul.f32 %v6355_v27, %v7784_v59  ;;  %v3875_v33 = vpop.f32.mrb[7].mxu0  ;;  %1934 = vst.msk [vmem:[#allocation3 + $0xb8] sm:$0xff] %vm1910_vm8, %v1765_v28  ;;  %2547 = vrot.lane.b32.xlu0 %v2390_v23, %s6683_s22  ;;  %v2392_v27 = vld [vmem:[#allocation2 + $0x1a0] sm:$0xff] }
 0x218   :  { %v4177_v34 = vmul.f32 %v7784_v59, %v3875_v33  ;;  %2930 = vrot.lane.b32.xlu1 %v2774_v51, %s6684_s24  ;;  %v2776_v28 = vld [vmem:[#allocation2 + $0x199] sm:$0xff] }
 0x219   :  { %v4249_v54 = vadd.f32 %v7803_v7, %v4178_v30  ;;  %v2148_v38 = vpop.permute.xlu0 %2147 }
 0x21a   :  { %v4248_v44 = vadd.f32 %v7803_v7, %v4177_v34  ;;  %2318 = vst.msk [vmem:[#allocation3 + $0xb0] sm:$0xff] %vm2295_vm9, %v2148_v38  ;;  %v3302_v42 = vpop.permute.xlu1 %3301  ;;  %v3536_v35 = vld [vmem:[#allocation3 + $0xa0] sm:$0xff]  ;;  %v1622_v34 = vld [vmem:[#allocation2 + $0x1c9] sm:$0xff] }
 0x21b   :  { %v4313_v41 = vmax.f32 %v4249_v54, 0.0  ;;  %3473 = vst.msk [vmem:[#allocation3 + $0xa8] sm:$0xff] %vm3451_vm12, %v3302_v42  ;;  %1395 = vrot.lane.b32.xlu0 %v2390_v23, %s6680_s28  ;;  %6374 = vmatprep.mubr.msk.f32.mxu0 %vm3582_vm13, %v3536_v35  ;;  %v2777_v38 = vld [vmem:[#allocation2 + $0x1a1] sm:$0xff] }
 0x21c   :  { %v4312_v48 = vmax.f32 %v4248_v44, 0.0  ;;  %1778 = vrot.lane.b32.xlu1 %v2774_v51, %s6681_s5 }
 0x21d   :  { %v4373_v49 = vmax.f32 %v4311_v39, %v4313_v41  ;;  %v614_v56 = vpop.permute.xlu0 %613  ;;  %v3161_v41 = vld [vmem:[#allocation2 + $0x19a] sm:$0xff] }
 0x21e   :  { %v4372_v52 = vmax.f32 %v4310_v47, %v4312_v48  ;;  %781 = vst.msk [vmem:[#allocation3 + $0xc8] sm:$0xff] %vm755_vm5, %v614_v56  ;;  %v997_v58 = vpop.permute.xlu1 %996  ;;  %v1623_v47 = vld [vmem:[#allocation2 + $0x1d1] sm:$0xff] }
 0x21f   :  { %4406 = vst.msk [vmem:[#allocation4 + $0x18] sm:$0xff] %vm4402_vm14, %v4373_v49  ;;  %2932 = vrot.lane.b32.xlu0 %v2775_v50, %s6684_s24  ;;  %v2007_v49 = vld [vmem:[#allocation2 + $0x1ca] sm:$0xff] }
 0x220   :  { %4405 = vst.msk [vmem:[#allocation4 + $0x10] sm:$0xff] %vm4402_vm14, %v4372_v52  ;;  %3315 = vrot.lane.b32.xlu1 %v3159_v57, %s6686_s21  ;;  %v3162_v52 = vld [vmem:[#allocation2 + $0x1a2] sm:$0xff] }
 0x221   :  { %1165 = vst.msk [vmem:[#allocation3 + $0xc0] sm:$0xff] %vm1140_vm6, %v997_v58  ;;  %v2150_v37 = vpop.permute.xlu0 %2149 }
 0x222   :  { %2319 = vst.msk [vmem:[#allocation3 + $0xb8] sm:$0xff] %vm2295_vm9, %v2150_v37  ;;  %v2534_v1 = vpop.permute.xlu1 %2533  ;;  %v3537_v43 = vld [vmem:[#allocation3 + $0xa8] sm:$0xff] }
 0x223   :  { %2704 = vst.msk [vmem:[#allocation3 + $0xb0] sm:$0xff] %vm2681_vm10, %v2534_v1  ;;  %6375 = vmatmul.mubr.msk.f32.gmra.mrb[20].mxu0 %vm3582_vm13, %v3537_v43  ;;  %627 = vrot.lane.b32.xlu0 %v467_v61, %s6679_s27  ;;  %v2008_v61 = vld [vmem:[#allocation2 + $0x1d2] sm:$0xff] }
 0x224   :  { %1780 = vrot.lane.b32.xlu1 %v2775_v50, %s6681_s5 }
 0x225   :  { %v999_v2 = vpop.permute.xlu0 %998 }
 0x226   :  { %1166 = vst.msk [vmem:[#allocation3 + $0xc8] sm:$0xff] %vm1140_vm6, %v999_v2  ;;  %v1382_v6 = vpop.permute.xlu1 %1381  ;;  %v221_v2 = vld [vmem:[%s9638_s23 + $0x158] sm:$0xff] }
 0x227   :  { %v4437_v4 = vld [vmem:[#allocation4 + $0x10] ss:$2 sm:$0xff]  ;;  %v4469_v5 = vld [vmem:[#allocation4 + $0x11] ss:$2 sm:$0xff]  ;;  %1550 = vst.msk [vmem:[#allocation3 + $0xc0] sm:$0xff] %vm1525_vm7, %v1382_v6  ;;  %2163 = vrot.lane.b32.xlu0 %v3159_v57, %s6682_s0 }
 0x228   :  { %v4499_v45 = vmax.f32 %v4437_v4, %v4469_v5  ;;  %3317 = vrot.lane.b32.xlu1 %v3160_v3, %s6686_s21  ;;  %v220_v57 = vld [vmem:[%s9638_s23 + $0x150] sm:$0xff]  ;;  %286 = vst.msk [vmem:[#allocation2 + $0x249] sm:$0xff] %vm68_vm0, %v221_v2 }
 0x229   :  { %v2536_v46 = vpop.permute.xlu0 %2535  ;;  %285 = vst.msk [vmem:[#allocation2 + $0x241] sm:$0xff] %vm68_vm0, %v220_v57  ;;  %v223_v57 = vld [vmem:[%s9638_s23 + $0x168] sm:$0xff] }
 0x22a   :  { %4557 = vst.msk [vmem:[#allocation5 + $0x21] sm:$0xff] %vm4402_vm14, %v4499_v45  ;;  %v2919_v12 = vpop.permute.xlu1 %2918 }
 0x22b   :  { %2705 = vst.msk [vmem:[#allocation3 + $0xb8] sm:$0xff] %vm2681_vm10, %v2536_v46  ;;  %629 = vrot.lane.b32.xlu0 %v468_v9, %s6679_s27  ;;  %v2778_v9 = vld [vmem:[#allocation2 + $0x1e1] sm:$0xff] }
 0x22c   :  { %3089 = vst.msk [vmem:[#allocation3 + $0xb0] sm:$0xff] %vm3066_vm11, %v2919_v12  ;;  %1012 = vrot.lane.b32.xlu1 %v852_v11, %s6678_s26 }
 0x22d   :  { %v1384_v17 = vpop.permute.xlu0 %1383  ;;  %288 = vst.msk [vmem:[#allocation2 + $0x261] sm:$0xff] %vm68_vm0, %v223_v57 }
 0x22e   :  { %1551 = vst.msk [vmem:[#allocation3 + $0xc8] sm:$0xff] %vm1525_vm7, %v1384_v17  ;;  %v1767_v14 = vpop.permute.xlu1 %1766 }
 0x22f   :  { %1935 = vst.msk [vmem:[#allocation3 + $0xc0] sm:$0xff] %vm1910_vm8, %v1767_v14  ;;  %2165 = vrot.lane.b32.xlu0 %v3160_v3, %s6682_s0 }
 0x230   :  { %2549 = vrot.lane.b32.xlu1 %v2391_v13, %s6683_s22  ;;  %v8041_v43 = vld [vmem:[#allocation2 + $0x240] sm:$0xff] }
 0x231   :  { %v7989_v24 = vld [vmem:[#allocation5 + $0x20] sm:$0xff]  ;;  %v2921_v22 = vpop.permute.xlu0 %2920  ;;  %415 = vst.msk [vmem:[#allocation3 + $0x160] sm:$0xff] %vm68_vm0, %v8041_v43 }
 0x232   :  { %v4960_v21 = vld [vmem:[#allocation5 + $0x21] sm:$0xff]  ;;  %v4750_v23 = vpack.c.bf16 %v7989_v24, %v7869_v53  ;;  %3090 = vst.msk [vmem:[#allocation3 + $0xb8] sm:$0xff] %vm3066_vm11, %v2921_v22  ;;  %v3304_v31 = vpop.permute.xlu1 %3303 }
 0x233   :  { %v4815_v26 = vpack.c.bf16 %v4960_v21, %v4605_v25  ;;  %3474 = vst.msk [vmem:[#allocation3 + $0xb0] sm:$0xff] %vm3451_vm12, %v3304_v31  ;;  %1014 = vrot.lane.b32.xlu0 %v853_v15, %s6678_s26 }
 0x234   :  { %1397 = vrot.lane.b32.xlu1 %v7734_v29, %s6680_s28 }
 0x235   :  { %4823 = vst.msk [vmem:[#allocation6 + $0x8] sm:$0xff] %vm4402_vm14, %v4815_v26  ;;  %v616_v51 = vpop.permute.xlu0 %615 }
 0x236   :  { %v7999_v18 = vpop.f32.mrb[8].mxu0  ;;  %782 = vst.msk [vmem:[#allocation3 + $0xd0] sm:$0xff] %vm755_vm5, %v616_v51  ;;  %v1769_v30 = vpop.permute.xlu1 %1768 }
 0x237   :  { %v8002_v33 = vpop.f32.mrb[9].mxu0  ;;  %1936 = vst.msk [vmem:[#allocation3 + $0xc8] sm:$0xff] %vm1910_vm8, %v1769_v30  ;;  %2551 = vrot.lane.b32.xlu0 %v2392_v27, %s6683_s22  ;;  %v4180_v4 = vmul.f32 %v7999_v18, %v7784_v59 }
 0x238   :  { %2934 = vrot.lane.b32.xlu1 %v2776_v28, %s6684_s24  ;;  %v4179_v6 = vmul.f32 %v7784_v59, %v8002_v33  ;;  %v2779_v28 = vld [vmem:[#allocation2 + $0x1e9] sm:$0xff] }
 0x239   :  { %v2152_v29 = vpop.permute.xlu0 %2151  ;;  %v4251_v46 = vadd.f32 %v7803_v7, %v4180_v4 }
 0x23a   :  { %2320 = vst.msk [vmem:[#allocation3 + $0xc0] sm:$0xff] %vm2295_vm9, %v2152_v29  ;;  %v3306_v54 = vpop.permute.xlu1 %3305  ;;  %v3538_v44 = vld [vmem:[#allocation3 + $0xb0] sm:$0xff]  ;;  %v4250_v13 = vadd.f32 %v7803_v7, %v4179_v6  ;;  %v3163_v29 = vld [vmem:[#allocation2 + $0x1e2] sm:$0xff]  ;;  %v2780_v6 = vld [vmem:[#allocation2 + $0x1f9] sm:$0xff] }
 0x23b   :  { %3475 = vst.msk [vmem:[#allocation3 + $0xb8] sm:$0xff] %vm3451_vm12, %v3306_v54  ;;  %1399 = vrot.lane.b32.xlu0 %v7755_v40, %s6680_s28  ;;  %6377 = vmatprep.mubr.msk.f32.mxu0 %vm3582_vm13, %v3538_v44  ;;  %v4315_v21 = vmax.f32 %v4251_v46, 0.0 }
 0x23c   :  { %1782 = vrot.lane.b32.xlu1 %v1622_v34, %s6681_s5  ;;  %v4314_v27 = vmax.f32 %v4250_v13, 0.0  ;;  %v3165_v13 = vld [vmem:[#allocation2 + $0x1fa] sm:$0xff] }
 0x23d   :  { %v618_v39 = vpop.permute.xlu0 %617 }
 0x23e   :  { %783 = vst.msk [vmem:[#allocation3 + $0xd8] sm:$0xff] %vm755_vm5, %v618_v39  ;;  %v1001_v42 = vpop.permute.xlu1 %1000  ;;  %v3164_v39 = vld [vmem:[#allocation2 + $0x1ea] sm:$0xff] }
 0x23f   :  { %1167 = vst.msk [vmem:[#allocation3 + $0xd0] sm:$0xff] %vm1140_vm6, %v1001_v42  ;;  %2936 = vrot.lane.b32.xlu0 %v2777_v38, %s6684_s24 }
 0x240   :  { %3319 = vrot.lane.b32.xlu1 %v3161_v41, %s6686_s21 }
 0x241   :  { %v2154_v35 = vpop.permute.xlu0 %2153 }
 0x242   :  { %2321 = vst.msk [vmem:[#allocation3 + $0xc8] sm:$0xff] %vm2295_vm9, %v2154_v35  ;;  %v2538_v40 = vpop.permute.xlu1 %2537  ;;  %v3539_v48 = vld [vmem:[#allocation3 + $0xb8] sm:$0xff] }
 0x243   :  { %2706 = vst.msk [vmem:[#allocation3 + $0xc0] sm:$0xff] %vm2681_vm10, %v2538_v40  ;;  %6378 = vmatmul.mubr.msk.f32.gmra.mrb[22].mxu0 %vm3582_vm13, %v3539_v48  ;;  %631 = vrot.lane.b32.xlu0 %v1622_v34, %s6679_s27  ;;  %v222_v40 = vld [vmem:[%s9638_s23 + $0x160] sm:$0xff] }
 0x244   :  { %1784 = vrot.lane.b32.xlu1 %v1623_v47, %s6681_s5  ;;  %287 = vst.msk [vmem:[#allocation2 + $0x259] sm:$0xff] %vm68_vm0, %v222_v40 }
 0x245   :  { %v1003_v50 = vpop.permute.xlu0 %1002 }
 0x246   :  { %1168 = vst.msk [vmem:[#allocation3 + $0xd8] sm:$0xff] %vm1140_vm6, %v1003_v50  ;;  %v1386_v56 = vpop.permute.xlu1 %1385 }
 0x247   :  { %1552 = vst.msk [vmem:[#allocation3 + $0xd0] sm:$0xff] %vm1525_vm7, %v1386_v56  ;;  %2167 = vrot.lane.b32.xlu0 %v2007_v49, %s6682_s0 }
 0x248   :  { %3321 = vrot.lane.b32.xlu1 %v3162_v52, %s6686_s21 }
 0x249   :  { %v2540_v63 = vpop.permute.xlu0 %2539 }
 0x24a   :  { %2707 = vst.msk [vmem:[#allocation3 + $0xc8] sm:$0xff] %vm2681_vm10, %v2540_v63  ;;  %v2923_v58 = vpop.permute.xlu1 %2922 }
 0x24b   :  { %3091 = vst.msk [vmem:[#allocation3 + $0xc0] sm:$0xff] %vm3066_vm11, %v2923_v58  ;;  %633 = vrot.lane.b32.xlu0 %v1623_v47, %s6679_s27  ;;  %v8108_v56 = vld [vmem:[#allocation2 + $0x258] sm:$0xff] }
 0x24c   :  { %1016 = vrot.lane.b32.xlu1 %v2007_v49, %s6678_s26  ;;  %417 = vst.msk [vmem:[#allocation3 + $0x170] sm:$0xff] %vm68_vm0, %v8108_v56 }
 0x24d   :  { %v1388_v37 = vpop.permute.xlu0 %1387 }
 0x24e   :  { %1553 = vst.msk [vmem:[#allocation3 + $0xd8] sm:$0xff] %vm1525_vm7, %v1388_v37  ;;  %v1771_v1 = vpop.permute.xlu1 %1770  ;;  %v5024_v37 = vld [vmem:[#allocation5 + $0x22] sm:$0xff] }
 0x24f   :  { %1937 = vst.msk [vmem:[#allocation3 + $0xd0] sm:$0xff] %vm1910_vm8, %v1771_v1  ;;  %2169 = vrot.lane.b32.xlu0 %v2008_v61, %s6682_s0 }
 0x250   :  { %2553 = vrot.lane.b32.xlu1 %v7788_v60, %s6683_s22 }
 0x251   :  { %v2925_v3 = vpop.permute.xlu0 %2924 }
 0x252   :  { %3092 = vst.msk [vmem:[#allocation3 + $0xc8] sm:$0xff] %vm3066_vm11, %v2925_v3  ;;  %v3308_v5 = vpop.permute.xlu1 %3307 }
 0x253   :  { %3476 = vst.msk [vmem:[#allocation3 + $0xc0] sm:$0xff] %vm3451_vm12, %v3308_v5  ;;  %1018 = vrot.lane.b32.xlu0 %v2008_v61, %s6678_s26 }
 0x254   :  { %1401 = vrot.lane.b32.xlu1 %v7788_v60, %s6680_s28  ;;  %v8068_v60 = vld [vmem:[#allocation2 + $0x248] sm:$0xff] }
 0x255   :  { %v620_v45 = vpop.permute.xlu0 %619  ;;  %416 = vst.msk [vmem:[#allocation3 + $0x168] sm:$0xff] %vm68_vm0, %v8068_v60 }
 0x256   :  { %v6361_v8 = vpop.f32.mrb[10].mxu0  ;;  %784 = vst.msk [vmem:[#allocation3 + $0xe0] sm:$0xff] %vm755_vm5, %v620_v45  ;;  %v1773_v11 = vpop.permute.xlu1 %1772 }
 0x257   :  { %v4182_v12 = vmul.f32 %v6361_v8, %v7784_v59  ;;  %v3895_v17 = vpop.f32.mrb[11].mxu0  ;;  %1938 = vst.msk [vmem:[#allocation3 + $0xd8] sm:$0xff] %vm1910_vm8, %v1773_v11  ;;  %2555 = vrot.lane.b32.xlu0 %v7819_v10, %s6683_s22 }
 0x258   :  { %v4181_v14 = vmul.f32 %v7784_v59, %v3895_v17  ;;  %2938 = vrot.lane.b32.xlu1 %v2778_v9, %s6684_s24 }
 0x259   :  { %v4253_v15 = vadd.f32 %v7803_v7, %v4182_v12  ;;  %v2156_v25 = vpop.permute.xlu0 %2155  ;;  %v2781_v12 = vld [vmem:[#allocation2 + $0x201] sm:$0xff] }
 0x25a   :  { %v4252_v20 = vadd.f32 %v7803_v7, %v4181_v14  ;;  %2322 = vst.msk [vmem:[#allocation3 + $0xd0] sm:$0xff] %vm2295_vm9, %v2156_v25  ;;  %v3310_v26 = vpop.permute.xlu1 %3309  ;;  %v3540_v31 = vld [vmem:[#allocation3 + $0xc0] sm:$0xff] }
 0x25b   :  { %v4317_v22 = vmax.f32 %v4253_v15, 0.0  ;;  %3477 = vst.msk [vmem:[#allocation3 + $0xc8] sm:$0xff] %vm3451_vm12, %v3310_v26  ;;  %1403 = vrot.lane.b32.xlu0 %v7819_v10, %s6680_s28  ;;  %6380 = vmatprep.mubr.msk.f32.mxu0 %vm3582_vm13, %v3540_v31  ;;  %v224_v26 = vld [vmem:[%s9638_s23 + $0x170] sm:$0xff] }
 0x25c   :  { %v4316_v51 = vmax.f32 %v4252_v20, 0.0  ;;  %1786 = vrot.lane.b32.xlu1 %v2778_v9, %s6681_s5  ;;  %289 = vst.msk [vmem:[#allocation2 + $0x271] sm:$0xff] %vm68_vm0, %v224_v26 }
 0x25d   :  { %v4375_v18 = vmax.f32 %v4315_v21, %v4317_v22  ;;  %v622_v33 = vpop.permute.xlu0 %621  ;;  %v3166_v21 = vld [vmem:[#allocation2 + $0x202] sm:$0xff] }
 0x25e   :  { %v4374_v30 = vmax.f32 %v4314_v27, %v4316_v51  ;;  %785 = vst.msk [vmem:[#allocation3 + $0xe8] sm:$0xff] %vm755_vm5, %v622_v33  ;;  %v1005_v34 = vpop.permute.xlu1 %1004 }
 0x25f   :  { %4408 = vst.msk [vmem:[#allocation4 + $0x28] sm:$0xff] %vm4402_vm14, %v4375_v18  ;;  %2940 = vrot.lane.b32.xlu0 %v2779_v28, %s6684_s24 }
 0x260   :  { %4407 = vst.msk [vmem:[#allocation4 + $0x20] sm:$0xff] %vm4402_vm14, %v4374_v30  ;;  %3323 = vrot.lane.b32.xlu1 %v3163_v29, %s6686_s21  ;;  %v225_v30 = vld [vmem:[%s9638_s23 + $0x178] sm:$0xff] }
 0x261   :  { %1169 = vst.msk [vmem:[#allocation3 + $0xe0] sm:$0xff] %vm1140_vm6, %v1005_v34  ;;  %v2158_v10 = vpop.permute.xlu0 %2157 }
 0x262   :  { %2323 = vst.msk [vmem:[#allocation3 + $0xd8] sm:$0xff] %vm2295_vm9, %v2158_v10  ;;  %v2542_v54 = vpop.permute.xlu1 %2541  ;;  %v3541_v44 = vld [vmem:[#allocation3 + $0xc8] sm:$0xff] }
 0x263   :  { %2708 = vst.msk [vmem:[#allocation3 + $0xd0] sm:$0xff] %vm2681_vm10, %v2542_v54  ;;  %6381 = vmatmul.mubr.msk.f32.gmra.mrb[24].mxu0 %vm3582_vm13, %v3541_v44  ;;  %635 = vrot.lane.b32.xlu0 %v2778_v9, %s6679_s27  ;;  %v8133_v9 = vld [vmem:[#allocation2 + $0x260] sm:$0xff]  ;;  %v2782_v44 = vld [vmem:[#allocation2 + $0x211] sm:$0xff] }
 0x264   :  { %1788 = vrot.lane.b32.xlu1 %v2779_v28, %s6681_s5  ;;  %418 = vst.msk [vmem:[#allocation3 + $0x178] sm:$0xff] %vm68_vm0, %v8133_v9  ;;  %290 = vst.msk [vmem:[#allocation2 + $0x279] sm:$0xff] %vm68_vm0, %v225_v30 }
 0x265   :  { %v1007_v38 = vpop.permute.xlu0 %1006 }
 0x266   :  { %1170 = vst.msk [vmem:[#allocation3 + $0xe8] sm:$0xff] %vm1140_vm6, %v1007_v38  ;;  %v1390_v35 = vpop.permute.xlu1 %1389 }
 0x267   :  { %v4439_v41 = vld [vmem:[#allocation4 + $0x20] ss:$2 sm:$0xff]  ;;  %v4471_v42 = vld [vmem:[#allocation4 + $0x21] ss:$2 sm:$0xff]  ;;  %1554 = vst.msk [vmem:[#allocation3 + $0xe0] sm:$0xff] %vm1525_vm7, %v1390_v35  ;;  %2171 = vrot.lane.b32.xlu0 %v3163_v29, %s6682_s0 }
 0x268   :  { %v4500_v47 = vmax.f32 %v4439_v41, %v4471_v42  ;;  %3325 = vrot.lane.b32.xlu1 %v3164_v39, %s6686_s21  ;;  %v8191_v42 = vld [vmem:[%s9640_s2] ss:$0 sm:$0xff] }
 0x269   :  { %v2544_v48 = vpop.permute.xlu0 %2543 }
 0x26a   :  { %4558 = vst.msk [vmem:[#allocation5 + $0x31] sm:$0xff] %vm4402_vm14, %v4500_v47  ;;  %v2927_v49 = vpop.permute.xlu1 %2926 }
 0x26b   :  { %2709 = vst.msk [vmem:[#allocation3 + $0xd8] sm:$0xff] %vm2681_vm10, %v2544_v48  ;;  %637 = vrot.lane.b32.xlu0 %v2779_v28, %s6679_s27  ;;  %v8168_v28 = vld [vmem:[#allocation2 + $0x270] sm:$0xff] }
 0x26c   :  { %3093 = vst.msk [vmem:[#allocation3 + $0xd0] sm:$0xff] %vm3066_vm11, %v2927_v49  ;;  %1020 = vrot.lane.b32.xlu1 %v3163_v29, %s6678_s26 }
 0x26d   :  { %v1392_v50 = vpop.permute.xlu0 %1391  ;;  %419 = vst.msk [vmem:[#allocation3 + $0x180] sm:$0xff] %vm68_vm0, %v8168_v28 }
 0x26e   :  { %1555 = vst.msk [vmem:[#allocation3 + $0xe8] sm:$0xff] %vm1525_vm7, %v1392_v50  ;;  %v1775_v52 = vpop.permute.xlu1 %1774 }
 0x26f   :  { %1939 = vst.msk [vmem:[#allocation3 + $0xe0] sm:$0xff] %vm1910_vm8, %v1775_v52  ;;  %2173 = vrot.lane.b32.xlu0 %v3164_v39, %s6682_s0 }
 0x270   :  { %2557 = vrot.lane.b32.xlu1 %v7859_v55, %s6683_s22 }
 0x271   :  { %v4897_v63 = vld [vmem:[#allocation5 + $0x30] sm:$0xff]  ;;  %v2929_v58 = vpop.permute.xlu0 %2928 }
 0x272   :  { %v8119_v61 = vpack.c.bf16 %v4897_v63, %v7989_v24  ;;  %v5025_v1 = vld [vmem:[#allocation5 + $0x32] sm:$0xff]  ;;  %3094 = vst.msk [vmem:[#allocation3 + $0xd8] sm:$0xff] %vm3066_vm11, %v2929_v58  ;;  %v3312_v2 = vpop.permute.xlu1 %3311 }
 0x273   :  { %v5040_v3 = vpack.c.bf16 %v5025_v1, %v5024_v37  ;;  %3478 = vst.msk [vmem:[#allocation3 + $0xd0] sm:$0xff] %vm3451_vm12, %v3312_v2  ;;  %1022 = vrot.lane.b32.xlu0 %v3164_v39, %s6678_s26  ;;  %v2783_v2 = vld [vmem:[#allocation2 + $0x219] sm:$0xff] }
 0x274   :  { %4597 = vst.msk [vmem:[#allocation6 + $0x18] sm:$0xff] %vm4402_vm14, %v8119_v61  ;;  %1405 = vrot.lane.b32.xlu1 %v7859_v55, %s6680_s28 }
 0x275   :  { %5048 = vst.msk [vmem:[#allocation6 + $0x10] sm:$0xff] %vm4402_vm14, %v5040_v3  ;;  %v624_v4 = vpop.permute.xlu0 %623 }
 0x276   :  { %v6364_v5 = vpop.f32.mrb[12].mxu0  ;;  %786 = vst.msk [vmem:[#allocation3 + $0xf0] sm:$0xff] %vm755_vm5, %v624_v4  ;;  %v1777_v45 = vpop.permute.xlu1 %1776  ;;  %v3167_v4 = vld [vmem:[#allocation2 + $0x212] sm:$0xff] }
 0x277   :  { %v3905_v8 = vpop.f32.mrb[13].mxu0  ;;  %1940 = vst.msk [vmem:[#allocation3 + $0xe8] sm:$0xff] %vm1910_vm8, %v1777_v45  ;;  %2559 = vrot.lane.b32.xlu0 %v7882_v62, %s6683_s22  ;;  %v4184_v34 = vmul.f32 %v6364_v5, %v7784_v59 }
 0x278   :  { %2942 = vrot.lane.b32.xlu1 %v2780_v6, %s6684_s24  ;;  %v4183_v10 = vmul.f32 %v7784_v59, %v3905_v8 }
 0x279   :  { %v2160_v55 = vpop.permute.xlu0 %2159  ;;  %v4255_v41 = vadd.f32 %v7803_v7, %v4184_v34 }
 0x27a   :  { %2324 = vst.msk [vmem:[#allocation3 + $0xe0] sm:$0xff] %vm2295_vm9, %v2160_v55  ;;  %v3314_v46 = vpop.permute.xlu1 %3313  ;;  %v3542_v11 = vld [vmem:[#allocation3 + $0xd0] sm:$0xff]  ;;  %v4254_v47 = vadd.f32 %v7803_v7, %v4183_v10 }
 0x27b   :  { %3479 = vst.msk [vmem:[#allocation3 + $0xd8] sm:$0xff] %vm3451_vm12, %v3314_v46  ;;  %1407 = vrot.lane.b32.xlu0 %v7882_v62, %s6680_s28  ;;  %6383 = vmatprep.mubr.msk.f32.mxu0 %vm3582_vm13, %v3542_v11  ;;  %v4319_v63 = vmax.f32 %v4255_v41, 0.0  ;;  %v3168_v46 = vld [vmem:[#allocation2 + $0x21a] sm:$0xff] }
 0x27c   :  { %1790 = vrot.lane.b32.xlu1 %v2780_v6, %s6681_s5  ;;  %v4318_v37 = vmax.f32 %v4254_v47, 0.0 }
 0x27d   :  { %v626_v17 = vpop.permute.xlu0 %625 }
 0x27e   :  { %787 = vst.msk [vmem:[#allocation3 + $0xf8] sm:$0xff] %vm755_vm5, %v626_v17  ;;  %v1009_v14 = vpop.permute.xlu1 %1008 }
 0x27f   :  { %1171 = vst.msk [vmem:[#allocation3 + $0xf0] sm:$0xff] %vm1140_vm6, %v1009_v14  ;;  %2944 = vrot.lane.b32.xlu0 %v2781_v12, %s6684_s24  ;;  %v226_v14 = vld [vmem:[%s9638_s23 + $0x180] sm:$0xff] }
 0x280   :  { %3327 = vrot.lane.b32.xlu1 %v3165_v13, %s6686_s21  ;;  %291 = vst.msk [vmem:[#allocation2 + $0x289] sm:$0xff] %vm68_vm0, %v226_v14 }
 0x281   :  { %v2162_v15 = vpop.permute.xlu0 %2161 }
 0x282   :  { %2325 = vst.msk [vmem:[#allocation3 + $0xe8] sm:$0xff] %vm2295_vm9, %v2162_v15  ;;  %v2546_v62 = vpop.permute.xlu1 %2545  ;;  %v3543_v20 = vld [vmem:[#allocation3 + $0xd8] sm:$0xff] }
 0x283   :  { %2710 = vst.msk [vmem:[#allocation3 + $0xe0] sm:$0xff] %vm2681_vm10, %v2546_v62  ;;  %6384 = vmatmul.mubr.msk.f32.gmra.mrb[26].mxu0 %vm3582_vm13, %v3543_v20  ;;  %639 = vrot.lane.b32.xlu0 %v2780_v6, %s6679_s27 }
 0x284   :  { %1792 = vrot.lane.b32.xlu1 %v2781_v12, %s6681_s5 }
 0x285   :  { %v1011_v25 = vpop.permute.xlu0 %1010 }
 0x286   :  { %1172 = vst.msk [vmem:[#allocation3 + $0xf8] sm:$0xff] %vm1140_vm6, %v1011_v25  ;;  %v1394_v22 = vpop.permute.xlu1 %1393 }
 0x287   :  { %1556 = vst.msk [vmem:[#allocation3 + $0xf0] sm:$0xff] %vm1525_vm7, %v1394_v22  ;;  %2175 = vrot.lane.b32.xlu0 %v3165_v13, %s6682_s0  ;;  %v8243_v22 = vld [vmem:[#allocation2 + $0x288] sm:$0xff] }
 0x288   :  { %3329 = vrot.lane.b32.xlu1 %v3166_v21, %s6686_s21  ;;  %421 = vst.msk [vmem:[#allocation3 + $0x190] sm:$0xff] %vm68_vm0, %v8243_v22 }
 0x289   :  { %v2548_v31 = vpop.permute.xlu0 %2547 }
 0x28a   :  { %2711 = vst.msk [vmem:[#allocation3 + $0xe8] sm:$0xff] %vm2681_vm10, %v2548_v31  ;;  %v2931_v27 = vpop.permute.xlu1 %2930  ;;  %v4961_v31 = vld [vmem:[#allocation5 + $0x31] sm:$0xff] }
 0x28b   :  { %3095 = vst.msk [vmem:[#allocation3 + $0xe0] sm:$0xff] %vm3066_vm11, %v2931_v27  ;;  %641 = vrot.lane.b32.xlu0 %v2781_v12, %s6679_s27 }
 0x28c   :  { %1024 = vrot.lane.b32.xlu1 %v3165_v13, %s6678_s26 }
 0x28d   :  { %v1396_v51 = vpop.permute.xlu0 %1395 }
 0x28e   :  { %1557 = vst.msk [vmem:[#allocation3 + $0xf8] sm:$0xff] %vm1525_vm7, %v1396_v51  ;;  %v1779_v18 = vpop.permute.xlu1 %1778 }
 0x28f   :  { %1941 = vst.msk [vmem:[#allocation3 + $0xf0] sm:$0xff] %vm1910_vm8, %v1779_v18  ;;  %2177 = vrot.lane.b32.xlu0 %v3166_v21, %s6682_s0 }
 0x290   :  { %2561 = vrot.lane.b32.xlu1 %v7917_v19, %s6683_s22 }
 0x291   :  { %v2933_v33 = vpop.permute.xlu0 %2932 }
 0x292   :  { %3096 = vst.msk [vmem:[#allocation3 + $0xe8] sm:$0xff] %vm3066_vm11, %v2933_v33  ;;  %v3316_v29 = vpop.permute.xlu1 %3315  ;;  %v2784_v33 = vld [vmem:[#allocation2 + $0x229] sm:$0xff] }
 0x293   :  { %3480 = vst.msk [vmem:[#allocation3 + $0xe0] sm:$0xff] %vm3451_vm12, %v3316_v29  ;;  %1026 = vrot.lane.b32.xlu0 %v3166_v21, %s6678_s26  ;;  %v227_v21 = vld [vmem:[%s9638_s23 + $0x188] sm:$0xff] }
 0x294   :  { %1409 = vrot.lane.b32.xlu1 %v7917_v19, %s6680_s28  ;;  %v8196_v19 = vld [vmem:[#allocation2 + $0x278] sm:$0xff]  ;;  %292 = vst.msk [vmem:[#allocation2 + $0x291] sm:$0xff] %vm68_vm0, %v227_v21 }
 0x295   :  { %v628_v54 = vpop.permute.xlu0 %627  ;;  %420 = vst.msk [vmem:[#allocation3 + $0x188] sm:$0xff] %vm68_vm0, %v8196_v19 }
 0x296   :  { %788 = vst.msk [vmem:[#allocation3 + $0x100] sm:$0xff] %vm755_vm5, %v628_v54  ;;  %v1781_v38 = vpop.permute.xlu1 %1780  ;;  %v6367_v39 = vpop.f32.mrb[14].mxu0 }
 0x297   :  { %1942 = vst.msk [vmem:[#allocation3 + $0xf8] sm:$0xff] %vm1910_vm8, %v1781_v38  ;;  %v4186_v59 = vmul.f32 %v8191_v42, %v6367_v39  ;;  %v3915_v35 = vpop.f32.mrb[15].mxu0  ;;  %2563 = vrot.lane.b32.xlu0 %v7940_v36, %s6683_s22  ;;  %v2785_v39 = vld [vmem:[#allocation2 + $0x231] sm:$0xff] }
 0x298   :  { %v4185_v40 = vmul.f32 %v8191_v42, %v3915_v35  ;;  %2946 = vrot.lane.b32.xlu1 %v2782_v44, %s6684_s24 }
 0x299   :  { %v4257_v48 = vadd.f32 %v7803_v7, %v4186_v59  ;;  %v2164_v49 = vpop.permute.xlu0 %2163  ;;  %v3169_v59 = vld [vmem:[#allocation2 + $0x22a] sm:$0xff] }
 0x29a   :  { %v4256_v50 = vadd.f32 %v7803_v7, %v4185_v40  ;;  %2326 = vst.msk [vmem:[#allocation3 + $0xf0] sm:$0xff] %vm2295_vm9, %v2164_v49  ;;  %v3318_v52 = vpop.permute.xlu1 %3317  ;;  %v3544_v57 = vld [vmem:[#allocation3 + $0xe0] sm:$0xff]  ;;  %v3170_v49 = vld [vmem:[#allocation2 + $0x232] sm:$0xff] }
 0x29b   :  { %v4321_v58 = vmax.f32 %v4257_v48, 0.0  ;;  %3481 = vst.msk [vmem:[#allocation3 + $0xe8] sm:$0xff] %vm3451_vm12, %v3318_v52  ;;  %1411 = vrot.lane.b32.xlu0 %v7940_v36, %s6680_s28  ;;  %6386 = vmatprep.mubr.msk.f32.mxu0 %vm3582_vm13, %v3544_v57  ;;  %v8261_v54 = vld [vmem:[#allocation2 + $0x290] sm:$0xff] }
 0x29c   :  { %v4320_v1 = vmax.f32 %v4256_v50, 0.0  ;;  %1794 = vrot.lane.b32.xlu1 %v2782_v44, %s6681_s5  ;;  %422 = vst.msk [vmem:[#allocation3 + $0x198] sm:$0xff] %vm68_vm0, %v8261_v54  ;;  %v228_v52 = vld [vmem:[%s9638_s23 + $0x190] sm:$0xff] }
 0x29d   :  { %v4377_v3 = vmax.f32 %v4319_v63, %v4321_v58  ;;  %v630_v7 = vpop.permute.xlu0 %629  ;;  %293 = vst.msk [vmem:[#allocation2 + $0x2a1] sm:$0xff] %vm68_vm0, %v228_v52  ;;  %v231_v52 = vld [vmem:[%s9638_s23 + $0x1a8] sm:$0xff] }
 0x29e   :  { %v4376_v5 = vmax.f32 %v4318_v37, %v4320_v1  ;;  %789 = vst.msk [vmem:[#allocation3 + $0x108] sm:$0xff] %vm755_vm5, %v630_v7  ;;  %v1013_v6 = vpop.permute.xlu1 %1012 }
 0x29f   :  { %4410 = vst.msk [vmem:[#allocation4 + $0x38] sm:$0xff] %vm4402_vm14, %v4377_v3  ;;  %2948 = vrot.lane.b32.xlu0 %v2783_v2, %s6684_s24 }
 0x2a0   :  { %1173 = vst.msk [vmem:[#allocation3 + $0x100] sm:$0xff] %vm1140_vm6, %v1013_v6  ;;  %3331 = vrot.lane.b32.xlu1 %v3167_v4, %s6686_s21 }
 0x2a1   :  { %4409 = vst.msk [vmem:[#allocation4 + $0x30] sm:$0xff] %vm4402_vm14, %v4376_v5  ;;  %v2166_v36 = vpop.permute.xlu0 %2165 }
 0x2a2   :  { %2327 = vst.msk [vmem:[#allocation3 + $0xf8] sm:$0xff] %vm2295_vm9, %v2166_v36  ;;  %v2550_v45 = vpop.permute.xlu1 %2549  ;;  %v3545_v8 = vld [vmem:[#allocation3 + $0xe8] sm:$0xff] }
 0x2a3   :  { %2712 = vst.msk [vmem:[#allocation3 + $0xf0] sm:$0xff] %vm2681_vm10, %v2550_v45  ;;  %6387 = vmatmul.mubr.msk.f32.gmra.mrb[28].mxu0 %vm3582_vm13, %v3545_v8  ;;  %643 = vrot.lane.b32.xlu0 %v2782_v44, %s6679_s27  ;;  %v2786_v36 = vld [vmem:[#allocation2 + $0x241] sm:$0xff] }
 0x2a4   :  { %1796 = vrot.lane.b32.xlu1 %v2783_v2, %s6681_s5  ;;  %v8296_v1 = vld [vmem:[#allocation2 + $0x2a0] sm:$0xff]  ;;  %296 = vst.msk [vmem:[#allocation2 + $0x2c1] sm:$0xff] %vm68_vm0, %v231_v52 }
 0x2a5   :  { %v1015_v55 = vpop.permute.xlu0 %1014  ;;  %423 = vst.msk [vmem:[#allocation3 + $0x1a0] sm:$0xff] %vm68_vm0, %v8296_v1 }
 0x2a6   :  { %1174 = vst.msk [vmem:[#allocation3 + $0x108] sm:$0xff] %vm1140_vm6, %v1015_v55  ;;  %v1398_v11 = vpop.permute.xlu1 %1397  ;;  %v8317_v55 = vld [vmem:[%s9641_s30] ss:$0 sm:$0xff] }
 0x2a7   :  { %1558 = vst.msk [vmem:[#allocation3 + $0x100] sm:$0xff] %vm1525_vm7, %v1398_v11  ;;  %2179 = vrot.lane.b32.xlu0 %v3167_v4, %s6682_s0 }
 0x2a8   :  { %v4441_v12 = vld [vmem:[#allocation4 + $0x30] ss:$2 sm:$0xff]  ;;  %v4473_v17 = vld [vmem:[#allocation4 + $0x31] ss:$2 sm:$0xff]  ;;  %3333 = vrot.lane.b32.xlu1 %v3168_v46, %s6686_s21 }
 0x2a9   :  { %v4501_v13 = vmax.f32 %v4441_v12, %v4473_v17  ;;  %v2552_v15 = vpop.permute.xlu0 %2551 }
 0x2aa   :  { %2713 = vst.msk [vmem:[#allocation3 + $0xf8] sm:$0xff] %vm2681_vm10, %v2552_v15  ;;  %v2935_v62 = vpop.permute.xlu1 %2934 }
 0x2ab   :  { %4559 = vst.msk [vmem:[#allocation5 + $0x41] sm:$0xff] %vm4402_vm14, %v4501_v13  ;;  %645 = vrot.lane.b32.xlu0 %v2783_v2, %s6679_s27  ;;  %v229_v2 = vld [vmem:[%s9638_s23 + $0x198] sm:$0xff] }
 0x2ac   :  { %3097 = vst.msk [vmem:[#allocation3 + $0xf0] sm:$0xff] %vm3066_vm11, %v2935_v62  ;;  %1028 = vrot.lane.b32.xlu1 %v3167_v4, %s6678_s26 }
 0x2ad   :  { %v1400_v20 = vpop.permute.xlu0 %1399  ;;  %294 = vst.msk [vmem:[#allocation2 + $0x2a9] sm:$0xff] %vm68_vm0, %v229_v2 }
 0x2ae   :  { %1559 = vst.msk [vmem:[#allocation3 + $0x108] sm:$0xff] %vm1525_vm7, %v1400_v20  ;;  %v1783_v25 = vpop.permute.xlu1 %1782 }
 0x2af   :  { %1943 = vst.msk [vmem:[#allocation3 + $0x100] sm:$0xff] %vm1910_vm8, %v1783_v25  ;;  %2181 = vrot.lane.b32.xlu0 %v3168_v46, %s6682_s0 }
 0x2b0   :  { %2565 = vrot.lane.b32.xlu1 %v7980_v16, %s6683_s22 }
 0x2b1   :  { %v2937_v26 = vpop.permute.xlu0 %2936 }
 0x2b2   :  { %v8248_v27 = vld [vmem:[#allocation5 + $0x41] sm:$0xff]  ;;  %3098 = vst.msk [vmem:[#allocation3 + $0xf8] sm:$0xff] %vm3066_vm11, %v2937_v26  ;;  %v3320_v51 = vpop.permute.xlu1 %3319 }
 0x2b3   :  { %v4816_v18 = vpack.c.bf16 %v8248_v27, %v4961_v31  ;;  %3482 = vst.msk [vmem:[#allocation3 + $0xf0] sm:$0xff] %vm3451_vm12, %v3320_v51  ;;  %1030 = vrot.lane.b32.xlu0 %v3168_v46, %s6678_s26 }
 0x2b4   :  { %1413 = vrot.lane.b32.xlu1 %v7980_v16, %s6680_s28 }
 0x2b5   :  { %4824 = vst.msk [vmem:[#allocation6 + $0x20] sm:$0xff] %vm4402_vm14, %v4816_v18  ;;  %v632_v30 = vpop.permute.xlu0 %631  ;;  %v2787_v18 = vld [vmem:[#allocation2 + $0x249] sm:$0xff] }
 0x2b6   :  { %790 = vst.msk [vmem:[#allocation3 + $0x110] sm:$0xff] %vm755_vm5, %v632_v30  ;;  %v1785_v29 = vpop.permute.xlu1 %1784  ;;  %v6370_v34 = vpop.f32.mrb[16].mxu0 }
 0x2b7   :  { %1944 = vst.msk [vmem:[#allocation3 + $0x108] sm:$0xff] %vm1910_vm8, %v1785_v29  ;;  %v3925_v10 = vpop.f32.mrb[17].mxu0  ;;  %2567 = vrot.lane.b32.xlu0 %v8006_v32, %s6683_s22  ;;  %v4188_v4 = vmul.f32 %v8191_v42, %v6370_v34  ;;  %v3171_v29 = vld [vmem:[#allocation2 + $0x242] sm:$0xff] }
 0x2b8   :  { %2950 = vrot.lane.b32.xlu1 %v2784_v33, %s6684_s24  ;;  %v4187_v5 = vmul.f32 %v8191_v42, %v3925_v10 }
 0x2b9   :  { %v2168_v16 = vpop.permute.xlu0 %2167  ;;  %v4259_v46 = vadd.f32 %v8317_v55, %v4188_v4 }
 0x2ba   :  { %2328 = vst.msk [vmem:[#allocation3 + $0x100] sm:$0xff] %vm2295_vm9, %v2168_v16  ;;  %v3322_v44 = vpop.permute.xlu1 %3321  ;;  %v3546_v38 = vld [vmem:[#allocation3 + $0xf0] sm:$0xff]  ;;  %v4258_v17 = vadd.f32 %v8317_v55, %v4187_v5  ;;  %v5026_v5 = vld [vmem:[#allocation5 + $0x42] sm:$0xff] }
 0x2bb   :  { %3483 = vst.msk [vmem:[#allocation3 + $0xf8] sm:$0xff] %vm3451_vm12, %v3322_v44  ;;  %1415 = vrot.lane.b32.xlu0 %v8006_v32, %s6680_s28  ;;  %6389 = vmatprep.mubr.msk.f32.mxu0 %vm3582_vm13, %v3546_v38  ;;  %v4323_v21 = vmax.f32 %v4259_v46, 0.0 }
 0x2bc   :  { %1798 = vrot.lane.b32.xlu1 %v2784_v33, %s6681_s5  ;;  %v4322_v31 = vmax.f32 %v4258_v17, 0.0 }
 0x2bd   :  { %v634_v41 = vpop.permute.xlu0 %633 }
 0x2be   :  { %791 = vst.msk [vmem:[#allocation3 + $0x118] sm:$0xff] %vm755_vm5, %v634_v41  ;;  %v1017_v35 = vpop.permute.xlu1 %1016 }
 0x2bf   :  { %1175 = vst.msk [vmem:[#allocation3 + $0x110] sm:$0xff] %vm1140_vm6, %v1017_v35  ;;  %2952 = vrot.lane.b32.xlu0 %v2785_v39, %s6684_s24 }
 0x2c0   :  { %3335 = vrot.lane.b32.xlu1 %v3169_v59, %s6686_s21 }
 0x2c1   :  { %v2170_v47 = vpop.permute.xlu0 %2169 }
 0x2c2   :  { %2329 = vst.msk [vmem:[#allocation3 + $0x108] sm:$0xff] %vm2295_vm9, %v2170_v47  ;;  %v2554_v32 = vpop.permute.xlu1 %2553  ;;  %v3547_v40 = vld [vmem:[#allocation3 + $0xf8] sm:$0xff] }
 0x2c3   :  { %2714 = vst.msk [vmem:[#allocation3 + $0x100] sm:$0xff] %vm2681_vm10, %v2554_v32  ;;  %6390 = vmatmul.mubr.msk.f32.gmra.mrb[30].mxu0 %vm3582_vm13, %v3547_v40  ;;  %647 = vrot.lane.b32.xlu0 %v2784_v33, %s6679_s27  ;;  %v230_v32 = vld [vmem:[%s9638_s23 + $0x1a0] sm:$0xff] }
 0x2c4   :  { %1800 = vrot.lane.b32.xlu1 %v2785_v39, %s6681_s5  ;;  %295 = vst.msk [vmem:[#allocation2 + $0x2b9] sm:$0xff] %vm68_vm0, %v230_v32 }
 0x2c5   :  { %v1019_v48 = vpop.permute.xlu0 %1018 }
 0x2c6   :  { %1176 = vst.msk [vmem:[#allocation3 + $0x118] sm:$0xff] %vm1140_vm6, %v1019_v48  ;;  %v1402_v50 = vpop.permute.xlu1 %1401 }
 0x2c7   :  { %1560 = vst.msk [vmem:[#allocation3 + $0x110] sm:$0xff] %vm1525_vm7, %v1402_v50  ;;  %2183 = vrot.lane.b32.xlu0 %v3169_v59, %s6682_s0 }
 0x2c8   :  { %3337 = vrot.lane.b32.xlu1 %v3170_v49, %s6686_s21 }
 0x2c9   :  { %v2556_v57 = vpop.permute.xlu0 %2555 }
 0x2ca   :  { %2715 = vst.msk [vmem:[#allocation3 + $0x108] sm:$0xff] %vm2681_vm10, %v2556_v57  ;;  %v2939_v63 = vpop.permute.xlu1 %2938 }
 0x2cb   :  { %3099 = vst.msk [vmem:[#allocation3 + $0x100] sm:$0xff] %vm3066_vm11, %v2939_v63  ;;  %649 = vrot.lane.b32.xlu0 %v2785_v39, %s6679_s27  ;;  %v3172_v39 = vld [vmem:[#allocation2 + $0x24a] sm:$0xff]  ;;  %v8371_v57 = vld [vmem:[#allocation2 + $0x2b8] sm:$0xff] }
 0x2cc   :  { %1032 = vrot.lane.b32.xlu1 %v3169_v59, %s6678_s26  ;;  %425 = vst.msk [vmem:[#allocation3 + $0x1b0] sm:$0xff] %vm68_vm0, %v8371_v57 }
 0x2cd   :  { %v1404_v58 = vpop.permute.xlu0 %1403 }
 0x2ce   :  { %1561 = vst.msk [vmem:[#allocation3 + $0x118] sm:$0xff] %vm1525_vm7, %v1404_v58  ;;  %v1787_v37 = vpop.permute.xlu1 %1786  ;;  %v4898_v58 = vld [vmem:[#allocation5 + $0x40] sm:$0xff] }
 0x2cf   :  { %1945 = vst.msk [vmem:[#allocation3 + $0x110] sm:$0xff] %vm1910_vm8, %v1787_v37  ;;  %2185 = vrot.lane.b32.xlu0 %v3170_v49, %s6682_s0 }
 0x2d0   :  { %2569 = vrot.lane.b32.xlu1 %v8041_v43, %s6683_s22 }
 0x2d1   :  { %v2941_v3 = vpop.permute.xlu0 %2940 }
 0x2d2   :  { %3100 = vst.msk [vmem:[#allocation3 + $0x108] sm:$0xff] %vm3066_vm11, %v2941_v3  ;;  %v3324_v7 = vpop.permute.xlu1 %3323 }
 0x2d3   :  { %3484 = vst.msk [vmem:[#allocation3 + $0x100] sm:$0xff] %vm3451_vm12, %v3324_v7  ;;  %1034 = vrot.lane.b32.xlu0 %v3170_v49, %s6678_s26 }
 0x2d4   :  { %1417 = vrot.lane.b32.xlu1 %v8041_v43, %s6680_s28  ;;  %v8324_v43 = vld [vmem:[#allocation2 + $0x2a8] sm:$0xff] }
 0x2d5   :  { %v636_v6 = vpop.permute.xlu0 %635  ;;  %424 = vst.msk [vmem:[#allocation3 + $0x1a8] sm:$0xff] %vm68_vm0, %v8324_v43 }
 0x2d6   :  { %792 = vst.msk [vmem:[#allocation3 + $0x120] sm:$0xff] %vm755_vm5, %v636_v6  ;;  %v1789_v45 = vpop.permute.xlu1 %1788  ;;  %v6373_v8 = vpop.f32.mrb[18].mxu0 }
 0x2d7   :  { %1946 = vst.msk [vmem:[#allocation3 + $0x118] sm:$0xff] %vm1910_vm8, %v1789_v45  ;;  %v4190_v11 = vmul.f32 %v8191_v42, %v6373_v8  ;;  %v3935_v12 = vpop.f32.mrb[19].mxu0  ;;  %2571 = vrot.lane.b32.xlu0 %v8068_v60, %s6683_s22  ;;  %v2788_v8 = vld [vmem:[#allocation2 + $0x259] sm:$0xff] }
 0x2d8   :  { %v4189_v13 = vmul.f32 %v8191_v42, %v3935_v12  ;;  %2954 = vrot.lane.b32.xlu1 %v2786_v36, %s6684_s24  ;;  %v8399_v12 = vld [vmem:[#allocation2 + $0x2c0] sm:$0xff] }
 0x2d9   :  { %v4261_v14 = vadd.f32 %v8317_v55, %v4190_v11  ;;  %v2172_v15 = vpop.permute.xlu0 %2171  ;;  %426 = vst.msk [vmem:[#allocation3 + $0x1b8] sm:$0xff] %vm68_vm0, %v8399_v12 }
 0x2da   :  { %v4260_v62 = vadd.f32 %v8317_v55, %v4189_v13  ;;  %2330 = vst.msk [vmem:[#allocation3 + $0x110] sm:$0xff] %vm2295_vm9, %v2172_v15  ;;  %v3326_v20 = vpop.permute.xlu1 %3325  ;;  %v3548_v25 = vld [vmem:[#allocation3 + $0x100] sm:$0xff] }
 0x2db   :  { %v4325_v26 = vmax.f32 %v4261_v14, 0.0  ;;  %3485 = vst.msk [vmem:[#allocation3 + $0x108] sm:$0xff] %vm3451_vm12, %v3326_v20  ;;  %1419 = vrot.lane.b32.xlu0 %v8068_v60, %s6680_s28  ;;  %6392 = vmatprep.mubr.msk.f32.mxu0 %vm3582_vm13, %v3548_v25  ;;  %v2789_v14 = vld [vmem:[#allocation2 + $0x261] sm:$0xff] }
 0x2dc   :  { %v4324_v51 = vmax.f32 %v4260_v62, 0.0  ;;  %1802 = vrot.lane.b32.xlu1 %v2786_v36, %s6681_s5  ;;  %v3173_v62 = vld [vmem:[#allocation2 + $0x25a] sm:$0xff] }
 0x2dd   :  { %v4379_v30 = vmax.f32 %v4323_v21, %v4325_v26  ;;  %v638_v33 = vpop.permute.xlu0 %637 }
 0x2de   :  { %v4378_v34 = vmax.f32 %v4322_v31, %v4324_v51  ;;  %793 = vst.msk [vmem:[#allocation3 + $0x128] sm:$0xff] %vm755_vm5, %v638_v33  ;;  %v1021_v10 = vpop.permute.xlu1 %1020  ;;  %v3174_v31 = vld [vmem:[#allocation2 + $0x262] sm:$0xff] }
 0x2df   :  { %4412 = vst.msk [vmem:[#allocation4 + $0x48] sm:$0xff] %vm4402_vm14, %v4379_v30  ;;  %2956 = vrot.lane.b32.xlu0 %v2787_v18, %s6684_s24 }
 0x2e0   :  { %1177 = vst.msk [vmem:[#allocation3 + $0x120] sm:$0xff] %vm1140_vm6, %v1021_v10  ;;  %3339 = vrot.lane.b32.xlu1 %v3171_v29, %s6686_s21 }
 0x2e1   :  { %4411 = vst.msk [vmem:[#allocation4 + $0x40] sm:$0xff] %vm4402_vm14, %v4378_v34  ;;  %v2174_v60 = vpop.permute.xlu0 %2173 }
 0x2e2   :  { %2331 = vst.msk [vmem:[#allocation3 + $0x118] sm:$0xff] %vm2295_vm9, %v2174_v60  ;;  %v2558_v16 = vpop.permute.xlu1 %2557  ;;  %v3549_v44 = vld [vmem:[#allocation3 + $0x108] sm:$0xff]  ;;  %v233_v60 = vld [vmem:[%s9638_s23 + $0x1b8] sm:$0xff] }
 0x2e3   :  { %2716 = vst.msk [vmem:[#allocation3 + $0x110] sm:$0xff] %vm2681_vm10, %v2558_v16  ;;  %6393 = vmatmul.mubr.msk.f32.gmra.mrb[32].mxu0 %vm3582_vm13, %v3549_v44  ;;  %651 = vrot.lane.b32.xlu0 %v2786_v36, %s6679_s27 }
 0x2e4   :  { %1804 = vrot.lane.b32.xlu1 %v2787_v18, %s6681_s5  ;;  %298 = vst.msk [vmem:[#allocation2 + $0x2d9] sm:$0xff] %vm68_vm0, %v233_v60 }
 0x2e5   :  { %v1023_v38 = vpop.permute.xlu0 %1022 }
 0x2e6   :  { %1178 = vst.msk [vmem:[#allocation3 + $0x128] sm:$0xff] %vm1140_vm6, %v1023_v38  ;;  %v1406_v41 = vpop.permute.xlu1 %1405 }
 0x2e7   :  { %1562 = vst.msk [vmem:[#allocation3 + $0x120] sm:$0xff] %vm1525_vm7, %v1406_v41  ;;  %2187 = vrot.lane.b32.xlu0 %v3171_v29, %s6682_s0 }
 0x2e8   :  { %v4443_v59 = vld [vmem:[#allocation4 + $0x40] ss:$2 sm:$0xff]  ;;  %v4475_v35 = vld [vmem:[#allocation4 + $0x41] ss:$2 sm:$0xff]  ;;  %3341 = vrot.lane.b32.xlu1 %v3172_v39, %s6686_s21 }
 0x2e9   :  { %v4502_v47 = vmax.f32 %v4443_v59, %v4475_v35  ;;  %v2560_v40 = vpop.permute.xlu0 %2559  ;;  %v2790_v59 = vld [vmem:[#allocation2 + $0x271] sm:$0xff] }
 0x2ea   :  { %2717 = vst.msk [vmem:[#allocation3 + $0x118] sm:$0xff] %vm2681_vm10, %v2560_v40  ;;  %v2943_v48 = vpop.permute.xlu1 %2942 }
 0x2eb   :  { %4560 = vst.msk [vmem:[#allocation5 + $0x51] sm:$0xff] %vm4402_vm14, %v4502_v47  ;;  %653 = vrot.lane.b32.xlu0 %v2787_v18, %s6679_s27  ;;  %v232_v18 = vld [vmem:[%s9638_s23 + $0x1b0] sm:$0xff] }
 0x2ec   :  { %3101 = vst.msk [vmem:[#allocation3 + $0x110] sm:$0xff] %vm3066_vm11, %v2943_v48  ;;  %1036 = vrot.lane.b32.xlu1 %v3171_v29, %s6678_s26 }
 0x2ed   :  { %v1408_v49 = vpop.permute.xlu0 %1407  ;;  %297 = vst.msk [vmem:[#allocation2 + $0x2d1] sm:$0xff] %vm68_vm0, %v232_v18 }
 0x2ee   :  { %1563 = vst.msk [vmem:[#allocation3 + $0x128] sm:$0xff] %vm1525_vm7, %v1408_v49  ;;  %v1791_v50 = vpop.permute.xlu1 %1790 }
 0x2ef   :  { %1947 = vst.msk [vmem:[#allocation3 + $0x120] sm:$0xff] %vm1910_vm8, %v1791_v50  ;;  %2189 = vrot.lane.b32.xlu0 %v3172_v39, %s6682_s0 }
 0x2f0   :  { %2573 = vrot.lane.b32.xlu1 %v8108_v56, %s6683_s22 }
 0x2f1   :  { %v2945_v63 = vpop.permute.xlu0 %2944 }
 0x2f2   :  { %v8376_v37 = vld [vmem:[#allocation5 + $0x50] sm:$0xff]  ;;  %3102 = vst.msk [vmem:[#allocation3 + $0x118] sm:$0xff] %vm3066_vm11, %v2945_v63  ;;  %v3328_v3 = vpop.permute.xlu1 %3327 }
 0x2f3   :  { %v8378_v2 = vld [vmem:[#allocation5 + $0x51] sm:$0xff]  ;;  %v8382_v7 = vpack.c.bf16 %v8376_v37, %v4898_v58  ;;  %3486 = vst.msk [vmem:[#allocation3 + $0x110] sm:$0xff] %vm3451_vm12, %v3328_v3  ;;  %1038 = vrot.lane.b32.xlu0 %v3172_v39, %s6678_s26 }
 0x2f4   :  { %v8386_v4 = vpack.c.bf16 %v8378_v2, %v8248_v27  ;;  %v5027_v6 = vld [vmem:[#allocation5 + $0x52] sm:$0xff]  ;;  %1421 = vrot.lane.b32.xlu1 %v8108_v56, %s6680_s28 }
 0x2f5   :  { %v5041_v36 = vpack.c.bf16 %v5027_v6, %v5026_v5  ;;  %4598 = vst.msk [vmem:[#allocation6 + $0x30] sm:$0xff] %vm4402_vm14, %v8382_v7  ;;  %v640_v45 = vpop.permute.xlu0 %639  ;;  %v8434_v10 = vld [vmem:[#allocation2 + $0x2d0] sm:$0xff]  ;;  %v8457_v49 = vld [vmem:[#allocation2 + $0x2d8] sm:$0xff] }
 0x2f6   :  { %794 = vst.msk [vmem:[#allocation3 + $0x130] sm:$0xff] %vm755_vm5, %v640_v45  ;;  %v1793_v27 = vpop.permute.xlu1 %1792  ;;  %v6376_v46 = vpop.f32.mrb[20].mxu0 }
 0x2f7   :  { %5049 = vst.msk [vmem:[#allocation6 + $0x28] sm:$0xff] %vm4402_vm14, %v5041_v36  ;;  %v3945_v11 = vpop.f32.mrb[21].mxu0  ;;  %2575 = vrot.lane.b32.xlu0 %v8133_v9, %s6683_s22  ;;  %v4192_v38 = vmul.f32 %v8191_v42, %v6376_v46 }
 0x2f8   :  { %1948 = vst.msk [vmem:[#allocation3 + $0x128] sm:$0xff] %vm1910_vm8, %v1793_v27  ;;  %2958 = vrot.lane.b32.xlu1 %v2788_v8, %s6684_s24  ;;  %v4191_v39 = vmul.f32 %v8191_v42, %v3945_v11  ;;  %v2791_v27 = vld [vmem:[#allocation2 + $0x279] sm:$0xff] }
 0x2f9   :  { %v2176_v56 = vpop.permute.xlu0 %2175  ;;  %427 = vst.msk [vmem:[#allocation3 + $0x1c0] sm:$0xff] %vm68_vm0, %v8434_v10  ;;  %v4263_v32 = vadd.f32 %v8317_v55, %v4192_v38  ;;  %428 = vst.msk [vmem:[#allocation3 + $0x1c8] sm:$0xff] %vm68_vm0, %v8457_v49 }
 0x2fa   :  { %2332 = vst.msk [vmem:[#allocation3 + $0x120] sm:$0xff] %vm2295_vm9, %v2176_v56  ;;  %v3330_v17 = vpop.permute.xlu1 %3329  ;;  %v3550_v13 = vld [vmem:[#allocation3 + $0x110] sm:$0xff] }
 0x2fb   :  { %3487 = vst.msk [vmem:[#allocation3 + $0x118] sm:$0xff] %vm3451_vm12, %v3330_v17  ;;  %1423 = vrot.lane.b32.xlu0 %v8133_v9, %s6680_s28  ;;  %6395 = vmatprep.mubr.msk.f32.mxu0 %vm3582_vm13, %v3550_v13  ;;  %v4327_v6 = vmax.f32 %v4263_v32, 0.0  ;;  %v3175_v56 = vld [vmem:[#allocation2 + $0x272] sm:$0xff] }
 0x2fc   :  { %1806 = vrot.lane.b32.xlu1 %v2788_v8, %s6681_s5 }
 0x2fd   :  { %v642_v15 = vpop.permute.xlu0 %641 }
 0x2fe   :  { %795 = vst.msk [vmem:[#allocation3 + $0x138] sm:$0xff] %vm755_vm5, %v642_v15  ;;  %v1025_v20 = vpop.permute.xlu1 %1024 }
 0x2ff   :  { %1179 = vst.msk [vmem:[#allocation3 + $0x130] sm:$0xff] %vm1140_vm6, %v1025_v20  ;;  %2960 = vrot.lane.b32.xlu0 %v2789_v14, %s6684_s24  ;;  %v3176_v20 = vld [vmem:[#allocation2 + $0x27a] sm:$0xff] }
 0x300   :  { %3343 = vrot.lane.b32.xlu1 %v3173_v62, %s6686_s21 }
 0x301   :  { %v2178_v25 = vpop.permute.xlu0 %2177 }
 0x302   :  { %2333 = vst.msk [vmem:[#allocation3 + $0x128] sm:$0xff] %vm2295_vm9, %v2178_v25  ;;  %v2562_v9 = vpop.permute.xlu1 %2561  ;;  %v3551_v21 = vld [vmem:[#allocation3 + $0x118] sm:$0xff] }
 0x303   :  { %2718 = vst.msk [vmem:[#allocation3 + $0x120] sm:$0xff] %vm2681_vm10, %v2562_v9  ;;  %6396 = vmatmul.mubr.msk.f32.gmra.mrb[34].mxu0 %vm3582_vm13, %v3551_v21  ;;  %655 = vrot.lane.b32.xlu0 %v2788_v8, %s6679_s27 }
 0x304   :  { %1808 = vrot.lane.b32.xlu1 %v2789_v14, %s6681_s5 }
 0x305   :  { %v1027_v26 = vpop.permute.xlu0 %1026 }
 0x306   :  { %1180 = vst.msk [vmem:[#allocation3 + $0x138] sm:$0xff] %vm1140_vm6, %v1027_v26  ;;  %v1410_v51 = vpop.permute.xlu1 %1409 }
 0x307   :  { %1564 = vst.msk [vmem:[#allocation3 + $0x130] sm:$0xff] %vm1525_vm7, %v1410_v51  ;;  %2191 = vrot.lane.b32.xlu0 %v3173_v62, %s6682_s0 }
 0x308   :  { %3345 = vrot.lane.b32.xlu1 %v3174_v31, %s6686_s21 }
 0x309   :  { %v2564_v30 = vpop.permute.xlu0 %2563 }
 0x30a   :  { %2719 = vst.msk [vmem:[#allocation3 + $0x128] sm:$0xff] %vm2681_vm10, %v2564_v30  ;;  %v2947_v33 = vpop.permute.xlu1 %2946 }
 0x30b   :  { %3103 = vst.msk [vmem:[#allocation3 + $0x120] sm:$0xff] %vm3066_vm11, %v2947_v33  ;;  %657 = vrot.lane.b32.xlu0 %v2789_v14, %s6679_s27 }
 0x30c   :  { %1040 = vrot.lane.b32.xlu1 %v3173_v62, %s6678_s26 }
 0x30d   :  { %v1412_v29 = vpop.permute.xlu0 %1411 }
 0x30e   :  { %1565 = vst.msk [vmem:[#allocation3 + $0x138] sm:$0xff] %vm1525_vm7, %v1412_v29  ;;  %v1795_v34 = vpop.permute.xlu1 %1794  ;;  %v235_v29 = vld [vmem:[%s9638_s23 + $0x1c8] sm:$0xff] }
 0x30f   :  { %1949 = vst.msk [vmem:[#allocation3 + $0x130] sm:$0xff] %vm1910_vm8, %v1795_v34  ;;  %2193 = vrot.lane.b32.xlu0 %v3174_v31, %s6682_s0 }
 0x310   :  { %2577 = vrot.lane.b32.xlu1 %v8168_v28, %s6683_s22  ;;  %300 = vst.msk [vmem:[#allocation2 + $0x2f1] sm:$0xff] %vm68_vm0, %v235_v29 }
 0x311   :  { %v2949_v16 = vpop.permute.xlu0 %2948 }
 0x312   :  { %3104 = vst.msk [vmem:[#allocation3 + $0x128] sm:$0xff] %vm3066_vm11, %v2949_v16  ;;  %v3332_v44 = vpop.permute.xlu1 %3331 }
 0x313   :  { %3488 = vst.msk [vmem:[#allocation3 + $0x120] sm:$0xff] %vm3451_vm12, %v3332_v44  ;;  %1042 = vrot.lane.b32.xlu0 %v3174_v31, %s6678_s26  ;;  %v234_v31 = vld [vmem:[%s9638_s23 + $0x1c0] sm:$0xff] }
 0x314   :  { %1425 = vrot.lane.b32.xlu1 %v8168_v28, %s6680_s28  ;;  %v4262_v28 = vadd.f32 %v8317_v55, %v4191_v39  ;;  %299 = vst.msk [vmem:[#allocation2 + $0x2e9] sm:$0xff] %vm68_vm0, %v234_v31 }
 0x315   :  { %v644_v41 = vpop.permute.xlu0 %643 }
 0x316   :  { %796 = vst.msk [vmem:[#allocation3 + $0x140] sm:$0xff] %vm755_vm5, %v644_v41  ;;  %v1797_v35 = vpop.permute.xlu1 %1796  ;;  %v6379_v47 = vpop.f32.mrb[22].mxu0  ;;  %v4326_v45 = vmax.f32 %v4262_v28, 0.0 }
 0x317   :  { %1950 = vst.msk [vmem:[#allocation3 + $0x138] sm:$0xff] %vm1910_vm8, %v1797_v35  ;;  %v4194_v40 = vmul.f32 %v8191_v42, %v6379_v47  ;;  %v3955_v48 = vpop.f32.mrb[23].mxu0  ;;  %2579 = vrot.lane.b32.xlu0 %v8196_v19, %s6683_s22  ;;  %v2792_v35 = vld [vmem:[#allocation2 + $0x289] sm:$0xff] }
 0x318   :  { %v4193_v50 = vmul.f32 %v8191_v42, %v3955_v48  ;;  %2962 = vrot.lane.b32.xlu1 %v2790_v59, %s6684_s24 }
 0x319   :  { %v4265_v52 = vadd.f32 %v8317_v55, %v4194_v40  ;;  %v2180_v63 = vpop.permute.xlu0 %2179 }
 0x31a   :  { %v4264_v58 = vadd.f32 %v8317_v55, %v4193_v50  ;;  %2334 = vst.msk [vmem:[#allocation3 + $0x130] sm:$0xff] %vm2295_vm9, %v2180_v63  ;;  %v3334_v3 = vpop.permute.xlu1 %3333  ;;  %v3552_v5 = vld [vmem:[#allocation3 + $0x120] sm:$0xff]  ;;  %v2793_v50 = vld [vmem:[#allocation2 + $0x291] sm:$0xff] }
 0x31b   :  { %v4329_v36 = vmax.f32 %v4265_v52, 0.0  ;;  %3489 = vst.msk [vmem:[#allocation3 + $0x128] sm:$0xff] %vm3451_vm12, %v3334_v3  ;;  %1427 = vrot.lane.b32.xlu0 %v8196_v19, %s6680_s28  ;;  %6398 = vmatprep.mubr.msk.f32.mxu0 %vm3582_vm13, %v3552_v5  ;;  %v8504_v34 = vld [vmem:[#allocation2 + $0x2e8] sm:$0xff] }
 0x31c   :  { %v4328_v8 = vmax.f32 %v4264_v58, 0.0  ;;  %1810 = vrot.lane.b32.xlu1 %v2790_v59, %s6681_s5  ;;  %429 = vst.msk [vmem:[#allocation3 + $0x1d0] sm:$0xff] %vm68_vm0, %v8504_v34  ;;  %v3177_v63 = vld [vmem:[#allocation2 + $0x28a] sm:$0xff] }
 0x31d   :  { %v4381_v46 = vmax.f32 %v4327_v6, %v4329_v36  ;;  %v646_v11 = vpop.permute.xlu0 %645  ;;  %v3178_v36 = vld [vmem:[#allocation2 + $0x292] sm:$0xff] }
 0x31e   :  { %v4380_v17 = vmax.f32 %v4326_v45, %v4328_v8  ;;  %797 = vst.msk [vmem:[#allocation3 + $0x148] sm:$0xff] %vm755_vm5, %v646_v11  ;;  %v1029_v13 = vpop.permute.xlu1 %1028  ;;  %v236_v8 = vld [vmem:[%s9638_s23 + $0x1d0] sm:$0xff] }
 0x31f   :  { %4414 = vst.msk [vmem:[#allocation4 + $0x58] sm:$0xff] %vm4402_vm14, %v4381_v46  ;;  %2964 = vrot.lane.b32.xlu0 %v2791_v27, %s6684_s24 }
 0x320   :  { %1181 = vst.msk [vmem:[#allocation3 + $0x140] sm:$0xff] %vm1140_vm6, %v1029_v13  ;;  %3347 = vrot.lane.b32.xlu1 %v3175_v56, %s6686_s21  ;;  %v237_v13 = vld [vmem:[%s9638_s23 + $0x1d8] sm:$0xff] }
 0x321   :  { %4413 = vst.msk [vmem:[#allocation4 + $0x50] sm:$0xff] %vm4402_vm14, %v4380_v17  ;;  %v2182_v19 = vpop.permute.xlu0 %2181 }
 0x322   :  { %2335 = vst.msk [vmem:[#allocation3 + $0x138] sm:$0xff] %vm2295_vm9, %v2182_v19  ;;  %v2566_v14 = vpop.permute.xlu1 %2565  ;;  %v3553_v15 = vld [vmem:[#allocation3 + $0x128] sm:$0xff] }
 0x323   :  { %2720 = vst.msk [vmem:[#allocation3 + $0x130] sm:$0xff] %vm2681_vm10, %v2566_v14  ;;  %6399 = vmatmul.mubr.msk.f32.gmra.mrb[36].mxu0 %vm3582_vm13, %v3553_v15  ;;  %659 = vrot.lane.b32.xlu0 %v2790_v59, %s6679_s27 }
 0x324   :  { %1812 = vrot.lane.b32.xlu1 %v2791_v27, %s6681_s5  ;;  %301 = vst.msk [vmem:[#allocation2 + $0x301] sm:$0xff] %vm68_vm0, %v236_v8  ;;  %302 = vst.msk [vmem:[#allocation2 + $0x309] sm:$0xff] %vm68_vm0, %v237_v13 }
 0x325   :  { %v1031_v62 = vpop.permute.xlu0 %1030 }
 0x326   :  { %1182 = vst.msk [vmem:[#allocation3 + $0x148] sm:$0xff] %vm1140_vm6, %v1031_v62  ;;  %v1414_v25 = vpop.permute.xlu1 %1413 }
 0x327   :  { %1566 = vst.msk [vmem:[#allocation3 + $0x140] sm:$0xff] %vm1525_vm7, %v1414_v25  ;;  %2195 = vrot.lane.b32.xlu0 %v3175_v56, %s6682_s0  ;;  %v2794_v25 = vld [vmem:[#allocation2 + $0x2a1] sm:$0xff] }
 0x328   :  { %v4445_v9 = vld [vmem:[#allocation4 + $0x50] ss:$2 sm:$0xff]  ;;  %v4477_v21 = vld [vmem:[#allocation4 + $0x51] ss:$2 sm:$0xff]  ;;  %3349 = vrot.lane.b32.xlu1 %v3176_v20, %s6686_s21 }
 0x329   :  { %v4503_v26 = vmax.f32 %v4445_v9, %v4477_v21  ;;  %v2568_v51 = vpop.permute.xlu0 %2567 }
 0x32a   :  { %2721 = vst.msk [vmem:[#allocation3 + $0x138] sm:$0xff] %vm2681_vm10, %v2568_v51  ;;  %v2951_v18 = vpop.permute.xlu1 %2950 }
 0x32b   :  { %4561 = vst.msk [vmem:[#allocation5 + $0x61] sm:$0xff] %vm4402_vm14, %v4503_v26  ;;  %661 = vrot.lane.b32.xlu0 %v2791_v27, %s6679_s27  ;;  %v8559_v17 = vld [vmem:[#allocation2 + $0x300] sm:$0xff] }
 0x32c   :  { %3105 = vst.msk [vmem:[#allocation3 + $0x130] sm:$0xff] %vm3066_vm11, %v2951_v18  ;;  %1044 = vrot.lane.b32.xlu1 %v3175_v56, %s6678_s26  ;;  %v8582_v18 = vld [vmem:[#allocation2 + $0x308] sm:$0xff] }
 0x32d   :  { %v1416_v30 = vpop.permute.xlu0 %1415  ;;  %431 = vst.msk [vmem:[#allocation3 + $0x1e0] sm:$0xff] %vm68_vm0, %v8559_v17  ;;  %432 = vst.msk [vmem:[#allocation3 + $0x1e8] sm:$0xff] %vm68_vm0, %v8582_v18 }
 0x32e   :  { %1567 = vst.msk [vmem:[#allocation3 + $0x148] sm:$0xff] %vm1525_vm7, %v1416_v30  ;;  %v1799_v33 = vpop.permute.xlu1 %1798 }
 0x32f   :  { %1951 = vst.msk [vmem:[#allocation3 + $0x140] sm:$0xff] %vm1910_vm8, %v1799_v33  ;;  %2197 = vrot.lane.b32.xlu0 %v3176_v20, %s6682_s0 }
 0x330   :  { %2581 = vrot.lane.b32.xlu1 %v8243_v22, %s6683_s22 }
 0x331   :  { %v2953_v60 = vpop.permute.xlu0 %2952 }
 0x332   :  { %v8509_v16 = vld [vmem:[#allocation5 + $0x60] sm:$0xff]  ;;  %3106 = vst.msk [vmem:[#allocation3 + $0x138] sm:$0xff] %vm3066_vm11, %v2953_v60  ;;  %v3336_v38 = vpop.permute.xlu1 %3335 }
 0x333   :  { %v4964_v44 = vld [vmem:[#allocation5 + $0x61] sm:$0xff]  ;;  %v4752_v39 = vpack.c.bf16 %v8509_v16, %v8376_v37  ;;  %3490 = vst.msk [vmem:[#allocation3 + $0x130] sm:$0xff] %vm3451_vm12, %v3336_v38  ;;  %1046 = vrot.lane.b32.xlu0 %v3176_v20, %s6678_s26 }
 0x334   :  { %v4817_v41 = vpack.c.bf16 %v4964_v44, %v8378_v2  ;;  %1429 = vrot.lane.b32.xlu1 %v8243_v22, %s6680_s28  ;;  %v8524_v2 = vld [vmem:[#allocation2 + $0x2f0] sm:$0xff] }
 0x335   :  { %v648_v59 = vpop.permute.xlu0 %647  ;;  %430 = vst.msk [vmem:[#allocation3 + $0x1d8] sm:$0xff] %vm68_vm0, %v8524_v2 }
 0x336   :  { %4825 = vst.msk [vmem:[#allocation6 + $0x38] sm:$0xff] %vm4402_vm14, %v4817_v41  ;;  %v1801_v47 = vpop.permute.xlu1 %1800  ;;  %v6382_v32 = vpop.f32.mrb[24].mxu0 }
 0x337   :  { %798 = vst.msk [vmem:[#allocation3 + $0x150] sm:$0xff] %vm755_vm5, %v648_v59  ;;  %v3965_v40 = vpop.f32.mrb[25].mxu0  ;;  %2583 = vrot.lane.b32.xlu0 %v8261_v54, %s6683_s22  ;;  %v4196_v15 = vmul.f32 %v8191_v42, %v6382_v32 }
 0x338   :  { %1952 = vst.msk [vmem:[#allocation3 + $0x148] sm:$0xff] %vm1910_vm8, %v1801_v47  ;;  %2966 = vrot.lane.b32.xlu1 %v2792_v35, %s6684_s24  ;;  %v4195_v62 = vmul.f32 %v8191_v42, %v3965_v40  ;;  %v2795_v47 = vld [vmem:[#allocation2 + $0x2a9] sm:$0xff] }
 0x339   :  { %v2184_v22 = vpop.permute.xlu0 %2183  ;;  %v4267_v26 = vadd.f32 %v8317_v55, %v4196_v15 }
 0x33a   :  { %2336 = vst.msk [vmem:[#allocation3 + $0x140] sm:$0xff] %vm2295_vm9, %v2184_v22  ;;  %v3338_v48 = vpop.permute.xlu1 %3337  ;;  %v3554_v28 = vld [vmem:[#allocation3 + $0x130] sm:$0xff]  ;;  %v3179_v22 = vld [vmem:[#allocation2 + $0x2a2] sm:$0xff] }
 0x33b   :  { %3491 = vst.msk [vmem:[#allocation3 + $0x138] sm:$0xff] %vm3451_vm12, %v3338_v48  ;;  %1431 = vrot.lane.b32.xlu0 %v8261_v54, %s6680_s28  ;;  %6401 = vmatprep.mubr.msk.f32.mxu0 %vm3582_vm13, %v3554_v28  ;;  %v4331_v41 = vmax.f32 %v4267_v26, 0.0 }
 0x33c   :  { %1814 = vrot.lane.b32.xlu1 %v2792_v35, %s6681_s5 }
 0x33d   :  { %v650_v52 = vpop.permute.xlu0 %649 }
 0x33e   :  { %799 = vst.msk [vmem:[#allocation3 + $0x158] sm:$0xff] %vm755_vm5, %v650_v52  ;;  %v1033_v58 = vpop.permute.xlu1 %1032 }
 0x33f   :  { %1183 = vst.msk [vmem:[#allocation3 + $0x150] sm:$0xff] %vm1140_vm6, %v1033_v58  ;;  %2968 = vrot.lane.b32.xlu0 %v2793_v50, %s6684_s24  ;;  %v3180_v58 = vld [vmem:[#allocation2 + $0x2aa] sm:$0xff] }
 0x340   :  { %3351 = vrot.lane.b32.xlu1 %v3177_v63, %s6686_s21 }
 0x341   :  { %v2186_v3 = vpop.permute.xlu0 %2185 }
 0x342   :  { %2337 = vst.msk [vmem:[#allocation3 + $0x148] sm:$0xff] %vm2295_vm9, %v2186_v3  ;;  %v2570_v54 = vpop.permute.xlu1 %2569  ;;  %v3555_v5 = vld [vmem:[#allocation3 + $0x138] sm:$0xff] }
 0x343   :  { %2722 = vst.msk [vmem:[#allocation3 + $0x140] sm:$0xff] %vm2681_vm10, %v2570_v54  ;;  %6402 = vmatmul.mubr.msk.f32.gmra.mrb[38].mxu0 %vm3582_vm13, %v3555_v5  ;;  %663 = vrot.lane.b32.xlu0 %v2792_v35, %s6679_s27 }
 0x344   :  { %1816 = vrot.lane.b32.xlu1 %v2793_v50, %s6681_s5 }
 0x345   :  { %v1035_v6 = vpop.permute.xlu0 %1034 }
 0x346   :  { %1184 = vst.msk [vmem:[#allocation3 + $0x158] sm:$0xff] %vm1140_vm6, %v1035_v6  ;;  %v1418_v45 = vpop.permute.xlu1 %1417 }
 0x347   :  { %1568 = vst.msk [vmem:[#allocation3 + $0x150] sm:$0xff] %vm1525_vm7, %v1418_v45  ;;  %2199 = vrot.lane.b32.xlu0 %v3177_v63, %s6682_s0 }
 0x348   :  { %3353 = vrot.lane.b32.xlu1 %v3178_v36, %s6686_s21 }
 0x349   :  { %v2572_v27 = vpop.permute.xlu0 %2571 }
 0x34a   :  { %2723 = vst.msk [vmem:[#allocation3 + $0x148] sm:$0xff] %vm2681_vm10, %v2572_v27  ;;  %v2955_v46 = vpop.permute.xlu1 %2954 }
 0x34b   :  { %3107 = vst.msk [vmem:[#allocation3 + $0x140] sm:$0xff] %vm3066_vm11, %v2955_v46  ;;  %665 = vrot.lane.b32.xlu0 %v2793_v50, %s6679_s27 }
 0x34c   :  { %1048 = vrot.lane.b32.xlu1 %v3177_v63, %s6678_s26 }
 0x34d   :  { %v1420_v11 = vpop.permute.xlu0 %1419 }
 0x34e   :  { %1569 = vst.msk [vmem:[#allocation3 + $0x158] sm:$0xff] %vm1525_vm7, %v1420_v11  ;;  %v1803_v56 = vpop.permute.xlu1 %1802  ;;  %v239_v11 = vld [vmem:[%s9638_s23 + $0x1e8] sm:$0xff] }
 0x34f   :  { %1953 = vst.msk [vmem:[#allocation3 + $0x150] sm:$0xff] %vm1910_vm8, %v1803_v56  ;;  %2201 = vrot.lane.b32.xlu0 %v3178_v36, %s6682_s0 }
 0x350   :  { %2585 = vrot.lane.b32.xlu1 %v8296_v1, %s6683_s22  ;;  %304 = vst.msk [vmem:[#allocation2 + $0x321] sm:$0xff] %vm68_vm0, %v239_v11 }
 0x351   :  { %v2957_v19 = vpop.permute.xlu0 %2956 }
 0x352   :  { %3108 = vst.msk [vmem:[#allocation3 + $0x148] sm:$0xff] %vm3066_vm11, %v2957_v19  ;;  %v3340_v14 = vpop.permute.xlu1 %3339 }
 0x353   :  { %3492 = vst.msk [vmem:[#allocation3 + $0x140] sm:$0xff] %vm3451_vm12, %v3340_v14  ;;  %1050 = vrot.lane.b32.xlu0 %v3178_v36, %s6678_s26  ;;  %v238_v36 = vld [vmem:[%s9638_s23 + $0x1e0] sm:$0xff] }
 0x354   :  { %1433 = vrot.lane.b32.xlu1 %v8296_v1, %s6680_s28  ;;  %v4266_v1 = vadd.f32 %v8317_v55, %v4195_v62  ;;  %303 = vst.msk [vmem:[#allocation2 + $0x319] sm:$0xff] %vm68_vm0, %v238_v36  ;;  %v5028_v62 = vld [vmem:[#allocation5 + $0x62] sm:$0xff] }
 0x355   :  { %v652_v20 = vpop.permute.xlu0 %651 }
 0x356   :  { %800 = vst.msk [vmem:[#allocation3 + $0x160] sm:$0xff] %vm755_vm5, %v652_v20  ;;  %v1805_v9 = vpop.permute.xlu1 %1804  ;;  %v6385_v21 = vpop.f32.mrb[26].mxu0 }
 0x357   :  { %1954 = vst.msk [vmem:[#allocation3 + $0x158] sm:$0xff] %vm1910_vm8, %v1805_v9  ;;  %v4198_v31 = vmul.f32 %v8191_v42, %v6385_v21  ;;  %v3975_v51 = vpop.f32.mrb[27].mxu0  ;;  %2587 = vrot.lane.b32.xlu0 %v8324_v43, %s6683_s22  ;;  %v2796_v21 = vld [vmem:[#allocation2 + $0x2b9] sm:$0xff] }
 0x358   :  { %v4197_v30 = vmul.f32 %v8191_v42, %v3975_v51  ;;  %2970 = vrot.lane.b32.xlu1 %v2794_v25, %s6684_s24  ;;  %v4330_v42 = vmax.f32 %v4266_v1, 0.0 }
 0x359   :  { %v4269_v33 = vadd.f32 %v8317_v55, %v4198_v31  ;;  %v2188_v29 = vpop.permute.xlu0 %2187 }
 0x35a   :  { %v4268_v60 = vadd.f32 %v8317_v55, %v4197_v30  ;;  %2338 = vst.msk [vmem:[#allocation3 + $0x150] sm:$0xff] %vm2295_vm9, %v2188_v29  ;;  %v3342_v44 = vpop.permute.xlu1 %3341  ;;  %v3556_v38 = vld [vmem:[#allocation3 + $0x140] sm:$0xff] }
 0x35b   :  { %v4333_v59 = vmax.f32 %v4269_v33, 0.0  ;;  %3493 = vst.msk [vmem:[#allocation3 + $0x148] sm:$0xff] %vm3451_vm12, %v3342_v44  ;;  %1435 = vrot.lane.b32.xlu0 %v8324_v43, %s6680_s28  ;;  %6404 = vmatprep.mubr.msk.f32.mxu0 %vm3582_vm13, %v3556_v38  ;;  %v8629_v56 = vld [vmem:[#allocation2 + $0x318] sm:$0xff]  ;;  %v8649_v1 = vld [vmem:[#allocation2 + $0x320] sm:$0xff] }
 0x35c   :  { %v4332_v35 = vmax.f32 %v4268_v60, 0.0  ;;  %1818 = vrot.lane.b32.xlu1 %v2794_v25, %s6681_s5  ;;  %433 = vst.msk [vmem:[#allocation3 + $0x1f0] sm:$0xff] %vm68_vm0, %v8629_v56  ;;  %434 = vst.msk [vmem:[#allocation3 + $0x1f8] sm:$0xff] %vm68_vm0, %v8649_v1  ;;  %v2797_v29 = vld [vmem:[#allocation2 + $0x2c1] sm:$0xff] }
 0x35d   :  { %v4383_v32 = vmax.f32 %v4331_v41, %v4333_v59  ;;  %v654_v40 = vpop.permute.xlu0 %653  ;;  %v3181_v44 = vld [vmem:[#allocation2 + $0x2ba] sm:$0xff] }
 0x35e   :  { %v4382_v48 = vmax.f32 %v4330_v42, %v4332_v35  ;;  %801 = vst.msk [vmem:[#allocation3 + $0x168] sm:$0xff] %vm755_vm5, %v654_v40  ;;  %v1037_v28 = vpop.permute.xlu1 %1036  ;;  %v3182_v35 = vld [vmem:[#allocation2 + $0x2c2] sm:$0xff] }
 0x35f   :  { %4416 = vst.msk [vmem:[#allocation4 + $0x68] sm:$0xff] %vm4402_vm14, %v4383_v32  ;;  %2972 = vrot.lane.b32.xlu0 %v2795_v47, %s6684_s24  ;;  %v240_v32 = vld [vmem:[%s9638_s23 + $0x1f0] sm:$0xff] }
 0x360   :  { %1185 = vst.msk [vmem:[#allocation3 + $0x160] sm:$0xff] %vm1140_vm6, %v1037_v28  ;;  %3355 = vrot.lane.b32.xlu1 %v3179_v22, %s6686_s21 }
 0x361   :  { %4415 = vst.msk [vmem:[#allocation4 + $0x60] sm:$0xff] %vm4402_vm14, %v4382_v48  ;;  %v2190_v43 = vpop.permute.xlu0 %2189 }
 0x362   :  { %2339 = vst.msk [vmem:[#allocation3 + $0x158] sm:$0xff] %vm2295_vm9, %v2190_v43  ;;  %v2574_v50 = vpop.permute.xlu1 %2573  ;;  %v3557_v52 = vld [vmem:[#allocation3 + $0x148] sm:$0xff]  ;;  %v241_v43 = vld [vmem:[%s9638_s23 + $0x1f8] sm:$0xff]  ;;  %s6688_s23 = smov 64  }
 0x363   :  { %2724 = vst.msk [vmem:[#allocation3 + $0x150] sm:$0xff] %vm2681_vm10, %v2574_v50  ;;  %6405 = vmatmul.mubr.msk.f32.gmra.mrb[40].mxu0 %vm3582_vm13, %v3557_v52  ;;  %667 = vrot.lane.b32.xlu0 %v2794_v25, %s6679_s27 }
 0x364   :  { %1820 = vrot.lane.b32.xlu1 %v2795_v47, %s6681_s5  ;;  %305 = vst.msk [vmem:[#allocation2 + $0x331] sm:$0xff] %vm68_vm0, %v240_v32  ;;  %306 = vst.msk [vmem:[#allocation2 + $0x339] sm:$0xff] %vm68_vm0, %v241_v43  ;;  %vm4660_vm0 = vcmask 523520  }
 0x365   :  { %v1039_v63 = vpop.permute.xlu0 %1038 }
 0x366   :  { %1186 = vst.msk [vmem:[#allocation3 + $0x168] sm:$0xff] %vm1140_vm6, %v1039_v63  ;;  %v1422_v3 = vpop.permute.xlu1 %1421  ;;  %v8694_v63 = vld [vmem:[%s9640_s2] ss:$0 sm:$0xff] }
 0x367   :  { %1570 = vst.msk [vmem:[#allocation3 + $0x160] sm:$0xff] %vm1525_vm7, %v1422_v3  ;;  %2203 = vrot.lane.b32.xlu0 %v3179_v22, %s6682_s0 }
 0x368   :  { %v4447_v54 = vld [vmem:[#allocation4 + $0x60] ss:$2 sm:$0xff]  ;;  %v4479_v5 = vld [vmem:[#allocation4 + $0x61] ss:$2 sm:$0xff]  ;;  %3357 = vrot.lane.b32.xlu1 %v3180_v58, %s6686_s21 }
 0x369   :  { %v4504_v6 = vmax.f32 %v4447_v54, %v4479_v5  ;;  %v2576_v45 = vpop.permute.xlu0 %2575  ;;  %v2798_v5 = vld [vmem:[#allocation2 + $0x2d1] sm:$0xff] }
 0x36a   :  { %2725 = vst.msk [vmem:[#allocation3 + $0x158] sm:$0xff] %vm2681_vm10, %v2576_v45  ;;  %v2959_v8 = vpop.permute.xlu1 %2958 }
 0x36b   :  { %4562 = vst.msk [vmem:[#allocation5 + $0x71] sm:$0xff] %vm4402_vm14, %v4504_v6  ;;  %669 = vrot.lane.b32.xlu0 %v2795_v47, %s6679_s27 }
 0x36c   :  { %3109 = vst.msk [vmem:[#allocation3 + $0x150] sm:$0xff] %vm3066_vm11, %v2959_v8  ;;  %1052 = vrot.lane.b32.xlu1 %v3179_v22, %s6678_s26 }
 0x36d   :  { %v1424_v27 = vpop.permute.xlu0 %1423 }
 0x36e   :  { %1571 = vst.msk [vmem:[#allocation3 + $0x168] sm:$0xff] %vm1525_vm7, %v1424_v27  ;;  %v1807_v46 = vpop.permute.xlu1 %1806 }
 0x36f   :  { %1955 = vst.msk [vmem:[#allocation3 + $0x160] sm:$0xff] %vm1910_vm8, %v1807_v46  ;;  %2205 = vrot.lane.b32.xlu0 %v3180_v58, %s6682_s0 }
 0x370   :  { %2589 = vrot.lane.b32.xlu1 %v8371_v57, %s6683_s22 }
 0x371   :  { %v2961_v13 = vpop.permute.xlu0 %2960 }
 0x372   :  { %v4901_v19 = vld [vmem:[#allocation5 + $0x70] sm:$0xff]  ;;  %3110 = vst.msk [vmem:[#allocation3 + $0x158] sm:$0xff] %vm3066_vm11, %v2961_v13  ;;  %v3344_v14 = vpop.permute.xlu1 %3343 }
 0x373   :  { %v8636_v15 = vpack.c.bf16 %v4901_v19, %v8509_v16  ;;  %3494 = vst.msk [vmem:[#allocation3 + $0x150] sm:$0xff] %vm3451_vm12, %v3344_v14  ;;  %1054 = vrot.lane.b32.xlu0 %v3180_v58, %s6678_s26  ;;  %v5029_v20 = vld [vmem:[#allocation5 + $0x72] sm:$0xff] }
 0x374   :  { %1437 = vrot.lane.b32.xlu1 %v8371_v57, %s6680_s28  ;;  %v5042_v25 = vpack.c.bf16 %v5029_v20, %v5028_v62  ;;  %v8747_v43 = vld [vmem:[#allocation5 + $0x71] sm:$0xff] }
 0x375   :  { %4599 = vst.msk [vmem:[#allocation6 + $0x48] sm:$0xff] %vm4402_vm14, %v8636_v15  ;;  %v656_v9 = vpop.permute.xlu0 %655 }
 0x376   :  { %802 = vst.msk [vmem:[#allocation3 + $0x170] sm:$0xff] %vm755_vm5, %v656_v9  ;;  %v1809_v26 = vpop.permute.xlu1 %1808  ;;  %v6388_v31 = vpop.f32.mrb[28].mxu0 }
 0x377   :  { %5050 = vst.msk [vmem:[#allocation6 + $0x40] sm:$0xff] %vm4402_vm14, %v5042_v25  ;;  %v3985_v51 = vpop.f32.mrb[29].mxu0  ;;  %2591 = vrot.lane.b32.xlu0 %v8399_v12, %s6683_s22  ;;  %v4200_v58 = vmul.f32 %v8694_v63, %v6388_v31 }
 0x378   :  { %1956 = vst.msk [vmem:[#allocation3 + $0x168] sm:$0xff] %vm1910_vm8, %v1809_v26  ;;  %2974 = vrot.lane.b32.xlu1 %v2796_v21, %s6684_s24  ;;  %v4199_v3 = vmul.f32 %v8694_v63, %v3985_v51  ;;  %v2799_v26 = vld [vmem:[#allocation2 + $0x2d9] sm:$0xff] }
 0x379   :  { %v2192_v57 = vpop.permute.xlu0 %2191  ;;  %v4271_v45 = vadd.f32 %v8317_v55, %v4200_v58  ;;  %v3183_v51 = vld [vmem:[#allocation2 + $0x2d2] sm:$0xff] }
 0x37a   :  { %2340 = vst.msk [vmem:[#allocation3 + $0x160] sm:$0xff] %vm2295_vm9, %v2192_v57  ;;  %v3346_v30 = vpop.permute.xlu1 %3345  ;;  %v3558_v33 = vld [vmem:[#allocation3 + $0x150] sm:$0xff]  ;;  %v4270_v46 = vadd.f32 %v8317_v55, %v4199_v3 }
 0x37b   :  { %3495 = vst.msk [vmem:[#allocation3 + $0x158] sm:$0xff] %vm3451_vm12, %v3346_v30  ;;  %1439 = vrot.lane.b32.xlu0 %v8399_v12, %s6680_s28  ;;  %6407 = vmatprep.mubr.msk.f32.mxu0 %vm3582_vm13, %v3558_v33  ;;  %v4335_v20 = vmax.f32 %v4271_v45, 0.0 }
 0x37c   :  { %1822 = vrot.lane.b32.xlu1 %v2796_v21, %s6681_s5  ;;  %v4334_v9 = vmax.f32 %v4270_v46, 0.0 }
 0x37d   :  { %v658_v60 = vpop.permute.xlu0 %657 }
 0x37e   :  { %803 = vst.msk [vmem:[#allocation3 + $0x178] sm:$0xff] %vm755_vm5, %v658_v60  ;;  %v1041_v38 = vpop.permute.xlu1 %1040 }
 0x37f   :  { %1187 = vst.msk [vmem:[#allocation3 + $0x170] sm:$0xff] %vm1140_vm6, %v1041_v38  ;;  %2976 = vrot.lane.b32.xlu0 %v2797_v29, %s6684_s24 }
 0x380   :  { %3359 = vrot.lane.b32.xlu1 %v3181_v44, %s6686_s21 }
 0x381   :  { %v2194_v41 = vpop.permute.xlu0 %2193 }
 0x382   :  { %2341 = vst.msk [vmem:[#allocation3 + $0x168] sm:$0xff] %vm2295_vm9, %v2194_v41  ;;  %v2578_v12 = vpop.permute.xlu1 %2577  ;;  %v3559_v59 = vld [vmem:[#allocation3 + $0x158] sm:$0xff] }
 0x383   :  { %2726 = vst.msk [vmem:[#allocation3 + $0x160] sm:$0xff] %vm2681_vm10, %v2578_v12  ;;  %6408 = vmatmul.mubr.msk.f32.gmra.mrb[42].mxu0 %vm3582_vm13, %v3559_v59  ;;  %671 = vrot.lane.b32.xlu0 %v2796_v21, %s6679_s27 }
 0x384   :  { %1824 = vrot.lane.b32.xlu1 %v2797_v29, %s6681_s5 }
 0x385   :  { %v1043_v42 = vpop.permute.xlu0 %1042 }
 0x386   :  { %1188 = vst.msk [vmem:[#allocation3 + $0x178] sm:$0xff] %vm1140_vm6, %v1043_v42  ;;  %v1426_v47 = vpop.permute.xlu1 %1425 }
 0x387   :  { %1572 = vst.msk [vmem:[#allocation3 + $0x170] sm:$0xff] %vm1525_vm7, %v1426_v47  ;;  %2207 = vrot.lane.b32.xlu0 %v3181_v44, %s6682_s0 }
 0x388   :  { %3361 = vrot.lane.b32.xlu1 %v3182_v35, %s6686_s21 }
 0x389   :  { %v2580_v40 = vpop.permute.xlu0 %2579 }
 0x38a   :  { %2727 = vst.msk [vmem:[#allocation3 + $0x168] sm:$0xff] %vm2681_vm10, %v2580_v40  ;;  %v2963_v22 = vpop.permute.xlu1 %2962  ;;  %v5031_v40 = vld [vmem:[#allocation5 + $0x92] sm:$0xff] }
 0x38b   :  { %3111 = vst.msk [vmem:[#allocation3 + $0x160] sm:$0xff] %vm3066_vm11, %v2963_v22  ;;  %673 = vrot.lane.b32.xlu0 %v2797_v29, %s6679_s27 }
 0x38c   :  { %1056 = vrot.lane.b32.xlu1 %v3181_v44, %s6678_s26  ;;  %v3184_v44 = vld [vmem:[#allocation2 + $0x2da] sm:$0xff] }
 0x38d   :  { %v1428_v48 = vpop.permute.xlu0 %1427 }
 0x38e   :  { %1573 = vst.msk [vmem:[#allocation3 + $0x178] sm:$0xff] %vm1525_vm7, %v1428_v48  ;;  %v1811_v28 = vpop.permute.xlu1 %1810 }
 0x38f   :  { %1957 = vst.msk [vmem:[#allocation3 + $0x170] sm:$0xff] %vm1910_vm8, %v1811_v28  ;;  %2209 = vrot.lane.b32.xlu0 %v3182_v35, %s6682_s0 }
 0x390   :  { %2593 = vrot.lane.b32.xlu1 %v8434_v10, %s6683_s22 }
 0x391   :  { %v2965_v50 = vpop.permute.xlu0 %2964 }
 0x392   :  { %3112 = vst.msk [vmem:[#allocation3 + $0x168] sm:$0xff] %vm3066_vm11, %v2965_v50  ;;  %v3348_v52 = vpop.permute.xlu1 %3347 }
 0x393   :  { %3496 = vst.msk [vmem:[#allocation3 + $0x160] sm:$0xff] %vm3451_vm12, %v3348_v52  ;;  %1058 = vrot.lane.b32.xlu0 %v3182_v35, %s6678_s26 }
 0x394   :  { %1441 = vrot.lane.b32.xlu1 %v8434_v10, %s6680_s28 }
 0x395   :  { %v660_v54 = vpop.permute.xlu0 %659 }
 0x396   :  { %804 = vst.msk [vmem:[#allocation3 + $0x180] sm:$0xff] %vm755_vm5, %v660_v54  ;;  %v1813_v6 = vpop.permute.xlu1 %1812  ;;  %v6391_v36 = vpop.f32.mrb[30].mxu0  ;;  %v2800_v54 = vld [vmem:[#allocation2 + $0x2e9] sm:$0xff] }
 0x397   :  { %1958 = vst.msk [vmem:[#allocation3 + $0x178] sm:$0xff] %vm1910_vm8, %v1813_v6  ;;  %v4202_v8 = vmul.f32 %v8694_v63, %v6391_v36  ;;  %v3995_v27 = vpop.f32.mrb[31].mxu0  ;;  %2595 = vrot.lane.b32.xlu0 %v8457_v49, %s6683_s22 }
 0x398   :  { %v4201_v10 = vmul.f32 %v8694_v63, %v3995_v27  ;;  %2978 = vrot.lane.b32.xlu1 %v2798_v5, %s6684_s24  ;;  %v2801_v27 = vld [vmem:[#allocation2 + $0x2f1] sm:$0xff] }
 0x399   :  { %v4273_v11 = vadd.f32 %v8317_v55, %v4202_v8  ;;  %v2196_v13 = vpop.permute.xlu0 %2195 }
 0x39a   :  { %v4272_v19 = vadd.f32 %v8317_v55, %v4201_v10  ;;  %2342 = vst.msk [vmem:[#allocation3 + $0x170] sm:$0xff] %vm2295_vm9, %v2196_v13  ;;  %v3350_v14 = vpop.permute.xlu1 %3349  ;;  %v3560_v62 = vld [vmem:[#allocation3 + $0x160] sm:$0xff]  ;;  %v3185_v10 = vld [vmem:[#allocation2 + $0x2ea] sm:$0xff] }
 0x39b   :  { %v4337_v25 = vmax.f32 %v4273_v11, 0.0  ;;  %3497 = vst.msk [vmem:[#allocation3 + $0x168] sm:$0xff] %vm3451_vm12, %v3350_v14  ;;  %1443 = vrot.lane.b32.xlu0 %v8457_v49, %s6680_s28  ;;  %6410 = vmatprep.mubr.msk.f32.mxu0 %vm3582_vm13, %v3560_v62  ;;  %v3186_v62 = vld [vmem:[#allocation2 + $0x2f2] sm:$0xff] }
 0x39c   :  { %v4336_v21 = vmax.f32 %v4272_v19, 0.0  ;;  %1826 = vrot.lane.b32.xlu1 %v2798_v5, %s6681_s5 }
 0x39d   :  { %v4385_v31 = vmax.f32 %v4335_v20, %v4337_v25  ;;  %v662_v55 = vpop.permute.xlu0 %661 }
 0x39e   :  { %v4384_v57 = vmax.f32 %v4334_v9, %v4336_v21  ;;  %805 = vst.msk [vmem:[#allocation3 + $0x188] sm:$0xff] %vm755_vm5, %v662_v55  ;;  %v1045_v30 = vpop.permute.xlu1 %1044 }
 0x39f   :  { %4418 = vst.msk [vmem:[#allocation4 + $0x78] sm:$0xff] %vm4402_vm14, %v4385_v31  ;;  %2980 = vrot.lane.b32.xlu0 %v2799_v26, %s6684_s24 }
 0x3a0   :  { %1189 = vst.msk [vmem:[#allocation3 + $0x180] sm:$0xff] %vm1140_vm6, %v1045_v30  ;;  %3363 = vrot.lane.b32.xlu1 %v3183_v51, %s6686_s21 }
 0x3a1   :  { %4417 = vst.msk [vmem:[#allocation4 + $0x70] sm:$0xff] %vm4402_vm14, %v4384_v57  ;;  %v2198_v49 = vpop.permute.xlu0 %2197 }
 0x3a2   :  { %2343 = vst.msk [vmem:[#allocation3 + $0x178] sm:$0xff] %vm2295_vm9, %v2198_v49  ;;  %v2582_v33 = vpop.permute.xlu1 %2581  ;;  %v3561_v29 = vld [vmem:[#allocation3 + $0x168] sm:$0xff] }
 0x3a3   :  { %2728 = vst.msk [vmem:[#allocation3 + $0x170] sm:$0xff] %vm2681_vm10, %v2582_v33  ;;  %6411 = vmatmul.mubr.msk.f32.gmra.mrb[44].mxu0 %vm3582_vm13, %v3561_v29  ;;  %675 = vrot.lane.b32.xlu0 %v2798_v5, %s6679_s27  ;;  %v2802_v49 = vld [vmem:[#allocation2 + $0x301] sm:$0xff] }
 0x3a4   :  { %1828 = vrot.lane.b32.xlu1 %v2799_v26, %s6681_s5 }
 0x3a5   :  { %v1047_v60 = vpop.permute.xlu0 %1046 }
 0x3a6   :  { %1190 = vst.msk [vmem:[#allocation3 + $0x188] sm:$0xff] %vm1140_vm6, %v1047_v60  ;;  %v1430_v38 = vpop.permute.xlu1 %1429  ;;  %v8801_v60 = vld [vmem:[%s9641_s30] ss:$0 sm:$0xff] }
 0x3a7   :  { %1574 = vst.msk [vmem:[#allocation3 + $0x180] sm:$0xff] %vm1525_vm7, %v1430_v38  ;;  %2211 = vrot.lane.b32.xlu0 %v3183_v51, %s6682_s0 }
 0x3a8   :  { %v4449_v41 = vld [vmem:[#allocation4 + $0x70] ss:$2 sm:$0xff]  ;;  %v4481_v12 = vld [vmem:[#allocation4 + $0x71] ss:$2 sm:$0xff]  ;;  %3365 = vrot.lane.b32.xlu1 %v3184_v44, %s6686_s21 }
 0x3a9   :  { %v4505_v59 = vmax.f32 %v4449_v41, %v4481_v12  ;;  %v2584_v42 = vpop.permute.xlu0 %2583 }
 0x3aa   :  { %2729 = vst.msk [vmem:[#allocation3 + $0x178] sm:$0xff] %vm2681_vm10, %v2584_v42  ;;  %v2967_v35 = vpop.permute.xlu1 %2966 }
 0x3ab   :  { %4563 = vst.msk [vmem:[#allocation5 + $0x81] sm:$0xff] %vm4402_vm14, %v4505_v59  ;;  %677 = vrot.lane.b32.xlu0 %v2799_v26, %s6679_s27 }
 0x3ac   :  { %3113 = vst.msk [vmem:[#allocation3 + $0x170] sm:$0xff] %vm3066_vm11, %v2967_v35  ;;  %1060 = vrot.lane.b32.xlu1 %v3183_v51, %s6678_s26 }
 0x3ad   :  { %v1432_v47 = vpop.permute.xlu0 %1431 }
 0x3ae   :  { %1575 = vst.msk [vmem:[#allocation3 + $0x188] sm:$0xff] %vm1525_vm7, %v1432_v47  ;;  %v1815_v32 = vpop.permute.xlu1 %1814 }
 0x3af   :  { %1959 = vst.msk [vmem:[#allocation3 + $0x180] sm:$0xff] %vm1910_vm8, %v1815_v32  ;;  %2213 = vrot.lane.b32.xlu0 %v3184_v44, %s6682_s0 }
 0x3b0   :  { %2597 = vrot.lane.b32.xlu1 %v8504_v34, %s6683_s22 }
 0x3b1   :  { %v2969_v22 = vpop.permute.xlu0 %2968 }
 0x3b2   :  { %v8744_v48 = vld [vmem:[#allocation5 + $0x81] sm:$0xff]  ;;  %3114 = vst.msk [vmem:[#allocation3 + $0x178] sm:$0xff] %vm3066_vm11, %v2969_v22  ;;  %v3352_v28 = vpop.permute.xlu1 %3351 }
 0x3b3   :  { %v5030_v50 = vld [vmem:[#allocation5 + $0x82] sm:$0xff]  ;;  %3498 = vst.msk [vmem:[#allocation3 + $0x170] sm:$0xff] %vm3451_vm12, %v3352_v28  ;;  %1062 = vrot.lane.b32.xlu0 %v3184_v44, %s6678_s26  ;;  %v4818_v52 = vpack.c.bf16 %v8744_v48, %v8747_v43 }
 0x3b4   :  { %v5043_v58 = vpack.c.bf16 %v5031_v40, %v5030_v50  ;;  %1445 = vrot.lane.b32.xlu1 %v8504_v34, %s6680_s28 }
 0x3b5   :  { %v664_v3 = vpop.permute.xlu0 %663  ;;  %4826 = vst.msk [vmem:[#allocation6 + $0x50] sm:$0xff] %vm4402_vm14, %v4818_v52  ;;  %v2803_v52 = vld [vmem:[#allocation2 + $0x309] sm:$0xff] }
 0x3b6   :  { %5051 = vst.msk [vmem:[#allocation6 + $0x58] sm:$0xff] %vm4402_vm14, %v5043_v58  ;;  %v1817_v5 = vpop.permute.xlu1 %1816  ;;  %v6394_v6 = vpop.f32.mrb[32].mxu0 }
 0x3b7   :  { %806 = vst.msk [vmem:[#allocation3 + $0x190] sm:$0xff] %vm755_vm5, %v664_v3  ;;  %v4005_v36 = vpop.f32.mrb[33].mxu0  ;;  %2599 = vrot.lane.b32.xlu0 %v8524_v2, %s6683_s22  ;;  %v4204_v51 = vmul.f32 %v8694_v63, %v6394_v6 }
 0x3b8   :  { %1960 = vst.msk [vmem:[#allocation3 + $0x188] sm:$0xff] %vm1910_vm8, %v1817_v5  ;;  %2982 = vrot.lane.b32.xlu1 %v2800_v54, %s6684_s24  ;;  %v4203_v57 = vmul.f32 %v8694_v63, %v4005_v36 }
 0x3b9   :  { %v2200_v45 = vpop.permute.xlu0 %2199  ;;  %v4275_v44 = vadd.f32 %v8801_v60, %v4204_v51 }
 0x3ba   :  { %2344 = vst.msk [vmem:[#allocation3 + $0x180] sm:$0xff] %vm2295_vm9, %v2200_v45  ;;  %v3354_v34 = vpop.permute.xlu1 %3353  ;;  %v3562_v8 = vld [vmem:[#allocation3 + $0x170] sm:$0xff] }
 0x3bb   :  { %3499 = vst.msk [vmem:[#allocation3 + $0x178] sm:$0xff] %vm3451_vm12, %v3354_v34  ;;  %1447 = vrot.lane.b32.xlu0 %v8524_v2, %s6680_s28  ;;  %6413 = vmatprep.mubr.msk.f32.mxu0 %vm3582_vm13, %v3562_v8  ;;  %v4339_v40 = vmax.f32 %v4275_v44, 0.0  ;;  %v3188_v8 = vld [vmem:[#allocation2 + $0x30a] sm:$0xff]  ;;  %v3189_v44 = vld [vmem:[#allocation2 + $0x31a] sm:$0xff] }
 0x3bc   :  { %1830 = vrot.lane.b32.xlu1 %v2800_v54, %s6681_s5 }
 0x3bd   :  { %v666_v46 = vpop.permute.xlu0 %665 }
 0x3be   :  { %807 = vst.msk [vmem:[#allocation3 + $0x198] sm:$0xff] %vm755_vm5, %v666_v46  ;;  %v1049_v11 = vpop.permute.xlu1 %1048 }
 0x3bf   :  { %1191 = vst.msk [vmem:[#allocation3 + $0x190] sm:$0xff] %vm1140_vm6, %v1049_v11  ;;  %2984 = vrot.lane.b32.xlu0 %v2801_v27, %s6684_s24 }
 0x3c0   :  { %3367 = vrot.lane.b32.xlu1 %v3185_v10, %s6686_s21 }
 0x3c1   :  { %v2202_v13 = vpop.permute.xlu0 %2201 }
 0x3c2   :  { %2345 = vst.msk [vmem:[#allocation3 + $0x188] sm:$0xff] %vm2295_vm9, %v2202_v13  ;;  %v2586_v2 = vpop.permute.xlu1 %2585  ;;  %v3563_v19 = vld [vmem:[#allocation3 + $0x178] sm:$0xff] }
 0x3c3   :  { %2730 = vst.msk [vmem:[#allocation3 + $0x180] sm:$0xff] %vm2681_vm10, %v2586_v2  ;;  %6414 = vmatmul.mubr.msk.f32.gmra.mrb[46].mxu0 %vm3582_vm13, %v3563_v19  ;;  %679 = vrot.lane.b32.xlu0 %v2800_v54, %s6679_s27  ;;  %v3187_v54 = vld [vmem:[#allocation2 + $0x302] sm:$0xff] }
 0x3c4   :  { %1832 = vrot.lane.b32.xlu1 %v2801_v27, %s6681_s5 }
 0x3c5   :  { %v1051_v14 = vpop.permute.xlu0 %1050 }
 0x3c6   :  { %1192 = vst.msk [vmem:[#allocation3 + $0x198] sm:$0xff] %vm1140_vm6, %v1051_v14  ;;  %v1434_v20 = vpop.permute.xlu1 %1433 }
 0x3c7   :  { %1576 = vst.msk [vmem:[#allocation3 + $0x190] sm:$0xff] %vm1525_vm7, %v1434_v20  ;;  %2215 = vrot.lane.b32.xlu0 %v3185_v10, %s6682_s0 }
 0x3c8   :  { %3369 = vrot.lane.b32.xlu1 %v3186_v62, %s6686_s21 }
 0x3c9   :  { %v2588_v25 = vpop.permute.xlu0 %2587 }
 0x3ca   :  { %2731 = vst.msk [vmem:[#allocation3 + $0x188] sm:$0xff] %vm2681_vm10, %v2588_v25  ;;  %v2971_v9 = vpop.permute.xlu1 %2970 }
 0x3cb   :  { %3115 = vst.msk [vmem:[#allocation3 + $0x180] sm:$0xff] %vm3066_vm11, %v2971_v9  ;;  %681 = vrot.lane.b32.xlu0 %v2801_v27, %s6679_s27 }
 0x3cc   :  { %1064 = vrot.lane.b32.xlu1 %v3185_v10, %s6678_s26 }
 0x3cd   :  { %v1436_v21 = vpop.permute.xlu0 %1435 }
 0x3ce   :  { %1577 = vst.msk [vmem:[#allocation3 + $0x198] sm:$0xff] %vm1525_vm7, %v1436_v21  ;;  %v1819_v26 = vpop.permute.xlu1 %1818 }
 0x3cf   :  { %1961 = vst.msk [vmem:[#allocation3 + $0x190] sm:$0xff] %vm1910_vm8, %v1819_v26  ;;  %2217 = vrot.lane.b32.xlu0 %v3186_v62, %s6682_s0 }
 0x3d0   :  { %2601 = vrot.lane.b32.xlu1 %v8559_v17, %s6683_s22 }
 0x3d1   :  { %v2973_v31 = vpop.permute.xlu0 %2972 }
 0x3d2   :  { %3116 = vst.msk [vmem:[#allocation3 + $0x188] sm:$0xff] %vm3066_vm11, %v2973_v31  ;;  %v3356_v55 = vpop.permute.xlu1 %3355  ;;  %v2804_v31 = vld [vmem:[#allocation2 + $0x319] sm:$0xff] }
 0x3d3   :  { %3500 = vst.msk [vmem:[#allocation3 + $0x180] sm:$0xff] %vm3451_vm12, %v3356_v55  ;;  %1066 = vrot.lane.b32.xlu0 %v3186_v62, %s6678_s26  ;;  %v4580_v62 = vld [vmem:[#allocation5 + $0xa0] sm:$0xff] }
 0x3d4   :  { %1449 = vrot.lane.b32.xlu1 %v8559_v17, %s6680_s28  ;;  %v4274_v17 = vadd.f32 %v8801_v60, %v4203_v57 }
 0x3d5   :  { %v668_v30 = vpop.permute.xlu0 %667 }
 0x3d6   :  { %808 = vst.msk [vmem:[#allocation3 + $0x1a0] sm:$0xff] %vm755_vm5, %v668_v30  ;;  %v1821_v33 = vpop.permute.xlu1 %1820  ;;  %v6397_v29 = vpop.f32.mrb[34].mxu0  ;;  %v4338_v28 = vmax.f32 %v4274_v17, 0.0 }
 0x3d7   :  { %1962 = vst.msk [vmem:[#allocation3 + $0x198] sm:$0xff] %vm1910_vm8, %v1821_v33  ;;  %v4206_v38 = vmul.f32 %v8694_v63, %v6397_v29  ;;  %v4015_v41 = vpop.f32.mrb[35].mxu0  ;;  %2603 = vrot.lane.b32.xlu0 %v8582_v18, %s6683_s22  ;;  %v2805_v33 = vld [vmem:[#allocation2 + $0x321] sm:$0xff] }
 0x3d8   :  { %v4205_v12 = vmul.f32 %v8694_v63, %v4015_v41  ;;  %2986 = vrot.lane.b32.xlu1 %v2802_v49, %s6684_s24 }
 0x3d9   :  { %v4277_v59 = vadd.f32 %v8801_v60, %v4206_v38  ;;  %v2204_v42 = vpop.permute.xlu0 %2203 }
 0x3da   :  { %v4276_v35 = vadd.f32 %v8801_v60, %v4205_v12  ;;  %2346 = vst.msk [vmem:[#allocation3 + $0x190] sm:$0xff] %vm2295_vm9, %v2204_v42  ;;  %v3358_v47 = vpop.permute.xlu1 %3357  ;;  %v3564_v32 = vld [vmem:[#allocation3 + $0x180] sm:$0xff] }
 0x3db   :  { %v4341_v22 = vmax.f32 %v4277_v59, 0.0  ;;  %3501 = vst.msk [vmem:[#allocation3 + $0x188] sm:$0xff] %vm3451_vm12, %v3358_v47  ;;  %1451 = vrot.lane.b32.xlu0 %v8582_v18, %s6680_s28  ;;  %6416 = vmatprep.mubr.msk.f32.mxu0 %vm3582_vm13, %v3564_v32  ;;  %v3190_v59 = vld [vmem:[#allocation2 + $0x322] sm:$0xff] }
 0x3dc   :  { %v4340_v50 = vmax.f32 %v4276_v35, 0.0  ;;  %1834 = vrot.lane.b32.xlu1 %v2802_v49, %s6681_s5 }
 0x3dd   :  { %v4387_v58 = vmax.f32 %v4339_v40, %v4341_v22  ;;  %v670_v3 = vpop.permute.xlu0 %669  ;;  %v2421_v40 = vld [vmem:[#allocation2 + $0x330] sm:$0xff] }
 0x3de   :  { %v4386_v5 = vmax.f32 %v4338_v28, %v4340_v50  ;;  %809 = vst.msk [vmem:[#allocation3 + $0x1a8] sm:$0xff] %vm755_vm5, %v670_v3  ;;  %v1053_v6 = vpop.permute.xlu1 %1052  ;;  %v2422_v3 = vld [vmem:[#allocation2 + $0x338] sm:$0xff] }
 0x3df   :  { %4420 = vst.msk [vmem:[#allocation4 + $0x88] sm:$0xff] %vm4402_vm14, %v4387_v58  ;;  %2988 = vrot.lane.b32.xlu0 %v2803_v52, %s6684_s24 }
 0x3e0   :  { %1193 = vst.msk [vmem:[#allocation3 + $0x1a0] sm:$0xff] %vm1140_vm6, %v1053_v6  ;;  %3371 = vrot.lane.b32.xlu1 %v3187_v54, %s6686_s21  ;;  %v2806_v6 = vld [vmem:[#allocation2 + $0x331] sm:$0xff] }
 0x3e1   :  { %4419 = vst.msk [vmem:[#allocation4 + $0x80] sm:$0xff] %vm4402_vm14, %v4386_v5  ;;  %v2206_v18 = vpop.permute.xlu0 %2205 }
 0x3e2   :  { %2347 = vst.msk [vmem:[#allocation3 + $0x198] sm:$0xff] %vm2295_vm9, %v2206_v18  ;;  %v2590_v36 = vpop.permute.xlu1 %2589  ;;  %v3565_v45 = vld [vmem:[#allocation3 + $0x188] sm:$0xff] }
 0x3e3   :  { %2732 = vst.msk [vmem:[#allocation3 + $0x190] sm:$0xff] %vm2681_vm10, %v2590_v36  ;;  %6417 = vmatmul.mubr.msk.f32.gmra.mrb[48].mxu0 %vm3582_vm13, %v3565_v45  ;;  %683 = vrot.lane.b32.xlu0 %v2802_v49, %s6679_s27 }
 0x3e4   :  { %1836 = vrot.lane.b32.xlu1 %v2803_v52, %s6681_s5 }
 0x3e5   :  { %v1055_v34 = vpop.permute.xlu0 %1054 }
 0x3e6   :  { %1194 = vst.msk [vmem:[#allocation3 + $0x1a8] sm:$0xff] %vm1140_vm6, %v1055_v34  ;;  %v1438_v27 = vpop.permute.xlu1 %1437 }
 0x3e7   :  { %1578 = vst.msk [vmem:[#allocation3 + $0x1a0] sm:$0xff] %vm1525_vm7, %v1438_v27  ;;  %2219 = vrot.lane.b32.xlu0 %v3187_v54, %s6682_s0 }
 0x3e8   :  { %v4451_v46 = vld [vmem:[#allocation4 + $0x80] ss:$2 sm:$0xff]  ;;  %v4483_v10 = vld [vmem:[#allocation4 + $0x81] ss:$2 sm:$0xff]  ;;  %3373 = vrot.lane.b32.xlu1 %v3188_v8, %s6686_s21 }
 0x3e9   :  { %v4506_v11 = vmax.f32 %v4451_v46, %v4483_v10  ;;  %v2592_v13 = vpop.permute.xlu0 %2591 }
 0x3ea   :  { %2733 = vst.msk [vmem:[#allocation3 + $0x198] sm:$0xff] %vm2681_vm10, %v2592_v13  ;;  %v2975_v2 = vpop.permute.xlu1 %2974 }
 0x3eb   :  { %4564 = vst.msk [vmem:[#allocation5 + $0xb1] sm:$0xff] %vm4402_vm14, %v4506_v11  ;;  %685 = vrot.lane.b32.xlu0 %v2803_v52, %s6679_s27 }
 0x3ec   :  { %3117 = vst.msk [vmem:[#allocation3 + $0x190] sm:$0xff] %vm3066_vm11, %v2975_v2  ;;  %1068 = vrot.lane.b32.xlu1 %v3187_v54, %s6678_s26 }
 0x3ed   :  { %v1440_v19 = vpop.permute.xlu0 %1439 }
 0x3ee   :  { %1579 = vst.msk [vmem:[#allocation3 + $0x1a8] sm:$0xff] %vm1525_vm7, %v1440_v19  ;;  %v1823_v14 = vpop.permute.xlu1 %1822 }
 0x3ef   :  { %1963 = vst.msk [vmem:[#allocation3 + $0x1a0] sm:$0xff] %vm1910_vm8, %v1823_v14  ;;  %2221 = vrot.lane.b32.xlu0 %v3188_v8, %s6682_s0 }
 0x3f0   :  { %2605 = vrot.lane.b32.xlu1 %v8629_v56, %s6683_s22 }
 0x3f1   :  { %v2977_v20 = vpop.permute.xlu0 %2976 }
 0x3f2   :  { %v8844_v25 = vld [vmem:[#allocation5 + $0xb0] sm:$0xff]  ;;  %3118 = vst.msk [vmem:[#allocation3 + $0x198] sm:$0xff] %vm3066_vm11, %v2977_v20  ;;  %v3360_v9 = vpop.permute.xlu1 %3359 }
 0x3f3   :  { %v4592_v21 = vpack.c.bf16 %v8844_v25, %v4580_v62  ;;  %3502 = vst.msk [vmem:[#allocation3 + $0x190] sm:$0xff] %vm3451_vm12, %v3360_v9  ;;  %1070 = vrot.lane.b32.xlu0 %v3188_v8, %s6678_s26  ;;  %v2807_v62 = vld [vmem:[#allocation2 + $0x339] sm:$0xff] }
 0x3f4   :  { %1453 = vrot.lane.b32.xlu1 %v8629_v56, %s6680_s28  ;;  %v6638_v9 = vld [vmem:[%s9642_s29 + $0x40] sm:$0xff]  }
 0x3f5   :  { %4600 = vst.msk [vmem:[#allocation6 + $0x60] sm:$0xff] %vm4402_vm14, %v4592_v21  ;;  %v672_v26 = vpop.permute.xlu0 %671  ;;  %6220 = vmatprep.subr.bf16.mxu1 %v6638_v9 }
 0x3f6   :  { %810 = vst.msk [vmem:[#allocation3 + $0x1b0] sm:$0xff] %vm755_vm5, %v672_v26  ;;  %v1825_v55 = vpop.permute.xlu1 %1824  ;;  %v6400_v51 = vpop.f32.mrb[36].mxu0  ;;  %v6639_v26 = vld [vmem:[%s9642_s29] sm:$0xff]  }
 0x3f7   :  { %1964 = vst.msk [vmem:[#allocation3 + $0x1a8] sm:$0xff] %vm1910_vm8, %v1825_v55  ;;  %v4025_v57 = vpop.f32.mrb[37].mxu0  ;;  %2607 = vrot.lane.b32.xlu0 %v8649_v1, %s6683_s22  ;;  %v4208_v28 = vmul.f32 %v8694_v63, %v6400_v51  ;;  %6221 = vmatpush3.bf16.msra.mxu1 %v6639_v26 }
 0x3f8   :  { %2990 = vrot.lane.b32.xlu1 %v2804_v31, %s6684_s24  ;;  %v4207_v52 = vmul.f32 %v8694_v63, %v4025_v57 }
 0x3f9   :  { %v2208_v30 = vpop.permute.xlu0 %2207  ;;  %v4279_v54 = vadd.f32 %v8801_v60, %v4208_v28 }
 0x3fa   :  { %2348 = vst.msk [vmem:[#allocation3 + $0x1a0] sm:$0xff] %vm2295_vm9, %v2208_v30  ;;  %v3362_v56 = vpop.permute.xlu1 %3361  ;;  %v3566_v49 = vld [vmem:[#allocation3 + $0x190] sm:$0xff]  ;;  %v4278_v18 = vadd.f32 %v8801_v60, %v4207_v52  ;;  %v6640_v30 = vld [vmem:[%s9642_s29 + $0x48] sm:$0xff]   ;;  %v6647_v52 = vld [vmem:[%s9642_s29 + $0x20] sm:$0xff]  }
 0x3fb   :  { %3503 = vst.msk [vmem:[#allocation3 + $0x198] sm:$0xff] %vm3451_vm12, %v3362_v56  ;;  %1455 = vrot.lane.b32.xlu0 %v8649_v1, %s6680_s28  ;;  %6419 = vmatprep.mubr.msk.f32.mxu0 %vm3582_vm13, %v3566_v49  ;;  %v4343_v46 = vmax.f32 %v4279_v54, 0.0  ;;  %v6641_v56 = vld [vmem:[%s9642_s29 + $0x8] sm:$0xff]   ;;  %v2809_v54 = vld [vmem:[#allocation2 + $0x351] sm:$0xff] }
 0x3fc   :  { %1838 = vrot.lane.b32.xlu1 %v2804_v31, %s6681_s5  ;;  %v4342_v13 = vmax.f32 %v4278_v18, 0.0  ;;  %6222 = vmatprep.subr.bf16.mxu1 %v6640_v30  ;;  %v6649_v18 = vld [vmem:[%s9642_s29 + $0x28] sm:$0xff]  }
 0x3fd   :  { %v674_v29 = vpop.permute.xlu0 %673  ;;  %6223 = vmatpush3.bf16.msra.mxu1 %v6641_v56 }
 0x3fe   :  { %811 = vst.msk [vmem:[#allocation3 + $0x1b8] sm:$0xff] %vm755_vm5, %v674_v29  ;;  %v1057_v38 = vpop.permute.xlu1 %1056 }
 0x3ff   :  { %1195 = vst.msk [vmem:[#allocation3 + $0x1b0] sm:$0xff] %vm1140_vm6, %v1057_v38  ;;  %2992 = vrot.lane.b32.xlu0 %v2805_v33, %s6684_s24  ;;  %v6642_v38 = vld [vmem:[%s9642_s29 + $0x50] sm:$0xff]  }
 0x400   :  { %3375 = vrot.lane.b32.xlu1 %v3189_v44, %s6686_s21  ;;  %6224 = vmatprep.subr.bf16.mxu1 %v6642_v38  ;;  %v6670_v38 = vld [vmem:[#allocation5 + $0x31] sm:$0xff] }
 0x401   :  { %v2210_v41 = vpop.permute.xlu0 %2209 }
 0x402   :  { %2349 = vst.msk [vmem:[#allocation3 + $0x1a8] sm:$0xff] %vm2295_vm9, %v2210_v41  ;;  %v2594_v1 = vpop.permute.xlu1 %2593  ;;  %v3567_v17 = vld [vmem:[#allocation3 + $0x198] sm:$0xff]  ;;  %v6643_v41 = vld [vmem:[%s9642_s29 + $0x10] sm:$0xff]  }
 0x403   :  { %2734 = vst.msk [vmem:[#allocation3 + $0x1a0] sm:$0xff] %vm2681_vm10, %v2594_v1  ;;  %6420 = vmatmul.mubr.msk.f32.gmra.mrb[50].mxu0 %vm3582_vm13, %v3567_v17  ;;  %687 = vrot.lane.b32.xlu0 %v2804_v31, %s6679_s27 }
 0x404   :  { %1840 = vrot.lane.b32.xlu1 %v2805_v33, %s6681_s5  ;;  %6225 = vmatpush3.bf16.msra.mxu1 %v6643_v41 }
 0x405   :  { %v1059_v12 = vpop.permute.xlu0 %1058 }
 0x406   :  { %1196 = vst.msk [vmem:[#allocation3 + $0x1b8] sm:$0xff] %vm1140_vm6, %v1059_v12  ;;  %v1442_v42 = vpop.permute.xlu1 %1441  ;;  %v2423_v12 = vld [vmem:[#allocation2 + $0x348] sm:$0xff] }
 0x407   :  { %1580 = vst.msk [vmem:[#allocation3 + $0x1b0] sm:$0xff] %vm1525_vm7, %v1442_v42  ;;  %2223 = vrot.lane.b32.xlu0 %v3189_v44, %s6682_s0 }
 0x408   :  { %3377 = vrot.lane.b32.xlu1 %v3190_v59, %s6686_s21 }
 0x409   :  { %v2596_v35 = vpop.permute.xlu0 %2595 }
 0x40a   :  { %2735 = vst.msk [vmem:[#allocation3 + $0x1a8] sm:$0xff] %vm2681_vm10, %v2596_v35  ;;  %v2979_v47 = vpop.permute.xlu1 %2978 }
 0x40b   :  { %3119 = vst.msk [vmem:[#allocation3 + $0x1a0] sm:$0xff] %vm3066_vm11, %v2979_v47  ;;  %689 = vrot.lane.b32.xlu0 %v2805_v33, %s6679_s27  ;;  %v2424_v47 = vld [vmem:[#allocation2 + $0x350] sm:$0xff] }
 0x40c   :  { %1072 = vrot.lane.b32.xlu1 %v3189_v44, %s6678_s26  ;;  %v3192_v44 = vld [vmem:[#allocation2 + $0x33a] sm:$0xff] }
 0x40d   :  { %v1444_v32 = vpop.permute.xlu0 %1443 }
 0x40e   :  { %1581 = vst.msk [vmem:[#allocation3 + $0x1b8] sm:$0xff] %vm1525_vm7, %v1444_v32  ;;  %v1827_v22 = vpop.permute.xlu1 %1826  ;;  %v6645_v32 = vld [vmem:[%s9642_s29 + $0x18] sm:$0xff]  }
 0x40f   :  { %1965 = vst.msk [vmem:[#allocation3 + $0x1b0] sm:$0xff] %vm1910_vm8, %v1827_v22  ;;  %2225 = vrot.lane.b32.xlu0 %v3190_v59, %s6682_s0 }
 0x410   :  { %2609 = vrot.lane.b32.xlu1 %v2421_v40, %s6683_s22 }
 0x411   :  { %v2981_v50 = vpop.permute.xlu0 %2980 }
 0x412   :  { %3120 = vst.msk [vmem:[#allocation3 + $0x1a8] sm:$0xff] %vm3066_vm11, %v2981_v50  ;;  %v3364_v58 = vpop.permute.xlu1 %3363  ;;  %v6646_v50 = vld [vmem:[%s9642_s29 + $0x60] sm:$0xff]  }
 0x413   :  { %3504 = vst.msk [vmem:[#allocation3 + $0x1a0] sm:$0xff] %vm3451_vm12, %v3364_v58  ;;  %1074 = vrot.lane.b32.xlu0 %v3190_v59, %s6678_s26  ;;  %v6644_v59 = vld [vmem:[%s9642_s29 + $0x58] sm:$0xff]   ;;  %v2808_v58 = vld [vmem:[#allocation2 + $0x349] sm:$0xff] }
 0x414   :  { %1457 = vrot.lane.b32.xlu1 %v2421_v40, %s6680_s28  ;;  %6226 = vmatprep.subr.bf16.mxu1 %v6644_v59 }
 0x415   :  { %v676_v5 = vpop.permute.xlu0 %675  ;;  %6227 = vmatpush3.bf16.msra.mxu1 %v6645_v32 }
 0x416   :  { %812 = vst.msk [vmem:[#allocation3 + $0x1c0] sm:$0xff] %vm755_vm5, %v676_v5  ;;  %v1829_v36 = vpop.permute.xlu1 %1828  ;;  %v6403_v45 = vpop.f32.mrb[38].mxu0  ;;  %6228 = vmatprep.subr.bf16.mxu1 %v6646_v50  ;;  %v9025_v50 = vld [vmem:[#allocation5 + $0x62] sm:$0xff] }
 0x417   :  { %1966 = vst.msk [vmem:[#allocation3 + $0x1b8] sm:$0xff] %vm1910_vm8, %v1829_v36  ;;  %v4210_v34 = vmul.f32 %v8694_v63, %v6403_v45  ;;  %v4035_v8 = vpop.f32.mrb[39].mxu0  ;;  %2611 = vrot.lane.b32.xlu0 %v2422_v3, %s6683_s22  ;;  %v3193_v36 = vld [vmem:[#allocation2 + $0x34a] sm:$0xff] }
 0x418   :  { %v4209_v27 = vmul.f32 %v8694_v63, %v4035_v8  ;;  %2994 = vrot.lane.b32.xlu1 %v2806_v6, %s6684_s24  ;;  %v3191_v63 = vld [vmem:[#allocation2 + $0x332] sm:$0xff] }
 0x419   :  { %v4281_v10 = vadd.f32 %v8801_v60, %v4210_v34  ;;  %v2212_v11 = vpop.permute.xlu0 %2211  ;;  %6229 = vmatpush3.bf16.msra.mxu1 %v6647_v52  ;;  %v3194_v34 = vld [vmem:[#allocation2 + $0x352] sm:$0xff] }
 0x41a   :  { %v4280_v2 = vadd.f32 %v8801_v60, %v4209_v27  ;;  %2350 = vst.msk [vmem:[#allocation3 + $0x1b0] sm:$0xff] %vm2295_vm9, %v2212_v11  ;;  %v3366_v19 = vpop.permute.xlu1 %3365  ;;  %v3568_v14 = vld [vmem:[#allocation3 + $0x1a0] sm:$0xff]  ;;  %v8966_v8 = vld [vmem:[#allocation5 + $0xb1] sm:$0xff] }
 0x41b   :  { %v4345_v20 = vmax.f32 %v4281_v10, 0.0  ;;  %3505 = vst.msk [vmem:[#allocation3 + $0x1a8] sm:$0xff] %vm3451_vm12, %v3366_v19  ;;  %1459 = vrot.lane.b32.xlu0 %v2422_v3, %s6680_s28  ;;  %6422 = vmatprep.mubr.msk.f32.mxu0 %vm3582_vm13, %v3568_v14  ;;  %v8971_v10 = vld [vmem:[#allocation5 + $0x22] sm:$0xff]  ;;  %v6650_v11 = vld [vmem:[%s9642_s29 + $0x70] sm:$0xff]  }
 0x41c   :  { %v4344_v21 = vmax.f32 %v4280_v2, 0.0  ;;  %1842 = vrot.lane.b32.xlu1 %v2806_v6, %s6681_s5  ;;  %v6648_v6 = vld [vmem:[%s9642_s29 + $0x68] sm:$0xff]   ;;  %v6651_v19 = vld [vmem:[%s9642_s29 + $0x30] sm:$0xff]  }
 0x41d   :  { %v4389_v31 = vmax.f32 %v4343_v46, %v4345_v20  ;;  %v678_v55 = vpop.permute.xlu0 %677  ;;  %6230 = vmatprep.subr.bf16.mxu1 %v6648_v6  ;;  %v4604_v2 = vld [vmem:[#allocation5 + $0x1] sm:$0xff]  ;;  %v4831_v14 = vld [vmem:[#allocation5 + $0x12] sm:$0xff] }
 0x41e   :  { %v4388_v51 = vmax.f32 %v4342_v13, %v4344_v21  ;;  %813 = vst.msk [vmem:[#allocation3 + $0x1c8] sm:$0xff] %vm755_vm5, %v678_v55  ;;  %v1061_v57 = vpop.permute.xlu1 %1060  ;;  %6231 = vmatpush3.bf16.msra.mxu1 %v6649_v18  ;;  %v4847_v20 = vpack.c.bf16 %v8971_v10, %v4831_v14  ;;  %v6668_v21 = vld [vmem:[#allocation5 + $0x11] sm:$0xff]  ;;  %v9041_v18 = vld [vmem:[%s9640_s2] ss:$0 sm:$0xff] }
 0x41f   :  { %4422 = vst.msk [vmem:[#allocation4 + $0x98] sm:$0xff] %vm4402_vm14, %v4389_v31  ;;  %2996 = vrot.lane.b32.xlu0 %v2807_v62, %s6684_s24  ;;  %6232 = vmatprep.subr.bf16.mxu1 %v6650_v11  ;;  %v4620_v26 = vpack.c.bf16 %v6668_v21, %v4604_v2  ;;  %v6652_v31 = vld [vmem:[%s9642_s29 + $0x78] sm:$0xff]  }
 0x420   :  { %1197 = vst.msk [vmem:[#allocation3 + $0x1c0] sm:$0xff] %vm1140_vm6, %v1061_v57  ;;  %3379 = vrot.lane.b32.xlu1 %v3191_v63, %s6686_s21  ;;  %v6653_v57 = vld [vmem:[%s9642_s29 + $0x38] sm:$0xff]  }
 0x421   :  { %4421 = vst.msk [vmem:[#allocation4 + $0x90] sm:$0xff] %vm4402_vm14, %v4388_v51  ;;  %v2214_v49 = vpop.permute.xlu0 %2213  ;;  %v4669_v51 = vld [vmem:[#allocation5 + $0x2] sm:$0xff]  ;;  %v4835_v52 = vld [vmem:[#allocation5 + $0x52] sm:$0xff] }
 0x422   :  { %2351 = vst.msk [vmem:[#allocation3 + $0x1b8] sm:$0xff] %vm2295_vm9, %v2214_v49  ;;  %v2598_v33 = vpop.permute.xlu1 %2597  ;;  %v3569_v29 = vld [vmem:[#allocation3 + $0x1a8] sm:$0xff]  ;;  %6233 = vmatpush3.bf16.msra.mxu1 %v6651_v19 }
 0x423   :  { %2736 = vst.msk [vmem:[#allocation3 + $0x1b0] sm:$0xff] %vm2681_vm10, %v2598_v33  ;;  %6423 = vmatmul.mubr.msk.f32.gmra.mrb[52].mxu0 %vm3582_vm13, %v3569_v29  ;;  %1844 = vrot.lane.b32.xlu0 %v2807_v62, %s6681_s5  ;;  %v4685_v33 = vpack.c.bf16 %v4831_v14, %v4669_v51  ;;  %v4903_v51 = vld [vmem:[#allocation5 + $0x90] sm:$0xff] }
 0x424   :  { %2227 = vrot.lane.b32.xlu1 %v3191_v63, %s6682_s0  ;;  %6234 = vmatprep.subr.bf16.mxu1 %v6652_v31 }
 0x425   :  { %v1063_v1 = vpop.permute.xlu0 %1062 }
 0x426   :  { %1198 = vst.msk [vmem:[#allocation3 + $0x1c8] sm:$0xff] %vm1140_vm6, %v1063_v1  ;;  %v1446_v17 = vpop.permute.xlu1 %1445  ;;  %6235 = vmatpush3.bf16.msra.mxu1 %v6653_v57 }
 0x427   :  { %1582 = vst.msk [vmem:[#allocation3 + $0x1c0] sm:$0xff] %vm1525_vm7, %v1446_v17  ;;  %3381 = vrot.lane.b32.xlu0 %v3192_v44, %s6686_s21  ;;  %v4834_v17 = vld [vmem:[#allocation5 + $0x42] sm:$0xff] }
 0x428   :  { %v4453_v42 = vld [vmem:[#allocation4 + $0x90] ss:$2 sm:$0xff]  ;;  %v4485_v35 = vld [vmem:[#allocation4 + $0x91] ss:$2 sm:$0xff]  ;;  %2229 = vrot.lane.b32.xlu1 %v3192_v44, %s6682_s0  ;;  %v6669_v44 = vld [vmem:[#allocation5 + $0x21] sm:$0xff]  ;;  %v4687_v6 = vpack.c.bf16 %v4835_v52, %v4834_v17 }
 0x429   :  { %v4507_v40 = vmax.f32 %v4453_v42, %v4485_v35  ;;  %v2600_v22 = vpop.permute.xlu0 %2599  ;;  %v4976_v41 = vpack.c.bf16 %v6670_v38, %v6669_v44  ;;  %v4967_v44 = vld [vmem:[#allocation5 + $0x91] sm:$0xff] }
 0x42a   :  { %2737 = vst.msk [vmem:[#allocation3 + $0x1b8] sm:$0xff] %vm2681_vm10, %v2600_v22  ;;  %v2983_v28 = vpop.permute.xlu1 %2982  ;;  %v6672_v22 = vld [vmem:[#allocation5 + $0x40] sm:$0xff] }
 0x42b   :  { %4565 = vst.msk [vmem:[#allocation5 + $0xc1] sm:$0xff] %vm4402_vm14, %v4507_v40  ;;  %2613 = vrot.lane.b32.xlu0 %v2423_v12, %s6683_s22  ;;  %v6671_v40 = vld [vmem:[#allocation5 + $0x30] sm:$0xff] }
 0x42c   :  { %3121 = vst.msk [vmem:[#allocation3 + $0x1b0] sm:$0xff] %vm3066_vm11, %v2983_v28  ;;  %2615 = vrot.lane.b32.xlu1 %v2424_v47, %s6683_s22  ;;  %v4751_v28 = vpack.c.bf16 %v6672_v22, %v6671_v40  ;;  %v4677_v40 = vld [vmem:[#allocation5 + $0xa2] sm:$0xff] }
 0x42d   :  { %v1448_v3 = vpop.permute.xlu0 %1447 }
 0x42e   :  { %1583 = vst.msk [vmem:[#allocation3 + $0x1c8] sm:$0xff] %vm1525_vm7, %v1448_v3  ;;  %v1831_v5 = vpop.permute.xlu1 %1830 }
 0x42f   :  { %1967 = vst.msk [vmem:[#allocation3 + $0x1c0] sm:$0xff] %vm1910_vm8, %v1831_v5  ;;  %2998 = vrot.lane.b32.xlu0 %v2808_v58, %s6684_s24  ;;  %v4849_v58 = vpack.c.bf16 %v9025_v50, %v4835_v52 }
 0x430   :  { %3000 = vrot.lane.b32.xlu1 %v2809_v54, %s6684_s24 }
 0x431   :  { %v2985_v45 = vpop.permute.xlu0 %2984 }
 0x432   :  { %v8968_v27 = vld [vmem:[#allocation5 + $0xc1] sm:$0xff]  ;;  %3122 = vst.msk [vmem:[#allocation3 + $0x1b8] sm:$0xff] %vm3066_vm11, %v2985_v45  ;;  %v3368_v46 = vpop.permute.xlu1 %3367 }
 0x433   :  { %v4819_v13 = vpack.c.bf16 %v8968_v27, %v8966_v8  ;;  %3506 = vst.msk [vmem:[#allocation3 + $0x1b0] sm:$0xff] %vm3451_vm12, %v3368_v46  ;;  %3383 = vrot.lane.b32.xlu0 %v3193_v36, %s6686_s21 }
 0x434   :  { %3385 = vrot.lane.b32.xlu1 %v3194_v34, %s6686_s21  ;;  %s6687_s21 = smov 32   ;;  %v6674_v34 = vld [vmem:[#allocation5 + $0x61] sm:$0xff] }
 0x435   :  { %4827 = vst.msk [vmem:[#allocation6 + $0x68] sm:$0xff] %vm4402_vm14, %v4819_v13  ;;  %v680_v62 = vpop.permute.xlu0 %679  ;;  %v4978_v46 = vpack.c.bf16 %v8747_v43, %v6674_v34  ;;  %v4838_v13 = vld [vmem:[#allocation5 + $0x82] sm:$0xff]  ;;  %v4837_v43 = vld [vmem:[#allocation5 + $0x72] sm:$0xff] }
 0x436   :  { %814 = vst.msk [vmem:[#allocation3 + $0x1d0] sm:$0xff] %vm755_vm5, %v680_v62  ;;  %v1833_v63 = vpop.permute.xlu1 %1832  ;;  %v8987_v9 = vpop.f32.mrb[40].mxu0  ;;  %v5032_v34 = vld [vmem:[#allocation5 + $0xc2] sm:$0xff] }
 0x437   :  { %1968 = vst.msk [vmem:[#allocation3 + $0x1c8] sm:$0xff] %vm1910_vm8, %v1833_v63  ;;  %v8993_v55 = vpop.f32.mrb[41].mxu0  ;;  %4863 = vrot.lane.b32.xlu0 %v4847_v20, %s6687_s21  ;;  %v4212_v36 = vmul.f32 %v9041_v18, %v8987_v9  ;;  %v4850_v9 = vpack.c.bf16 %v4838_v13, %v4837_v43 }
 0x438   :  { %4636 = vrot.lane.b32.xlu1 %v4620_v26, %s6687_s21 }
 0x439   :  { %v2216_v30 = vpop.permute.xlu0 %2215  ;;  %v4283_v2 = vadd.f32 %v8801_v60, %v4212_v36 }
 0x43a   :  { %2352 = vst.msk [vmem:[#allocation3 + $0x1c0] sm:$0xff] %vm2295_vm9, %v2216_v30  ;;  %v3370_v56 = vpop.permute.xlu1 %3369  ;;  %v3570_v49 = vld [vmem:[#allocation3 + $0x1b0] sm:$0xff] }
 0x43b   :  { %3507 = vst.msk [vmem:[#allocation3 + $0x1b8] sm:$0xff] %vm3451_vm12, %v3370_v56  ;;  %6425 = vmatprep.mubr.msk.f32.mxu0 %vm3582_vm13, %v3570_v49  ;;  %4928 = vrot.lane.b32.xlu0 %v8119_v61, %s6688_s23  ;;  %v4833_v61 = vld [vmem:[#allocation5 + $0x32] sm:$0xff]  ;;  %v4347_v57 = vmax.f32 %v4283_v2, 0.0 }
 0x43c   :  { %4701 = vrot.lane.b32.xlu1 %v4685_v33, %s6688_s23  ;;  %v4848_v59 = vpack.c.bf16 %v4834_v17, %v4833_v61  ;;  %v4686_v24 = vpack.c.bf16 %v4833_v61, %v8971_v10  ;;  %v6675_v61 = vld [vmem:[#allocation5 + $0x70] sm:$0xff] }
 0x43d   :  { %v682_v29 = vpop.permute.xlu0 %681 }
 0x43e   :  { %815 = vst.msk [vmem:[#allocation3 + $0x1d8] sm:$0xff] %vm755_vm5, %v682_v29  ;;  %v1065_v1 = vpop.permute.xlu1 %1064  ;;  %v4688_v29 = vpack.c.bf16 %v4837_v43, %v9025_v50 }
 0x43f   :  { %1199 = vst.msk [vmem:[#allocation3 + $0x1d0] sm:$0xff] %vm1140_vm6, %v1065_v1  ;;  %4992 = vrot.lane.b32.xlu0 %v4976_v41, %s6689_s4 }
 0x440   :  { %4766 = vrot.lane.b32.xlu1 %v4750_v23, %s6689_s4 }
 0x441   :  { %v2218_v12 = vpop.permute.xlu0 %2217 }
 0x442   :  { %2353 = vst.msk [vmem:[#allocation3 + $0x1c8] sm:$0xff] %vm2295_vm9, %v2218_v12  ;;  %v2602_v42 = vpop.permute.xlu1 %2601  ;;  %v3571_v35 = vld [vmem:[#allocation3 + $0x1b8] sm:$0xff] }
 0x443   :  { %2738 = vst.msk [vmem:[#allocation3 + $0x1c0] sm:$0xff] %vm2681_vm10, %v2602_v42  ;;  %6426 = vmatmul.mubr.msk.f32.gmra.mrb[54].mxu0 %vm3582_vm13, %v3571_v35  ;;  %4865 = vrot.lane.b32.xlu0 %v4848_v59, %s6687_s21  ;;  %v4840_v59 = vld [vmem:[#allocation5 + $0xc2] sm:$0xff]  ;;  %v4839_v35 = vld [vmem:[#allocation5 + $0xb2] sm:$0xff] }
 0x444   :  { %4638 = vrot.lane.b32.xlu1 %v4976_v41, %s6687_s21  ;;  %v4979_v41 = vpack.c.bf16 %v4967_v44, %v8744_v48  ;;  %v4612_v42 = vld [vmem:[#allocation5 + $0xa1] sm:$0xff]  ;;  %v4689_v52 = vpack.c.bf16 %v4839_v35, %v4677_v40 }
 0x445   :  { %v1067_v47 = vpop.permute.xlu0 %1066 }
 0x446   :  { %1200 = vst.msk [vmem:[#allocation3 + $0x1d8] sm:$0xff] %vm1140_vm6, %v1067_v47  ;;  %v1450_v53 = vpop.permute.xlu1 %1449 }
 0x447   :  { %1584 = vst.msk [vmem:[#allocation3 + $0x1d0] sm:$0xff] %vm1525_vm7, %v1450_v53  ;;  %4930 = vrot.lane.b32.xlu0 %v8382_v7, %s6688_s23  ;;  %v4851_v53 = vpack.c.bf16 %v4840_v59, %v4839_v35 }
 0x448   :  { %4703 = vrot.lane.b32.xlu1 %v4686_v24, %s6688_s23  ;;  %v4624_v24 = vpack.c.bf16 %v8966_v8, %v4612_v42  ;;  %v4743_v8 = vld [vmem:[#allocation5 + $0xc0] sm:$0xff] }
 0x449   :  { %v2604_v23 = vpop.permute.xlu0 %2603 }
 0x44a   :  { %2739 = vst.msk [vmem:[#allocation3 + $0x1c8] sm:$0xff] %vm2681_vm10, %v2604_v23  ;;  %v2987_v32 = vpop.permute.xlu1 %2986 }
 0x44b   :  { %3123 = vst.msk [vmem:[#allocation3 + $0x1c0] sm:$0xff] %vm3066_vm11, %v2987_v32  ;;  %4994 = vrot.lane.b32.xlu0 %v8386_v4, %s6689_s4 }
 0x44c   :  { %4768 = vrot.lane.b32.xlu1 %v4751_v28, %s6689_s4 }
 0x44d   :  { %v1452_v7 = vpop.permute.xlu0 %1451 }
 0x44e   :  { %1585 = vst.msk [vmem:[#allocation3 + $0x1d8] sm:$0xff] %vm1525_vm7, %v1452_v7  ;;  %v1835_v3 = vpop.permute.xlu1 %1834 }
 0x44f   :  { %1969 = vst.msk [vmem:[#allocation3 + $0x1d0] sm:$0xff] %vm1910_vm8, %v1835_v3  ;;  %4867 = vrot.lane.b32.xlu0 %v4849_v58, %s6687_s21  ;;  %v4754_v3 = vpack.c.bf16 %v4743_v8, %v8844_v25 }
 0x450   :  { %4640 = vrot.lane.b32.xlu1 %v8386_v4, %s6687_s21  ;;  %v4211_v4 = vmul.f32 %v9041_v18, %v8993_v55  ;;  %v4902_v55 = vld [vmem:[#allocation5 + $0x80] sm:$0xff] }
 0x451   :  { %v2989_v54 = vpop.permute.xlu0 %2988  ;;  %v4915_v56 = vpack.c.bf16 %v4903_v51, %v4902_v55  ;;  %v4753_v12 = vpack.c.bf16 %v4902_v55, %v6675_v61 }
 0x452   :  { %3124 = vst.msk [vmem:[#allocation3 + $0x1c8] sm:$0xff] %vm3066_vm11, %v2989_v54  ;;  %v3372_v5 = vpop.permute.xlu1 %3371  ;;  %v4282_v14 = vadd.f32 %v8801_v60, %v4211_v4 }
 0x453   :  { %3508 = vst.msk [vmem:[#allocation3 + $0x1c0] sm:$0xff] %vm3451_vm12, %v3372_v5  ;;  %4932 = vrot.lane.b32.xlu0 %v8636_v15, %s6688_s23 }
 0x454   :  { %4705 = vrot.lane.b32.xlu1 %v4687_v6, %s6688_s23  ;;  %v4346_v37 = vmax.f32 %v4282_v14, 0.0 }
 0x455   :  { %v684_v45 = vpop.permute.xlu0 %683 }
 0x456   :  { %816 = vst.msk [vmem:[#allocation3 + $0x1e0] sm:$0xff] %vm755_vm5, %v684_v45  ;;  %v1837_v10 = vpop.permute.xlu1 %1836  ;;  %v6409_v11 = vpop.f32.mrb[42].mxu0 }
 0x457   :  { %1970 = vst.msk [vmem:[#allocation3 + $0x1d8] sm:$0xff] %vm1910_vm8, %v1837_v10  ;;  %v4214_v15 = vmul.f32 %v9041_v18, %v6409_v11  ;;  %v4055_v19 = vpop.f32.mrb[43].mxu0  ;;  %4996 = vrot.lane.b32.xlu0 %v4978_v46, %s6689_s4 }
 0x458   :  { %v4213_v62 = vmul.f32 %v9041_v18, %v4055_v19  ;;  %4770 = vrot.lane.b32.xlu1 %v4752_v39, %s6689_s4 }
 0x459   :  { %v4285_v20 = vadd.f32 %v8801_v60, %v4214_v15  ;;  %v2220_v63 = vpop.permute.xlu0 %2219 }
 0x45a   :  { %v4284_v21 = vadd.f32 %v8801_v60, %v4213_v62  ;;  %2354 = vst.msk [vmem:[#allocation3 + $0x1d0] sm:$0xff] %vm2295_vm9, %v2220_v63  ;;  %v3374_v26 = vpop.permute.xlu1 %3373  ;;  %v3572_v31 = vld [vmem:[#allocation3 + $0x1c0] sm:$0xff] }
 0x45b   :  { %v4349_v30 = vmax.f32 %v4285_v20, 0.0  ;;  %3509 = vst.msk [vmem:[#allocation3 + $0x1c8] sm:$0xff] %vm3451_vm12, %v3374_v26  ;;  %6428 = vmatprep.mubr.msk.f32.mxu0 %vm3582_vm13, %v3572_v31  ;;  %4869 = vrot.lane.b32.xlu0 %v4850_v9, %s6687_s21 }
 0x45c   :  { %v4348_v16 = vmax.f32 %v4284_v21, 0.0  ;;  %4642 = vrot.lane.b32.xlu1 %v4978_v46, %s6687_s21 }
 0x45d   :  { %v4391_v39 = vmax.f32 %v4347_v57, %v4349_v30  ;;  %v686_v60 = vpop.permute.xlu0 %685 }
 0x45e   :  { %v4390_v49 = vmax.f32 %v4346_v37, %v4348_v16  ;;  %817 = vst.msk [vmem:[#allocation3 + $0x1e8] sm:$0xff] %vm755_vm5, %v686_v60  ;;  %v1069_v33 = vpop.permute.xlu1 %1068 }
 0x45f   :  { %4424 = vst.msk [vmem:[#allocation4 + $0xa8] sm:$0xff] %vm4402_vm14, %v4391_v39  ;;  %4934 = vrot.lane.b32.xlu0 %v4915_v56, %s6688_s23 }
 0x460   :  { %1201 = vst.msk [vmem:[#allocation3 + $0x1e0] sm:$0xff] %vm1140_vm6, %v1069_v33  ;;  %4707 = vrot.lane.b32.xlu1 %v4688_v29, %s6688_s23  ;;  %v9138_v29 = vld [vmem:[%s9641_s30] ss:$0 sm:$0xff] }
 0x461   :  { %4423 = vst.msk [vmem:[#allocation4 + $0xa0] sm:$0xff] %vm4402_vm14, %v4390_v49  ;;  %v2222_v38 = vpop.permute.xlu0 %2221 }
 0x462   :  { %2355 = vst.msk [vmem:[#allocation3 + $0x1d8] sm:$0xff] %vm2295_vm9, %v2222_v38  ;;  %v2606_v1 = vpop.permute.xlu1 %2605  ;;  %v3573_v17 = vld [vmem:[#allocation3 + $0x1c8] sm:$0xff] }
 0x463   :  { %2740 = vst.msk [vmem:[#allocation3 + $0x1d0] sm:$0xff] %vm2681_vm10, %v2606_v1  ;;  %6429 = vmatmul.mubr.msk.f32.gmra.mrb[56].mxu0 %vm3582_vm13, %v3573_v17  ;;  %4998 = vrot.lane.b32.xlu0 %v4979_v41, %s6689_s4 }
 0x464   :  { %4772 = vrot.lane.b32.xlu1 %v4753_v12, %s6689_s4 }
 0x465   :  { %v1071_v47 = vpop.permute.xlu0 %1070 }
 0x466   :  { %1202 = vst.msk [vmem:[#allocation3 + $0x1e8] sm:$0xff] %vm1140_vm6, %v1071_v47  ;;  %v1454_v48 = vpop.permute.xlu1 %1453 }
 0x467   :  { %1586 = vst.msk [vmem:[#allocation3 + $0x1e0] sm:$0xff] %vm1525_vm7, %v1454_v48  ;;  %4871 = vrot.lane.b32.xlu0 %v4851_v53, %s6687_s21 }
 0x468   :  { %v4455_v23 = vld [vmem:[#allocation4 + $0xa0] ss:$2 sm:$0xff]  ;;  %v4487_v32 = vld [vmem:[#allocation4 + $0xa1] ss:$2 sm:$0xff]  ;;  %4644 = vrot.lane.b32.xlu1 %v4624_v24, %s6687_s21 }
 0x469   :  { %v4508_v22 = vmax.f32 %v4455_v23, %v4487_v32  ;;  %v2608_v28 = vpop.permute.xlu0 %2607 }
 0x46a   :  { %2741 = vst.msk [vmem:[#allocation3 + $0x1d8] sm:$0xff] %vm2681_vm10, %v2608_v28  ;;  %v2991_v50 = vpop.permute.xlu1 %2990 }
 0x46b   :  { %4566 = vst.msk [vmem:[#allocation5 + $0xd1] sm:$0xff] %vm4402_vm14, %v4508_v22 }
 0x46c   :  { %3125 = vst.msk [vmem:[#allocation3 + $0x1d0] sm:$0xff] %vm3066_vm11, %v2991_v50  ;;  %4709 = vrot.lane.b32.xlu1 %v4689_v52, %s6688_s23 }
 0x46d   :  { %v1456_v7 = vpop.permute.xlu0 %1455 }
 0x46e   :  { %1587 = vst.msk [vmem:[#allocation3 + $0x1e8] sm:$0xff] %vm1525_vm7, %v1456_v7  ;;  %v1839_v58 = vpop.permute.xlu1 %1838 }
 0x46f   :  { %1971 = vst.msk [vmem:[#allocation3 + $0x1e0] sm:$0xff] %vm1910_vm8, %v1839_v58 }
 0x470   :  { %4774 = vrot.lane.b32.xlu1 %v4754_v3, %s6689_s4 }
 0x471   :  { %v2993_v54 = vpop.permute.xlu0 %2992 }
 0x472   :  { %v9096_v5 = vld [vmem:[#allocation5 + $0xd0] sm:$0xff]  ;;  %3126 = vst.msk [vmem:[#allocation3 + $0x1d8] sm:$0xff] %vm3066_vm11, %v2993_v54  ;;  %v3376_v36 = vpop.permute.xlu1 %3375 }
 0x473   :  { %v9098_v6 = vld [vmem:[#allocation5 + $0xd1] sm:$0xff]  ;;  %v4916_v4 = vpack.c.bf16 %v9096_v5, %v4743_v8  ;;  %3510 = vst.msk [vmem:[#allocation3 + $0x1d0] sm:$0xff] %vm3451_vm12, %v3376_v36 }
 0x474   :  { %v4625_v45 = vpack.c.bf16 %v9098_v6, %v8968_v27  ;;  %v5033_v46 = vld [vmem:[#allocation5 + $0xd2] sm:$0xff] }
 0x475   :  { %v9105_v25 = vld [vmem:[#allocation5 + $0xd2] sm:$0xff]  ;;  %v5044_v10 = vpack.c.bf16 %v5033_v46, %v5032_v34  ;;  %4936 = vrot.lane.b32.xlu0 %v4916_v4, %s6688_s23  ;;  %4601 = vst.msk [vmem:[#allocation6 + $0x78] sm:$0xff] %vm4402_vm14, %v4916_v4  ;;  %v688_v11 = vpop.permute.xlu0 %687 }
 0x476   :  { %4646 = vrot.lane.b32.xlu1 %v4625_v45, %s6687_s21  ;;  %818 = vst.msk [vmem:[#allocation3 + $0x1f0] sm:$0xff] %vm755_vm5, %v688_v11  ;;  %v1841_v13 = vpop.permute.xlu1 %1840  ;;  %v6412_v27 = vpop.f32.mrb[44].mxu0  ;;  %v4690_v2 = vpack.c.bf16 %v9105_v25, %v4840_v59 }
 0x477   :  { %5052 = vst.msk [vmem:[#allocation6 + $0x70] sm:$0xff] %vm4402_vm14, %v5044_v10  ;;  %v4065_v15 = vpop.f32.mrb[45].mxu0  ;;  %v4216_v39 = vmul.f32 %v9041_v18, %v6412_v27 }
 0x478   :  { %1972 = vst.msk [vmem:[#allocation3 + $0x1e8] sm:$0xff] %vm1910_vm8, %v1841_v13  ;;  %v4215_v60 = vmul.f32 %v9041_v18, %v4065_v15 }
 0x479   :  { %5000 = vrot.lane.b32.xlu0 %v4625_v45, %s6689_s4  ;;  %v2224_v19 = vpop.permute.xlu0 %2223  ;;  %v4287_v44 = vadd.f32 %v9138_v29, %v4216_v39 }
 0x47a   :  { %4711 = vrot.lane.b32.xlu1 %v4690_v2, %s6688_s23  ;;  %2356 = vst.msk [vmem:[#allocation3 + $0x1e0] sm:$0xff] %vm2295_vm9, %v2224_v19  ;;  %v3378_v14 = vpop.permute.xlu1 %3377  ;;  %v3574_v62 = vld [vmem:[#allocation3 + $0x1d0] sm:$0xff]  ;;  %v4286_v1 = vadd.f32 %v9138_v29, %v4215_v60 }
 0x47b   :  { %3511 = vst.msk [vmem:[#allocation3 + $0x1d8] sm:$0xff] %vm3451_vm12, %v3378_v14  ;;  %6431 = vmatprep.mubr.msk.f32.mxu0 %vm3582_vm13, %v3574_v62  ;;  %v4351_v47 = vmax.f32 %v4287_v44, 0.0 }
 0x47c   :  { %v4350_v48 = vmax.f32 %v4286_v1, 0.0 }
 0x47d   :  { %v690_v43 = vpop.permute.xlu0 %689 }
 0x47e   :  { %819 = vst.msk [vmem:[#allocation3 + $0x1f8] sm:$0xff] %vm755_vm5, %v690_v43  ;;  %v1073_v20 = vpop.permute.xlu1 %1072  ;;  %vm6690_vm5 = vmmov 0  }
 0x47f   :  { %1203 = vst.msk [vmem:[#allocation3 + $0x1f0] sm:$0xff] %vm1140_vm6, %v1073_v20 }
 0x481   :  { %v2226_v63 = vpop.permute.xlu0 %2225 }
 0x482   :  { %2357 = vst.msk [vmem:[#allocation3 + $0x1e8] sm:$0xff] %vm2295_vm9, %v2226_v63  ;;  %v2610_v9 = vpop.permute.xlu1 %2609  ;;  %v3575_v21 = vld [vmem:[#allocation3 + $0x1d8] sm:$0xff] }
 0x483   :  { %2742 = vst.msk [vmem:[#allocation3 + $0x1e0] sm:$0xff] %vm2681_vm10, %v2610_v9  ;;  %6432 = vmatmul.mubr.msk.f32.gmra.mrb[58].mxu0 %vm3582_vm13, %v3575_v21 }
 0x485   :  { %v1075_v26 = vpop.permute.xlu0 %1074 }
 0x486   :  { %1204 = vst.msk [vmem:[#allocation3 + $0x1f8] sm:$0xff] %vm1140_vm6, %v1075_v26  ;;  %v1458_v31 = vpop.permute.xlu1 %1457  ;;  %vm5564_vm6 = vcmask 64512  }
 0x487   :  { %1588 = vst.msk [vmem:[#allocation3 + $0x1f0] sm:$0xff] %vm1525_vm7, %v1458_v31 }
 0x489   :  { %v2612_v55 = vpop.permute.xlu0 %2611 }
 0x48a   :  { %2743 = vst.msk [vmem:[#allocation3 + $0x1e8] sm:$0xff] %vm2681_vm10, %v2612_v55  ;;  %v2995_v51 = vpop.permute.xlu1 %2994 }
 0x48b   :  { %3127 = vst.msk [vmem:[#allocation3 + $0x1e0] sm:$0xff] %vm3066_vm11, %v2995_v51 }
 0x48d   :  { %v1460_v57 = vpop.permute.xlu0 %1459 }
 0x48e   :  { %1589 = vst.msk [vmem:[#allocation3 + $0x1f8] sm:$0xff] %vm1525_vm7, %v1460_v57  ;;  %v1843_v30 = vpop.permute.xlu1 %1842  ;;  %vm5512_vm7 = vcmask 523264  }
 0x48f   :  { %1973 = vst.msk [vmem:[#allocation3 + $0x1f0] sm:$0xff] %vm1910_vm8, %v1843_v30 }
 0x491   :  { %v2997_v37 = vpop.permute.xlu0 %2996 }
 0x492   :  { %3128 = vst.msk [vmem:[#allocation3 + $0x1e8] sm:$0xff] %vm3066_vm11, %v2997_v37  ;;  %v3380_v16 = vpop.permute.xlu1 %3379 }
 0x493   :  { %3512 = vst.msk [vmem:[#allocation3 + $0x1e0] sm:$0xff] %vm3451_vm12, %v3380_v16 }
 0x495   :  { %v1845_v56 = vpop.permute.xlu0 %1844 }
 0x496   :  { %1974 = vst.msk [vmem:[#allocation3 + $0x1f8] sm:$0xff] %vm1910_vm8, %v1845_v56  ;;  %v2228_v49 = vpop.permute.xlu1 %2227  ;;  %v6415_v33 = vpop.f32.mrb[46].mxu0 }
 0x497   :  { %2358 = vst.msk [vmem:[#allocation3 + $0x1f0] sm:$0xff] %vm2295_vm9, %v2228_v49  ;;  %v4218_v38 = vmul.f32 %v9041_v18, %v6415_v33  ;;  %v4075_v41 = vpop.f32.mrb[47].mxu0 }
 0x498   :  { %v4217_v17 = vmul.f32 %v9041_v18, %v4075_v41 }
 0x499   :  { %v4289_v61 = vadd.f32 %v9138_v29, %v4218_v38  ;;  %v3382_v12 = vpop.permute.xlu0 %3381 }
 0x49a   :  { %v4288_v59 = vadd.f32 %v9138_v29, %v4217_v17  ;;  %3513 = vst.msk [vmem:[#allocation3 + $0x1e8] sm:$0xff] %vm3451_vm12, %v3382_v12  ;;  %v2230_v42 = vpop.permute.xlu1 %2229  ;;  %v3576_v35 = vld [vmem:[#allocation3 + $0x1e0] sm:$0xff] }
 0x49b   :  { %v4353_v53 = vmax.f32 %v4289_v61, 0.0  ;;  %2359 = vst.msk [vmem:[#allocation3 + $0x1f8] sm:$0xff] %vm2295_vm9, %v2230_v42  ;;  %6434 = vmatprep.mubr.msk.f32.mxu0 %vm3582_vm13, %v3576_v35 }
 0x49c   :  { %v4352_v24 = vmax.f32 %v4288_v59, 0.0 }
 0x49d   :  { %v4393_v23 = vmax.f32 %v4351_v47, %v4353_v53  ;;  %v2614_v32 = vpop.permute.xlu0 %2613 }
 0x49e   :  { %v4392_v40 = vmax.f32 %v4350_v48, %v4352_v24  ;;  %2744 = vst.msk [vmem:[#allocation3 + $0x1f0] sm:$0xff] %vm2681_vm10, %v2614_v32  ;;  %v2616_v22 = vpop.permute.xlu1 %2615 }
 0x49f   :  { %4426 = vst.msk [vmem:[#allocation4 + $0xb8] sm:$0xff] %vm4402_vm14, %v4393_v23 }
 0x4a0   :  { %2745 = vst.msk [vmem:[#allocation3 + $0x1f8] sm:$0xff] %vm2681_vm10, %v2616_v22 }
 0x4a1   :  { %4425 = vst.msk [vmem:[#allocation4 + $0xb0] sm:$0xff] %vm4402_vm14, %v4392_v40  ;;  %v2999_v28 = vpop.permute.xlu0 %2998  ;;  %v3577_v50 = vld [vmem:[#allocation3 + $0x1e8] sm:$0xff] }
 0x4a2   :  { %3129 = vst.msk [vmem:[#allocation3 + $0x1f0] sm:$0xff] %vm3066_vm11, %v2999_v28  ;;  %v3001_v52 = vpop.permute.xlu1 %3000  ;;  %6435 = vmatmul.mubr.msk.f32.gmra.mrb[60].mxu0 %vm3582_vm13, %v3577_v50 }
 0x4a3   :  { %3130 = vst.msk [vmem:[#allocation3 + $0x1f8] sm:$0xff] %vm3066_vm11, %v3001_v52 }
 0x4a5   :  { %v3384_v8 = vpop.permute.xlu0 %3383 }
 0x4a6   :  { %3514 = vst.msk [vmem:[#allocation3 + $0x1f0] sm:$0xff] %vm3451_vm12, %v3384_v8  ;;  %v3386_v7 = vpop.permute.xlu1 %3385 }
 0x4a7   :  { %3515 = vst.msk [vmem:[#allocation3 + $0x1f8] sm:$0xff] %vm3451_vm12, %v3386_v7 }
 0x4a8   :  { %v4457_v58 = vld [vmem:[#allocation4 + $0xb0] ss:$2 sm:$0xff]  ;;  %v4489_v3 = vld [vmem:[#allocation4 + $0xb1] ss:$2 sm:$0xff] }
 0x4a9   :  { %v4509_v54 = vmax.f32 %v4457_v58, %v4489_v3  ;;  %v4864_v36 = vpop.permute.xlu0 %4863 }
 0x4aa   :  { %v4637_v4 = vpop.permute.xlu1 %4636  ;;  %4887 = vst.msk [vmem:[#allocation6 + $0x8] sm:$0xff] %vm4660_vm0, %v4864_v36 }
 0x4ab   :  { %4567 = vst.msk [vmem:[#allocation5 + $0xe1] sm:$0xff] %vm4402_vm14, %v4509_v54 }
 0x4ac   :  { %4661 = vst.msk [vmem:[#allocation6] sm:$0xff] %vm4660_vm0, %v4637_v4 }
 0x4ad   :  { %v4929_v45 = vpop.permute.xlu0 %4928  ;;  %v3578_v34 = vld [vmem:[#allocation3 + $0x1f0] sm:$0xff] }
 0x4ae   :  { %v4702_v46 = vpop.permute.xlu1 %4701  ;;  %4952 = vst.msk [vmem:[#allocation6 + $0x8] sm:$0xff] %vm4725_vm3, %v4929_v45  ;;  %6437 = vmatprep.mubr.msk.f32.mxu0 %vm3582_vm13, %v3578_v34  ;;  %v3579_v10 = vld [vmem:[#allocation3 + $0x1f8] sm:$0xff] }
 0x4af   :  { %4726 = vst.msk [vmem:[#allocation6] sm:$0xff] %vm4725_vm3, %v4702_v46  ;;  %6438 = vmatmul.mubr.msk.f32.gmra.mrb[62].mxu0 %vm3582_vm13, %v3579_v10 }
 0x4b0   :  { %6481 = vmatprep.mubr.msk.f32.mxu0 %vm6690_vm5, %v6677_v0 }
 0x4b1   :  { %v4993_v11 = vpop.permute.xlu0 %4992 }
 0x4b2   :  { %v9166_v13 = vld [vmem:[#allocation5 + $0xe2] sm:$0xff]  ;;  %v4767_v15 = vpop.permute.xlu1 %4766  ;;  %5016 = vst.msk [vmem:[#allocation6 + $0x8] sm:$0xff] %vm4790_vm4, %v4993_v11 }
 0x4b3   :  { %v9168_v27 = vld [vmem:[#allocation5 + $0xe0] sm:$0xff]  ;;  %v4852_v19 = vpack.c.bf16 %v9166_v13, %v9105_v25  ;;  %4791 = vst.msk [vmem:[#allocation6] sm:$0xff] %vm4790_vm4, %v4767_v15 }
 0x4b4   :  { %v9170_v2 = vld [vmem:[#allocation5 + $0xe1] sm:$0xff]  ;;  %v4755_v14 = vpack.c.bf16 %v9168_v27, %v9096_v5 }
 0x4b5   :  { %v4820_v62 = vpack.c.bf16 %v9170_v2, %v9098_v6  ;;  %4873 = vrot.lane.b32.xlu0 %v4852_v19, %s6687_s21  ;;  %v4866_v43 = vpop.permute.xlu0 %4865 }
 0x4b6   :  { %4776 = vrot.lane.b32.xlu1 %v4755_v14, %s6689_s4  ;;  %v4639_v20 = vpop.permute.xlu1 %4638  ;;  %4888 = vst.msk [vmem:[#allocation6 + $0x20] sm:$0xff] %vm4660_vm0, %v4866_v43  ;;  %v6418_v63 = vpop.f32.mrb[48].mxu0 }
 0x4b7   :  { %4828 = vst.msk [vmem:[#allocation6 + $0x80] sm:$0xff] %vm4402_vm14, %v4820_v62  ;;  %v4085_v25 = vpop.f32.mrb[49].mxu0  ;;  %v4220_v1 = vmul.f32 %v9041_v18, %v6418_v63 }
 0x4b8   :  { %4662 = vst.msk [vmem:[#allocation6 + $0x18] sm:$0xff] %vm4660_vm0, %v4639_v20  ;;  %v4219_v17 = vmul.f32 %v9041_v18, %v4085_v25 }
 0x4b9   :  { %v4931_v5 = vpop.permute.xlu0 %4930  ;;  %v5057_v9 = vld [vmem:[#allocation6 + $0x8] sm:$0xff]  ;;  %v4291_v42 = vadd.f32 %v9138_v29, %v4220_v1 }
 0x4ba   :  { %v4704_v21 = vpop.permute.xlu1 %4703  ;;  %4953 = vst.msk [vmem:[#allocation6 + $0x20] sm:$0xff] %vm4725_vm3, %v4931_v5  ;;  %5280 = vmatprep.mubr.bf16.mxu1 %v5057_v9  ;;  %v5056_v6 = vld [vmem:[#allocation6] sm:$0xff]  ;;  %v4290_v53 = vadd.f32 %v9138_v29, %v4219_v17 }
 0x4bb   :  { %4727 = vst.msk [vmem:[#allocation6 + $0x18] sm:$0xff] %vm4725_vm3, %v4704_v21  ;;  %5281 = vmatmul.mubr.bf16.vlgmr.msra.gmra.mrb[0].mxu1 %v5056_v6  ;;  %v4355_v22 = vmax.f32 %v4291_v42, 0.0 }
 0x4bc   :  { %v4354_v50 = vmax.f32 %v4290_v53, 0.0 }
 0x4bd   :  { %v4995_v26 = vpop.permute.xlu0 %4994 }
 0x4be   :  { %v4769_v31 = vpop.permute.xlu1 %4768  ;;  %5017 = vst.msk [vmem:[#allocation6 + $0x20] sm:$0xff] %vm4790_vm4, %v4995_v26 }
 0x4bf   :  { %4792 = vst.msk [vmem:[#allocation6 + $0x18] sm:$0xff] %vm4790_vm4, %v4769_v31 }
 0x4c1   :  { %v4868_v55 = vpop.permute.xlu0 %4867 }
 0x4c2   :  { %v4641_v51 = vpop.permute.xlu1 %4640  ;;  %4889 = vst.msk [vmem:[#allocation6 + $0x38] sm:$0xff] %vm4660_vm0, %v4868_v55 }
 0x4c3   :  { %4663 = vst.msk [vmem:[#allocation6 + $0x30] sm:$0xff] %vm4660_vm0, %v4641_v51 }
 0x4c5   :  { %v4933_v57 = vpop.permute.xlu0 %4932  ;;  %v5060_v30 = vld [vmem:[#allocation6 + $0x20] sm:$0xff] }
 0x4c6   :  { %v4706_v37 = vpop.permute.xlu1 %4705  ;;  %4954 = vst.msk [vmem:[#allocation6 + $0x38] sm:$0xff] %vm4725_vm3, %v4933_v57  ;;  %5288 = vmatprep.mubr.bf16.mxu1 %v5060_v30  ;;  %v5059_v16 = vld [vmem:[#allocation6 + $0x18] sm:$0xff] }
 0x4c7   :  { %4728 = vst.msk [vmem:[#allocation6 + $0x30] sm:$0xff] %vm4725_vm3, %v4706_v37  ;;  %5289 = vmatmul.mubr.bf16.gmra.mrb[4].mxu1 %v5059_v16 }
 0x4c9   :  { %v4997_v39 = vpop.permute.xlu0 %4996 }
 0x4ca   :  { %v4771_v60 = vpop.permute.xlu1 %4770  ;;  %5018 = vst.msk [vmem:[#allocation6 + $0x38] sm:$0xff] %vm4790_vm4, %v4997_v39 }
 0x4cb   :  { %4793 = vst.msk [vmem:[#allocation6 + $0x30] sm:$0xff] %vm4790_vm4, %v4771_v60 }
 0x4cd   :  { %v4870_v56 = vpop.permute.xlu0 %4869 }
 0x4ce   :  { %v4643_v49 = vpop.permute.xlu1 %4642  ;;  %4890 = vst.msk [vmem:[#allocation6 + $0x50] sm:$0xff] %vm4660_vm0, %v4870_v56 }
 0x4cf   :  { %4664 = vst.msk [vmem:[#allocation6 + $0x48] sm:$0xff] %vm4660_vm0, %v4643_v49 }
 0x4d1   :  { %v4935_v33 = vpop.permute.xlu0 %4934  ;;  %v5063_v44 = vld [vmem:[#allocation6 + $0x38] sm:$0xff] }
 0x4d2   :  { %v4708_v38 = vpop.permute.xlu1 %4707  ;;  %4955 = vst.msk [vmem:[#allocation6 + $0x50] sm:$0xff] %vm4725_vm3, %v4935_v33  ;;  %5296 = vmatprep.mubr.bf16.mxu1 %v5063_v44  ;;  %v5062_v41 = vld [vmem:[#allocation6 + $0x30] sm:$0xff] }
 0x4d3   :  { %4729 = vst.msk [vmem:[#allocation6 + $0x48] sm:$0xff] %vm4725_vm3, %v4708_v38  ;;  %5297 = vmatmul.mubr.bf16.gmra.mrb[8].mxu1 %v5062_v41 }
 0x4d5   :  { %v4999_v61 = vpop.permute.xlu0 %4998 }
 0x4d6   :  { %5019 = vst.msk [vmem:[#allocation6 + $0x50] sm:$0xff] %vm4790_vm4, %v4999_v61  ;;  %v4773_v12 = vpop.permute.xlu1 %4772  ;;  %v6421_v59 = vpop.f32.mrb[50].mxu0 }
 0x4d7   :  { %4794 = vst.msk [vmem:[#allocation6 + $0x48] sm:$0xff] %vm4790_vm4, %v4773_v12  ;;  %v4222_v35 = vmul.f32 %v9041_v18, %v6421_v59  ;;  %v4095_v47 = vpop.f32.mrb[51].mxu0 }
 0x4d8   :  { %v4221_v48 = vmul.f32 %v9041_v18, %v4095_v47 }
 0x4d9   :  { %v4293_v24 = vadd.f32 %v9138_v29, %v4222_v35  ;;  %v4872_v23 = vpop.permute.xlu0 %4871 }
 0x4da   :  { %v4292_v32 = vadd.f32 %v9138_v29, %v4221_v48  ;;  %v4645_v40 = vpop.permute.xlu1 %4644  ;;  %4891 = vst.msk [vmem:[#allocation6 + $0x68] sm:$0xff] %vm4660_vm0, %v4872_v23 }
 0x4db   :  { %v4357_v28 = vmax.f32 %v4293_v24, 0.0  ;;  %4665 = vst.msk [vmem:[#allocation6 + $0x60] sm:$0xff] %vm4660_vm0, %v4645_v40 }
 0x4dc   :  { %v4356_v52 = vmax.f32 %v4292_v32, 0.0 }
 0x4dd   :  { %v4395_v8 = vmax.f32 %v4355_v22, %v4357_v28  ;;  %v5066_v7 = vld [vmem:[#allocation6 + $0x50] sm:$0xff] }
 0x4de   :  { %v4394_v58 = vmax.f32 %v4354_v50, %v4356_v52  ;;  %v4710_v3 = vpop.permute.xlu1 %4709  ;;  %5304 = vmatprep.mubr.bf16.mxu1 %v5066_v7  ;;  %v5065_v54 = vld [vmem:[#allocation6 + $0x48] sm:$0xff] }
 0x4df   :  { %4428 = vst.msk [vmem:[#allocation4 + $0xc8] sm:$0xff] %vm4402_vm14, %v4395_v8  ;;  %5305 = vmatmul.mubr.bf16.gmra.mrb[12].mxu1 %v5065_v54 }
 0x4e0   :  { %4730 = vst.msk [vmem:[#allocation6 + $0x60] sm:$0xff] %vm4725_vm3, %v4710_v3 }
 0x4e1   :  { %4427 = vst.msk [vmem:[#allocation4 + $0xc0] sm:$0xff] %vm4402_vm14, %v4394_v58 }
 0x4e2   :  { %v4775_v36 = vpop.permute.xlu1 %4774 }
 0x4e3   :  { %4795 = vst.msk [vmem:[#allocation6 + $0x60] sm:$0xff] %vm4790_vm4, %v4775_v36 }
 0x4e7   :  { %v4937_v4 = vpop.permute.xlu0 %4936 }
 0x4e8   :  { %v4647_v45 = vpop.permute.xlu1 %4646  ;;  %v4459_v34 = vld [vmem:[#allocation4 + $0xc0] ss:$2 sm:$0xff]  ;;  %v4491_v46 = vld [vmem:[#allocation4 + $0xc1] ss:$2 sm:$0xff]  ;;  %4956 = vst.msk [vmem:[#allocation6 + $0x68] sm:$0xff] %vm4725_vm3, %v4937_v4 }
 0x4e9   :  { %4666 = vst.msk [vmem:[#allocation6 + $0x78] sm:$0xff] %vm4660_vm0, %v4647_v45  ;;  %v4510_v10 = vmax.f32 %v4459_v34, %v4491_v46 }
 0x4ea   :  { %v5068_v5 = vld [vmem:[#allocation6 + $0x60] sm:$0xff] }
 0x4eb   :  { %4568 = vst.msk [vmem:[#allocation5 + $0xf1] sm:$0xff] %vm4402_vm14, %v4510_v10  ;;  %v5001_v11 = vpop.permute.xlu0 %5000 }
 0x4ec   :  { %v4712_v15 = vpop.permute.xlu1 %4711  ;;  %5020 = vst.msk [vmem:[#allocation6 + $0x68] sm:$0xff] %vm4790_vm4, %v5001_v11 }
 0x4ed   :  { %4731 = vst.msk [vmem:[#allocation6 + $0x78] sm:$0xff] %vm4725_vm3, %v4712_v15 }
 0x4f2   :  { %v4907_v19 = vld [vmem:[#allocation5 + $0xf0] sm:$0xff] }
 0x4f3   :  { %v4617_v14 = vld [vmem:[#allocation5 + $0xf1] sm:$0xff]  ;;  %v5069_v43 = vld [vmem:[#allocation6 + $0x68] sm:$0xff]  ;;  %v4917_v20 = vpack.c.bf16 %v4907_v19, %v9168_v27 }
 0x4f4   :  { %v4682_v62 = vld [vmem:[#allocation5 + $0xf2] sm:$0xff]  ;;  %v4626_v63 = vpack.c.bf16 %v4617_v14, %v9170_v2  ;;  %5312 = vmatprep.mubr.bf16.mxu1 %v5069_v43 }
 0x4f5   :  { %v4691_v25 = vpack.c.bf16 %v4682_v62, %v9166_v13  ;;  %5313 = vmatmul.mubr.bf16.gmra.mrb[16].mxu1 %v5068_v5  ;;  %4938 = vrot.lane.b32.xlu0 %v4917_v20, %s6688_s23  ;;  %4602 = vst.msk [vmem:[#allocation6 + $0x90] sm:$0xff] %vm4402_vm14, %v4917_v20 }
 0x4f6   :  { %4648 = vrot.lane.b32.xlu1 %v4626_v63, %s6687_s21  ;;  %v6424_v9 = vpop.f32.mrb[52].mxu0 }
 0x4f7   :  { %5053 = vst.msk [vmem:[#allocation6 + $0x88] sm:$0xff] %vm4402_vm14, %v4691_v25  ;;  %v4105_v21 = vpop.f32.mrb[53].mxu0  ;;  %v4224_v27 = vmul.f32 %v9041_v18, %v6424_v9 }
 0x4f8   :  { %v4223_v13 = vmul.f32 %v9041_v18, %v4105_v21 }
 0x4f9   :  { %5002 = vrot.lane.b32.xlu0 %v4626_v63, %s6689_s4  ;;  %v4295_v6 = vadd.f32 %v9138_v29, %v4224_v27  ;;  %v6655_v27 = vld [vmem:[%s9642_s29 + $0x88] sm:$0xff]  }
 0x4fa   :  { %4713 = vrot.lane.b32.xlu1 %v4691_v25, %s6688_s23  ;;  %v4294_v55 = vadd.f32 %v9138_v29, %v4223_v13 }
 0x4fb   :  { %v4359_v37 = vmax.f32 %v4295_v6, 0.0 }
 0x4fc   :  { %v4358_v39 = vmax.f32 %v4294_v55, 0.0 }
 0x516   :  { %v6427_v2 = vpop.f32.mrb[54].mxu0 }
 0x517   :  { %v4226_v26 = vmul.f32 %v9041_v18, %v6427_v2  ;;  %v4115_v31 = vpop.f32.mrb[55].mxu0 }
 0x518   :  { %v4225_v51 = vmul.f32 %v9041_v18, %v4115_v31 }
 0x519   :  { %v4297_v57 = vadd.f32 %v9138_v29, %v4226_v26 }
 0x51a   :  { %v4296_v30 = vadd.f32 %v9138_v29, %v4225_v51 }
 0x51b   :  { %v4361_v16 = vmax.f32 %v4297_v57, 0.0 }
 0x51c   :  { %v4360_v60 = vmax.f32 %v4296_v30, 0.0 }
 0x51d   :  { %v4397_v56 = vmax.f32 %v4359_v37, %v4361_v16 }
 0x51e   :  { %v4396_v49 = vmax.f32 %v4358_v39, %v4360_v60 }
 0x51f   :  { %4430 = vst.msk [vmem:[#allocation4 + $0xd8] sm:$0xff] %vm4402_vm14, %v4397_v56 }
 0x520   :  { %4429 = vst.msk [vmem:[#allocation4 + $0xd0] sm:$0xff] %vm4402_vm14, %v4396_v49 }
 0x527   :  { %v4874_v33 = vpop.permute.xlu0 %4873  ;;  %v4461_v38 = vld [vmem:[#allocation4 + $0xd0] ss:$2 sm:$0xff]  ;;  %v4493_v41 = vld [vmem:[#allocation4 + $0xd1] ss:$2 sm:$0xff] }
 0x528   :  { %v4777_v44 = vpop.permute.xlu1 %4776  ;;  %4892 = vst.msk [vmem:[#allocation6 + $0x80] sm:$0xff] %vm4660_vm0, %v4874_v33  ;;  %v4511_v1 = vmax.f32 %v4461_v38, %v4493_v41 }
 0x529   :  { %4796 = vst.msk [vmem:[#allocation6 + $0x78] sm:$0xff] %vm4790_vm4, %v4777_v44 }
 0x52a   :  { %4569 = vst.msk [vmem:[#allocation5 + $0x101] sm:$0xff] %vm4402_vm14, %v4511_v1 }
 0x530   :  { %v5071_v21 = vld [vmem:[#allocation6 + $0x78] sm:$0xff] }
 0x531   :  { %v4844_v17 = vld [vmem:[#allocation5 + $0x102] sm:$0xff] }
 0x532   :  { %v4747_v61 = vld [vmem:[#allocation5 + $0x100] sm:$0xff]  ;;  %v4853_v59 = vpack.c.bf16 %v4844_v17, %v4682_v62 }
 0x533   :  { %v4618_v12 = vld [vmem:[#allocation5 + $0x101] sm:$0xff]  ;;  %v4756_v42 = vpack.c.bf16 %v4747_v61, %v4907_v19 }
 0x534   :  { %v4821_v35 = vpack.c.bf16 %v4618_v12, %v4617_v14  ;;  %4875 = vrot.lane.b32.xlu0 %v4853_v59, %s6687_s21  ;;  %v6654_v14 = vld [vmem:[%s9642_s29 + $0x80] sm:$0xff]  }
 0x535   :  { %4778 = vrot.lane.b32.xlu1 %v4756_v42, %s6689_s4  ;;  %6440 = vmatprep.subr.bf16.mxu1 %v6654_v14 }
 0x536   :  { %4829 = vst.msk [vmem:[#allocation6 + $0x98] sm:$0xff] %vm4402_vm14, %v4821_v35  ;;  %v6430_v47 = vpop.f32.mrb[56].mxu0  ;;  %6441 = vmatpush3.bf16.msra.mxu1 %v6654_v14 }
 0x537   :  { %v4125_v53 = vpop.f32.mrb[57].mxu0  ;;  %v4228_v48 = vmul.f32 %v9041_v18, %v6430_v47  ;;  %6442 = vmatprep.subr.bf16.mxu1 %v6655_v27 }
 0x538   :  { %v4227_v24 = vmul.f32 %v9041_v18, %v4125_v53 }
 0x539   :  { %v4299_v32 = vadd.f32 %v9138_v29, %v4228_v48 }
 0x53a   :  { %v4298_v28 = vadd.f32 %v9138_v29, %v4227_v24  ;;  %6443 = vmatpush3.bf16.msra.mxu1 %v6655_v27  ;;  %v5039_v24 = vld [vmem:[#allocation5 + $0x132] sm:$0xff] }
 0x53b   :  { %v4363_v7 = vmax.f32 %v4299_v32, 0.0  ;;  %6460 = vmatprep.subr.mxu1 %v6677_v0 }
 0x53c   :  { %v4362_v3 = vmax.f32 %v4298_v28, 0.0 }
 0x556   :  { %v6433_v23 = vpop.f32.mrb[58].mxu0 }
 0x557   :  { %v4230_v40 = vmul.f32 %v9041_v18, %v6433_v23  ;;  %v4135_v22 = vpop.f32.mrb[59].mxu0 }
 0x558   :  { %v4229_v50 = vmul.f32 %v9041_v18, %v4135_v22 }
 0x559   :  { %v4301_v52 = vadd.f32 %v9138_v29, %v4230_v40 }
 0x55a   :  { %v4300_v8 = vadd.f32 %v9138_v29, %v4229_v50 }
 0x55b   :  { %v4365_v58 = vmax.f32 %v4301_v52, 0.0 }
 0x55c   :  { %v4364_v54 = vmax.f32 %v4300_v8, 0.0  ;;  %v4911_v8 = vld [vmem:[#allocation5 + $0x130] sm:$0xff] }
 0x55d   :  { %v4399_v36 = vmax.f32 %v4363_v7, %v4365_v58 }
 0x55e   :  { %v4398_v4 = vmax.f32 %v4362_v3, %v4364_v54  ;;  %v4975_v54 = vld [vmem:[#allocation5 + $0x131] sm:$0xff] }
 0x55f   :  { %4432 = vst.msk [vmem:[#allocation4 + $0xe8] sm:$0xff] %vm4402_vm14, %v4399_v36 }
 0x560   :  { %4431 = vst.msk [vmem:[#allocation4 + $0xe0] sm:$0xff] %vm4402_vm14, %v4398_v4 }
 0x567   :  { %v4939_v45 = vpop.permute.xlu0 %4938  ;;  %v4463_v34 = vld [vmem:[#allocation4 + $0xe0] ss:$2 sm:$0xff]  ;;  %v4495_v46 = vld [vmem:[#allocation4 + $0xe1] ss:$2 sm:$0xff] }
 0x568   :  { %4957 = vst.msk [vmem:[#allocation6 + $0x80] sm:$0xff] %vm4725_vm3, %v4939_v45  ;;  %v4649_v10 = vpop.permute.xlu1 %4648  ;;  %v4512_v11 = vmax.f32 %v4463_v34, %v4495_v46 }
 0x569   :  { %4667 = vst.msk [vmem:[#allocation6 + $0x90] sm:$0xff] %vm4660_vm0, %v4649_v10 }
 0x56a   :  { %4570 = vst.msk [vmem:[#allocation5 + $0x111] sm:$0xff] %vm4402_vm14, %v4512_v11 }
 0x56b   :  { %v5003_v15 = vpop.permute.xlu0 %5002 }
 0x56c   :  { %5021 = vst.msk [vmem:[#allocation6 + $0x80] sm:$0xff] %vm4790_vm4, %v5003_v15  ;;  %v4714_v19 = vpop.permute.xlu1 %4713 }
 0x56d   :  { %4732 = vst.msk [vmem:[#allocation6 + $0x90] sm:$0xff] %vm4725_vm3, %v4714_v19 }
 0x571   :  { %v9263_v62 = vld [vmem:[#allocation5 + $0x110] sm:$0xff] }
 0x572   :  { %v9265_v43 = vld [vmem:[#allocation5 + $0x111] sm:$0xff]  ;;  %v4918_v25 = vpack.c.bf16 %v9263_v62, %v4747_v61 }
 0x573   :  { %v9267_v20 = vld [vmem:[#allocation5 + $0x112] sm:$0xff]  ;;  %v5072_v63 = vld [vmem:[#allocation6 + $0x80] sm:$0xff]  ;;  %v4627_v5 = vpack.c.bf16 %v9265_v43, %v4618_v12 }
 0x574   :  { %v4692_v9 = vpack.c.bf16 %v9267_v20, %v4844_v17  ;;  %5320 = vmatprep.mubr.bf16.mxu1 %v5072_v63  ;;  %4940 = vrot.lane.b32.xlu0 %v4918_v25, %s6688_s23  ;;  %4603 = vst.msk [vmem:[#allocation6 + $0xa8] sm:$0xff] %vm4402_vm14, %v4918_v25 }
 0x575   :  { %5321 = vmatmul.mubr.bf16.gmra.mrb[20].mxu1 %v5071_v21  ;;  %4650 = vrot.lane.b32.xlu1 %v4627_v5, %s6687_s21  ;;  %v6436_v13 = vpop.f32.mrb[60].mxu0 }
 0x576   :  { %5054 = vst.msk [vmem:[#allocation6 + $0xa0] sm:$0xff] %vm4402_vm14, %v4692_v9  ;;  %v4145_v2 = vpop.f32.mrb[61].mxu0  ;;  %v4232_v6 = vmul.f32 %v9041_v18, %v6436_v13 }
 0x577   :  { %v4231_v26 = vmul.f32 %v9041_v18, %v4145_v2 }
 0x578   :  { %5004 = vrot.lane.b32.xlu0 %v4627_v5, %s6689_s4  ;;  %v4303_v55 = vadd.f32 %v9138_v29, %v4232_v6  ;;  %v6691_v6 = vmov 0.0|0.0  }
 0x579   :  { %4715 = vrot.lane.b32.xlu1 %v4692_v9, %s6688_s23  ;;  %v4302_v30 = vadd.f32 %v9138_v29, %v4231_v26  ;;  %6563 = vmatprep.subr.bf16.mxu0 %v6691_v6  ;;  %v5663_v26 = vld [vmem:[%s9612_s12] sm:$0xff] }
 0x57a   :  { %v4367_v60 = vmax.f32 %v4303_v55, 0.0 }
 0x57b   :  { %v4366_v49 = vmax.f32 %v4302_v30, 0.0 }
 0x582   :  { %v6439_v31 = vpop.f32.mrb[62].mxu0 }
 0x583   :  { %v4234_v51 = vmul.f32 %v9041_v18, %v6439_v31  ;;  %v4155_v57 = vpop.f32.mrb[63].mxu0  ;;  %v5664_v31 = vld [vmem:[%s9612_s12 + $0x8] sm:$0xff] }
 0x584   :  { %v4233_v37 = vmul.f32 %v9041_v18, %v4155_v57  ;;  %v6564_v55 = vpack.c.bf16 %v5664_v31, %v5663_v26 }
 0x585   :  { %v4305_v16 = vadd.f32 %v9138_v29, %v4234_v51 }
 0x586   :  { %v4304_v39 = vadd.f32 %v9138_v29, %v4233_v37  ;;  %6565 = vmatpush3.bf16.msra.mxu0 %v6564_v55 }
 0x587   :  { %v4369_v56 = vmax.f32 %v4305_v16, 0.0  ;;  %6566 = vmatprep.subr.bf16.mxu0 %v6691_v6 }
 0x588   :  { %v4368_v33 = vmax.f32 %v4304_v39, 0.0 }
 0x589   :  { %v4401_v44 = vmax.f32 %v4367_v60, %v4369_v56 }
 0x58a   :  { %v4400_v38 = vmax.f32 %v4366_v49, %v4368_v33 }
 0x58b   :  { %4434 = vst.msk [vmem:[#allocation4 + $0xf8] sm:$0xff] %vm4402_vm14, %v4401_v44 }
 0x58c   :  { %4433 = vst.msk [vmem:[#allocation4 + $0xf0] sm:$0xff] %vm4402_vm14, %v4400_v38 }
 0x58e   :  { %v6236_v41 = vpop.f32.mrb[0].mxu1 }
 0x58f   :  { %v6237_v1 = vpop.f32.mrb[1].mxu1 }
 0x590   :  { %v9292_v17 = vadd.f32 %v6237_v1, %v6236_v41  ;;  %v6239_v61 = vpop.f32.mrb[2].mxu1  ;;  %v5058_v41 = vld [vmem:[#allocation6 + $0x10] sm:$0xff]  ;;  %v5563_v1 = vld [vmem:[%s9613_s8] sm:$0xff] }
 0x591   :  { %v6240_v18 = vpop.f32.mrb[3].mxu1 }
 0x592   :  { %v9294_v12 = vadd.f32 %v6240_v18, %v6239_v61  ;;  %v5061_v61 = vld [vmem:[#allocation6 + $0x28] sm:$0xff]  ;;  %v5064_v18 = vld [vmem:[#allocation6 + $0x40] sm:$0xff] }
 0x593   :  { %v4465_v59 = vld [vmem:[#allocation4 + $0xf0] ss:$2 sm:$0xff]  ;;  %v4497_v29 = vld [vmem:[#allocation4 + $0xf1] ss:$2 sm:$0xff] }
 0x594   :  { %v4513_v42 = vmax.f32 %v4465_v59, %v4497_v29  ;;  %v5067_v59 = vld [vmem:[#allocation6 + $0x58] sm:$0xff]  ;;  %v5070_v29 = vld [vmem:[#allocation6 + $0x70] sm:$0xff] }
 0x596   :  { %4571 = vst.msk [vmem:[#allocation5 + $0x121] sm:$0xff] %vm4402_vm14, %v4513_v42  ;;  %v5073_v42 = vld [vmem:[#allocation6 + $0x88] sm:$0xff] }
 0x59a   :  { %v6242_v35 = vpop.f32.mrb[4].mxu1 }
 0x59b   :  { %v6243_v47 = vpop.f32.mrb[5].mxu1 }
 0x59c   :  { %v9297_v53 = vadd.f32 %v6243_v47, %v6242_v35  ;;  %v6245_v48 = vpop.f32.mrb[6].mxu1  ;;  %v5076_v35 = vld [vmem:[#allocation6 + $0xa0] sm:$0xff] }
 0x59d   :  { %v6246_v23 = vpop.f32.mrb[7].mxu1  ;;  %v4846_v32 = vld [vmem:[#allocation5 + $0x122] sm:$0xff] }
 0x59e   :  { %v4749_v40 = vld [vmem:[#allocation5 + $0x120] sm:$0xff]  ;;  %v9299_v28 = vadd.f32 %v6246_v23, %v6245_v48  ;;  %v4854_v50 = vpack.c.bf16 %v4846_v32, %v9267_v20  ;;  %v5047_v58 = vpack.c.bf16 %v5039_v24, %v4846_v32 }
 0x59f   :  { %v4974_v22 = vld [vmem:[#allocation5 + $0x121] sm:$0xff]  ;;  %v4757_v52 = vpack.c.bf16 %v4749_v40, %v9263_v62  ;;  %v4919_v3 = vpack.c.bf16 %v4911_v8, %v4749_v40  ;;  %v5666_v8 = vld [vmem:[%s9612_s12 + $0x18] sm:$0xff] }
 0x5a0   :  { %v4822_v7 = vpack.c.bf16 %v4974_v22, %v9265_v43  ;;  %4877 = vrot.lane.b32.xlu0 %v4854_v50, %s6687_s21  ;;  %5055 = vst.msk [vmem:[#allocation6 + $0xb8] sm:$0xff] %vm4402_vm14, %v5047_v58  ;;  %v4983_v45 = vpack.c.bf16 %v4975_v54, %v4974_v22  ;;  %v5562_v40 = vld [vmem:[%s9614_s1] sm:$0x3] }
 0x5a1   :  { %4780 = vrot.lane.b32.xlu1 %v4757_v52, %s6689_s4  ;;  %v5665_v52 = vld [vmem:[%s9612_s12 + $0x10] sm:$0xff]  ;;  %v5667_v58 = vld [vmem:[%s9612_s12 + $0x20] sm:$0xff] }
 0x5a2   :  { %4830 = vst.msk [vmem:[#allocation6 + $0xb0] sm:$0xff] %vm4402_vm14, %v4822_v7  ;;  %v6567_v7 = vpack.c.bf16 %v5666_v8, %v5665_v52 }
 0x5a4   :  { %4942 = vrot.lane.b32.xlu0 %v4919_v3, %s6688_s23  ;;  %6568 = vmatpush3.bf16.msra.mxu0 %v6567_v7  ;;  %v5668_v3 = vld [vmem:[%s9612_s12 + $0x28] sm:$0xff] }
 0x5a5   :  { %6569 = vmatprep.subr.bf16.mxu0 %v6691_v6  ;;  %v6570_v54 = vpack.c.bf16 %v5668_v3, %v5667_v58 }
 0x5a6   :  { %v4876_v36 = vpop.permute.xlu0 %4875  ;;  %v6248_v34 = vpop.f32.mrb[8].mxu1 }
 0x5a7   :  { %v4779_v4 = vpop.permute.xlu1 %4778  ;;  %4893 = vst.msk [vmem:[#allocation6 + $0x98] sm:$0xff] %vm4660_vm0, %v4876_v36  ;;  %v6249_v46 = vpop.f32.mrb[9].mxu1  ;;  %v5079_v47 = vld [vmem:[#allocation6 + $0xb8] sm:$0xff]  ;;  %v5669_v36 = vld [vmem:[%s9612_s12 + $0x30] sm:$0xff] }
 0x5a8   :  { %4797 = vst.msk [vmem:[#allocation6 + $0x90] sm:$0xff] %vm4790_vm4, %v4779_v4  ;;  %5006 = vrot.lane.b32.xlu0 %v4983_v45, %s6689_s4  ;;  %v9312_v10 = vadd.f32 %v6249_v46, %v6248_v34  ;;  %v6251_v11 = vpop.f32.mrb[10].mxu1  ;;  %6571 = vmatpush3.bf16.msra.mxu0 %v6570_v54  ;;  %v5670_v4 = vld [vmem:[%s9612_s12 + $0x38] sm:$0xff]  ;;  %v5655_v34 = vld [vmem:[%s9615_s11] sm:$0xff]  ;;  %v5656_v46 = vld [vmem:[%s9615_s11 + $0x8] sm:$0xff] }
 0x5a9   :  { %v6252_v15 = vpop.f32.mrb[11].mxu1  ;;  %6572 = vmatprep.subr.bf16.mxu0 %v6691_v6  ;;  %v6573_v45 = vpack.c.bf16 %v5670_v4, %v5669_v36 }
 0x5aa   :  { %v9314_v19 = vadd.f32 %v6252_v15, %v6251_v11  ;;  %v5657_v11 = vld [vmem:[%s9615_s11 + $0x10] sm:$0xff]  ;;  %v6576_v15 = vpack.c.bf16 %v5656_v46, %v5655_v34 }
 0x5ac   :  { %6574 = vmatpush3.bf16.msra.mxu0 %v6573_v45 }
 0x5ad   :  { %6587 = vmatprep.subr.bf16.mxu0 %v6691_v6 }
 0x5af   :  { %v5074_v39 = vld [vmem:[#allocation6 + $0x90] sm:$0xff] }
 0x5b2   :  { %v6254_v14 = vpop.f32.mrb[12].mxu1 }
 0x5b3   :  { %v6255_v62 = vpop.f32.mrb[13].mxu1 }
 0x5b4   :  { %v9316_v43 = vadd.f32 %v6255_v62, %v6254_v14  ;;  %v6257_v20 = vpop.f32.mrb[14].mxu1  ;;  %v5658_v14 = vld [vmem:[%s9615_s11 + $0x18] sm:$0xff] }
 0x5b5   :  { %v6258_v63 = vpop.f32.mrb[15].mxu1  ;;  %v6579_v62 = vpack.c.bf16 %v5658_v14, %v5657_v11 }
 0x5b6   :  { %v9318_v25 = vadd.f32 %v6258_v63, %v6257_v20  ;;  %v5659_v20 = vld [vmem:[%s9615_s11 + $0x20] sm:$0xff]  ;;  %v5660_v63 = vld [vmem:[%s9615_s11 + $0x28] sm:$0xff] }
 0x5c8   :  { %v6260_v5 = vpop.f32.mrb[16].mxu1 }
 0x5c9   :  { %v6261_v9 = vpop.f32.mrb[17].mxu1 }
 0x5ca   :  { %v9320_v21 = vadd.f32 %v6261_v9, %v6260_v5  ;;  %v6263_v27 = vpop.f32.mrb[18].mxu1  ;;  %v6582_v5 = vpack.c.bf16 %v5660_v63, %v5659_v20  ;;  %v5661_v9 = vld [vmem:[%s9615_s11 + $0x30] sm:$0xff] }
 0x5cb   :  { %v6264_v13 = vpop.f32.mrb[19].mxu1 }
 0x5cc   :  { %v9322_v2 = vadd.f32 %v6264_v13, %v6263_v27  ;;  %v5662_v27 = vld [vmem:[%s9615_s11 + $0x38] sm:$0xff] }
 0x5cd   :  { %v6585_v13 = vpack.c.bf16 %v5662_v27, %v5661_v9 }
 0x5e6   :  { %v4941_v51 = vpop.permute.xlu0 %4940 }
 0x5e7   :  { %4958 = vst.msk [vmem:[#allocation6 + $0x98] sm:$0xff] %vm4725_vm3, %v4941_v51  ;;  %v4651_v57 = vpop.permute.xlu1 %4650 }
 0x5e8   :  { %4668 = vst.msk [vmem:[#allocation6 + $0xa8] sm:$0xff] %vm4660_vm0, %v4651_v57 }
 0x5ea   :  { %v5005_v30 = vpop.permute.xlu0 %5004 }
 0x5eb   :  { %5022 = vst.msk [vmem:[#allocation6 + $0x98] sm:$0xff] %vm4790_vm4, %v5005_v30  ;;  %v4716_v37 = vpop.permute.xlu1 %4715 }
 0x5ec   :  { %4733 = vst.msk [vmem:[#allocation6 + $0xa8] sm:$0xff] %vm4725_vm3, %v4716_v37 }
 0x5f2   :  { %v5075_v16 = vld [vmem:[#allocation6 + $0x98] sm:$0xff] }
 0x5f3   :  { %5328 = vmatprep.mubr.bf16.mxu1 %v5075_v16 }
 0x5f4   :  { %5329 = vmatmul.mubr.bf16.gmra.mrb[24].mxu1 %v5074_v39 }
 0x612   :  { %v4878_v60 = vpop.permute.xlu0 %4877 }
 0x613   :  { %v4781_v56 = vpop.permute.xlu1 %4780  ;;  %4894 = vst.msk [vmem:[#allocation6 + $0xb0] sm:$0xff] %vm4660_vm0, %v4878_v60 }
 0x614   :  { %4798 = vst.msk [vmem:[#allocation6 + $0xa8] sm:$0xff] %vm4790_vm4, %v4781_v56 }
 0x616   :  { %v4943_v49 = vpop.permute.xlu0 %4942 }
 0x617   :  { %4959 = vst.msk [vmem:[#allocation6 + $0xb0] sm:$0xff] %vm4725_vm3, %v4943_v49 }
 0x61a   :  { %v5007_v33 = vpop.permute.xlu0 %5006 }
 0x61b   :  { %5023 = vst.msk [vmem:[#allocation6 + $0xb0] sm:$0xff] %vm4790_vm4, %v5007_v33  ;;  %v5077_v38 = vld [vmem:[#allocation6 + $0xa8] sm:$0xff] }
 0x622   :  { %v5078_v44 = vld [vmem:[#allocation6 + $0xb0] sm:$0xff] }
 0x623   :  { %5336 = vmatprep.mubr.bf16.mxu1 %v5078_v44  ;;  %v9425_v44 = vld [vmem:[%s9616_s6] ss:$0 sm:$0xff] }
 0x624   :  { %5337 = vmatmul.mubr.bf16.gmra.mrb[28].mxu1 %v5077_v38 }
 0x625   :  { %6444 = vmatprep.mubr.msk.bf16.mxu1 %vm4402_vm14, %v5058_v41 }
 0x62c   :  { %6445 = vmatmul.mubr.msk.bf16.vlgmr.msra.gmra.mrb[32].mxu1 %vm4402_vm14, %v5061_v61 }
 0x62d   :  { %6448 = vmatprep.mubr.msk.bf16.mxu1 %vm4402_vm14, %v5064_v18  ;;  %6461 = vmatpush3.msra.mxu1 %v5563_v1  ;;  %v9431_v1 = vld [vmem:[%s9617_s7] ss:$0 sm:$0xff] }
 0x62e   :  { %6575 = vmatprep.subr.bf16.mxu1 %v6691_v6 }
 0x634   :  { %6449 = vmatmul.mubr.msk.bf16.gmra.mrb[36].mxu1 %vm4402_vm14, %v5067_v59 }
 0x635   :  { %6452 = vmatprep.mubr.msk.bf16.mxu1 %vm4402_vm14, %v5070_v29 }
 0x63c   :  { %6453 = vmatmul.mubr.msk.bf16.gmra.mrb[40].mxu1 %vm4402_vm14, %v5073_v42 }
 0x63d   :  { %6456 = vmatprep.mubr.msk.bf16.mxu1 %vm4402_vm14, %v5076_v35 }
 0x644   :  { %6457 = vmatmul.mubr.msk.bf16.gmra.mrb[44].mxu1 %vm4402_vm14, %v5079_v47 }
 0x645   :  { %6462 = vmatprep.mubr.msk.f32.mxu1 %vm6690_vm5, %v6677_v0 }
 0x648   :  { %v6266_v48 = vpop.f32.mrb[20].mxu1 }
 0x649   :  { %v6267_v24 = vpop.f32.mrb[21].mxu1 }
 0x64a   :  { %v9356_v23 = vadd.f32 %v6267_v24, %v6266_v48  ;;  %v6269_v32 = vpop.f32.mrb[22].mxu1 }
 0x64b   :  { %v6270_v22 = vpop.f32.mrb[23].mxu1 }
 0x64c   :  { %v9361_v50 = vadd.f32 %v6270_v22, %v6269_v32  ;;  %6463 = vmatmul.mubr.msk.f32.vlgmr.msra.gmra.mrb[48].mxu1 %vm5564_vm6, %v5562_v40 }
 0x64d   :  { %6500 = vmatprep.mubr.msk.f32.mxu1 %vm6690_vm5, %v6677_v0  ;;  %6577 = vmatpush3.bf16.msra.mxu1 %v6576_v15 }
 0x64e   :  { %6578 = vmatprep.subr.bf16.mxu1 %v6691_v6 }
 0x651   :  { %6580 = vmatpush3.bf16.msra.mxu1 %v6579_v62 }
 0x652   :  { %6581 = vmatprep.subr.bf16.mxu1 %v6691_v6 }
 0x655   :  { %6583 = vmatpush3.bf16.msra.mxu1 %v6582_v5 }
 0x656   :  { %6584 = vmatprep.subr.bf16.mxu1 %v6691_v6 }
 0x659   :  { %6586 = vmatpush3.bf16.msra.mxu1 %v6585_v13 }
 0x65a   :  { %6611 = vmatprep.subr.bf16.mxu1 %v6691_v6 }
 0x6c7   :  { %v6272_v26 = vpop.f32.mrb[24].mxu1 }
 0x6c8   :  { %v6273_v31 = vpop.f32.mrb[25].mxu1 }
 0x6c9   :  { %v9414_v55 = vadd.f32 %v6273_v31, %v6272_v26  ;;  %v6275_v51 = vpop.f32.mrb[26].mxu1 }
 0x6ca   :  { %v6276_v57 = vpop.f32.mrb[27].mxu1 }
 0x6cb   :  { %v9416_v30 = vadd.f32 %v6276_v57, %v6275_v51 }
 0x6f7   :  { %v6278_v37 = vpop.f32.mrb[28].mxu1 }
 0x6f8   :  { %v6279_v16 = vpop.f32.mrb[29].mxu1 }
 0x6f9   :  { %v9418_v39 = vadd.f32 %v6279_v16, %v6278_v37  ;;  %v6281_v60 = vpop.f32.mrb[30].mxu1 }
 0x6fa   :  { %v6282_v56 = vpop.f32.mrb[31].mxu1 }
 0x6fb   :  { %v9420_v49 = vadd.f32 %v6282_v56, %v6281_v60 }
 0x6ff   :  { %v6446_v33 = vpop.f32.mrb[32].mxu1 }
 0x700   :  { %v5388_v38 = vadd.f32 %v6446_v33, %v9297_v53  ;;  %v5379_v41 = vpop.f32.mrb[33].mxu1 }
 0x701   :  { %v5380_v61 = vadd.f32 %v9292_v17, %v5379_v41  ;;  %v6447_v18 = vpop.f32.mrb[34].mxu1 }
 0x702   :  { %v5451_v59 = vmul.f32 %v9425_v44, %v5388_v38  ;;  %v5391_v29 = vadd.f32 %v6447_v18, %v9299_v28  ;;  %v5382_v42 = vpop.f32.mrb[35].mxu1 }
 0x703   :  { %v5449_v35 = vmul.f32 %v9425_v44, %v5380_v61  ;;  %v5383_v47 = vadd.f32 %v9294_v12, %v5382_v42 }
 0x704   :  { %v5474_v53 = vadd.f32 %v9431_v1, %v5451_v59  ;;  %v5452_v48 = vmul.f32 %v9425_v44, %v5391_v29 }
 0x705   :  { %v5472_v24 = vadd.f32 %v9431_v1, %v5449_v35  ;;  %v5450_v32 = vmul.f32 %v9425_v44, %v5383_v47 }
 0x706   :  { %v5475_v17 = vadd.f32 %v9431_v1, %v5452_v48  ;;  %v5490_v52 = vmax.f32 %v5474_v53, 0.0 }
 0x707   :  { %v5473_v40 = vadd.f32 %v9431_v1, %v5450_v32  ;;  %v6450_v22 = vpop.f32.mrb[36].mxu1  ;;  %v5488_v58 = vmax.f32 %v5472_v24, 0.0 }
 0x708   :  { %v5491_v28 = vmax.f32 %v5475_v17, 0.0  ;;  %v5404_v8 = vadd.f32 %v6450_v22, %v9316_v43  ;;  %v5395_v7 = vpop.f32.mrb[37].mxu1 }
 0x709   :  { %v5489_v12 = vmax.f32 %v5473_v40, 0.0  ;;  %v5396_v3 = vadd.f32 %v9312_v10, %v5395_v7  ;;  %v6451_v54 = vpop.f32.mrb[38].mxu1 }
 0x70a   :  { %v5505_v36 = vmax.f32 %v5490_v52, %v5491_v28  ;;  %v5455_v4 = vmul.f32 %v9425_v44, %v5404_v8  ;;  %v5407_v45 = vadd.f32 %v6451_v54, %v9318_v25  ;;  %v5398_v34 = vpop.f32.mrb[39].mxu1 }
 0x70b   :  { %v5504_v46 = vmax.f32 %v5488_v58, %v5489_v12  ;;  %v5453_v11 = vmul.f32 %v9425_v44, %v5396_v3  ;;  %v5399_v15 = vadd.f32 %v9314_v19, %v5398_v34 }
 0x70c   :  { %5514 = vst.msk [vmem:[#allocation7 + $0x8] sm:$0xff] %vm5512_vm7, %v5505_v36  ;;  %v5478_v43 = vadd.f32 %v9431_v1, %v5455_v4  ;;  %v5456_v14 = vmul.f32 %v9425_v44, %v5407_v45  ;;  %v6142_v36 = vld [vmem:[%s9618_s9] ss:$0 sm:$0xff] }
 0x70d   :  { %5513 = vst.msk [vmem:[#allocation7] sm:$0xff] %vm5512_vm7, %v5504_v46  ;;  %v5476_v10 = vadd.f32 %v9431_v1, %v5453_v11  ;;  %v5454_v62 = vmul.f32 %v9425_v44, %v5399_v15  ;;  %v6143_v11 = vld [vmem:[%s9619_s10] ss:$0 sm:$0xff] }
 0x70e   :  { %v5479_v25 = vadd.f32 %v9431_v1, %v5456_v14  ;;  %v5494_v5 = vmax.f32 %v5478_v43, 0.0 }
 0x70f   :  { %v5477_v20 = vadd.f32 %v9431_v1, %v5454_v62  ;;  %v6454_v63 = vpop.f32.mrb[40].mxu1  ;;  %v5492_v13 = vmax.f32 %v5476_v10, 0.0  ;;  %v5825_v62 = vld [vmem:[%s9620_s14] sm:$0xff] }
 0x710   :  { %v5495_v9 = vmax.f32 %v5479_v25, 0.0  ;;  %v5420_v19 = vadd.f32 %v6454_v63, %v9356_v23  ;;  %v5411_v27 = vpop.f32.mrb[41].mxu1  ;;  %v5826_v25 = vld [vmem:[%s9620_s14 + $0x8] sm:$0xff] }
 0x711   :  { %v5493_v26 = vmax.f32 %v5477_v20, 0.0  ;;  %v5412_v31 = vadd.f32 %v9320_v21, %v5411_v27  ;;  %v6455_v51 = vpop.f32.mrb[42].mxu1 }
 0x712   :  { %v5507_v57 = vmax.f32 %v5494_v5, %v5495_v9  ;;  %v5459_v37 = vmul.f32 %v9425_v44, %v5420_v19  ;;  %v5423_v16 = vadd.f32 %v6455_v51, %v9361_v50  ;;  %v5414_v60 = vpop.f32.mrb[43].mxu1  ;;  %v5828_v51 = vld [vmem:[%s9620_s14 + $0x18] sm:$0xff] }
 0x713   :  { %v5506_v56 = vmax.f32 %v5492_v13, %v5493_v26  ;;  %v5457_v33 = vmul.f32 %v9425_v44, %v5412_v31  ;;  %v5415_v38 = vadd.f32 %v9322_v2, %v5414_v60  ;;  %v6588_v13 = vpack.c.bf16 %v5826_v25, %v5825_v62  ;;  %v5827_v31 = vld [vmem:[%s9620_s14 + $0x10] sm:$0xff]  ;;  %v5924_v62 = vld [vmem:[%s9621_s16 + $0x28] sm:$0xff] }
 0x714   :  { %5516 = vst.msk [vmem:[#allocation7 + $0x18] sm:$0xff] %vm5512_vm7, %v5507_v57  ;;  %v5482_v23 = vadd.f32 %v9431_v1, %v5459_v37  ;;  %v5460_v41 = vmul.f32 %v9425_v44, %v5423_v16  ;;  %v5521_v52 = vld [vmem:[#allocation7] ss:$2 sm:$0xff]  ;;  %v5529_v28 = vld [vmem:[#allocation7 + $0x1] ss:$2 sm:$0xff]  ;;  %v6591_v37 = vpack.c.bf16 %v5828_v51, %v5827_v31 }
 0x715   :  { %5515 = vst.msk [vmem:[#allocation7 + $0x10] sm:$0xff] %vm5512_vm7, %v5506_v56  ;;  %v5480_v21 = vadd.f32 %v9431_v1, %v5457_v33  ;;  %v5458_v61 = vmul.f32 %v9425_v44, %v5415_v38  ;;  %v5536_v4 = vmax.f32 %v5521_v52, %v5529_v28  ;;  %v5829_v16 = vld [vmem:[%s9620_s14 + $0x20] sm:$0xff]  ;;  %v5830_v33 = vld [vmem:[%s9620_s14 + $0x28] sm:$0xff]  ;;  %v5836_v52 = vld [vmem:[%s9620_s14 + $0x58] sm:$0xff] }
 0x716   :  { %v5483_v50 = vadd.f32 %v9431_v1, %v5460_v41  ;;  %v5498_v29 = vmax.f32 %v5482_v23, 0.0  ;;  %v6594_v41 = vpack.c.bf16 %v5830_v33, %v5829_v16  ;;  %v6147_v31 = vld [vmem:[%s9623_s15] ss:$0 sm:$0xff] }
 0x717   :  { %v5481_v18 = vadd.f32 %v9431_v1, %v5458_v61  ;;  %v6458_v59 = vpop.f32.mrb[44].mxu1  ;;  %v5496_v47 = vmax.f32 %v5480_v21, 0.0  ;;  %v5540_v63 = vsel %vm5512_vm7, %v5536_v4, 0.0  ;;  %v5831_v21 = vld [vmem:[%s9620_s14 + $0x30] sm:$0xff] }
 0x718   :  { %v5499_v42 = vmax.f32 %v5483_v50, 0.0  ;;  %v5436_v2 = vadd.f32 %v6458_v59, %v9418_v39  ;;  %v5427_v35 = vpop.f32.mrb[45].mxu1 }
 0x719   :  { %v5497_v53 = vmax.f32 %v5481_v18, 0.0  ;;  %v5428_v48 = vadd.f32 %v9414_v55, %v5427_v35  ;;  %v6459_v24 = vpop.f32.mrb[46].mxu1  ;;  %v5832_v18 = vld [vmem:[%s9620_s14 + $0x38] sm:$0xff] }
 0x71a   :  { %v5509_v32 = vmax.f32 %v5498_v29, %v5499_v42  ;;  %v5463_v17 = vmul.f32 %v9425_v44, %v5436_v2  ;;  %v5439_v40 = vadd.f32 %v6459_v24, %v9420_v49  ;;  %v5430_v22 = vpop.f32.mrb[47].mxu1  ;;  %v6597_v35 = vpack.c.bf16 %v5832_v18, %v5831_v21 }
 0x71b   :  { %v5508_v8 = vmax.f32 %v5496_v47, %v5497_v53  ;;  %v5461_v7 = vmul.f32 %v9425_v44, %v5428_v48  ;;  %v5431_v58 = vadd.f32 %v9416_v30, %v5430_v22  ;;  %v5833_v53 = vld [vmem:[%s9620_s14 + $0x40] sm:$0xff]  ;;  %v5834_v48 = vld [vmem:[%s9620_s14 + $0x48] sm:$0xff]  ;;  %v5835_v22 = vld [vmem:[%s9620_s14 + $0x50] sm:$0xff] }
 0x71c   :  { %5518 = vst.msk [vmem:[#allocation7 + $0x28] sm:$0xff] %vm5512_vm7, %v5509_v32  ;;  %v5486_v39 = vadd.f32 %v9431_v1, %v5463_v17  ;;  %v5464_v55 = vmul.f32 %v9425_v44, %v5439_v40  ;;  %v5523_v12 = vld [vmem:[#allocation7 + $0x10] ss:$2 sm:$0xff]  ;;  %v5531_v3 = vld [vmem:[#allocation7 + $0x11] ss:$2 sm:$0xff]  ;;  %v6600_v17 = vpack.c.bf16 %v5834_v48, %v5833_v53 }
 0x71d   :  { %5517 = vst.msk [vmem:[#allocation7 + $0x20] sm:$0xff] %vm5512_vm7, %v5508_v8  ;;  %v5484_v49 = vadd.f32 %v9431_v1, %v5461_v7  ;;  %v5462_v54 = vmul.f32 %v9425_v44, %v5431_v58  ;;  %v5537_v30 = vmax.f32 %v5523_v12, %v5531_v3  ;;  %v6603_v7 = vpack.c.bf16 %v5836_v52, %v5835_v22 }
 0x71e   :  { %v5487_v45 = vadd.f32 %v9431_v1, %v5464_v55  ;;  %v5502_v43 = vmax.f32 %v5486_v39, 0.0  ;;  %v5837_v39 = vld [vmem:[%s9620_s14 + $0x60] sm:$0xff]  ;;  %v5838_v55 = vld [vmem:[%s9620_s14 + $0x68] sm:$0xff] }
 0x71f   :  { %v5485_v34 = vadd.f32 %v9431_v1, %v5462_v54  ;;  %v5634_v46 = vpop.f32.mrb[48].mxu1  ;;  %v5541_v15 = vsel %vm5512_vm7, %v5537_v30, 0.0  ;;  %v5500_v1 = vmax.f32 %v5484_v49, 0.0  ;;  %v6606_v49 = vpack.c.bf16 %v5838_v55, %v5837_v39 }
 0x720   :  { %v5503_v14 = vmax.f32 %v5487_v45, 0.0  ;;  %v5645_v44 = vmul.f32 %v6142_v36, %v5634_v46  ;;  %v6464_v10 = vpop.f32.mrb[49].mxu1  ;;  %v5542_v19 = vadd.f32 %v5541_v15, %v5540_v63  ;;  %v5839_v45 = vld [vmem:[%s9620_s14 + $0x70] sm:$0xff]  ;;  %v5920_v15 = vld [vmem:[%s9621_s16 + $0x8] sm:$0xff] }
 0x721   :  { %v5501_v20 = vmax.f32 %v5485_v34, 0.0  ;;  %v5840_v34 = vld [vmem:[%s9620_s14 + $0x78] sm:$0xff]  ;;  %v5923_v10 = vld [vmem:[%s9621_s16 + $0x20] sm:$0xff] }
 0x722   :  { %v5511_v5 = vmax.f32 %v5502_v43, %v5503_v14  ;;  %v5653_v9 = vadd.f32 %v6143_v11, %v5645_v44  ;;  %v5543_v57 = vrot.slane %v5542_v19, 4  ;;  %v6609_v46 = vpack.c.bf16 %v5840_v34, %v5839_v45  ;;  %v5919_v11 = vld [vmem:[%s9621_s16] sm:$0xff]  ;;  %v5922_v14 = vld [vmem:[%s9621_s16 + $0x18] sm:$0xff] }
 0x723   :  { %v5510_v27 = vmax.f32 %v5500_v1, %v5501_v20  ;;  %v6612_v43 = vpack.c.bf16 %v5920_v15, %v5919_v11  ;;  %v6618_v25 = vpack.c.bf16 %v5924_v62, %v5923_v10 }
 0x724   :  { %5520 = vst.msk [vmem:[#allocation7 + $0x38] sm:$0xff] %vm5512_vm7, %v5511_v5  ;;  %v5654_v26 = vmax.f32 %v5653_v9, 0.0  ;;  %v5525_v60 = vld [vmem:[#allocation7 + $0x20] ss:$2 sm:$0xff]  ;;  %v5533_v56 = vld [vmem:[#allocation7 + $0x21] ss:$2 sm:$0xff]  ;;  %v5544_v38 = vadd.f32 %v5543_v57, %v5542_v19 }
 0x725   :  { %5519 = vst.msk [vmem:[#allocation7 + $0x30] sm:$0xff] %vm5512_vm7, %v5510_v27  ;;  %v5538_v23 = vmax.f32 %v5525_v60, %v5533_v56  ;;  %v6146_v5 = vld [vmem:[%s9622_s13] ss:$0 sm:$0xff]  ;;  %v25_v60 = vstv %s9624_s19 }
 0x726   :  { %6482 = vmatmul.mubr.msk.f32.vlgmr.msra.gmra.mrb[64].mxu0 %vm5512_vm7, %v5654_v26  ;;  %v5545_v29 = vrot.slane %v5544_v38, 2  ;;  %v5926_v26 = vld [vmem:[%s9621_s16 + $0x38] sm:$0xff]  ;;  %26 = vst [vmem:[#allocation8] sm:$0x1] %v25_v60  ;;  %v6148_v56 = vld [vmem:[%s9625_s17] ss:$0 sm:$0xff] }
 0x727   :  { %6589 = vmatpush3.bf16.msra.mxu0 %v6588_v13  ;;  %6535 = vmatprep.mubr.msk.f32.mxu0 %vm6690_vm5, %v6677_v0  ;;  %v5551_v42 = vsel %vm5512_vm7, %v5538_v23, 0.0  ;;  %v5925_v13 = vld [vmem:[%s9621_s16 + $0x30] sm:$0xff] }
 0x728   :  { %6590 = vmatprep.subr.bf16.mxu0 %v6691_v6  ;;  %v5546_v24 = vadd.f32 %v5545_v29, %v5544_v38 }
 0x72a   :  { %v5547_v28 = vrot.slane %v5546_v24, 1 }
 0x72b   :  { %6592 = vmatpush3.bf16.msra.mxu0 %v6591_v37 }
 0x72c   :  { %v5527_v61 = vld [vmem:[#allocation7 + $0x30] ss:$2 sm:$0xff]  ;;  %v5535_v50 = vld [vmem:[#allocation7 + $0x31] ss:$2 sm:$0xff]  ;;  %6593 = vmatprep.subr.bf16.mxu0 %v6691_v6  ;;  %v5548_v12 = vadd.f32 %v5547_v28, %v5546_v24 }
 0x72d   :  { %v5539_v59 = vmax.f32 %v5527_v61, %v5535_v50 }
 0x72e   :  { %v5550_v36 = vmul.f32 0.0625, %v5548_v12 }
 0x72f   :  { %v5552_v2 = vsel %vm5512_vm7, %v5539_v59, 0.0  ;;  %6595 = vmatpush3.bf16.msra.mxu0 %v6594_v41  ;;  %v6151_v59 = vld [vmem:[%s9626_s18] ss:$0 sm:$0xff] }
 0x730   :  { %v5553_v47 = vadd.f32 %v5552_v2, %v5551_v42  ;;  %6596 = vmatprep.subr.bf16.mxu0 %v6691_v6 }
 0x732   :  { %v5554_v32 = vrot.slane %v5553_v47, 4 }
 0x733   :  { %6598 = vmatpush3.bf16.msra.mxu0 %v6597_v35  ;;  %v6152_v35 = vld [vmem:[#allocation8] ss:$0 sm:$0xff] }
 0x734   :  { %v5555_v40 = vadd.f32 %v5554_v32, %v5553_v47  ;;  %6599 = vmatprep.subr.bf16.mxu0 %v6691_v6 }
 0x736   :  { %v5556_v8 = vrot.slane %v5555_v40, 2 }
 0x737   :  { %6601 = vmatpush3.bf16.msra.mxu0 %v6600_v17 }
 0x738   :  { %v5557_v58 = vadd.f32 %v5556_v8, %v5555_v40  ;;  %6602 = vmatprep.subr.bf16.mxu0 %v6691_v6 }
 0x73a   :  { %v5558_v3 = vrot.slane %v5557_v58, 1 }
 0x73b   :  { %6604 = vmatpush3.bf16.msra.mxu0 %v6603_v7 }
 0x73c   :  { %v5559_v54 = vadd.f32 %v5558_v3, %v5557_v58  ;;  %6605 = vmatprep.subr.bf16.mxu0 %v6691_v6 }
 0x73e   :  { %v5560_v4 = vmul.f32 0.0625, %v5559_v54 }
 0x73f   :  { %6607 = vmatpush3.bf16.msra.mxu0 %v6606_v49 }
 0x740   :  { %v5561_v30 = vsel %vm3775_vm2, %v5550_v36, %v5560_v4  ;;  %6608 = vmatprep.subr.bf16.mxu0 %v6691_v6  ;;  %vm6023_vm2 = vcmask 1041408  }
 0x741   :  { %6501 = vmatmul.mubr.msk.f32.vlgmr.msra.gmra.mrb[50].mxu1 %vm5512_vm7, %v5561_v30 }
 0x742   :  { %6554 = vmatprep.mubr.msk.f32.mxu1 %vm6690_vm5, %v6677_v0  ;;  %v5921_v0 = vld [vmem:[%s9621_s16 + $0x10] sm:$0xff]  ;;  %6613 = vmatpush3.bf16.msra.mxu1 %v6612_v43 }
 0x743   :  { %6610 = vmatpush3.bf16.msra.mxu0 %v6609_v46  ;;  %v6615_v44 = vpack.c.bf16 %v5922_v14, %v5921_v0  ;;  %6614 = vmatprep.subr.bf16.mxu1 %v6691_v6 }
 0x746   :  { %6616 = vmatpush3.bf16.msra.mxu1 %v6615_v44 }
 0x747   :  { %6617 = vmatprep.subr.bf16.mxu1 %v6691_v6 }
 0x74a   :  { %6619 = vmatpush3.bf16.msra.mxu1 %v6618_v25 }
 0x74b   :  { %6620 = vmatprep.subr.bf16.mxu1 %v6691_v6  ;;  %v6621_v6 = vpack.c.bf16 %v5926_v26, %v5925_v13 }
 0x74e   :  { %6622 = vmatpush3.bf16.msra.mxu1 %v6621_v6 }
 0x7f9   :  { %v5740_v1 = vpop.f32.mrb[64].mxu0 }
 0x7fa   :  { %v6483_v20 = vpop.f32.mrb[65].mxu0 }
 0x814   :  { %v5813_v63 = vpop.f32.mrb[50].mxu1 }
 0x815   :  { %v5814_v9 = vadd.f32 %v5813_v63, %v5740_v1  ;;  %v6502_v19 = vpop.f32.mrb[51].mxu1 }
 0x817   :  { %v5824_v27 = vadd.f32 %v6146_v5, %v5814_v9 }
 0x819   :  { %6536 = vmatmul.mubr.f32.vlgmr.msra.gmra.mrb[66].mxu0 %v5824_v27 }
 0x8ec   :  { %v5914_v51 = vpop.f32.mrb[66].mxu0 }
 0x8ed   :  { %v5915_v57 = vadd.f32 %v6147_v31, %v5914_v51  ;;  %v6537_v37 = vpop.f32.mrb[67].mxu0 }
 0x8ef   :  { %v5918_v16 = vmax.f32 %v5915_v57, 0.0 }
 0x8f1   :  { %6555 = vmatmul.mubr.msk.f32.vlgmr.msra.gmra.mrb[52].mxu1 %vm5512_vm7, %v5918_v16 }
 0x9c4   :  { %v6003_v33 = vpop.f32.mrb[52].mxu1 }
 0x9c5   :  { %v6004_v38 = vadd.f32 %v6148_v56, %v6003_v33  ;;  %v6556_v23 = vpop.f32.mrb[53].mxu1 }
 0x9c7   :  { %v6150_v41 = vmul.f32 -1.442695, %v6004_v38 }
 0x9c9   :  { %6656 = vpow2.f32 %v6150_v41 }
 0x9d3   :  { %v6657_v21 = vpop.eup %6656 }
 0x9d4   :  { %v6010_v61 = vadd.f32 1.0, %v6657_v21 }
 0x9d6   :  { %6658 = vrcp.f32 %v6010_v61 }
 0x9e0   :  { %v6659_v50 = vpop.eup %6658 }
 0x9e1   :  { %v6013_v18 = vmul.f32 %v6659_v50, %v5824_v27 }
 0x9e3   :  { %v6014_v29 = vmax.f32 %v6013_v18, 0.0 }
 0x9e5   :  { %v6022_v42 = vmul.f32 %v6151_v59, %v6014_v29 }
 0x9e7   :  { %v6024_v2 = vsel %vm6023_vm2, %v6022_v42, 0.0 }
 0x9e8   :  { %6025 = vadd.xlane.f32.xlu0 %v6024_v2 }
 0xa75   :  { %v6026_v47 = vpop.xlane.xlu0 %6025 }
 0xa76   :  { %v6034_v53 = vadd.f32 %v6152_v35, %v6026_v47 }
 0xa78   :  { %v6153_v48 = vmul.f32 -1.442695, %v6034_v53 }
 0xa7a   :  { %6660 = vpow2.f32 %v6153_v48 }
 0xa84   :  { %v6661_v24 = vpop.eup %6660 }
 0xa85   :  { %v6038_v32 = vadd.f32 1.0, %v6661_v24 }
 0xa87   :  { %6662 = vrcp.f32 %v6038_v32 }
 0xa91   :  { %v6663_v17 = vpop.eup %6662 }
 0xa92   :  { %6041 = vst.msk [vmem:[%s9627_s20] sm:$0x3] %vm71_vm1, %v6663_v17 }

</bundles_post_ra>
